<compile_context>
chip_gen: v6e
topology: v6e:2x2x1
jax: 0.10.0
libtpu: 0.0.40
codegen_flags: <defaults>
</compile_context>

<pallas_src>
import numpy as np

import jax
import jax.numpy as jnp
from jax.experimental import pallas as pl
from jax.experimental.pallas import tpu as pltpu


# ----------------------------------------------------------------------------
# Static geometry (per grid step / per block of TB images).
# Per-image activation row pitch is 32 (= conv1 output height), so every
# image-internal row shift used below stays inside one image's 32 rows.
# ----------------------------------------------------------------------------
TB = 16                 # images per grid step (multiple of 8)
F = TB * 32             # valid activation rows per block
R0 = F + 16             # rows of the folded input / conv1 output (16 slack
                        # zero rows at the end of each block keep slices legal)
R1 = F + 12             # rows of the pool1 map
R2 = F + 4              # rows of the conv2 output / pool2-w map
K1 = 5 * 36             # conv1 matmul K: 5 h-taps x 36 padded columns


# ----------------------------------------------------------------------------
# The fused Pallas kernel: one grid step == TB images.
# ----------------------------------------------------------------------------
def _lenet_kernel(x_ref, w1_ref, w2_ref, wf1_ref, wf23_ref, b_ref, out_ref):
    f32 = jnp.float32
    bf16 = jnp.bfloat16
    b = b_ref[...]                                             # (8, 256) f32

    # ---- conv1 + bias + ReLU: one MXU matmul, (R0,180) x (180,256).
    # Output lane = d*128 + bcol*6 + c  (d = w-parity for pool1, bcol = w//2).
    y1 = jnp.dot(x_ref[...], w1_ref[...], preferred_element_type=f32)
    y1 = jnp.maximum(y1 + b[0:1, :], 0.0)                      # (R0, 256)

    # ---- pool1: w via the two 128-lane halves, h via a +1-row max.
    pw = jnp.maximum(y1[:, 0:128], y1[:, 128:256])             # (R0, 128)
    m = jnp.maximum(pw[0:R1, :], pw[1:R1 + 1, :])              # (R1, 128)
    mb = m.astype(bf16)
    # pooled(img t, ph, pcol, ci) sits at row 32*t + 2*ph, lane pcol*6 + ci.

    # ---- conv2 + bias + ReLU: 5 matmuls (one per kernel row i), K = 128
    # lanes (16 pooled cols x 6 in-ch), N = 256 lanes = e*128 + vo*16 + co.
    y2 = jnp.zeros((R2, 256), f32)
    for i in range(5):
        y2 = y2 + jnp.dot(mb[2 * i: 2 * i + R2, :], w2_ref[i],
                          preferred_element_type=f32)
    y2 = jnp.maximum(y2 + b[1:2, :], 0.0)                      # (R2, 256)

    # ---- pool2: w(v) via lane halves, h(u) via a +2-row max.
    pw2 = jnp.maximum(y2[:, 0:128], y2[:, 128:256])            # (R2, 128)
    p2 = jnp.maximum(pw2[0:F, :], pw2[2:F + 2, :])             # (F, 128)
    p2b = p2.astype(bf16)
    # pooled2(img t, uo, vo, co) sits at row 32*t + 4*uo, lane vo*16 + co.

    # ---- fc1: gather the 6 uo-rows of every image with 0/1 selection
    # matmuls (the MXU does the row gather), then contract with the per-uo
    # block of the fc1 weight (PyTorch NCHW flatten order folded in there).
    row_id = jax.lax.broadcasted_iota(jnp.int32, (TB, F), 1)
    img_id = jax.lax.broadcasted_iota(jnp.int32, (TB, F), 0)
    h1 = jnp.zeros((TB, 128), f32)
    for uo in range(6):
        sel = (row_id == 32 * img_id + 4 * uo).astype(bf16)    # (TB, F)
        rows = jnp.dot(sel, p2b, preferred_element_type=f32)   # (TB, 128)
        h1 = h1 + jnp.dot(rows.astype(bf16), wf1_ref[uo],
                          preferred_element_type=f32)
    h1 = jnp.maximum(h1 + b[2:3, 0:128], 0.0)                  # (TB, 128)

    # ---- fc2 + ReLU, fc3 (f32 operands: negligible cost, best accuracy).
    h2 = jnp.maximum(
        jnp.dot(h1, wf23_ref[0], preferred_element_type=f32) + b[3:4, 0:128],
        0.0)
    out = jnp.dot(h2, wf23_ref[1], preferred_element_type=f32) + b[4:5, 0:128]
    out_ref[...] = out                                         # (TB, 128)


# ----------------------------------------------------------------------------
# Parameters (PyTorch-shaped) and their one-time re-layout for the kernel.
# ----------------------------------------------------------------------------
def init_params(key):
    ks = jax.random.split(key, 10)
    return {
        "conv1_w": jax.random.normal(ks[0], (6, 1, 5, 5), jnp.float32) * 0.1,
        "conv1_b": jax.random.normal(ks[1], (6,), jnp.float32) * 0.01,
        "conv2_w": jax.random.normal(ks[2], (16, 6, 5, 5), jnp.float32) * 0.1,
        "conv2_b": jax.random.normal(ks[3], (16,), jnp.float32) * 0.01,
        "fc1_w": jax.random.normal(ks[4], (120, 576), jnp.float32) * 0.05,
        "fc1_b": jax.random.normal(ks[5], (120,), jnp.float32) * 0.01,
        "fc2_w": jax.random.normal(ks[6], (84, 120), jnp.float32) * 0.05,
        "fc2_b": jax.random.normal(ks[7], (84,), jnp.float32) * 0.01,
        "fc3_w": jax.random.normal(ks[8], (2, 84), jnp.float32) * 0.05,
        "fc3_b": jax.random.normal(ks[9], (2,), jnp.float32) * 0.01,
    }


def prepare_params(p):
    cw1 = np.asarray(p["conv1_w"], np.float32)     # (6,1,5,5)
    cb1 = np.asarray(p["conv1_b"], np.float32)
    cw2 = np.asarray(p["conv2_w"], np.float32)     # (16,6,5,5)
    cb2 = np.asarray(p["conv2_b"], np.float32)
    fw1 = np.asarray(p["fc1_w"], np.float32)       # (120,576)
    fb1 = np.asarray(p["fc1_b"], np.float32)
    fw2 = np.asarray(p["fc2_w"], np.float32)       # (84,120)
    fb2 = np.asarray(p["fc2_b"], np.float32)
    fw3 = np.asarray(p["fc3_w"], np.float32)       # (2,84)
    fb3 = np.asarray(p["fc3_b"], np.float32)

    # conv1: W1[i*36 + w_in, d*128 + bcol*6 + c] = cw1[c,0,i, w_in - (2b+d)].
    w1 = np.zeros((K1, 256), np.float32)
    b1 = np.zeros((256,), np.float32)
    for bcol in range(16):
        for d in range(2):
            col = d * 128 + bcol * 6
            w_out = 2 * bcol + d
            b1[col: col + 6] = cb1
            for i in range(5):
                for j in range(5):
                    w1[i * 36 + w_out + j, col: col + 6] = cw1[:, 0, i, j]

    # conv2: W2[i, pcol*6 + ci, e*128 + vo*16 + co] = cw2[co,ci,i, pcol-(2vo+e)].
    w2 = np.zeros((5, 128, 256), np.float32)
    b2 = np.zeros((256,), np.float32)
    for vo in range(6):
        for e in range(2):
            col = e * 128 + vo * 16
            v = 2 * vo + e
            b2[col: col + 16] = cb2
            for i in range(5):
                for j in range(5):
                    pcol = v + j
                    for ci in range(6):
                        w2[i, pcol * 6 + ci, col: col + 16] = cw2[:, ci, i, j]

    # fc1 (PyTorch (C,H,W) flatten order): Wf1[uo, vo*16+co, f] = fw1[f, co*36+uo*6+vo].
    wf1 = np.zeros((6, 128, 128), np.float32)
    for uo in range(6):
        for vo in range(6):
            for co in range(16):
                wf1[uo, vo * 16 + co, :120] = fw1[:, co * 36 + uo * 6 + vo]
    bf1 = np.zeros((128,), np.float32)
    bf1[:120] = fb1

    # fc2 / fc3, zero-padded to 128x128 so the output block is lane-dense.
    wf23 = np.zeros((2, 128, 128), np.float32)
    wf23[0, :120, :84] = fw2.T
    wf23[1, :84, :2] = fw3.T
    bf2 = np.zeros((128,), np.float32)
    bf2[:84] = fb2
    bf3 = np.zeros((128,), np.float32)
    bf3[:2] = fb3

    bias = np.zeros((8, 256), np.float32)
    bias[0] = b1
    bias[1] = b2
    bias[2, :128] = bf1
    bias[3, :128] = bf2
    bias[4, :128] = bf3

    return {
        "w1": jnp.asarray(w1, jnp.bfloat16),
        "w2": jnp.asarray(w2, jnp.bfloat16),
        "wf1": jnp.asarray(wf1, jnp.bfloat16),
        "wf23": jnp.asarray(wf23, jnp.float32),
        "bias": jnp.asarray(bias, jnp.float32),
    }


def _prep_input(x_nchw, nb):
    """(N,1,32,32) -> (nb*R0, 180) bf16 folded rows.

    Row 32*t + h (within a block) holds the 5 h-taps x 36 padded columns of
    image t needed to produce conv1 output row h; 16 zero slack rows close
    each block so all in-kernel slices stay in bounds.
    """
    n = x_nchw.shape[0]
    npad = nb * TB
    x = x_nchw[:, 0, :, :].astype(jnp.float32)                 # (n, 32, 32)
    x = jnp.pad(x, ((0, npad - n), (2, 2), (2, 2)))            # (npad, 36, 36)
    taps = [x[:, i:i + 32, :] for i in range(5)]               # 5 x (npad,32,36)
    xf = jnp.concatenate(taps, axis=-1)                        # (npad, 32, 180)
    xf = xf.reshape(nb, F, K1)
    xf = jnp.pad(xf, ((0, 0), (0, R0 - F), (0, 0)))            # (nb, R0, 180)
    return xf.reshape(nb * R0, K1).astype(jnp.bfloat16)


@jax.jit
def lenet_forward(x_nchw, pp):
    n = x_nchw.shape[0]
    nb = -(-n // TB)
    x2 = _prep_input(x_nchw, nb)
    out = pl.pallas_call(
        _lenet_kernel,
        out_shape=jax.ShapeDtypeStruct((nb * TB, 128), jnp.float32),
        grid=(nb,),
        in_specs=[
            pl.BlockSpec((R0, K1), lambda i: (i, 0)),
            pl.BlockSpec((K1, 256), lambda i: (0, 0)),
            pl.BlockSpec((5, 128, 256), lambda i: (0, 0, 0)),
            pl.BlockSpec((6, 128, 128), lambda i: (0, 0, 0)),
            pl.BlockSpec((2, 128, 128), lambda i: (0, 0, 0)),
            pl.BlockSpec((8, 256), lambda i: (0, 0)),
        ],
        out_specs=pl.BlockSpec((TB, 128), lambda i: (i, 0)),
        compiler_params=pltpu.CompilerParams(
            dimension_semantics=("parallel",),
            vmem_limit_bytes=32 * 1024 * 1024,
        ),
    )(x2, pp["w1"], pp["w2"], pp["wf1"], pp["wf23"], pp["bias"])
    return out[:n, :2]


# ----------------------------------------------------------------------------
# Pure-JAX reference (mirrors the PyTorch module) for the correctness check.
# ----------------------------------------------------------------------------
@jax.jit
def reference_forward(x_nchw, p):
    dn = ("NCHW", "OIHW", "NCHW")
    hi = jax.lax.Precision.HIGHEST
    y = jax.lax.conv_general_dilated(
        x_nchw, p["conv1_w"], (1, 1), ((2, 2), (2, 2)),
        dimension_numbers=dn, precision=hi)
    y = jax.nn.relu(y + p["conv1_b"].reshape(1, 6, 1, 1))
    y = jax.lax.reduce_window(y, -jnp.inf, jax.lax.max,
                              (1, 1, 2, 2), (1, 1, 2, 2), "VALID")
    y = jax.lax.conv_general_dilated(
        y, p["conv2_w"], (1, 1), ((0, 0), (0, 0)),
        dimension_numbers=dn, precision=hi)
    y = jax.nn.relu(y + p["conv2_b"].reshape(1, 16, 1, 1))
    y = jax.lax.reduce_window(y, -jnp.inf, jax.lax.max,
                              (1, 1, 2, 2), (1, 1, 2, 2), "VALID")
    flat = y.reshape(y.shape[0], -1)                           # NCHW flatten
    h = jax.nn.relu(flat @ p["fc1_w"].T + p["fc1_b"])
    h = jax.nn.relu(h @ p["fc2_w"].T + p["fc2_b"])
    return h @ p["fc3_w"].T + p["fc3_b"]


# ----------------------------------------------------------------------------
if __name__ == "__main__":
    key = jax.random.PRNGKey(0)
    k_x, k_p = jax.random.split(key)

    # LeNet's fc1 (16*6*6) implies 32x32 single-channel input.
    x = jax.random.normal(k_x, (2, 1, 32, 32), jnp.float32)
    params = init_params(k_p)
    prepped = prepare_params(params)

    out = jax.block_until_ready(lenet_forward(x, prepped))
    assert out.shape == (2, 2)
    assert bool(jnp.all(jnp.isfinite(out)))

    ref = jax.block_until_ready(reference_forward(x, params))
    err = float(jnp.max(jnp.abs(out - ref)))
    # bf16 matmul operands (f32 accumulation) vs an f32 HIGHEST reference.
    assert err < 5e-2, f"mismatch vs reference: {err}"

    print("KERNEL_OK")
</pallas_src>

<mosaic_0001>
module attributes {stable_mosaic.version = 11 : i64} {
  func.func @_lenet_kernel(%arg0: i32, %arg1: memref<528x180xbf16, #tpu.memory_space<vmem>>, %arg2: memref<180x256xbf16, #tpu.memory_space<vmem>>, %arg3: memref<5x128x256xbf16, #tpu.memory_space<vmem>>, %arg4: memref<6x128x128xbf16, #tpu.memory_space<vmem>>, %arg5: memref<2x128x128xf32, #tpu.memory_space<vmem>>, %arg6: memref<8x256xf32, #tpu.memory_space<vmem>>, %arg7: memref<16x128xf32, #tpu.memory_space<vmem>>) attributes {dimension_semantics = [#tpu.dimension_semantics<parallel>], iteration_bounds = array<i64: 1>, scalar_prefetch = 0 : i64, scratch_operands = 0 : i64, tpu.core_type = #tpu.core_type<tc>, window_params = [{transform_indices = @transform_0, window_bounds = array<i64: 528, 180>}, {pipeline_mode = #tpu.pipeline_mode<synchronous>, transform_indices = @transform_1, window_bounds = array<i64: 180, 256>}, {pipeline_mode = #tpu.pipeline_mode<synchronous>, transform_indices = @transform_2, window_bounds = array<i64: 5, 128, 256>}, {pipeline_mode = #tpu.pipeline_mode<synchronous>, transform_indices = @transform_3, window_bounds = array<i64: 6, 128, 128>}, {pipeline_mode = #tpu.pipeline_mode<synchronous>, transform_indices = @transform_4, window_bounds = array<i64: 2, 128, 128>}, {pipeline_mode = #tpu.pipeline_mode<synchronous>, transform_indices = @transform_5, window_bounds = array<i64: 8, 256>}, {transform_indices = @transform_6, window_bounds = array<i64: 16, 128>}]} {
    %c0 = arith.constant 0 : index
    %c0_0 = arith.constant 0 : index
    %0 = vector.load %arg6[%c0, %c0_0] : memref<8x256xf32, #tpu.memory_space<vmem>>, vector<8x256xf32>
    %c0_1 = arith.constant 0 : index
    %c0_2 = arith.constant 0 : index
    %1 = vector.load %arg1[%c0_1, %c0_2] : memref<528x180xbf16, #tpu.memory_space<vmem>>, vector<528x180xbf16>
    %c0_3 = arith.constant 0 : index
    %c0_4 = arith.constant 0 : index
    %2 = vector.load %arg2[%c0_3, %c0_4] : memref<180x256xbf16, #tpu.memory_space<vmem>>, vector<180x256xbf16>
    %cst = arith.constant dense<0.000000e+00> : vector<528x256xf32>
    %3 = tpu.matmul %1, %2, %cst {dimension_numbers = #tpu.dot_dimension_numbers<[1], [0], [0], [1], [0, 0, 1, 1], [], []>} : vector<528x180xbf16>, vector<180x256xbf16>, vector<528x256xf32> -> vector<528x256xf32>
    %4 = vector.extract_strided_slice %0 {offsets = [0, 0], sizes = [1, 256], strides = [1, 1]} : vector<8x256xf32> to vector<1x256xf32>
    %5 = vector.broadcast %4 : vector<1x256xf32> to vector<528x256xf32>
    %6 = arith.addf %3, %5 : vector<528x256xf32>
    %cst_5 = arith.constant 0.000000e+00 : f32
    %7 = vector.broadcast %cst_5 : f32 to vector<528x256xf32>
    %8 = arith.maximumf %6, %7 : vector<528x256xf32>
    %9 = vector.extract_strided_slice %8 {offsets = [0, 0], sizes = [528, 128], strides = [1, 1]} : vector<528x256xf32> to vector<528x128xf32>
    %10 = vector.extract_strided_slice %8 {offsets = [0, 128], sizes = [528, 128], strides = [1, 1]} : vector<528x256xf32> to vector<528x128xf32>
    %11 = arith.maximumf %9, %10 : vector<528x128xf32>
    %12 = vector.extract_strided_slice %11 {offsets = [0, 0], sizes = [524, 128], strides = [1, 1]} : vector<528x128xf32> to vector<524x128xf32>
    %13 = vector.extract_strided_slice %11 {offsets = [1, 0], sizes = [524, 128], strides = [1, 1]} : vector<528x128xf32> to vector<524x128xf32>
    %14 = arith.maximumf %12, %13 : vector<524x128xf32>
    %15 = arith.truncf %14 : vector<524x128xf32> to vector<524x128xbf16>
    %cst_6 = arith.constant 0.000000e+00 : f32
    %16 = vector.broadcast %cst_6 : f32 to vector<516x256xf32>
    %17 = vector.extract_strided_slice %15 {offsets = [0, 0], sizes = [516, 128], strides = [1, 1]} : vector<524x128xbf16> to vector<516x128xbf16>
    %c0_7 = arith.constant 0 : index
    %c0_8 = arith.constant 0 : index
    %c0_9 = arith.constant 0 : index
    %18 = vector.load %arg3[%c0_7, %c0_8, %c0_9] : memref<5x128x256xbf16, #tpu.memory_space<vmem>>, vector<1x128x256xbf16>
    %19 = vector.shape_cast %18 : vector<1x128x256xbf16> to vector<128x256xbf16>
    %cst_10 = arith.constant dense<0.000000e+00> : vector<516x256xf32>
    %20 = tpu.matmul %17, %19, %cst_10 {dimension_numbers = #tpu.dot_dimension_numbers<[1], [0], [0], [1], [0, 0, 1, 1], [], []>} : vector<516x128xbf16>, vector<128x256xbf16>, vector<516x256xf32> -> vector<516x256xf32>
    %21 = arith.addf %16, %20 : vector<516x256xf32>
    %22 = vector.extract_strided_slice %15 {offsets = [2, 0], sizes = [516, 128], strides = [1, 1]} : vector<524x128xbf16> to vector<516x128xbf16>
    %c1 = arith.constant 1 : index
    %c0_11 = arith.constant 0 : index
    %c0_12 = arith.constant 0 : index
    %23 = vector.load %arg3[%c1, %c0_11, %c0_12] : memref<5x128x256xbf16, #tpu.memory_space<vmem>>, vector<1x128x256xbf16>
    %24 = vector.shape_cast %23 : vector<1x128x256xbf16> to vector<128x256xbf16>
    %cst_13 = arith.constant dense<0.000000e+00> : vector<516x256xf32>
    %25 = tpu.matmul %22, %24, %cst_13 {dimension_numbers = #tpu.dot_dimension_numbers<[1], [0], [0], [1], [0, 0, 1, 1], [], []>} : vector<516x128xbf16>, vector<128x256xbf16>, vector<516x256xf32> -> vector<516x256xf32>
    %26 = arith.addf %21, %25 : vector<516x256xf32>
    %27 = vector.extract_strided_slice %15 {offsets = [4, 0], sizes = [516, 128], strides = [1, 1]} : vector<524x128xbf16> to vector<516x128xbf16>
    %c2 = arith.constant 2 : index
    %c0_14 = arith.constant 0 : index
    %c0_15 = arith.constant 0 : index
    %28 = vector.load %arg3[%c2, %c0_14, %c0_15] : memref<5x128x256xbf16, #tpu.memory_space<vmem>>, vector<1x128x256xbf16>
    %29 = vector.shape_cast %28 : vector<1x128x256xbf16> to vector<128x256xbf16>
    %cst_16 = arith.constant dense<0.000000e+00> : vector<516x256xf32>
    %30 = tpu.matmul %27, %29, %cst_16 {dimension_numbers = #tpu.dot_dimension_numbers<[1], [0], [0], [1], [0, 0, 1, 1], [], []>} : vector<516x128xbf16>, vector<128x256xbf16>, vector<516x256xf32> -> vector<516x256xf32>
    %31 = arith.addf %26, %30 : vector<516x256xf32>
    %32 = vector.extract_strided_slice %15 {offsets = [6, 0], sizes = [516, 128], strides = [1, 1]} : vector<524x128xbf16> to vector<516x128xbf16>
    %c3 = arith.constant 3 : index
    %c0_17 = arith.constant 0 : index
    %c0_18 = arith.constant 0 : index
    %33 = vector.load %arg3[%c3, %c0_17, %c0_18] : memref<5x128x256xbf16, #tpu.memory_space<vmem>>, vector<1x128x256xbf16>
    %34 = vector.shape_cast %33 : vector<1x128x256xbf16> to vector<128x256xbf16>
    %cst_19 = arith.constant dense<0.000000e+00> : vector<516x256xf32>
    %35 = tpu.matmul %32, %34, %cst_19 {dimension_numbers = #tpu.dot_dimension_numbers<[1], [0], [0], [1], [0, 0, 1, 1], [], []>} : vector<516x128xbf16>, vector<128x256xbf16>, vector<516x256xf32> -> vector<516x256xf32>
    %36 = arith.addf %31, %35 : vector<516x256xf32>
    %37 = vector.extract_strided_slice %15 {offsets = [8, 0], sizes = [516, 128], strides = [1, 1]} : vector<524x128xbf16> to vector<516x128xbf16>
    %c4 = arith.constant 4 : index
    %c0_20 = arith.constant 0 : index
    %c0_21 = arith.constant 0 : index
    %38 = vector.load %arg3[%c4, %c0_20, %c0_21] : memref<5x128x256xbf16, #tpu.memory_space<vmem>>, vector<1x128x256xbf16>
    %39 = vector.shape_cast %38 : vector<1x128x256xbf16> to vector<128x256xbf16>
    %cst_22 = arith.constant dense<0.000000e+00> : vector<516x256xf32>
    %40 = tpu.matmul %37, %39, %cst_22 {dimension_numbers = #tpu.dot_dimension_numbers<[1], [0], [0], [1], [0, 0, 1, 1], [], []>} : vector<516x128xbf16>, vector<128x256xbf16>, vector<516x256xf32> -> vector<516x256xf32>
    %41 = arith.addf %36, %40 : vector<516x256xf32>
    %42 = vector.extract_strided_slice %0 {offsets = [1, 0], sizes = [1, 256], strides = [1, 1]} : vector<8x256xf32> to vector<1x256xf32>
    %43 = vector.broadcast %42 : vector<1x256xf32> to vector<516x256xf32>
    %44 = arith.addf %41, %43 : vector<516x256xf32>
    %cst_23 = arith.constant 0.000000e+00 : f32
    %45 = vector.broadcast %cst_23 : f32 to vector<516x256xf32>
    %46 = arith.maximumf %44, %45 : vector<516x256xf32>
    %47 = vector.extract_strided_slice %46 {offsets = [0, 0], sizes = [516, 128], strides = [1, 1]} : vector<516x256xf32> to vector<516x128xf32>
    %48 = vector.extract_strided_slice %46 {offsets = [0, 128], sizes = [516, 128], strides = [1, 1]} : vector<516x256xf32> to vector<516x128xf32>
    %49 = arith.maximumf %47, %48 : vector<516x128xf32>
    %50 = vector.extract_strided_slice %49 {offsets = [0, 0], sizes = [512, 128], strides = [1, 1]} : vector<516x128xf32> to vector<512x128xf32>
    %51 = vector.extract_strided_slice %49 {offsets = [2, 0], sizes = [512, 128], strides = [1, 1]} : vector<516x128xf32> to vector<512x128xf32>
    %52 = arith.maximumf %50, %51 : vector<512x128xf32>
    %53 = arith.truncf %52 : vector<512x128xf32> to vector<512x128xbf16>
    %54 = tpu.iota {dimensions = array<i32: 1>} : vector<16x512xi32>
    %55 = tpu.iota {dimensions = array<i32: 0>} : vector<16x512xi32>
    %cst_24 = arith.constant 0.000000e+00 : f32
    %56 = vector.broadcast %cst_24 : f32 to vector<16x128xf32>
    %c32_i32 = arith.constant 32 : i32
    %57 = vector.broadcast %c32_i32 : i32 to vector<16x512xi32>
    %58 = arith.muli %57, %55 : vector<16x512xi32>
    %c0_i32 = arith.constant 0 : i32
    %59 = vector.broadcast %c0_i32 : i32 to vector<16x512xi32>
    %60 = arith.addi %58, %59 : vector<16x512xi32>
    %61 = arith.cmpi eq, %54, %60 : vector<16x512xi32>
    %62 = arith.extui %61 : vector<16x512xi1> to vector<16x512xi32>
    %63 = arith.sitofp %62 : vector<16x512xi32> to vector<16x512xf32>
    %64 = arith.truncf %63 : vector<16x512xf32> to vector<16x512xbf16>
    %cst_25 = arith.constant dense<0.000000e+00> : vector<16x128xf32>
    %65 = tpu.matmul %64, %53, %cst_25 {dimension_numbers = #tpu.dot_dimension_numbers<[1], [0], [0], [1], [0, 0, 1, 1], [], []>} : vector<16x512xbf16>, vector<512x128xbf16>, vector<16x128xf32> -> vector<16x128xf32>
    %66 = arith.truncf %65 : vector<16x128xf32> to vector<16x128xbf16>
    %c0_26 = arith.constant 0 : index
    %c0_27 = arith.constant 0 : index
    %c0_28 = arith.constant 0 : index
    %67 = vector.load %arg4[%c0_26, %c0_27, %c0_28] : memref<6x128x128xbf16, #tpu.memory_space<vmem>>, vector<1x128x128xbf16>
    %68 = vector.shape_cast %67 : vector<1x128x128xbf16> to vector<128x128xbf16>
    %cst_29 = arith.constant dense<0.000000e+00> : vector<16x128xf32>
    %69 = tpu.matmul %66, %68, %cst_29 {dimension_numbers = #tpu.dot_dimension_numbers<[1], [0], [0], [1], [0, 0, 1, 1], [], []>} : vector<16x128xbf16>, vector<128x128xbf16>, vector<16x128xf32> -> vector<16x128xf32>
    %70 = arith.addf %56, %69 : vector<16x128xf32>
    %c32_i32_30 = arith.constant 32 : i32
    %71 = vector.broadcast %c32_i32_30 : i32 to vector<16x512xi32>
    %72 = arith.muli %71, %55 : vector<16x512xi32>
    %c4_i32 = arith.constant 4 : i32
    %73 = vector.broadcast %c4_i32 : i32 to vector<16x512xi32>
    %74 = arith.addi %72, %73 : vector<16x512xi32>
    %75 = arith.cmpi eq, %54, %74 : vector<16x512xi32>
    %76 = arith.extui %75 : vector<16x512xi1> to vector<16x512xi32>
    %77 = arith.sitofp %76 : vector<16x512xi32> to vector<16x512xf32>
    %78 = arith.truncf %77 : vector<16x512xf32> to vector<16x512xbf16>
    %cst_31 = arith.constant dense<0.000000e+00> : vector<16x128xf32>
    %79 = tpu.matmul %78, %53, %cst_31 {dimension_numbers = #tpu.dot_dimension_numbers<[1], [0], [0], [1], [0, 0, 1, 1], [], []>} : vector<16x512xbf16>, vector<512x128xbf16>, vector<16x128xf32> -> vector<16x128xf32>
    %80 = arith.truncf %79 : vector<16x128xf32> to vector<16x128xbf16>
    %c1_32 = arith.constant 1 : index
    %c0_33 = arith.constant 0 : index
    %c0_34 = arith.constant 0 : index
    %81 = vector.load %arg4[%c1_32, %c0_33, %c0_34] : memref<6x128x128xbf16, #tpu.memory_space<vmem>>, vector<1x128x128xbf16>
    %82 = vector.shape_cast %81 : vector<1x128x128xbf16> to vector<128x128xbf16>
    %cst_35 = arith.constant dense<0.000000e+00> : vector<16x128xf32>
    %83 = tpu.matmul %80, %82, %cst_35 {dimension_numbers = #tpu.dot_dimension_numbers<[1], [0], [0], [1], [0, 0, 1, 1], [], []>} : vector<16x128xbf16>, vector<128x128xbf16>, vector<16x128xf32> -> vector<16x128xf32>
    %84 = arith.addf %70, %83 : vector<16x128xf32>
    %c32_i32_36 = arith.constant 32 : i32
    %85 = vector.broadcast %c32_i32_36 : i32 to vector<16x512xi32>
    %86 = arith.muli %85, %55 : vector<16x512xi32>
    %c8_i32 = arith.constant 8 : i32
    %87 = vector.broadcast %c8_i32 : i32 to vector<16x512xi32>
    %88 = arith.addi %86, %87 : vector<16x512xi32>
    %89 = arith.cmpi eq, %54, %88 : vector<16x512xi32>
    %90 = arith.extui %89 : vector<16x512xi1> to vector<16x512xi32>
    %91 = arith.sitofp %90 : vector<16x512xi32> to vector<16x512xf32>
    %92 = arith.truncf %91 : vector<16x512xf32> to vector<16x512xbf16>
    %cst_37 = arith.constant dense<0.000000e+00> : vector<16x128xf32>
    %93 = tpu.matmul %92, %53, %cst_37 {dimension_numbers = #tpu.dot_dimension_numbers<[1], [0], [0], [1], [0, 0, 1, 1], [], []>} : vector<16x512xbf16>, vector<512x128xbf16>, vector<16x128xf32> -> vector<16x128xf32>
    %94 = arith.truncf %93 : vector<16x128xf32> to vector<16x128xbf16>
    %c2_38 = arith.constant 2 : index
    %c0_39 = arith.constant 0 : index
    %c0_40 = arith.constant 0 : index
    %95 = vector.load %arg4[%c2_38, %c0_39, %c0_40] : memref<6x128x128xbf16, #tpu.memory_space<vmem>>, vector<1x128x128xbf16>
    %96 = vector.shape_cast %95 : vector<1x128x128xbf16> to vector<128x128xbf16>
    %cst_41 = arith.constant dense<0.000000e+00> : vector<16x128xf32>
    %97 = tpu.matmul %94, %96, %cst_41 {dimension_numbers = #tpu.dot_dimension_numbers<[1], [0], [0], [1], [0, 0, 1, 1], [], []>} : vector<16x128xbf16>, vector<128x128xbf16>, vector<16x128xf32> -> vector<16x128xf32>
    %98 = arith.addf %84, %97 : vector<16x128xf32>
    %c32_i32_42 = arith.constant 32 : i32
    %99 = vector.broadcast %c32_i32_42 : i32 to vector<16x512xi32>
    %100 = arith.muli %99, %55 : vector<16x512xi32>
    %c12_i32 = arith.constant 12 : i32
    %101 = vector.broadcast %c12_i32 : i32 to vector<16x512xi32>
    %102 = arith.addi %100, %101 : vector<16x512xi32>
    %103 = arith.cmpi eq, %54, %102 : vector<16x512xi32>
    %104 = arith.extui %103 : vector<16x512xi1> to vector<16x512xi32>
    %105 = arith.sitofp %104 : vector<16x512xi32> to vector<16x512xf32>
    %106 = arith.truncf %105 : vector<16x512xf32> to vector<16x512xbf16>
    %cst_43 = arith.constant dense<0.000000e+00> : vector<16x128xf32>
    %107 = tpu.matmul %106, %53, %cst_43 {dimension_numbers = #tpu.dot_dimension_numbers<[1], [0], [0], [1], [0, 0, 1, 1], [], []>} : vector<16x512xbf16>, vector<512x128xbf16>, vector<16x128xf32> -> vector<16x128xf32>
    %108 = arith.truncf %107 : vector<16x128xf32> to vector<16x128xbf16>
    %c3_44 = arith.constant 3 : index
    %c0_45 = arith.constant 0 : index
    %c0_46 = arith.constant 0 : index
    %109 = vector.load %arg4[%c3_44, %c0_45, %c0_46] : memref<6x128x128xbf16, #tpu.memory_space<vmem>>, vector<1x128x128xbf16>
    %110 = vector.shape_cast %109 : vector<1x128x128xbf16> to vector<128x128xbf16>
    %cst_47 = arith.constant dense<0.000000e+00> : vector<16x128xf32>
    %111 = tpu.matmul %108, %110, %cst_47 {dimension_numbers = #tpu.dot_dimension_numbers<[1], [0], [0], [1], [0, 0, 1, 1], [], []>} : vector<16x128xbf16>, vector<128x128xbf16>, vector<16x128xf32> -> vector<16x128xf32>
    %112 = arith.addf %98, %111 : vector<16x128xf32>
    %c32_i32_48 = arith.constant 32 : i32
    %113 = vector.broadcast %c32_i32_48 : i32 to vector<16x512xi32>
    %114 = arith.muli %113, %55 : vector<16x512xi32>
    %c16_i32 = arith.constant 16 : i32
    %115 = vector.broadcast %c16_i32 : i32 to vector<16x512xi32>
    %116 = arith.addi %114, %115 : vector<16x512xi32>
    %117 = arith.cmpi eq, %54, %116 : vector<16x512xi32>
    %118 = arith.extui %117 : vector<16x512xi1> to vector<16x512xi32>
    %119 = arith.sitofp %118 : vector<16x512xi32> to vector<16x512xf32>
    %120 = arith.truncf %119 : vector<16x512xf32> to vector<16x512xbf16>
    %cst_49 = arith.constant dense<0.000000e+00> : vector<16x128xf32>
    %121 = tpu.matmul %120, %53, %cst_49 {dimension_numbers = #tpu.dot_dimension_numbers<[1], [0], [0], [1], [0, 0, 1, 1], [], []>} : vector<16x512xbf16>, vector<512x128xbf16>, vector<16x128xf32> -> vector<16x128xf32>
    %122 = arith.truncf %121 : vector<16x128xf32> to vector<16x128xbf16>
    %c4_50 = arith.constant 4 : index
    %c0_51 = arith.constant 0 : index
    %c0_52 = arith.constant 0 : index
    %123 = vector.load %arg4[%c4_50, %c0_51, %c0_52] : memref<6x128x128xbf16, #tpu.memory_space<vmem>>, vector<1x128x128xbf16>
    %124 = vector.shape_cast %123 : vector<1x128x128xbf16> to vector<128x128xbf16>
    %cst_53 = arith.constant dense<0.000000e+00> : vector<16x128xf32>
    %125 = tpu.matmul %122, %124, %cst_53 {dimension_numbers = #tpu.dot_dimension_numbers<[1], [0], [0], [1], [0, 0, 1, 1], [], []>} : vector<16x128xbf16>, vector<128x128xbf16>, vector<16x128xf32> -> vector<16x128xf32>
    %126 = arith.addf %112, %125 : vector<16x128xf32>
    %c32_i32_54 = arith.constant 32 : i32
    %127 = vector.broadcast %c32_i32_54 : i32 to vector<16x512xi32>
    %128 = arith.muli %127, %55 : vector<16x512xi32>
    %c20_i32 = arith.constant 20 : i32
    %129 = vector.broadcast %c20_i32 : i32 to vector<16x512xi32>
    %130 = arith.addi %128, %129 : vector<16x512xi32>
    %131 = arith.cmpi eq, %54, %130 : vector<16x512xi32>
    %132 = arith.extui %131 : vector<16x512xi1> to vector<16x512xi32>
    %133 = arith.sitofp %132 : vector<16x512xi32> to vector<16x512xf32>
    %134 = arith.truncf %133 : vector<16x512xf32> to vector<16x512xbf16>
    %cst_55 = arith.constant dense<0.000000e+00> : vector<16x128xf32>
    %135 = tpu.matmul %134, %53, %cst_55 {dimension_numbers = #tpu.dot_dimension_numbers<[1], [0], [0], [1], [0, 0, 1, 1], [], []>} : vector<16x512xbf16>, vector<512x128xbf16>, vector<16x128xf32> -> vector<16x128xf32>
    %136 = arith.truncf %135 : vector<16x128xf32> to vector<16x128xbf16>
    %c5 = arith.constant 5 : index
    %c0_56 = arith.constant 0 : index
    %c0_57 = arith.constant 0 : index
    %137 = vector.load %arg4[%c5, %c0_56, %c0_57] : memref<6x128x128xbf16, #tpu.memory_space<vmem>>, vector<1x128x128xbf16>
    %138 = vector.shape_cast %137 : vector<1x128x128xbf16> to vector<128x128xbf16>
    %cst_58 = arith.constant dense<0.000000e+00> : vector<16x128xf32>
    %139 = tpu.matmul %136, %138, %cst_58 {dimension_numbers = #tpu.dot_dimension_numbers<[1], [0], [0], [1], [0, 0, 1, 1], [], []>} : vector<16x128xbf16>, vector<128x128xbf16>, vector<16x128xf32> -> vector<16x128xf32>
    %140 = arith.addf %126, %139 : vector<16x128xf32>
    %141 = vector.extract_strided_slice %0 {offsets = [2, 0], sizes = [1, 128], strides = [1, 1]} : vector<8x256xf32> to vector<1x128xf32>
    %142 = vector.broadcast %141 : vector<1x128xf32> to vector<16x128xf32>
    %143 = arith.addf %140, %142 : vector<16x128xf32>
    %cst_59 = arith.constant 0.000000e+00 : f32
    %144 = vector.broadcast %cst_59 : f32 to vector<16x128xf32>
    %145 = arith.maximumf %143, %144 : vector<16x128xf32>
    %c0_60 = arith.constant 0 : index
    %c0_61 = arith.constant 0 : index
    %c0_62 = arith.constant 0 : index
    %146 = vector.load %arg5[%c0_60, %c0_61, %c0_62] : memref<2x128x128xf32, #tpu.memory_space<vmem>>, vector<1x128x128xf32>
    %147 = vector.shape_cast %146 : vector<1x128x128xf32> to vector<128x128xf32>
    %cst_63 = arith.constant dense<0.000000e+00> : vector<16x128xf32>
    %148 = tpu.matmul %145, %147, %cst_63 {dimension_numbers = #tpu.dot_dimension_numbers<[1], [0], [0], [1], [0, 0, 1, 1], [], []>} : vector<16x128xf32>, vector<128x128xf32>, vector<16x128xf32> -> vector<16x128xf32>
    %149 = vector.extract_strided_slice %0 {offsets = [3, 0], sizes = [1, 128], strides = [1, 1]} : vector<8x256xf32> to vector<1x128xf32>
    %150 = vector.broadcast %149 : vector<1x128xf32> to vector<16x128xf32>
    %151 = arith.addf %148, %150 : vector<16x128xf32>
    %cst_64 = arith.constant 0.000000e+00 : f32
    %152 = vector.broadcast %cst_64 : f32 to vector<16x128xf32>
    %153 = arith.maximumf %151, %152 : vector<16x128xf32>
    %c1_65 = arith.constant 1 : index
    %c0_66 = arith.constant 0 : index
    %c0_67 = arith.constant 0 : index
    %154 = vector.load %arg5[%c1_65, %c0_66, %c0_67] : memref<2x128x128xf32, #tpu.memory_space<vmem>>, vector<1x128x128xf32>
    %155 = vector.shape_cast %154 : vector<1x128x128xf32> to vector<128x128xf32>
    %cst_68 = arith.constant dense<0.000000e+00> : vector<16x128xf32>
    %156 = tpu.matmul %153, %155, %cst_68 {dimension_numbers = #tpu.dot_dimension_numbers<[1], [0], [0], [1], [0, 0, 1, 1], [], []>} : vector<16x128xf32>, vector<128x128xf32>, vector<16x128xf32> -> vector<16x128xf32>
    %157 = vector.extract_strided_slice %0 {offsets = [4, 0], sizes = [1, 128], strides = [1, 1]} : vector<8x256xf32> to vector<1x128xf32>
    %158 = vector.broadcast %157 : vector<1x128xf32> to vector<16x128xf32>
    %159 = arith.addf %156, %158 : vector<16x128xf32>
    %c0_69 = arith.constant 0 : index
    %c0_70 = arith.constant 0 : index
    %160 = vector.load %arg7[%c0_69, %c0_70] : memref<16x128xf32, #tpu.memory_space<vmem>>, vector<16x128xf32>
    tpu.vector_store %arg7[%c0_69, %c0_70], %159 {strides = array<i32>} : memref<16x128xf32, #tpu.memory_space<vmem>>, vector<16x128xf32>,
    return
  }
  func.func @transform_0(%arg0: i32) -> (i32, i32) {
    %c0_i32 = arith.constant 0 : i32
    %c0_i32_0 = arith.constant 0 : i32
    return %arg0, %c0_i32 : i32, i32
  }
  func.func @transform_1(%arg0: i32) -> (i32, i32) {
    %c0_i32 = arith.constant 0 : i32
    %c0_i32_0 = arith.constant 0 : i32
    %c0_i32_1 = arith.constant 0 : i32
    return %c0_i32, %c0_i32_0 : i32, i32
  }
  func.func @transform_2(%arg0: i32) -> (i32, i32, i32) {
    %c0_i32 = arith.constant 0 : i32
    %c0_i32_0 = arith.constant 0 : i32
    %c0_i32_1 = arith.constant 0 : i32
    %c0_i32_2 = arith.constant 0 : i32
    return %c0_i32, %c0_i32_0, %c0_i32_1 : i32, i32, i32
  }
  func.func @transform_3(%arg0: i32) -> (i32, i32, i32) {
    %c0_i32 = arith.constant 0 : i32
    %c0_i32_0 = arith.constant 0 : i32
    %c0_i32_1 = arith.constant 0 : i32
    %c0_i32_2 = arith.constant 0 : i32
    return %c0_i32, %c0_i32_0, %c0_i32_1 : i32, i32, i32
  }
  func.func @transform_4(%arg0: i32) -> (i32, i32, i32) {
    %c0_i32 = arith.constant 0 : i32
    %c0_i32_0 = arith.constant 0 : i32
    %c0_i32_1 = arith.constant 0 : i32
    %c0_i32_2 = arith.constant 0 : i32
    return %c0_i32, %c0_i32_0, %c0_i32_1 : i32, i32, i32
  }
  func.func @transform_5(%arg0: i32) -> (i32, i32) {
    %c0_i32 = arith.constant 0 : i32
    %c0_i32_0 = arith.constant 0 : i32
    %c0_i32_1 = arith.constant 0 : i32
    return %c0_i32, %c0_i32_0 : i32, i32
  }
  func.func @transform_6(%arg0: i32) -> (i32, i32) {
    %c0_i32 = arith.constant 0 : i32
    %c0_i32_0 = arith.constant 0 : i32
    return %arg0, %c0_i32 : i32, i32
  }
}

</mosaic_0001>

<bundles_post_ra>
// kernel: lenet_forward.1
= control target key start
LH: loop header
LB: loop body
LE: loop exit
PB: predicated region body
PF: predicated region fallthrough
CT: control target
= control target key end

     0   :  { %vm535_vm0 = vcmask 424960   ;;  %vm635_vm1 = vcmask 1041408   ;;  %vm1269_vm2 = vcmask 1046528   ;;  %vm2630_vm3 = vcmask 1045504   ;;  %s12686_s1 = inlined_call_operand.vmem [shape: bf16[180,256], index: 1, kind: input, shape index: {}]   ;;  %s12687_s0 = inlined_call_operand.vmem [shape: bf16[528,180], index: 0, kind: input, shape index: {}]   ;;  %s12688_s2 = inlined_call_operand.vmem [shape: bf16[5,128,256], index: 2, kind: input, shape index: {}]   ;;  %s12689_s5 = inlined_call_operand.vmem [shape: f32[8,256], index: 5, kind: input, shape index: {}]   ;;  %s12690_s3 = inlined_call_operand.vmem [shape: bf16[6,128,128], index: 3, kind: input, shape index: {}]   ;;  %s12691_s4 = inlined_call_operand.vmem [shape: f32[2,128,128], index: 4, kind: input, shape index: {}]   ;;  %s12692_s6 = inlined_call_operand.vmem [shape: f32[16,128], index: 6, kind: output, shape index: {}]  }
   0x1   :  { %v7954_v0 = vld [vmem:[%s12686_s1 + $0x74] ss:$8 sps:$4 sm:$0xff]   ;;  %v7956_v1 = vld [vmem:[%s12686_s1 + $0x70] ss:$8 sps:$4 sm:$0xff]   ;;  %v7957_v2 = vld [vmem:[%s12686_s1 + $0x64] ss:$8 sps:$4 sm:$0xff]  }
   0x2   :  { %642 = vmatprep.subr.bf16.mxu0 %v7954_v0  ;;  %v7959_v3 = vld [vmem:[%s12686_s1 + $0x60] ss:$8 sps:$4 sm:$0xff]   ;;  %v7960_v4 = vld [vmem:[%s12686_s1 + $0x54] ss:$8 sps:$4 sm:$0xff]   ;;  %v7962_v5 = vld [vmem:[%s12686_s1 + $0x50] ss:$8 sps:$4 sm:$0xff]  }
   0x3   :  { %643 = vmatpush1.bf16.msra.mxu0 %v7956_v1  ;;  %v7963_v6 = vld [vmem:[%s12686_s1 + $0x44] ss:$8 sps:$4 sm:$0xff]   ;;  %v7965_v7 = vld [vmem:[%s12686_s1 + $0x40] ss:$8 sps:$4 sm:$0xff]   ;;  %v7966_v8 = vld [vmem:[%s12686_s1 + $0x34] ss:$8 sps:$4 sm:$0xff]  }
   0x4   :  { %644 = vmatprep.subr.bf16.mxu0 %v7957_v2  ;;  %v7968_v9 = vld [vmem:[%s12686_s1 + $0x30] ss:$8 sps:$4 sm:$0xff]   ;;  %v7969_v10 = vld [vmem:[%s12686_s1 + $0x24] ss:$8 sps:$4 sm:$0xff]   ;;  %v7971_v12 = vld [vmem:[%s12686_s1 + $0x20] ss:$8 sps:$4 sm:$0xff]  }
   0x5   :  { %v7991_v11 = vld [vmem:[%s12687_s0 + $0x4] ss:$8 sps:$4 sm:$0xff]   ;;  %v7972_v13 = vld [vmem:[%s12686_s1 + $0x14] ss:$8 sps:$4 sm:$0xff]   ;;  %v7974_v14 = vld [vmem:[%s12686_s1 + $0x10] ss:$8 sps:$4 sm:$0xff]  }
   0x6   :  { %6989 = vmatprep.mubr.msk.bf16.mxu0 %vm535_vm0, %v7991_v11  ;;  %v7975_v15 = vld [vmem:[%s12686_s1 + $0x4] ss:$8 sps:$4 sm:$0xff]   ;;  %v114_v16 = vld [vmem:[%s12686_s1 + $0xb0] sm:$0x33]  ;;  %v7977_v17 = vld [vmem:[%s12686_s1] ss:$8 sps:$4 sm:$0xff]  }
   0x7   :  { %645 = vmatpush1.bf16.msra.mxu0 %v7959_v3  ;;  %v6987_v18 = vcombine.high %v114_v16, %v114_v16  ;;  %v6986_v19 = vcombine.low %v114_v16, %v114_v16  ;;  %v7980_v21 = vld [vmem:[%s12686_s1 + $0xa4] ss:$8 sps:$4 sm:$0xff]   ;;  %v7982_v22 = vld [vmem:[%s12686_s1 + $0xa0] ss:$8 sps:$4 sm:$0xff]   ;;  %v7983_v23 = vld [vmem:[%s12686_s1 + $0x94] ss:$8 sps:$4 sm:$0xff]  }
   0x8   :  { %646 = vmatprep.subr.bf16.mxu0 %v7960_v4  ;;  %v7985_v24 = vld [vmem:[%s12686_s1 + $0x90] ss:$8 sps:$4 sm:$0xff]   ;;  %v7986_v25 = vld [vmem:[%s12686_s1 + $0x84] ss:$8 sps:$4 sm:$0xff]   ;;  %v7988_v26 = vld [vmem:[%s12686_s1 + $0x80] ss:$8 sps:$4 sm:$0xff]  }
   0x9   :  { %v637_v20 = vsel %vm635_vm1, %v6986_v19, 0  ;;  %v7989_v27 = vld [vmem:[%s12687_s0] ss:$8 sps:$4 sm:$0xff]   ;;  %v7992_v28 = vld [vmem:[%s12687_s0 + $0x14] ss:$8 sps:$4 sm:$0xff]   ;;  %vm4004_vm4 = vcmask 1043456  }
   0xa   :  { %v7994_v29 = vld [vmem:[%s12687_s0 + $0x10] ss:$8 sps:$4 sm:$0xff]   ;;  %v7995_v30 = vld [vmem:[%s12687_s0 + $0x24] ss:$8 sps:$4 sm:$0xff]   ;;  %v7997_v31 = vld [vmem:[%s12687_s0 + $0x20] ss:$8 sps:$4 sm:$0xff]  }
   0xb   :  { %647 = vmatpush1.bf16.msra.mxu0 %v7962_v5  ;;  %v7998_v32 = vld [vmem:[%s12687_s0 + $0x34] ss:$8 sps:$4 sm:$0xff]   ;;  %v8000_v33 = vld [vmem:[%s12687_s0 + $0x30] ss:$8 sps:$4 sm:$0xff]   ;;  %v8001_v34 = vld [vmem:[%s12687_s0 + $0x44] ss:$8 sps:$4 sm:$0xff]  }
   0xc   :  { %648 = vmatprep.subr.bf16.mxu0 %v7963_v6  ;;  %v8003_v35 = vld [vmem:[%s12687_s0 + $0x40] ss:$8 sps:$4 sm:$0xff]   ;;  %v8004_v36 = vld [vmem:[%s12687_s0 + $0x54] ss:$8 sps:$4 sm:$0xff]   ;;  %v8006_v37 = vld [vmem:[%s12687_s0 + $0x50] ss:$8 sps:$4 sm:$0xff]  }
   0xd   :  { %v8007_v38 = vld [vmem:[%s12687_s0 + $0x64] ss:$8 sps:$4 sm:$0xff]   ;;  %v8009_v39 = vld [vmem:[%s12687_s0 + $0x60] ss:$8 sps:$4 sm:$0xff]   ;;  %v8010_v40 = vld [vmem:[%s12687_s0 + $0x74] ss:$8 sps:$4 sm:$0xff]  }
   0xe   :  { %v8012_v41 = vld [vmem:[%s12687_s0 + $0x70] ss:$8 sps:$4 sm:$0xff]   ;;  %v8013_v42 = vld [vmem:[%s12687_s0 + $0x84] ss:$8 sps:$4 sm:$0xff]   ;;  %v8015_v43 = vld [vmem:[%s12687_s0 + $0x80] ss:$8 sps:$4 sm:$0xff]  }
   0xf   :  { %649 = vmatpush1.bf16.msra.mxu0 %v7965_v7  ;;  %v8016_v44 = vld [vmem:[%s12687_s0 + $0x94] ss:$8 sps:$4 sm:$0xff]   ;;  %v8018_v46 = vld [vmem:[%s12687_s0 + $0x90] ss:$8 sps:$4 sm:$0xff]   ;;  %v8019_v48 = vld [vmem:[%s12687_s0 + $0xa4] ss:$8 sps:$4 sm:$0xff]  }
  0x10   :  { %650 = vmatprep.subr.bf16.mxu0 %v7966_v8  ;;  %v8064_v45 = vld [vmem:[%s12688_s2 + $0xf4] ss:$8 sps:$4 sm:$0xff]   ;;  %v8066_v47 = vld [vmem:[%s12688_s2 + $0xf0] ss:$8 sps:$4 sm:$0xff]   ;;  %v8069_v49 = vld [vmem:[%s12688_s2 + $0xe4] ss:$8 sps:$4 sm:$0xff]  }
  0x11   :  { %1811 = vmatprep.subr.bf16.mxu1 %v8064_v45  ;;  %v8072_v50 = vld [vmem:[%s12688_s2 + $0xe0] ss:$8 sps:$4 sm:$0xff]   ;;  %v8073_v51 = vld [vmem:[%s12688_s2 + $0xd4] ss:$8 sps:$4 sm:$0xff]   ;;  %v8075_v53 = vld [vmem:[%s12688_s2 + $0xd0] ss:$8 sps:$4 sm:$0xff]  }
  0x12   :  { %1812 = vmatpush1.bf16.msra.mxu1 %v8066_v47  ;;  %v8021_v52 = vld [vmem:[%s12687_s0 + $0xa0] ss:$8 sps:$4 sm:$0xff]   ;;  %v8022_v54 = vld [vmem:[%s12687_s0 + $0xb4] ss:$8 sps:$4 sm:$0xff]   ;;  %v8078_v55 = vld [vmem:[%s12688_s2 + $0xc4] ss:$8 sps:$4 sm:$0xff]  }
  0x13   :  { %651 = vmatpush1.bf16.msra.mxu0 %v7968_v9  ;;  %1813 = vmatprep.subr.bf16.mxu1 %v8069_v49  ;;  %v8081_v56 = vld [vmem:[%s12688_s2 + $0xc0] ss:$8 sps:$4 sm:$0xff]   ;;  %v8082_v57 = vld [vmem:[%s12688_s2 + $0xb4] ss:$8 sps:$4 sm:$0xff]   ;;  %v8024_v58 = vld [vmem:[%s12687_s0 + $0xb0] ss:$8 sps:$4 sm:$0xff]  }
  0x14   :  { %652 = vmatprep.subr.bf16.mxu0 %v7969_v10  ;;  %v8084_v59 = vld [vmem:[%s12688_s2 + $0xb0] ss:$8 sps:$4 sm:$0xff]   ;;  %v8025_v60 = vld [vmem:[%s12687_s0 + $0xc4] ss:$8 sps:$4 sm:$0xff]   ;;  %v8090_v62 = vld [vmem:[%s12688_s2 + $0xa0] ss:$8 sps:$4 sm:$0xff]  }
  0x15   :  { %v8087_v61 = vld [vmem:[%s12688_s2 + $0xa4] ss:$8 sps:$4 sm:$0xff]   ;;  %v8091_v63 = vld [vmem:[%s12688_s2 + $0x94] ss:$8 sps:$4 sm:$0xff]   ;;  %v8027_v0 = vld [vmem:[%s12687_s0 + $0xc0] ss:$8 sps:$4 sm:$0xff]  }
  0x16   :  { %1814 = vmatpush1.bf16.msra.mxu1 %v8072_v50  ;;  %v8093_v1 = vld [vmem:[%s12688_s2 + $0x90] ss:$8 sps:$4 sm:$0xff]   ;;  %v8028_v2 = vld [vmem:[%s12687_s0 + $0xd4] ss:$8 sps:$4 sm:$0xff]   ;;  %v8096_v3 = vld [vmem:[%s12688_s2 + $0x84] ss:$8 sps:$4 sm:$0xff]  }
  0x17   :  { %653 = vmatpush1.bf16.msra.mxu0 %v7971_v12  ;;  %1815 = vmatprep.subr.bf16.mxu1 %v8073_v51  ;;  %v8099_v4 = vld [vmem:[%s12688_s2 + $0x80] ss:$8 sps:$4 sm:$0xff]   ;;  %v12696_v5 = vmov 0   ;;  %v8030_v6 = vld [vmem:[%s12687_s0 + $0xd0] ss:$8 sps:$4 sm:$0xff]   ;;  %vm3317_vm5 = vcmask 1044480  }
  0x18   :  { %654 = vmatprep.subr.bf16.mxu0 %v7972_v13  ;;  %1843 = vmatprep.mubr.bf16.mxu1 %v12696_v5  ;;  %v8031_v7 = vld [vmem:[%s12687_s0 + $0xe4] ss:$8 sps:$4 sm:$0xff]   ;;  %v8105_v8 = vld [vmem:[%s12688_s2 + $0x174] ss:$8 sps:$4 sm:$0xff]   ;;  %v8103_v9 = vld [vmem:[%s12688_s2 + $0x170] ss:$8 sps:$4 sm:$0xff]  }
  0x19   :  { %v8108_v10 = vld [vmem:[%s12688_s2 + $0x164] ss:$8 sps:$4 sm:$0xff]   ;;  %v8106_v11 = vld [vmem:[%s12688_s2 + $0x160] ss:$8 sps:$4 sm:$0xff]   ;;  %v8034_v13 = vld [vmem:[%s12687_s0 + $0xf4] ss:$8 sps:$4 sm:$0xff]  }
  0x1a   :  { %1816 = vmatpush1.bf16.msra.mxu1 %v8075_v53  ;;  %v8033_v12 = vld [vmem:[%s12687_s0 + $0xe0] ss:$8 sps:$4 sm:$0xff]   ;;  %v8117_v16 = vld [vmem:[%s12688_s2 + $0x144] ss:$8 sps:$4 sm:$0xff]  }
  0x1b   :  { %655 = vmatpush1.bf16.msra.mxu0 %v7974_v14  ;;  %1817 = vmatprep.subr.bf16.mxu1 %v8078_v55  ;;  %v8114_v14 = vld [vmem:[%s12688_s2 + $0x154] ss:$8 sps:$4 sm:$0xff]   ;;  %v8037_v19 = vld [vmem:[%s12687_s0 + $0x104] ss:$8 sps:$4 sm:$0xff]   ;;  %v8063_v45 = vld [vmem:[%s12687_s0 + $0x180] ss:$8 sps:$4 sm:$0xff]  }
  0x1c   :  { %656 = vmatprep.subr.bf16.mxu0 %v7975_v15  ;;  %v8112_v15 = vld [vmem:[%s12688_s2 + $0x150] ss:$8 sps:$4 sm:$0xff]   ;;  %v25_v49 = vld [vmem:[%s12689_s5 + $0x8] sm:$0xff] }
  0x1d   :  { %v8071_v55 = vld [vmem:[%s12687_s0 + $0x190] ss:$8 sps:$4 sm:$0xff]  }
  0x1e   :  { %1818 = vmatpush1.bf16.msra.mxu1 %v8081_v56  ;;  %v8076_v56 = vld [vmem:[%s12687_s0 + $0x1a4] ss:$8 sps:$4 sm:$0xff]  }
  0x1f   :  { %657 = vmatpush1.bf16.msra.mxu0 %v7977_v17  ;;  %1819 = vmatprep.subr.bf16.mxu1 %v8082_v57  ;;  %v8115_v17 = vld [vmem:[%s12688_s2 + $0x140] ss:$8 sps:$4 sm:$0xff]  }
  0x20   :  { %6988 = vmatprep.subr.msk.bf16.mxu0 %vm635_vm1, %v6987_v18  ;;  %v8036_v18 = vld [vmem:[%s12687_s0 + $0xf0] ss:$8 sps:$4 sm:$0xff]  }
  0x22   :  { %1820 = vmatpush1.bf16.msra.mxu1 %v8084_v59 }
  0x23   :  { %667 = vmatpush2.bf16.msra.mxu0 %v637_v20  ;;  %1821 = vmatprep.subr.bf16.mxu1 %v8087_v61  ;;  %v8123_v20 = vld [vmem:[%s12688_s2 + $0x134] ss:$8 sps:$4 sm:$0xff]  }
  0x24   :  { %668 = vmatprep.subr.bf16.mxu0 %v7980_v21  ;;  %v8121_v21 = vld [vmem:[%s12688_s2 + $0x130] ss:$8 sps:$4 sm:$0xff]  }
  0x26   :  { %1822 = vmatpush1.bf16.msra.mxu1 %v8090_v62 }
  0x27   :  { %669 = vmatpush2.bf16.msra.mxu0 %v7982_v22  ;;  %1823 = vmatprep.subr.bf16.mxu1 %v8091_v63  ;;  %v8126_v22 = vld [vmem:[%s12688_s2 + $0x124] ss:$8 sps:$4 sm:$0xff]  }
  0x28   :  { %670 = vmatprep.subr.bf16.mxu0 %v7983_v23  ;;  %v8124_v23 = vld [vmem:[%s12688_s2 + $0x120] ss:$8 sps:$4 sm:$0xff]  }
  0x2a   :  { %1824 = vmatpush1.bf16.msra.mxu1 %v8093_v1 }
  0x2b   :  { %671 = vmatpush2.bf16.msra.mxu0 %v7985_v24  ;;  %1825 = vmatprep.subr.bf16.mxu1 %v8096_v3  ;;  %v8039_v24 = vld [vmem:[%s12687_s0 + $0x100] ss:$8 sps:$4 sm:$0xff]  }
  0x2c   :  { %672 = vmatprep.subr.bf16.mxu0 %v7986_v25  ;;  %v8040_v25 = vld [vmem:[%s12687_s0 + $0x114] ss:$8 sps:$4 sm:$0xff]  }
  0x2e   :  { %1826 = vmatpush1.bf16.msra.mxu1 %v8099_v4 }
  0x2f   :  { %673 = vmatpush2.bf16.msra.mxu0 %v7988_v26  ;;  %v8132_v26 = vld [vmem:[%s12688_s2 + $0x114] ss:$8 sps:$4 sm:$0xff]  }
  0x30   :  { %2809 = vmatprep.subr.bf16.mxu0 %v8105_v8  ;;  %v8080_v8 = vld [vmem:[%s12687_s0 + $0x1a0] ss:$8 sps:$4 sm:$0xff]  }
  0x32   :  { %675 = vmatmul.mubr.bf16.vlgmr.msra.gmra.mxu0 %v7989_v27  ;;  %v8130_v27 = vld [vmem:[%s12688_s2 + $0x110] ss:$8 sps:$4 sm:$0xff]  }
  0x33   :  { %6990 = vmatprep.mubr.msk.bf16.mxu0 %vm535_vm0, %v7992_v28  ;;  %2810 = vmatpush1.bf16.msra.mxu0 %v8103_v9  ;;  %v8135_v28 = vld [vmem:[%s12688_s2 + $0x104] ss:$8 sps:$4 sm:$0xff]  }
  0x34   :  { %2811 = vmatprep.subr.bf16.mxu0 %v8108_v10 }
  0x37   :  { %2812 = vmatpush1.bf16.msra.mxu0 %v8106_v11 }
  0x38   :  { %2813 = vmatprep.subr.bf16.mxu0 %v8114_v14 }
  0x3a   :  { %685 = vmatmul.mubr.bf16.gmra.mxu0 %v7994_v29  ;;  %v8133_v29 = vld [vmem:[%s12688_s2 + $0x100] ss:$8 sps:$4 sm:$0xff]  }
  0x3b   :  { %6991 = vmatprep.mubr.msk.bf16.mxu0 %vm535_vm0, %v7995_v30  ;;  %2814 = vmatpush1.bf16.msra.mxu0 %v8112_v15  ;;  %v8042_v30 = vld [vmem:[%s12687_s0 + $0x110] ss:$8 sps:$4 sm:$0xff]  }
  0x3c   :  { %2815 = vmatprep.subr.bf16.mxu0 %v8117_v16 }
  0x3f   :  { %2816 = vmatpush1.bf16.msra.mxu0 %v8115_v17 }
  0x40   :  { %2817 = vmatprep.subr.bf16.mxu0 %v8123_v20 }
  0x42   :  { %695 = vmatmul.mubr.bf16.gmra.mxu0 %v7997_v31  ;;  %v8043_v31 = vld [vmem:[%s12687_s0 + $0x124] ss:$8 sps:$4 sm:$0xff]  }
  0x43   :  { %6992 = vmatprep.mubr.msk.bf16.mxu0 %vm535_vm0, %v7998_v32  ;;  %2818 = vmatpush1.bf16.msra.mxu0 %v8121_v21  ;;  %v8045_v32 = vld [vmem:[%s12687_s0 + $0x120] ss:$8 sps:$4 sm:$0xff]  }
  0x44   :  { %2819 = vmatprep.subr.bf16.mxu0 %v8126_v22 }
  0x47   :  { %2820 = vmatpush1.bf16.msra.mxu0 %v8124_v23 }
  0x48   :  { %2821 = vmatprep.subr.bf16.mxu0 %v8132_v26 }
  0x4a   :  { %705 = vmatmul.mubr.bf16.gmra.mxu0 %v8000_v33  ;;  %v8046_v33 = vld [vmem:[%s12687_s0 + $0x134] ss:$8 sps:$4 sm:$0xff]  }
  0x4b   :  { %6993 = vmatprep.mubr.msk.bf16.mxu0 %vm535_vm0, %v8001_v34  ;;  %2822 = vmatpush1.bf16.msra.mxu0 %v8130_v27  ;;  %v8048_v34 = vld [vmem:[%s12687_s0 + $0x130] ss:$8 sps:$4 sm:$0xff]  }
  0x4c   :  { %2823 = vmatprep.subr.bf16.mxu0 %v8135_v28 }
  0x4f   :  { %2824 = vmatpush1.bf16.msra.mxu0 %v8133_v29 }
  0x52   :  { %715 = vmatmul.mubr.bf16.gmra.mxu0 %v8003_v35  ;;  %v8049_v35 = vld [vmem:[%s12687_s0 + $0x144] ss:$8 sps:$4 sm:$0xff]  }
  0x53   :  { %6994 = vmatprep.mubr.msk.bf16.mxu0 %vm535_vm0, %v8004_v36  ;;  %v8051_v36 = vld [vmem:[%s12687_s0 + $0x140] ss:$8 sps:$4 sm:$0xff]  }
  0x5a   :  { %725 = vmatmul.mubr.bf16.gmra.mxu0 %v8006_v37  ;;  %v8052_v37 = vld [vmem:[%s12687_s0 + $0x154] ss:$8 sps:$4 sm:$0xff]  }
  0x5b   :  { %6995 = vmatprep.mubr.msk.bf16.mxu0 %vm535_vm0, %v8007_v38  ;;  %v8054_v38 = vld [vmem:[%s12687_s0 + $0x150] ss:$8 sps:$4 sm:$0xff]  }
  0x62   :  { %735 = vmatmul.mubr.bf16.gmra.mxu0 %v8009_v39  ;;  %v8055_v39 = vld [vmem:[%s12687_s0 + $0x164] ss:$8 sps:$4 sm:$0xff]  }
  0x63   :  { %6996 = vmatprep.mubr.msk.bf16.mxu0 %vm535_vm0, %v8010_v40  ;;  %v8057_v40 = vld [vmem:[%s12687_s0 + $0x160] ss:$8 sps:$4 sm:$0xff]  }
  0x6a   :  { %745 = vmatmul.mubr.bf16.gmra.mxu0 %v8012_v41  ;;  %v8058_v41 = vld [vmem:[%s12687_s0 + $0x174] ss:$8 sps:$4 sm:$0xff]  }
  0x6b   :  { %6997 = vmatprep.mubr.msk.bf16.mxu0 %vm535_vm0, %v8013_v42  ;;  %v8060_v42 = vld [vmem:[%s12687_s0 + $0x170] ss:$8 sps:$4 sm:$0xff]  }
  0x72   :  { %755 = vmatmul.mubr.bf16.gmra.mxu0 %v8015_v43  ;;  %v8061_v43 = vld [vmem:[%s12687_s0 + $0x184] ss:$8 sps:$4 sm:$0xff]  }
  0x73   :  { %6998 = vmatprep.mubr.msk.bf16.mxu0 %vm535_vm0, %v8016_v44  ;;  %v12693_v44 = vlaneseq }
  0x75   :  { %v8643_v47 = vshrl.u32 %v12693_v44, 7 }
  0x77   :  { %12722 = vst [vmem:[#allocation2_spill] sm:$0xff] %v8643_v47  ;;  %v117_v50 = vsub.s32 0, %v8643_v47 }
  0x79   :  { %v8653_v53 = vrot.slane %v25_v49, %v117_v50 }
  0x7a   :  { %765 = vmatmul.mubr.bf16.gmra.mxu0 %v8018_v46  ;;  %v8067_v46 = vld [vmem:[%s12687_s0 + $0x194] ss:$8 sps:$4 sm:$0xff]  }
  0x7b   :  { %6999 = vmatprep.mubr.msk.bf16.mxu0 %vm535_vm0, %v8019_v48 }
  0x82   :  { %775 = vmatmul.mubr.bf16.gmra.mxu0 %v8021_v52  ;;  %v24_v52 = vld [vmem:[%s12689_s5] sm:$0xff] }
  0x83   :  { %7000 = vmatprep.mubr.msk.bf16.mxu0 %vm535_vm0, %v8022_v54  ;;  %v8661_v57 = vrot.slane %v24_v52, %v117_v50 }
  0x8a   :  { %785 = vmatmul.mubr.bf16.gmra.mxu0 %v8024_v58 }
  0x8b   :  { %7001 = vmatprep.mubr.msk.bf16.mxu0 %vm535_vm0, %v8025_v60 }
  0x92   :  { %795 = vmatmul.mubr.bf16.gmra.mxu0 %v8027_v0 }
  0x93   :  { %7002 = vmatprep.mubr.msk.bf16.mxu0 %vm535_vm0, %v8028_v2 }
  0x9a   :  { %805 = vmatmul.mubr.bf16.gmra.mxu0 %v8030_v6 }
  0x9b   :  { %7003 = vmatprep.mubr.msk.bf16.mxu0 %vm535_vm0, %v8031_v7 }
  0xa2   :  { %815 = vmatmul.mubr.bf16.gmra.mxu0 %v8033_v12  ;;  %v8085_v12 = vld [vmem:[%s12687_s0 + $0x1b4] ss:$8 sps:$4 sm:$0xff]  }
  0xa3   :  { %7004 = vmatprep.mubr.msk.bf16.mxu0 %vm535_vm0, %v8034_v13 }
  0xaa   :  { %825 = vmatmul.mubr.bf16.gmra.mxu0 %v8036_v18 }
  0xab   :  { %7005 = vmatprep.mubr.msk.bf16.mxu0 %vm535_vm0, %v8037_v19 }
  0xb2   :  { %835 = vmatmul.mubr.bf16.gmra.mxu0 %v8039_v24 }
  0xb3   :  { %7006 = vmatprep.mubr.msk.bf16.mxu0 %vm535_vm0, %v8040_v25 }
  0xba   :  { %845 = vmatmul.mubr.bf16.gmra.mxu0 %v8042_v30 }
  0xbb   :  { %7007 = vmatprep.mubr.msk.bf16.mxu0 %vm535_vm0, %v8043_v31  ;;  %v8089_v31 = vld [vmem:[%s12687_s0 + $0x1b0] ss:$8 sps:$4 sm:$0xff]  }
  0xc2   :  { %855 = vmatmul.mubr.bf16.gmra.mxu0 %v8045_v32 }
  0xc3   :  { %7008 = vmatprep.mubr.msk.bf16.mxu0 %vm535_vm0, %v8046_v33 }
  0xca   :  { %865 = vmatmul.mubr.bf16.gmra.mxu0 %v8048_v34 }
  0xcb   :  { %7009 = vmatprep.mubr.msk.bf16.mxu0 %vm535_vm0, %v8049_v35 }
  0xd2   :  { %875 = vmatmul.mubr.bf16.gmra.mxu0 %v8051_v36  ;;  %v8094_v36 = vld [vmem:[%s12687_s0 + $0x1c4] ss:$8 sps:$4 sm:$0xff]  }
  0xd3   :  { %7010 = vmatprep.mubr.msk.bf16.mxu0 %vm535_vm0, %v8052_v37 }
  0xda   :  { %885 = vmatmul.mubr.bf16.gmra.mxu0 %v8054_v38 }
  0xdb   :  { %7011 = vmatprep.mubr.msk.bf16.mxu0 %vm535_vm0, %v8055_v39 }
  0xe2   :  { %895 = vmatmul.mubr.bf16.gmra.mxu0 %v8057_v40 }
  0xe3   :  { %7012 = vmatprep.mubr.msk.bf16.mxu0 %vm535_vm0, %v8058_v41 }
  0xea   :  { %905 = vmatmul.mubr.bf16.gmra.mxu0 %v8060_v42 }
  0xeb   :  { %7013 = vmatprep.mubr.msk.bf16.mxu0 %vm535_vm0, %v8061_v43 }
  0xf2   :  { %v676_v48 = vpop.f32.mrf.mxu0  ;;  %915 = vmatmul.mubr.bf16.gmra.mxu0 %v8063_v45 }
  0xf3   :  { %7014 = vmatprep.mubr.msk.bf16.mxu0 %vm535_vm0, %v8067_v46  ;;  %v677_v0 = vadd.f32 %v676_v48, %v8661_v57 }
  0xf4   :  { %v678_v51 = vpop.f32.mrf.mxu0 }
  0xf5   :  { %v679_v60 = vadd.f32 %v678_v51, %v8653_v53  ;;  %v1005_v13 = vmax.f32 %v677_v0, 0.0 }
  0xf6   :  { %v680_v54 = vpop.f32.mrf.mxu0 }
  0xf7   :  { %v681_v61 = vadd.f32 %v680_v54, %v8661_v57  ;;  %v1006_v4 = vmax.f32 %v679_v60, 0.0 }
  0xf8   :  { %v682_v58 = vpop.f32.mrf.mxu0 }
  0xf9   :  { %v683_v59 = vadd.f32 %v682_v58, %v8653_v53  ;;  %v1007_v6 = vmax.f32 %v681_v61, 0.0  ;;  %v1137_v18 = vmax.f32 %v1005_v13, %v1006_v4  ;;  %v8098_v61 = vld [vmem:[%s12687_s0 + $0x1c0] ss:$8 sps:$4 sm:$0xff]  }
  0xfa   :  { %v686_v62 = vpop.f32.mrf.mxu0  ;;  %925 = vmatmul.mubr.bf16.gmra.mxu0 %v8071_v55 }
  0xfb   :  { %v687_v63 = vadd.f32 %v686_v62, %v8661_v57  ;;  %7015 = vmatprep.mubr.msk.bf16.mxu0 %vm535_vm0, %v8076_v56  ;;  %v1008_v1 = vmax.f32 %v683_v59, 0.0  ;;  %v1270_v28 = vrot.slane %v1137_v18, 1 }
  0xfc   :  { %v688_v2 = vpop.f32.mrf.mxu0 }
  0xfd   :  { %v689_v3 = vadd.f32 %v688_v2, %v8653_v53  ;;  %v1009_v9 = vmax.f32 %v687_v63, 0.0  ;;  %v1138_v14 = vmax.f32 %v1007_v6, %v1008_v1  ;;  %v8100_v2 = vld [vmem:[%s12687_s0 + $0x1d4] ss:$8 sps:$4 sm:$0xff]  }
  0xfe   :  { %v690_v7 = vpop.f32.mrf.mxu0 }
  0xff   :  { %v1010_v10 = vmax.f32 %v689_v3, 0.0  ;;  %v691_v11 = vadd.f32 %v690_v7, %v8661_v57  ;;  %v1271_v24 = vrot.slane %v1138_v14, 1 }
 0x100   :  { %v692_v15 = vpop.f32.mrf.mxu0 }
 0x101   :  { %v1139_v16 = vmax.f32 %v1009_v9, %v1010_v10  ;;  %v693_v17 = vadd.f32 %v692_v15, %v8653_v53  ;;  %v1011_v21 = vmax.f32 %v691_v11, 0.0  ;;  %v1272_v38 = vsel %vm1269_vm2, %v1270_v28, %v1271_v24 }
 0x102   :  { %v696_v19 = vpop.f32.mrf.mxu0  ;;  %935 = vmatmul.mubr.bf16.gmra.mxu0 %v8080_v8  ;;  %v1467_v50 = vmax.f32 %v1137_v18, %v1272_v38 }
 0x103   :  { %v1273_v20 = vrot.slane %v1139_v16, 1  ;;  %v1012_v22 = vmax.f32 %v693_v17, 0.0  ;;  %v697_v23 = vadd.f32 %v696_v19, %v8661_v57  ;;  %7016 = vmatprep.mubr.msk.bf16.mxu0 %vm535_vm0, %v8085_v12 }
 0x104   :  { %v698_v25 = vpop.f32.mrf.mxu0 }
 0x105   :  { %v1140_v26 = vmax.f32 %v1011_v21, %v1012_v22  ;;  %v699_v27 = vadd.f32 %v698_v25, %v8653_v53  ;;  %v1274_v29 = vsel %vm1269_vm2, %v1271_v24, %v1273_v20  ;;  %v1013_v33 = vmax.f32 %v697_v23, 0.0  ;;  %v8102_v24 = vld [vmem:[%s12687_s0 + $0x1d0] ss:$8 sps:$4 sm:$0xff]  }
 0x106   :  { %v700_v30 = vpop.f32.mrf.mxu0  ;;  %v1468_v41 = vmax.f32 %v1138_v14, %v1274_v29  ;;  %v8109_v29 = vld [vmem:[%s12687_s0 + $0x1e4] ss:$8 sps:$4 sm:$0xff]  }
 0x107   :  { %v1275_v32 = vrot.slane %v1140_v26, 1  ;;  %v1014_v34 = vmax.f32 %v699_v27, 0.0  ;;  %v701_v35 = vadd.f32 %v700_v30, %v8661_v57 }
 0x108   :  { %v702_v37 = vpop.f32.mrf.mxu0  ;;  %v8696_v56 = vpack.c.bf16 %v1468_v41, %v1467_v50 }
 0x109   :  { %v1141_v39 = vmax.f32 %v1013_v33, %v1014_v34  ;;  %v703_v40 = vadd.f32 %v702_v37, %v8653_v53  ;;  %v1276_v42 = vsel %vm1269_vm2, %v1273_v20, %v1275_v32  ;;  %v1015_v46 = vmax.f32 %v701_v35, 0.0 }
 0x10a   :  { %v706_v43 = vpop.f32.mrf.mxu0  ;;  %945 = vmatmul.mubr.bf16.gmra.mxu0 %v8089_v31  ;;  %v1469_v58 = vmax.f32 %v1139_v16, %v1276_v42  ;;  %v1633_v10 = vrot.slane %v8696_v56, 1 }
 0x10b   :  { %v1277_v45 = vrot.slane %v1141_v39, 1  ;;  %v1016_v48 = vmax.f32 %v703_v40, 0.0  ;;  %v707_v49 = vadd.f32 %v706_v43, %v8661_v57  ;;  %7017 = vmatprep.mubr.msk.bf16.mxu0 %vm535_vm0, %v8094_v36 }
 0x10c   :  { %v708_v51 = vpop.f32.mrf.mxu0 }
 0x10d   :  { %v1278_v52 = vsel %vm1269_vm2, %v1275_v32, %v1277_v45  ;;  %v1142_v54 = vmax.f32 %v1015_v46, %v1016_v48  ;;  %v709_v55 = vadd.f32 %v708_v51, %v8653_v53  ;;  %v1017_v63 = vmax.f32 %v707_v49, 0.0  ;;  %v8111_v51 = vld [vmem:[%s12687_s0 + $0x1e0] ss:$8 sps:$4 sm:$0xff]  }
 0x10e   :  { %v1470_v59 = vmax.f32 %v1140_v26, %v1278_v52  ;;  %v710_v60 = vpop.f32.mrf.mxu0 }
 0x10f   :  { %v1279_v62 = vrot.slane %v1142_v54, 1  ;;  %v1018_v0 = vmax.f32 %v709_v55, 0.0  ;;  %v711_v1 = vadd.f32 %v710_v60, %v8661_v57 }
 0x110   :  { %v8705_v3 = vpack.c.bf16 %v1470_v59, %v1469_v58  ;;  %v712_v4 = vpop.f32.mrf.mxu0  ;;  %v8118_v59 = vld [vmem:[%s12687_s0 + $0x1f4] ss:$8 sps:$4 sm:$0xff]  }
 0x111   :  { %v1143_v6 = vmax.f32 %v1017_v63, %v1018_v0  ;;  %v713_v7 = vadd.f32 %v712_v4, %v8653_v53  ;;  %v1280_v8 = vsel %vm1269_vm2, %v1277_v45, %v1279_v62  ;;  %v1019_v13 = vmax.f32 %v711_v1, 0.0 }
 0x112   :  { %v716_v9 = vpop.f32.mrf.mxu0  ;;  %955 = vmatmul.mubr.bf16.gmra.mxu0 %v8098_v61  ;;  %v1634_v11 = vrot.slane %v8705_v3, 1  ;;  %v1471_v21 = vmax.f32 %v1141_v39, %v1280_v8 }
 0x113   :  { %v1281_v12 = vrot.slane %v1143_v6, 1  ;;  %v1020_v14 = vmax.f32 %v713_v7, 0.0  ;;  %v717_v15 = vadd.f32 %v716_v9, %v8661_v57  ;;  %7018 = vmatprep.mubr.msk.bf16.mxu0 %vm535_vm0, %v8100_v2 }
 0x114   :  { %v718_v16 = vpop.f32.mrf.mxu0  ;;  %v1635_v17 = vsel %vm1269_vm2, %v1633_v10, %v1634_v11 }
 0x115   :  { %v1282_v18 = vsel %vm1269_vm2, %v1279_v62, %v1281_v12  ;;  %v1144_v19 = vmax.f32 %v1019_v13, %v1020_v14  ;;  %v719_v20 = vadd.f32 %v718_v16, %v8653_v53  ;;  %1844 = vmatmul.mubr.bf16.vlgmr.msra.gmra.mxu1 %v1635_v17  ;;  %v1021_v26 = vmax.f32 %v717_v15, 0.0  ;;  %v8120_v17 = vld [vmem:[%s12687_s0 + $0x1f0] ss:$8 sps:$4 sm:$0xff]  }
 0x116   :  { %v1472_v22 = vmax.f32 %v1142_v54, %v1282_v18  ;;  %v720_v23 = vpop.f32.mrf.mxu0  ;;  %1853 = vmatprep.mubr.bf16.mxu1 %v12696_v5 }
 0x117   :  { %v1283_v25 = vrot.slane %v1144_v19, 1  ;;  %v1022_v27 = vmax.f32 %v719_v20, 0.0  ;;  %v721_v28 = vadd.f32 %v720_v23, %v8661_v57 }
 0x118   :  { %v8724_v30 = vpack.c.bf16 %v1472_v22, %v1471_v21  ;;  %v722_v31 = vpop.f32.mrf.mxu0  ;;  %v8127_v22 = vld [vmem:[%s12687_s0 + $0x204] ss:$8 sps:$4 sm:$0xff]  }
 0x119   :  { %v1145_v32 = vmax.f32 %v1021_v26, %v1022_v27  ;;  %v723_v33 = vadd.f32 %v722_v31, %v8653_v53  ;;  %v1284_v34 = vsel %vm1269_vm2, %v1281_v12, %v1283_v25  ;;  %v1023_v38 = vmax.f32 %v721_v28, 0.0 }
 0x11a   :  { %v726_v35 = vpop.f32.mrf.mxu0  ;;  %965 = vmatmul.mubr.bf16.gmra.mxu0 %v8102_v24  ;;  %v1636_v36 = vrot.slane %v8724_v30, 1  ;;  %v1473_v48 = vmax.f32 %v1143_v6, %v1284_v34 }
 0x11b   :  { %v1285_v37 = vrot.slane %v1145_v32, 1  ;;  %v1024_v39 = vmax.f32 %v723_v33, 0.0  ;;  %v727_v40 = vadd.f32 %v726_v35, %v8661_v57  ;;  %7019 = vmatprep.mubr.msk.bf16.mxu0 %vm535_vm0, %v8109_v29 }
 0x11c   :  { %v728_v41 = vpop.f32.mrf.mxu0  ;;  %v1637_v42 = vsel %vm1269_vm2, %v1634_v11, %v1636_v36 }
 0x11d   :  { %v1286_v43 = vsel %vm1269_vm2, %v1283_v25, %v1285_v37  ;;  %v1146_v45 = vmax.f32 %v1023_v38, %v1024_v39  ;;  %v729_v46 = vadd.f32 %v728_v41, %v8653_v53  ;;  %1854 = vmatmul.mubr.bf16.gmra.mxu1 %v1637_v42  ;;  %v1025_v54 = vmax.f32 %v727_v40, 0.0 }
 0x11e   :  { %v1474_v49 = vmax.f32 %v1144_v19, %v1286_v43  ;;  %v730_v50 = vpop.f32.mrf.mxu0  ;;  %1863 = vmatprep.mubr.bf16.mxu1 %v12696_v5  ;;  %v8129_v43 = vld [vmem:[%s12687_s0 + $0x200] ss:$8 sps:$4 sm:$0xff]  }
 0x11f   :  { %v1287_v52 = vrot.slane %v1146_v45, 1  ;;  %v1026_v55 = vmax.f32 %v729_v46, 0.0  ;;  %v731_v58 = vadd.f32 %v730_v50, %v8661_v57 }
 0x120   :  { %v8742_v60 = vpack.c.bf16 %v1474_v49, %v1473_v48  ;;  %v732_v61 = vpop.f32.mrf.mxu0 }
 0x121   :  { %v1147_v62 = vmax.f32 %v1025_v54, %v1026_v55  ;;  %v733_v63 = vadd.f32 %v732_v61, %v8653_v53  ;;  %v1288_v0 = vsel %vm1269_vm2, %v1285_v37, %v1287_v52  ;;  %v1027_v6 = vmax.f32 %v731_v58, 0.0 }
 0x122   :  { %v736_v1 = vpop.f32.mrf.mxu0  ;;  %975 = vmatmul.mubr.bf16.gmra.mxu0 %v8111_v51  ;;  %v1638_v2 = vrot.slane %v8742_v60, 1  ;;  %v1475_v14 = vmax.f32 %v1145_v32, %v1288_v0 }
 0x123   :  { %v1289_v4 = vrot.slane %v1147_v62, 1  ;;  %v1028_v7 = vmax.f32 %v733_v63, 0.0  ;;  %v737_v8 = vadd.f32 %v736_v1, %v8661_v57  ;;  %7020 = vmatprep.mubr.msk.bf16.mxu0 %vm535_vm0, %v8118_v59 }
 0x124   :  { %v738_v9 = vpop.f32.mrf.mxu0  ;;  %v1639_v10 = vsel %vm1269_vm2, %v1636_v36, %v1638_v2 }
 0x125   :  { %v1290_v11 = vsel %vm1269_vm2, %v1287_v52, %v1289_v4  ;;  %v1148_v12 = vmax.f32 %v1027_v6, %v1028_v7  ;;  %v739_v13 = vadd.f32 %v738_v9, %v8653_v53  ;;  %1864 = vmatmul.mubr.bf16.gmra.mxu1 %v1639_v10  ;;  %v1029_v19 = vmax.f32 %v737_v8, 0.0 }
 0x126   :  { %v1476_v15 = vmax.f32 %v1146_v45, %v1290_v11  ;;  %v740_v16 = vpop.f32.mrf.mxu0  ;;  %1873 = vmatprep.mubr.bf16.mxu1 %v12696_v5  ;;  %v2632_v8 = vrot.slane %v8705_v3, 2 }
 0x127   :  { %v1291_v18 = vrot.slane %v1148_v12, 1  ;;  %v1030_v20 = vmax.f32 %v739_v13, 0.0  ;;  %v741_v21 = vadd.f32 %v740_v16, %v8661_v57 }
 0x128   :  { %v8760_v23 = vpack.c.bf16 %v1476_v15, %v1475_v14  ;;  %v742_v24 = vpop.f32.mrf.mxu0 }
 0x129   :  { %v1149_v25 = vmax.f32 %v1029_v19, %v1030_v20  ;;  %v743_v26 = vadd.f32 %v742_v24, %v8653_v53  ;;  %v1292_v27 = vsel %vm1269_vm2, %v1289_v4, %v1291_v18  ;;  %v1031_v32 = vmax.f32 %v741_v21, 0.0 }
 0x12a   :  { %v746_v28 = vpop.f32.mrf.mxu0  ;;  %985 = vmatmul.mubr.bf16.gmra.mxu0 %v8120_v17  ;;  %v1640_v29 = vrot.slane %v8760_v23, 1  ;;  %v1477_v40 = vmax.f32 %v1147_v62, %v1292_v27 }
 0x12b   :  { %v1293_v31 = vrot.slane %v1149_v25, 1  ;;  %v1032_v33 = vmax.f32 %v743_v26, 0.0  ;;  %v747_v34 = vadd.f32 %v746_v28, %v8661_v57  ;;  %7021 = vmatprep.mubr.msk.bf16.mxu0 %vm535_vm0, %v8127_v22 }
 0x12c   :  { %v748_v35 = vpop.f32.mrf.mxu0  ;;  %v1641_v36 = vsel %vm1269_vm2, %v1638_v2, %v1640_v29 }
 0x12d   :  { %v1294_v37 = vsel %vm1269_vm2, %v1291_v18, %v1293_v31  ;;  %v1150_v38 = vmax.f32 %v1031_v32, %v1032_v33  ;;  %v749_v39 = vadd.f32 %v748_v35, %v8653_v53  ;;  %1874 = vmatmul.mubr.bf16.gmra.mxu1 %v1641_v36  ;;  %v1033_v46 = vmax.f32 %v747_v34, 0.0 }
 0x12e   :  { %v1478_v41 = vmax.f32 %v1148_v12, %v1294_v37  ;;  %v750_v42 = vpop.f32.mrf.mxu0  ;;  %1883 = vmatprep.mubr.bf16.mxu1 %v12696_v5  ;;  %v2631_v12 = vrot.slane %v8696_v56, 2  ;;  %v2634_v36 = vrot.slane %v8724_v30, 2 }
 0x12f   :  { %v1295_v45 = vrot.slane %v1150_v38, 1  ;;  %v1034_v48 = vmax.f32 %v749_v39, 0.0  ;;  %v751_v49 = vadd.f32 %v750_v42, %v8661_v57 }
 0x130   :  { %v8775_v50 = vpack.c.bf16 %v1478_v41, %v1477_v40  ;;  %v752_v51 = vpop.f32.mrf.mxu0  ;;  %v2633_v21 = vsel %vm2630_vm3, %v2631_v12, %v2632_v8 }
 0x131   :  { %v1151_v52 = vmax.f32 %v1033_v46, %v1034_v48  ;;  %v753_v54 = vadd.f32 %v752_v51, %v8653_v53  ;;  %v1296_v55 = vsel %vm1269_vm2, %v1293_v31, %v1295_v45  ;;  %v1035_v62 = vmax.f32 %v751_v49, 0.0 }
 0x132   :  { %v756_v58 = vpop.f32.mrf.mxu0  ;;  %995 = vmatmul.mubr.bf16.gmra.mxu0 %v8129_v43  ;;  %v1642_v59 = vrot.slane %v8775_v50, 1  ;;  %v1479_v9 = vmax.f32 %v1149_v25, %v1296_v55  ;;  %v2635_v51 = vsel %vm2630_vm3, %v2632_v8, %v2634_v36 }
 0x133   :  { %v1297_v61 = vrot.slane %v1151_v52, 1  ;;  %v1036_v63 = vmax.f32 %v753_v54, 0.0  ;;  %v757_v0 = vadd.f32 %v756_v58, %v8661_v57  ;;  %2841 = vmatprep.mubr.bf16.mxu0 %v12696_v5 }
 0x134   :  { %v758_v1 = vpop.f32.mrf.mxu0  ;;  %v1643_v2 = vsel %vm1269_vm2, %v1640_v29, %v1642_v59 }
 0x135   :  { %v1298_v4 = vsel %vm1269_vm2, %v1295_v45, %v1297_v61  ;;  %v1152_v6 = vmax.f32 %v1035_v62, %v1036_v63  ;;  %v759_v7 = vadd.f32 %v758_v1, %v8653_v53  ;;  %1884 = vmatmul.mubr.bf16.gmra.mxu1 %v1643_v2  ;;  %v1037_v14 = vmax.f32 %v757_v0, 0.0 }
 0x136   :  { %v1480_v10 = vmax.f32 %v1150_v38, %v1298_v4  ;;  %v760_v11 = vpop.f32.mrf.mxu0  ;;  %1893 = vmatprep.mubr.bf16.mxu1 %v12696_v5 }
 0x137   :  { %v1299_v13 = vrot.slane %v1152_v6, 1  ;;  %v1038_v15 = vmax.f32 %v759_v7, 0.0  ;;  %v761_v16 = vadd.f32 %v760_v11, %v8661_v57 }
 0x138   :  { %v8789_v17 = vpack.c.bf16 %v1480_v10, %v1479_v9  ;;  %v762_v18 = vpop.f32.mrf.mxu0 }
 0x139   :  { %v1153_v19 = vmax.f32 %v1037_v14, %v1038_v15  ;;  %v763_v20 = vadd.f32 %v762_v18, %v8653_v53  ;;  %v1300_v22 = vsel %vm1269_vm2, %v1297_v61, %v1299_v13  ;;  %v1039_v27 = vmax.f32 %v761_v16, 0.0 }
 0x13a   :  { %v766_v24 = vpop.f32.mrf.mxu0  ;;  %2842 = vmatmul.mubr.bf16.vlgmr.msra.gmra.mxu0 %v2633_v21  ;;  %v1644_v25 = vrot.slane %v8789_v17, 1  ;;  %v1481_v37 = vmax.f32 %v1151_v52, %v1300_v22 }
 0x13b   :  { %v1301_v26 = vrot.slane %v1153_v19, 1  ;;  %v1040_v28 = vmax.f32 %v763_v20, 0.0  ;;  %v767_v29 = vadd.f32 %v766_v24, %v8661_v57  ;;  %2851 = vmatprep.mubr.bf16.mxu0 %v12696_v5 }
 0x13c   :  { %v768_v31 = vpop.f32.mrf.mxu0  ;;  %v1645_v32 = vsel %vm1269_vm2, %v1642_v59, %v1644_v25 }
 0x13d   :  { %v1302_v33 = vsel %vm1269_vm2, %v1299_v13, %v1301_v26  ;;  %v1154_v34 = vmax.f32 %v1039_v27, %v1040_v28  ;;  %v769_v35 = vadd.f32 %v768_v31, %v8653_v53  ;;  %1894 = vmatmul.mubr.bf16.gmra.mxu1 %v1645_v32  ;;  %v1041_v41 = vmax.f32 %v767_v29, 0.0 }
 0x13e   :  { %v1482_v38 = vmax.f32 %v1152_v6, %v1302_v33  ;;  %v770_v39 = vpop.f32.mrf.mxu0  ;;  %1903 = vmatprep.mubr.bf16.mxu1 %v12696_v5  ;;  %v2636_v6 = vrot.slane %v8742_v60, 2 }
 0x13f   :  { %v1303_v40 = vrot.slane %v1154_v34, 1  ;;  %v1042_v42 = vmax.f32 %v769_v35, 0.0  ;;  %v771_v43 = vadd.f32 %v770_v39, %v8661_v57 }
 0x140   :  { %v8803_v45 = vpack.c.bf16 %v1482_v38, %v1481_v37  ;;  %v772_v46 = vpop.f32.mrf.mxu0  ;;  %v2637_v20 = vsel %vm2630_vm3, %v2634_v36, %v2636_v6 }
 0x141   :  { %v1155_v48 = vmax.f32 %v1041_v41, %v1042_v42  ;;  %v773_v49 = vadd.f32 %v772_v46, %v8653_v53  ;;  %v1304_v54 = vsel %vm1269_vm2, %v1301_v26, %v1303_v40  ;;  %v1043_v59 = vmax.f32 %v771_v43, 0.0 }
 0x142   :  { %v776_v52 = vpop.f32.mrf.mxu0  ;;  %2852 = vmatmul.mubr.bf16.gmra.mxu0 %v2635_v51  ;;  %v1646_v55 = vrot.slane %v8803_v45, 1  ;;  %v1483_v7 = vmax.f32 %v1153_v19, %v1304_v54 }
 0x143   :  { %v1305_v58 = vrot.slane %v1155_v48, 1  ;;  %v1044_v61 = vmax.f32 %v773_v49, 0.0  ;;  %v777_v62 = vadd.f32 %v776_v52, %v8661_v57  ;;  %2861 = vmatprep.mubr.bf16.mxu0 %v12696_v5 }
 0x144   :  { %v778_v63 = vpop.f32.mrf.mxu0  ;;  %v1647_v0 = vsel %vm1269_vm2, %v1644_v25, %v1646_v55 }
 0x145   :  { %v1306_v1 = vsel %vm1269_vm2, %v1303_v40, %v1305_v58  ;;  %v1156_v2 = vmax.f32 %v1043_v59, %v1044_v61  ;;  %v779_v4 = vadd.f32 %v778_v63, %v8653_v53  ;;  %1904 = vmatmul.mubr.bf16.gmra.mxu1 %v1647_v0  ;;  %v1045_v11 = vmax.f32 %v777_v62, 0.0 }
 0x146   :  { %v1484_v8 = vmax.f32 %v1154_v34, %v1306_v1  ;;  %v780_v9 = vpop.f32.mrf.mxu0  ;;  %1913 = vmatprep.mubr.bf16.mxu1 %v12696_v5  ;;  %v2638_v34 = vrot.slane %v8760_v23, 2 }
 0x147   :  { %v1307_v10 = vrot.slane %v1156_v2, 1  ;;  %v1046_v12 = vmax.f32 %v779_v4, 0.0  ;;  %v781_v13 = vadd.f32 %v780_v9, %v8661_v57  ;;  %v2640_v4 = vrot.slane %v8775_v50, 2 }
 0x148   :  { %v8817_v14 = vpack.c.bf16 %v1484_v8, %v1483_v7  ;;  %v782_v15 = vpop.f32.mrf.mxu0  ;;  %v2639_v51 = vsel %vm2630_vm3, %v2636_v6, %v2638_v34 }
 0x149   :  { %v1157_v16 = vmax.f32 %v1045_v11, %v1046_v12  ;;  %v783_v18 = vadd.f32 %v782_v15, %v8653_v53  ;;  %v1308_v21 = vsel %vm1269_vm2, %v1305_v58, %v1307_v10  ;;  %v1047_v25 = vmax.f32 %v781_v13, 0.0 }
 0x14a   :  { %v786_v19 = vpop.f32.mrf.mxu0  ;;  %2862 = vmatmul.mubr.bf16.gmra.mxu0 %v2637_v20  ;;  %v1648_v22 = vrot.slane %v8817_v14, 1  ;;  %v1485_v35 = vmax.f32 %v1155_v48, %v1308_v21  ;;  %v2641_v21 = vsel %vm2630_vm3, %v2638_v34, %v2640_v4  ;;  %v2642_v34 = vrot.slane %v8789_v17, 2 }
 0x14b   :  { %v1309_v24 = vrot.slane %v1157_v16, 1  ;;  %v1048_v26 = vmax.f32 %v783_v18, 0.0  ;;  %v787_v27 = vadd.f32 %v786_v19, %v8661_v57  ;;  %2871 = vmatprep.mubr.bf16.mxu0 %v12696_v5 }
 0x14c   :  { %v788_v28 = vpop.f32.mrf.mxu0  ;;  %v1649_v29 = vsel %vm1269_vm2, %v1646_v55, %v1648_v22 }
 0x14d   :  { %v1310_v31 = vsel %vm1269_vm2, %v1307_v10, %v1309_v24  ;;  %v1158_v32 = vmax.f32 %v1047_v25, %v1048_v26  ;;  %v789_v33 = vadd.f32 %v788_v28, %v8653_v53  ;;  %1914 = vmatmul.mubr.bf16.gmra.mxu1 %v1649_v29  ;;  %v1049_v39 = vmax.f32 %v787_v27, 0.0 }
 0x14e   :  { %v1486_v36 = vmax.f32 %v1156_v2, %v1310_v31  ;;  %v790_v37 = vpop.f32.mrf.mxu0  ;;  %1923 = vmatprep.mubr.bf16.mxu1 %v12696_v5 }
 0x14f   :  { %v1311_v38 = vrot.slane %v1158_v32, 1  ;;  %v1050_v40 = vmax.f32 %v789_v33, 0.0  ;;  %v791_v41 = vadd.f32 %v790_v37, %v8661_v57 }
 0x150   :  { %v8831_v42 = vpack.c.bf16 %v1486_v36, %v1485_v35  ;;  %v792_v43 = vpop.f32.mrf.mxu0 }
 0x151   :  { %v1159_v46 = vmax.f32 %v1049_v39, %v1050_v40  ;;  %v793_v49 = vadd.f32 %v792_v43, %v8653_v53  ;;  %v1312_v54 = vsel %vm1269_vm2, %v1309_v24, %v1311_v38  ;;  %v1051_v58 = vmax.f32 %v791_v41, 0.0 }
 0x152   :  { %v796_v48 = vpop.f32.mrf.mxu0  ;;  %2872 = vmatmul.mubr.bf16.gmra.mxu0 %v2639_v51  ;;  %v1650_v52 = vrot.slane %v8831_v42, 1  ;;  %v1487_v6 = vmax.f32 %v1157_v16, %v1312_v54 }
 0x153   :  { %v1313_v55 = vrot.slane %v1159_v46, 1  ;;  %v1052_v59 = vmax.f32 %v793_v49, 0.0  ;;  %v797_v61 = vadd.f32 %v796_v48, %v8661_v57  ;;  %2881 = vmatprep.mubr.bf16.mxu0 %v12696_v5  ;;  %v2643_v48 = vsel %vm2630_vm3, %v2640_v4, %v2642_v34 }
 0x154   :  { %v798_v62 = vpop.f32.mrf.mxu0  ;;  %v1651_v63 = vsel %vm1269_vm2, %v1648_v22, %v1650_v52 }
 0x155   :  { %v1314_v0 = vsel %vm1269_vm2, %v1311_v38, %v1313_v55  ;;  %v1160_v1 = vmax.f32 %v1051_v58, %v1052_v59  ;;  %v799_v2 = vadd.f32 %v798_v62, %v8653_v53  ;;  %1924 = vmatmul.mubr.bf16.gmra.mxu1 %v1651_v63  ;;  %v1053_v10 = vmax.f32 %v797_v61, 0.0 }
 0x156   :  { %v1488_v7 = vmax.f32 %v1158_v32, %v1314_v0  ;;  %v800_v8 = vpop.f32.mrf.mxu0  ;;  %1933 = vmatprep.mubr.bf16.mxu1 %v12696_v5 }
 0x157   :  { %v1315_v9 = vrot.slane %v1160_v1, 1  ;;  %v1054_v11 = vmax.f32 %v799_v2, 0.0  ;;  %v801_v12 = vadd.f32 %v800_v8, %v8661_v57 }
 0x158   :  { %v8845_v13 = vpack.c.bf16 %v1488_v7, %v1487_v6  ;;  %v802_v15 = vpop.f32.mrf.mxu0  ;;  %v2644_v6 = vrot.slane %v8803_v45, 2 }
 0x159   :  { %v1161_v18 = vmax.f32 %v1053_v10, %v1054_v11  ;;  %v803_v20 = vadd.f32 %v802_v15, %v8653_v53  ;;  %v1316_v19 = vsel %vm1269_vm2, %v1313_v55, %v1315_v9  ;;  %v1055_v25 = vmax.f32 %v801_v12, 0.0 }
 0x15a   :  { %v806_v16 = vpop.f32.mrf.mxu0  ;;  %2882 = vmatmul.mubr.bf16.gmra.mxu0 %v2641_v21  ;;  %v1652_v22 = vrot.slane %v8845_v13, 1  ;;  %v1489_v35 = vmax.f32 %v1159_v46, %v1316_v19 }
 0x15b   :  { %v1317_v24 = vrot.slane %v1161_v18, 1  ;;  %v1056_v26 = vmax.f32 %v803_v20, 0.0  ;;  %v807_v27 = vadd.f32 %v806_v16, %v8661_v57  ;;  %2891 = vmatprep.mubr.bf16.mxu0 %v12696_v5 }
 0x15c   :  { %v808_v28 = vpop.f32.mrf.mxu0  ;;  %v1653_v29 = vsel %vm1269_vm2, %v1650_v52, %v1652_v22 }
 0x15d   :  { %v1318_v31 = vsel %vm1269_vm2, %v1315_v9, %v1317_v24  ;;  %v1162_v32 = vmax.f32 %v1055_v25, %v1056_v26  ;;  %v809_v33 = vadd.f32 %v808_v28, %v8653_v53  ;;  %1934 = vmatmul.mubr.bf16.gmra.mxu1 %v1653_v29  ;;  %v1057_v39 = vmax.f32 %v807_v27, 0.0 }
 0x15e   :  { %v1490_v36 = vmax.f32 %v1160_v1, %v1318_v31  ;;  %v810_v37 = vpop.f32.mrf.mxu0  ;;  %1943 = vmatprep.mubr.bf16.mxu1 %v12696_v5 }
 0x15f   :  { %v1319_v38 = vrot.slane %v1162_v32, 1  ;;  %v1058_v40 = vmax.f32 %v809_v33, 0.0  ;;  %v811_v41 = vadd.f32 %v810_v37, %v8661_v57 }
 0x160   :  { %v8859_v43 = vpack.c.bf16 %v1490_v36, %v1489_v35  ;;  %v812_v49 = vpop.f32.mrf.mxu0  ;;  %v2646_v36 = vrot.slane %v8817_v14, 2 }
 0x161   :  { %v1163_v51 = vmax.f32 %v1057_v39, %v1058_v40  ;;  %v813_v54 = vadd.f32 %v812_v49, %v8653_v53  ;;  %v1320_v52 = vsel %vm1269_vm2, %v1317_v24, %v1319_v38  ;;  %v1059_v59 = vmax.f32 %v811_v41, 0.0 }
 0x162   :  { %v816_v46 = vpop.f32.mrf.mxu0  ;;  %2892 = vmatmul.mubr.bf16.gmra.mxu0 %v2643_v48  ;;  %v1654_v55 = vrot.slane %v8859_v43, 1  ;;  %v1491_v7 = vmax.f32 %v1161_v18, %v1320_v52 }
 0x163   :  { %v1321_v58 = vrot.slane %v1163_v51, 1  ;;  %v1060_v61 = vmax.f32 %v813_v54, 0.0  ;;  %v817_v62 = vadd.f32 %v816_v46, %v8661_v57  ;;  %2901 = vmatprep.mubr.bf16.mxu0 %v12696_v5 }
 0x164   :  { %v818_v63 = vpop.f32.mrf.mxu0  ;;  %v1655_v0 = vsel %vm1269_vm2, %v1652_v22, %v1654_v55  ;;  %v2645_v22 = vsel %vm2630_vm3, %v2642_v34, %v2644_v6 }
 0x165   :  { %v1322_v1 = vsel %vm1269_vm2, %v1319_v38, %v1321_v58  ;;  %v1164_v2 = vmax.f32 %v1059_v59, %v1060_v61  ;;  %v819_v4 = vadd.f32 %v818_v63, %v8653_v53  ;;  %1944 = vmatmul.mubr.bf16.gmra.mxu1 %v1655_v0  ;;  %v1061_v11 = vmax.f32 %v817_v62, 0.0 }
 0x166   :  { %v1492_v8 = vmax.f32 %v1162_v32, %v1322_v1  ;;  %v820_v9 = vpop.f32.mrf.mxu0  ;;  %1953 = vmatprep.mubr.bf16.mxu1 %v12696_v5 }
 0x167   :  { %v1323_v10 = vrot.slane %v1164_v2, 1  ;;  %v1062_v12 = vmax.f32 %v819_v4, 0.0  ;;  %v821_v15 = vadd.f32 %v820_v9, %v8661_v57  ;;  %v2648_v9 = vrot.slane %v8831_v42, 2 }
 0x168   :  { %v8873_v20 = vpack.c.bf16 %v1492_v8, %v1491_v7  ;;  %v822_v21 = vpop.f32.mrf.mxu0 }
 0x169   :  { %v1165_v19 = vmax.f32 %v1061_v11, %v1062_v12  ;;  %v823_v16 = vadd.f32 %v822_v21, %v8653_v53  ;;  %v1324_v24 = vsel %vm1269_vm2, %v1321_v58, %v1323_v10  ;;  %v1063_v27 = vmax.f32 %v821_v15, 0.0 }
 0x16a   :  { %v826_v18 = vpop.f32.mrf.mxu0  ;;  %2902 = vmatmul.mubr.bf16.gmra.mxu0 %v2645_v22  ;;  %v1656_v25 = vrot.slane %v8873_v20, 1  ;;  %v1493_v37 = vmax.f32 %v1163_v51, %v1324_v24  ;;  %v2647_v58 = vsel %vm2630_vm3, %v2644_v6, %v2646_v36 }
 0x16b   :  { %v1325_v26 = vrot.slane %v1165_v19, 1  ;;  %v1064_v28 = vmax.f32 %v823_v16, 0.0  ;;  %v827_v29 = vadd.f32 %v826_v18, %v8661_v57  ;;  %2911 = vmatprep.mubr.bf16.mxu0 %v12696_v5 }
 0x16c   :  { %v828_v31 = vpop.f32.mrf.mxu0  ;;  %v1657_v32 = vsel %vm1269_vm2, %v1654_v55, %v1656_v25 }
 0x16d   :  { %v1326_v33 = vsel %vm1269_vm2, %v1323_v10, %v1325_v26  ;;  %v1166_v35 = vmax.f32 %v1063_v27, %v1064_v28  ;;  %v829_v34 = vadd.f32 %v828_v31, %v8653_v53  ;;  %1954 = vmatmul.mubr.bf16.gmra.mxu1 %v1657_v32  ;;  %v1065_v41 = vmax.f32 %v827_v29, 0.0 }
 0x16e   :  { %v1494_v38 = vmax.f32 %v1164_v2, %v1326_v33  ;;  %v830_v39 = vpop.f32.mrf.mxu0  ;;  %1963 = vmatprep.mubr.bf16.mxu1 %v12696_v5  ;;  %v2649_v27 = vsel %vm2630_vm3, %v2646_v36, %v2648_v9 }
 0x16f   :  { %v1327_v40 = vrot.slane %v1166_v35, 1  ;;  %v1066_v49 = vmax.f32 %v829_v34, 0.0  ;;  %v831_v54 = vadd.f32 %v830_v39, %v8661_v57  ;;  %v8138_v34 = vld [vmem:[%s12688_s2 + $0x74] ss:$8 sps:$4 sm:$0xff]  }
 0x170   :  { %v8887_v48 = vpack.c.bf16 %v1494_v38, %v1493_v37  ;;  %v832_v52 = vpop.f32.mrf.mxu0  ;;  %v8136_v38 = vld [vmem:[%s12688_s2 + $0x70] ss:$8 sps:$4 sm:$0xff]   ;;  %2252 = vmatprep.subr.bf16.mxu1 %v8138_v34 }
 0x171   :  { %v1167_v46 = vmax.f32 %v1065_v41, %v1066_v49  ;;  %v833_v55 = vadd.f32 %v832_v52, %v8653_v53  ;;  %v1328_v59 = vsel %vm1269_vm2, %v1325_v26, %v1327_v40  ;;  %v1067_v63 = vmax.f32 %v831_v54, 0.0  ;;  %2253 = vmatpush1.bf16.msra.mxu1 %v8136_v38 }
 0x172   :  { %v836_v51 = vpop.f32.mrf.mxu0  ;;  %2912 = vmatmul.mubr.bf16.gmra.mxu0 %v2647_v58  ;;  %v1658_v61 = vrot.slane %v8887_v48, 1  ;;  %v1495_v10 = vmax.f32 %v1165_v19, %v1328_v59  ;;  %v2650_v49 = vrot.slane %v8845_v13, 2 }
 0x173   :  { %v1329_v62 = vrot.slane %v1167_v46, 1  ;;  %v1068_v0 = vmax.f32 %v833_v55, 0.0  ;;  %v837_v1 = vadd.f32 %v836_v51, %v8661_v57  ;;  %2921 = vmatprep.mubr.bf16.mxu0 %v12696_v5 }
 0x174   :  { %v838_v2 = vpop.f32.mrf.mxu0  ;;  %v1659_v4 = vsel %vm1269_vm2, %v1656_v25, %v1658_v61 }
 0x175   :  { %v1330_v7 = vsel %vm1269_vm2, %v1327_v40, %v1329_v62  ;;  %v1168_v8 = vmax.f32 %v1067_v63, %v1068_v0  ;;  %v839_v6 = vadd.f32 %v838_v2, %v8653_v53  ;;  %1964 = vmatmul.mubr.bf16.gmra.mxu1 %v1659_v4  ;;  %v1069_v21 = vmax.f32 %v837_v1, 0.0 }
 0x176   :  { %v1496_v11 = vmax.f32 %v1166_v35, %v1330_v7  ;;  %v840_v12 = vpop.f32.mrf.mxu0  ;;  %1973 = vmatprep.mubr.bf16.mxu1 %v12696_v5  ;;  %v2651_v4 = vsel %vm2630_vm3, %v2648_v9, %v2650_v49  ;;  %v8144_v9 = vld [vmem:[%s12688_s2 + $0x54] ss:$8 sps:$4 sm:$0xff]  }
 0x177   :  { %v1331_v15 = vrot.slane %v1168_v8, 1  ;;  %v1070_v16 = vmax.f32 %v839_v6, 0.0  ;;  %v841_v22 = vadd.f32 %v840_v12, %v8661_v57 }
 0x178   :  { %v8901_v24 = vpack.c.bf16 %v1496_v11, %v1495_v10  ;;  %v842_v18 = vpop.f32.mrf.mxu0 }
 0x179   :  { %v8903_v25 = vmax.f32 %v1069_v21, %v1070_v16  ;;  %v843_v26 = vadd.f32 %v842_v18, %v8653_v53  ;;  %v1332_v19 = vsel %vm1269_vm2, %v1329_v62, %v1331_v15  ;;  %v1071_v32 = vmax.f32 %v841_v22, 0.0  ;;  %v8141_v62 = vld [vmem:[%s12688_s2 + $0x64] ss:$8 sps:$4 sm:$0xff]   ;;  %v8142_v22 = vld [vmem:[%s12688_s2 + $0x50] ss:$8 sps:$4 sm:$0xff]  }
 0x17a   :  { %v846_v28 = vpop.f32.mrf.mxu0  ;;  %2922 = vmatmul.mubr.bf16.gmra.mxu0 %v2649_v27  ;;  %v1660_v29 = vrot.slane %v8901_v24, 1  ;;  %v1497_v54 = vmax.f32 %v1167_v46, %v1332_v19  ;;  %v8139_v46 = vld [vmem:[%s12688_s2 + $0x60] ss:$8 sps:$4 sm:$0xff]   ;;  %2254 = vmatprep.subr.bf16.mxu1 %v8141_v62  ;;  %v2652_v19 = vrot.slane %v8859_v43, 2 }
 0x17b   :  { %v1333_v31 = vrot.slane %v8903_v25, 1  ;;  %v1072_v33 = vmax.f32 %v843_v26, 0.0  ;;  %v847_v35 = vadd.f32 %v846_v28, %v8661_v57  ;;  %2931 = vmatprep.mubr.bf16.mxu0 %v12696_v5  ;;  %2255 = vmatpush1.bf16.msra.mxu1 %v8139_v46  ;;  %v8148_v46 = vld [vmem:[%s12688_s2 + $0x30] ss:$8 sps:$4 sm:$0xff]  }
 0x17c   :  { %v848_v37 = vpop.f32.mrf.mxu0  ;;  %v1661_v36 = vsel %vm1269_vm2, %v1658_v61, %v1660_v29  ;;  %2256 = vmatprep.subr.bf16.mxu1 %v8144_v9 }
 0x17d   :  { %v1334_v39 = vsel %vm1269_vm2, %v1331_v15, %v1333_v31  ;;  %v1170_v40 = vmax.f32 %v1071_v32, %v1072_v33  ;;  %v849_v41 = vadd.f32 %v848_v37, %v8653_v53  ;;  %1974 = vmatmul.mubr.bf16.gmra.mxu1 %v1661_v36  ;;  %v1073_v59 = vmax.f32 %v847_v35, 0.0  ;;  %v8147_v37 = vld [vmem:[%s12688_s2 + $0x44] ss:$8 sps:$4 sm:$0xff]  }
 0x17e   :  { %v1498_v52 = vmax.f32 %v1168_v8, %v1334_v39  ;;  %v850_v55 = vpop.f32.mrf.mxu0  ;;  %1983 = vmatprep.mubr.bf16.mxu1 %v12696_v5 }
 0x17f   :  { %v1335_v58 = vrot.slane %v1170_v40, 1  ;;  %v1074_v51 = vmax.f32 %v849_v41, 0.0  ;;  %v851_v61 = vadd.f32 %v850_v55, %v8661_v57  ;;  %2257 = vmatpush1.bf16.msra.mxu1 %v8142_v22  ;;  %v2653_v41 = vsel %vm2630_vm3, %v2650_v49, %v2652_v19  ;;  %v8150_v49 = vld [vmem:[%s12688_s2 + $0x34] ss:$8 sps:$4 sm:$0xff]  }
 0x180   :  { %v8927_v63 = vpack.c.bf16 %v1498_v52, %v1497_v54  ;;  %v852_v0 = vpop.f32.mrf.mxu0  ;;  %2258 = vmatprep.subr.bf16.mxu1 %v8147_v37 }
 0x181   :  { %v8932_v1 = vmax.f32 %v1073_v59, %v1074_v51  ;;  %v853_v2 = vadd.f32 %v852_v0, %v8653_v53  ;;  %v1336_v7 = vsel %vm1269_vm2, %v1333_v31, %v1335_v58  ;;  %v1075_v11 = vmax.f32 %v851_v61, 0.0 }
 0x182   :  { %v856_v8 = vpop.f32.mrf.mxu0  ;;  %2932 = vmatmul.mubr.bf16.gmra.mxu0 %v2651_v4  ;;  %v1662_v6 = vrot.slane %v8927_v63, 1  ;;  %v1499_v28 = vmax.f32 %v8903_v25, %v1336_v7  ;;  %v8145_v25 = vld [vmem:[%s12688_s2 + $0x40] ss:$8 sps:$4 sm:$0xff]  }
 0x183   :  { %v1337_v10 = vrot.slane %v8932_v1, 1  ;;  %v1076_v12 = vmax.f32 %v853_v2, 0.0  ;;  %v857_v15 = vadd.f32 %v856_v8, %v8661_v57  ;;  %2941 = vmatprep.mubr.bf16.mxu0 %v12696_v5  ;;  %2259 = vmatpush1.bf16.msra.mxu1 %v8145_v25  ;;  %v2654_v8 = vrot.slane %v8873_v20, 2 }
 0x184   :  { %v858_v21 = vpop.f32.mrf.mxu0  ;;  %v1663_v16 = vsel %vm1269_vm2, %v1660_v29, %v1662_v6  ;;  %2260 = vmatprep.subr.bf16.mxu1 %v8150_v49 }
 0x185   :  { %v1338_v18 = vsel %vm1269_vm2, %v1335_v58, %v1337_v10  ;;  %v1172_v26 = vmax.f32 %v1075_v11, %v1076_v12  ;;  %v859_v27 = vadd.f32 %v858_v21, %v8653_v53  ;;  %1984 = vmatmul.mubr.bf16.gmra.mxu1 %v1663_v16  ;;  %v1077_v33 = vmax.f32 %v857_v15, 0.0  ;;  %v8153_v16 = vld [vmem:[%s12688_s2 + $0x24] ss:$8 sps:$4 sm:$0xff]  }
 0x186   :  { %v1500_v31 = vmax.f32 %v1170_v40, %v1338_v18  ;;  %v860_v32 = vpop.f32.mrf.mxu0  ;;  %1993 = vmatprep.mubr.bf16.mxu1 %v12696_v5 }
 0x187   :  { %v1339_v29 = vrot.slane %v1172_v26, 1  ;;  %v1078_v35 = vmax.f32 %v859_v27, 0.0  ;;  %v861_v34 = vadd.f32 %v860_v32, %v8661_v57  ;;  %2261 = vmatpush1.bf16.msra.mxu1 %v8148_v46  ;;  %v8159_v46 = vld [vmem:[%s12688_s2 + $0x4] ss:$8 sps:$4 sm:$0xff]  }
 0x188   :  { %v8957_v36 = vpack.c.bf16 %v1500_v31, %v1499_v28  ;;  %v862_v38 = vpop.f32.mrf.mxu0  ;;  %v2655_v28 = vsel %vm2630_vm3, %v2652_v19, %v2654_v8  ;;  %2262 = vmatprep.subr.bf16.mxu1 %v8153_v16  ;;  %v8156_v19 = vld [vmem:[%s12688_s2 + $0x14] ss:$8 sps:$4 sm:$0xff]  }
 0x189   :  { %v8962_v39 = vmax.f32 %v1077_v33, %v1078_v35  ;;  %v863_v40 = vadd.f32 %v862_v38, %v8653_v53  ;;  %v1340_v54 = vsel %vm1269_vm2, %v1337_v10, %v1339_v29  ;;  %v1079_v59 = vmax.f32 %v861_v34, 0.0 }
 0x18a   :  { %v866_v52 = vpop.f32.mrf.mxu0  ;;  %2942 = vmatmul.mubr.bf16.gmra.mxu0 %v2653_v41  ;;  %v1664_v55 = vrot.slane %v8957_v36, 1  ;;  %v1501_v10 = vmax.f32 %v8932_v1, %v1340_v54  ;;  %v8151_v1 = vld [vmem:[%s12688_s2 + $0x20] ss:$8 sps:$4 sm:$0xff]  }
 0x18b   :  { %v1341_v58 = vrot.slane %v8962_v39, 1  ;;  %v1080_v51 = vmax.f32 %v863_v40, 0.0  ;;  %v867_v61 = vadd.f32 %v866_v52, %v8661_v57  ;;  %2951 = vmatprep.mubr.bf16.mxu0 %v12696_v5  ;;  %2263 = vmatpush1.bf16.msra.mxu1 %v8151_v1  ;;  %v8154_v40 = vld [vmem:[%s12688_s2 + $0x10] ss:$8 sps:$4 sm:$0xff]  }
 0x18c   :  { %v868_v62 = vpop.f32.mrf.mxu0  ;;  %v1665_v0 = vsel %vm1269_vm2, %v1662_v6, %v1664_v55  ;;  %2264 = vmatprep.subr.bf16.mxu1 %v8156_v19 }
 0x18d   :  { %v1342_v2 = vsel %vm1269_vm2, %v1339_v29, %v1341_v58  ;;  %v1174_v4 = vmax.f32 %v1079_v59, %v1080_v51  ;;  %v869_v7 = vadd.f32 %v868_v62, %v8653_v53  ;;  %1994 = vmatmul.mubr.bf16.gmra.mxu1 %v1665_v0  ;;  %v1081_v15 = vmax.f32 %v867_v61, 0.0 }
 0x18e   :  { %v1502_v11 = vmax.f32 %v1172_v26, %v1342_v2  ;;  %v870_v12 = vpop.f32.mrf.mxu0  ;;  %2003 = vmatprep.mubr.bf16.mxu1 %v12696_v5 }
 0x18f   :  { %v1343_v6 = vrot.slane %v1174_v4, 1  ;;  %v1082_v9 = vmax.f32 %v869_v7, 0.0  ;;  %v871_v21 = vadd.f32 %v870_v12, %v8661_v57  ;;  %2265 = vmatpush1.bf16.msra.mxu1 %v8154_v40 }
 0x190   :  { %v8987_v22 = vpack.c.bf16 %v1502_v11, %v1501_v10  ;;  %v872_v18 = vpop.f32.mrf.mxu0  ;;  %2266 = vmatprep.subr.bf16.mxu1 %v8159_v46 }
 0x191   :  { %v8992_v26 = vmax.f32 %v1081_v15, %v1082_v9  ;;  %v873_v27 = vadd.f32 %v872_v18, %v8653_v53  ;;  %v1344_v31 = vsel %vm1269_vm2, %v1341_v58, %v1343_v6  ;;  %v1083_v35 = vmax.f32 %v871_v21, 0.0 }
 0x192   :  { %v876_v32 = vpop.f32.mrf.mxu0  ;;  %2952 = vmatmul.mubr.bf16.gmra.mxu0 %v2655_v28  ;;  %v1666_v29 = vrot.slane %v8987_v22, 1  ;;  %v2656_v58 = vrot.slane %v8887_v48, 2  ;;  %v1503_v59 = vmax.f32 %v8962_v39, %v1344_v31  ;;  %v8157_v39 = vld [vmem:[%s12688_s2] ss:$8 sps:$4 sm:$0xff]  }
 0x193   :  { %v1345_v33 = vrot.slane %v8992_v26, 1  ;;  %v1084_v34 = vmax.f32 %v873_v27, 0.0  ;;  %v877_v37 = vadd.f32 %v876_v32, %v8661_v57  ;;  %2961 = vmatprep.mubr.bf16.mxu0 %v12696_v5  ;;  %2267 = vmatpush1.bf16.msra.mxu1 %v8157_v39  ;;  %v2658_v32 = vrot.slane %v8901_v24, 2  ;;  %v8165_v39 = vld [vmem:[%s12688_s2 + $0x264] ss:$8 sps:$4 sm:$0xff]  }
 0x194   :  { %v878_v38 = vpop.f32.mrf.mxu0  ;;  %v1667_v25 = vsel %vm1269_vm2, %v1664_v55, %v1666_v29  ;;  %v2657_v11 = vsel %vm2630_vm3, %v2654_v8, %v2656_v58 }
 0x195   :  { %v1346_v41 = vsel %vm1269_vm2, %v1343_v6, %v1345_v33  ;;  %v1176_v54 = vmax.f32 %v1083_v35, %v1084_v34  ;;  %v879_v52 = vadd.f32 %v878_v38, %v8653_v53  ;;  %2004 = vmatmul.mubr.bf16.gmra.mxu1 %v1667_v25  ;;  %v1085_v49 = vmax.f32 %v877_v37, 0.0 }
 0x196   :  { %v1504_v51 = vmax.f32 %v1174_v4, %v1346_v41  ;;  %v880_v61 = vpop.f32.mrf.mxu0  ;;  %2013 = vmatprep.mubr.bf16.mxu1 %v12696_v5  ;;  %v8162_v41 = vld [vmem:[%s12688_s2 + $0x274] ss:$8 sps:$4 sm:$0xff]  }
 0x197   :  { %v1347_v55 = vrot.slane %v1176_v54, 1  ;;  %v1086_v62 = vmax.f32 %v879_v52, 0.0  ;;  %v881_v0 = vadd.f32 %v880_v61, %v8661_v57  ;;  %4183 = vmatprep.subr.bf16.mxu0 %v8162_v41 }
 0x198   :  { %v9017_v2 = vpack.c.bf16 %v1504_v51, %v1503_v59  ;;  %v882_v7 = vpop.f32.mrf.mxu0  ;;  %v8160_v59 = vld [vmem:[%s12688_s2 + $0x270] ss:$8 sps:$4 sm:$0xff]  }
 0x199   :  { %v9022_v4 = vmax.f32 %v1085_v49, %v1086_v62  ;;  %v883_v10 = vadd.f32 %v882_v7, %v8653_v53  ;;  %v1348_v12 = vsel %vm1269_vm2, %v1345_v33, %v1347_v55  ;;  %v1087_v21 = vmax.f32 %v881_v0, 0.0  ;;  %4184 = vmatpush1.bf16.msra.mxu0 %v8160_v59 }
 0x19a   :  { %v886_v6 = vpop.f32.mrf.mxu0  ;;  %2962 = vmatmul.mubr.bf16.gmra.mxu0 %v2657_v11  ;;  %v1668_v15 = vrot.slane %v9017_v2, 1  ;;  %v1505_v33 = vmax.f32 %v8992_v26, %v1348_v12  ;;  %4185 = vmatprep.subr.bf16.mxu0 %v8165_v39 }
 0x19b   :  { %v1349_v9 = vrot.slane %v9022_v4, 1  ;;  %v1088_v16 = vmax.f32 %v883_v10, 0.0  ;;  %v887_v18 = vadd.f32 %v886_v6, %v8661_v57  ;;  %2971 = vmatprep.mubr.bf16.mxu0 %v12696_v5  ;;  %v2660_v6 = vrot.slane %v8927_v63, 2 }
 0x19c   :  { %v888_v1 = vpop.f32.mrf.mxu0  ;;  %v1669_v27 = vsel %vm1269_vm2, %v1666_v29, %v1668_v15 }
 0x19d   :  { %v1350_v8 = vsel %vm1269_vm2, %v1347_v55, %v1349_v9  ;;  %v1178_v28 = vmax.f32 %v1087_v21, %v1088_v16  ;;  %v889_v31 = vadd.f32 %v888_v1, %v8653_v53  ;;  %2014 = vmatmul.mubr.bf16.gmra.mxu1 %v1669_v27  ;;  %v1089_v19 = vmax.f32 %v887_v18, 0.0 }
 0x19e   :  { %v1506_v35 = vmax.f32 %v1176_v54, %v1350_v8  ;;  %v890_v34 = vpop.f32.mrf.mxu0  ;;  %2023 = vmatprep.mubr.bf16.mxu1 %v12696_v5  ;;  %v2659_v54 = vsel %vm2630_vm3, %v2656_v58, %v2658_v32 }
 0x19f   :  { %v1351_v37 = vrot.slane %v1178_v28, 1  ;;  %v1090_v38 = vmax.f32 %v889_v31, 0.0  ;;  %v891_v25 = vadd.f32 %v890_v34, %v8661_v57 }
 0x1a0   :  { %v9038_v29 = vpack.c.bf16 %v1506_v35, %v1505_v33  ;;  %v892_v40 = vpop.f32.mrf.mxu0  ;;  %v8168_v35 = vld [vmem:[%s12688_s2 + $0x254] ss:$8 sps:$4 sm:$0xff]  }
 0x1a1   :  { %v9043_v52 = vmax.f32 %v1089_v19, %v1090_v38  ;;  %v893_v26 = vadd.f32 %v892_v40, %v8653_v53  ;;  %v1352_v51 = vsel %vm1269_vm2, %v1349_v9, %v1351_v37  ;;  %v1091_v62 = vmax.f32 %v891_v25, 0.0  ;;  %v8163_v9 = vld [vmem:[%s12688_s2 + $0x260] ss:$8 sps:$4 sm:$0xff]  }
 0x1a2   :  { %v896_v61 = vpop.f32.mrf.mxu0  ;;  %2972 = vmatmul.mubr.bf16.gmra.mxu0 %v2659_v54  ;;  %v1670_v55 = vrot.slane %v9038_v29, 1  ;;  %v1507_v21 = vmax.f32 %v9022_v4, %v1352_v51  ;;  %v8171_v51 = vld [vmem:[%s12688_s2 + $0x244] ss:$8 sps:$4 sm:$0xff]  }
 0x1a3   :  { %v1353_v49 = vrot.slane %v9043_v52, 1  ;;  %v1092_v0 = vmax.f32 %v893_v26, 0.0  ;;  %v897_v46 = vadd.f32 %v896_v61, %v8661_v57  ;;  %2981 = vmatprep.mubr.bf16.mxu0 %v12696_v5  ;;  %4186 = vmatpush1.bf16.msra.mxu0 %v8163_v9 }
 0x1a4   :  { %v898_v58 = vpop.f32.mrf.mxu0  ;;  %v1671_v7 = vsel %vm1269_vm2, %v1668_v15, %v1670_v55  ;;  %4187 = vmatprep.subr.bf16.mxu0 %v8168_v35 }
 0x1a5   :  { %v1354_v10 = vsel %vm1269_vm2, %v1351_v37, %v1353_v49  ;;  %v1180_v11 = vmax.f32 %v1091_v62, %v1092_v0  ;;  %v899_v12 = vadd.f32 %v898_v58, %v8653_v53  ;;  %2024 = vmatmul.mubr.bf16.gmra.mxu1 %v1671_v7  ;;  %v1093_v1 = vmax.f32 %v897_v46, 0.0  ;;  %v8166_v37 = vld [vmem:[%s12688_s2 + $0x250] ss:$8 sps:$4 sm:$0xff]   ;;  %v8169_v46 = vld [vmem:[%s12688_s2 + $0x240] ss:$8 sps:$4 sm:$0xff]  }
 0x1a6   :  { %v1508_v16 = vmax.f32 %v1178_v28, %v1354_v10  ;;  %v900_v15 = vpop.f32.mrf.mxu0  ;;  %2033 = vmatprep.mubr.bf16.mxu1 %v12696_v5  ;;  %v2661_v28 = vsel %vm2630_vm3, %v2658_v32, %v2660_v6  ;;  %v2662_v0 = vrot.slane %v8957_v36, 2 }
 0x1a7   :  { %v1355_v18 = vrot.slane %v1180_v11, 1  ;;  %v1094_v27 = vmax.f32 %v899_v12, 0.0  ;;  %v901_v8 = vadd.f32 %v900_v15, %v8661_v57  ;;  %4188 = vmatpush1.bf16.msra.mxu0 %v8166_v37  ;;  %v8174_v15 = vld [vmem:[%s12688_s2 + $0x234] ss:$8 sps:$4 sm:$0xff]  }
 0x1a8   :  { %v9068_v31 = vpack.c.bf16 %v1508_v16, %v1507_v21  ;;  %v902_v33 = vpop.f32.mrf.mxu0  ;;  %4189 = vmatprep.subr.bf16.mxu0 %v8171_v51 }
 0x1a9   :  { %v9073_v34 = vmax.f32 %v1093_v1, %v1094_v27  ;;  %v903_v4 = vadd.f32 %v902_v33, %v8653_v53  ;;  %v1356_v19 = vsel %vm1269_vm2, %v1353_v49, %v1355_v18  ;;  %v1095_v41 = vmax.f32 %v901_v8, 0.0  ;;  %v8172_v1 = vld [vmem:[%s12688_s2 + $0x230] ss:$8 sps:$4 sm:$0xff]  }
 0x1aa   :  { %v906_v38 = vpop.f32.mrf.mxu0  ;;  %2982 = vmatmul.mubr.bf16.gmra.mxu0 %v2661_v28  ;;  %v1672_v25 = vrot.slane %v9068_v31, 1  ;;  %v1509_v58 = vmax.f32 %v9043_v52, %v1356_v19 }
 0x1ab   :  { %v1357_v40 = vrot.slane %v9073_v34, 1  ;;  %v1096_v26 = vmax.f32 %v903_v4, 0.0  ;;  %v907_v54 = vadd.f32 %v906_v38, %v8661_v57  ;;  %2991 = vmatprep.mubr.bf16.mxu0 %v12696_v5  ;;  %4190 = vmatpush1.bf16.msra.mxu0 %v8169_v46  ;;  %v8177_v38 = vld [vmem:[%s12688_s2 + $0x224] ss:$8 sps:$4 sm:$0xff]  }
 0x1ac   :  { %v908_v32 = vpop.f32.mrf.mxu0  ;;  %v1673_v59 = vsel %vm1269_vm2, %v1670_v55, %v1672_v25  ;;  %4191 = vmatprep.subr.bf16.mxu0 %v8174_v15 }
 0x1ad   :  { %v1358_v61 = vsel %vm1269_vm2, %v1355_v18, %v1357_v40  ;;  %v1182_v49 = vmax.f32 %v1095_v41, %v1096_v26  ;;  %v909_v62 = vadd.f32 %v908_v32, %v8653_v53  ;;  %2034 = vmatmul.mubr.bf16.gmra.mxu1 %v1673_v59  ;;  %v1097_v10 = vmax.f32 %v907_v54, 0.0  ;;  %v8175_v32 = vld [vmem:[%s12688_s2 + $0x220] ss:$8 sps:$4 sm:$0xff]  }
 0x1ae   :  { %v1510_v7 = vmax.f32 %v1180_v11, %v1358_v61  ;;  %v910_v55 = vpop.f32.mrf.mxu0  ;;  %2043 = vmatprep.mubr.bf16.mxu1 %v12696_v5  ;;  %v2663_v11 = vsel %vm2630_vm3, %v2660_v6, %v2662_v0  ;;  %v2664_v54 = vrot.slane %v8987_v22, 2 }
 0x1af   :  { %v1359_v39 = vrot.slane %v1182_v49, 1  ;;  %v1098_v12 = vmax.f32 %v909_v62, 0.0  ;;  %v911_v9 = vadd.f32 %v910_v55, %v8661_v57  ;;  %4192 = vmatpush1.bf16.msra.mxu0 %v8172_v1 }
 0x1b0   :  { %v9098_v21 = vpack.c.bf16 %v1510_v7, %v1509_v58  ;;  %v912_v16 = vpop.f32.mrf.mxu0  ;;  %4193 = vmatprep.subr.bf16.mxu0 %v8177_v38 }
 0x1b1   :  { %v9103_v18 = vmax.f32 %v1097_v10, %v1098_v12  ;;  %v913_v52 = vadd.f32 %v912_v16, %v8653_v53  ;;  %v1360_v27 = vsel %vm1269_vm2, %v1357_v40, %v1359_v39  ;;  %v1099_v4 = vmax.f32 %v911_v9, 0.0  ;;  %v8178_v12 = vld [vmem:[%s12688_s2 + $0x210] ss:$8 sps:$4 sm:$0xff]  }
 0x1b2   :  { %v916_v8 = vpop.f32.mrf.mxu0  ;;  %2992 = vmatmul.mubr.bf16.gmra.mxu0 %v2663_v11  ;;  %v1674_v33 = vrot.slane %v9098_v21, 1  ;;  %v1511_v59 = vmax.f32 %v9073_v34, %v1360_v27 }
 0x1b3   :  { %v1361_v35 = vrot.slane %v9103_v18, 1  ;;  %v1100_v28 = vmax.f32 %v913_v52, 0.0  ;;  %v917_v37 = vadd.f32 %v916_v8, %v8661_v57  ;;  %3001 = vmatprep.mubr.bf16.mxu0 %v12696_v5  ;;  %4194 = vmatpush1.bf16.msra.mxu0 %v8175_v32 }
 0x1b4   :  { %v918_v6 = vpop.f32.mrf.mxu0  ;;  %v1675_v19 = vsel %vm1269_vm2, %v1672_v25, %v1674_v33 }
 0x1b5   :  { %v1362_v40 = vsel %vm1269_vm2, %v1359_v39, %v1361_v35  ;;  %v1184_v41 = vmax.f32 %v1099_v4, %v1100_v28  ;;  %v919_v26 = vadd.f32 %v918_v6, %v8653_v53  ;;  %2044 = vmatmul.mubr.bf16.gmra.mxu1 %v1675_v19  ;;  %v1101_v62 = vmax.f32 %v917_v37, 0.0  ;;  %v8180_v39 = vld [vmem:[%s12688_s2 + $0x214] ss:$8 sps:$4 sm:$0xff]   ;;  %v8181_v19 = vld [vmem:[%s12688_s2 + $0x200] ss:$8 sps:$4 sm:$0xff]  }
 0x1b6   :  { %v1512_v51 = vmax.f32 %v1182_v49, %v1362_v40  ;;  %v920_v25 = vpop.f32.mrf.mxu0  ;;  %2053 = vmatprep.mubr.bf16.mxu1 %v12696_v5  ;;  %v2665_v49 = vsel %vm2630_vm3, %v2662_v0, %v2664_v54  ;;  %4195 = vmatprep.subr.bf16.mxu0 %v8180_v39  ;;  %v2666_v6 = vrot.slane %v9017_v2, 2 }
 0x1b7   :  { %v1363_v61 = vrot.slane %v1184_v41, 1  ;;  %v1102_v46 = vmax.f32 %v919_v26, 0.0  ;;  %v921_v58 = vadd.f32 %v920_v25, %v8661_v57  ;;  %4196 = vmatpush1.bf16.msra.mxu0 %v8178_v12 }
 0x1b8   :  { %v9128_v7 = vpack.c.bf16 %v1512_v51, %v1511_v59  ;;  %v922_v55 = vpop.f32.mrf.mxu0 }
 0x1b9   :  { %v9133_v10 = vmax.f32 %v1101_v62, %v1102_v46  ;;  %v923_v34 = vadd.f32 %v922_v55, %v8653_v53  ;;  %v1364_v9 = vsel %vm1269_vm2, %v1361_v35, %v1363_v61  ;;  %v1103_v11 = vmax.f32 %v921_v58, 0.0  ;;  %v8183_v35 = vld [vmem:[%s12688_s2 + $0x204] ss:$8 sps:$4 sm:$0xff]  }
 0x1ba   :  { %v926_v16 = vpop.f32.mrf.mxu0  ;;  %3002 = vmatmul.mubr.bf16.gmra.mxu0 %v2665_v49  ;;  %v1676_v15 = vrot.slane %v9128_v7, 1  ;;  %v1513_v38 = vmax.f32 %v9103_v18, %v1364_v9  ;;  %4197 = vmatprep.subr.bf16.mxu0 %v8183_v35  ;;  %v2667_v58 = vsel %vm2630_vm3, %v2664_v54, %v2666_v6 }
 0x1bb   :  { %v1365_v52 = vrot.slane %v9133_v10, 1  ;;  %v1104_v1 = vmax.f32 %v923_v34, 0.0  ;;  %v927_v27 = vadd.f32 %v926_v16, %v8661_v57  ;;  %3011 = vmatprep.mubr.bf16.mxu0 %v12696_v5  ;;  %4198 = vmatpush1.bf16.msra.mxu0 %v8181_v19 }
 0x1bc   :  { %v928_v0 = vpop.f32.mrf.mxu0  ;;  %v1677_v8 = vsel %vm1269_vm2, %v1674_v33, %v1676_v15 }
 0x1bd   :  { %v1366_v4 = vsel %vm1269_vm2, %v1363_v61, %v1365_v52  ;;  %v1186_v28 = vmax.f32 %v1103_v11, %v1104_v1  ;;  %v929_v37 = vadd.f32 %v928_v0, %v8653_v53  ;;  %2054 = vmatmul.mubr.bf16.gmra.mxu1 %v1677_v8  ;;  %v1105_v32 = vmax.f32 %v927_v27, 0.0 }
 0x1be   :  { %v1514_v40 = vmax.f32 %v1184_v41, %v1366_v4  ;;  %v930_v33 = vpop.f32.mrf.mxu0  ;;  %2063 = vmatprep.mubr.bf16.mxu1 %v12696_v5 }
 0x1bf   :  { %v1367_v26 = vrot.slane %v1186_v28, 1  ;;  %v1106_v59 = vmax.f32 %v929_v37, 0.0  ;;  %v931_v51 = vadd.f32 %v930_v33, %v8661_v57 }
 0x1c0   :  { %v9158_v25 = vpack.c.bf16 %v1514_v40, %v1513_v38  ;;  %v932_v61 = vpop.f32.mrf.mxu0 }
 0x1c1   :  { %v1187_v62 = vmax.f32 %v1105_v32, %v1106_v59  ;;  %v933_v46 = vadd.f32 %v932_v61, %v8653_v53  ;;  %v1368_v18 = vsel %vm1269_vm2, %v1365_v52, %v1367_v26  ;;  %v1107_v34 = vmax.f32 %v931_v51, 0.0 }
 0x1c2   :  { %v936_v41 = vpop.f32.mrf.mxu0  ;;  %3012 = vmatmul.mubr.bf16.gmra.mxu0 %v2667_v58  ;;  %v1678_v55 = vrot.slane %v9158_v25, 1  ;;  %v2668_v52 = vrot.slane %v9038_v29, 2  ;;  %v1515_v27 = vmax.f32 %v9133_v10, %v1368_v18 }
 0x1c3   :  { %v1369_v39 = vrot.slane %v1187_v62, 1  ;;  %v1108_v49 = vmax.f32 %v933_v46, 0.0  ;;  %v937_v12 = vadd.f32 %v936_v41, %v8661_v57  ;;  %3021 = vmatprep.mubr.bf16.mxu0 %v12696_v5 }
 0x1c4   :  { %v938_v9 = vpop.f32.mrf.mxu0  ;;  %v1679_v16 = vsel %vm1269_vm2, %v1676_v15, %v1678_v55 }
 0x1c5   :  { %v1370_v11 = vsel %vm1269_vm2, %v1367_v26, %v1369_v39  ;;  %v1188_v1 = vmax.f32 %v1107_v34, %v1108_v49  ;;  %v939_v54 = vadd.f32 %v938_v9, %v8653_v53  ;;  %2064 = vmatmul.mubr.bf16.gmra.mxu1 %v1679_v16  ;;  %v1109_v4 = vmax.f32 %v937_v12, 0.0 }
 0x1c6   :  { %v1516_v0 = vmax.f32 %v1186_v28, %v1370_v11  ;;  %v940_v8 = vpop.f32.mrf.mxu0  ;;  %2073 = vmatprep.mubr.bf16.mxu1 %v12696_v5  ;;  %v2669_v26 = vsel %vm2630_vm3, %v2666_v6, %v2668_v52 }
 0x1c7   :  { %v1371_v35 = vrot.slane %v1188_v1, 1  ;;  %v1110_v37 = vmax.f32 %v939_v54, 0.0  ;;  %v941_v19 = vadd.f32 %v940_v8, %v8661_v57 }
 0x1c8   :  { %v9173_v15 = vpack.c.bf16 %v1516_v0, %v1515_v27  ;;  %v942_v38 = vpop.f32.mrf.mxu0 }
 0x1c9   :  { %v1189_v40 = vmax.f32 %v1109_v4, %v1110_v37  ;;  %v943_v33 = vadd.f32 %v942_v38, %v8653_v53  ;;  %v1372_v32 = vsel %vm1269_vm2, %v1369_v39, %v1371_v35  ;;  %v1111_v51 = vmax.f32 %v941_v19, 0.0 }
 0x1ca   :  { %v946_v10 = vpop.f32.mrf.mxu0  ;;  %3022 = vmatmul.mubr.bf16.gmra.mxu0 %v2669_v26  ;;  %v1680_v28 = vrot.slane %v9173_v15, 1  ;;  %v2670_v39 = vrot.slane %v9068_v31, 2  ;;  %v1517_v49 = vmax.f32 %v1187_v62, %v1372_v32 }
 0x1cb   :  { %v1373_v59 = vrot.slane %v1189_v40, 1  ;;  %v1112_v61 = vmax.f32 %v943_v33, 0.0  ;;  %v947_v46 = vadd.f32 %v946_v10, %v8661_v57  ;;  %3031 = vmatprep.mubr.bf16.mxu0 %v12696_v5 }
 0x1cc   :  { %v948_v58 = vpop.f32.mrf.mxu0  ;;  %v1681_v18 = vsel %vm1269_vm2, %v1678_v55, %v1680_v28  ;;  %v2671_v4 = vsel %vm2630_vm3, %v2668_v52, %v2670_v39 }
 0x1cd   :  { %v1374_v41 = vsel %vm1269_vm2, %v1371_v35, %v1373_v59  ;;  %v1190_v34 = vmax.f32 %v1111_v51, %v1112_v61  ;;  %v949_v6 = vadd.f32 %v948_v58, %v8653_v53  ;;  %2074 = vmatmul.mubr.bf16.gmra.mxu1 %v1681_v18  ;;  %v1113_v11 = vmax.f32 %v947_v46, 0.0 }
 0x1ce   :  { %v1518_v12 = vmax.f32 %v1188_v1, %v1374_v41  ;;  %v950_v9 = vpop.f32.mrf.mxu0  ;;  %2083 = vmatprep.mubr.bf16.mxu1 %v12696_v5  ;;  %v2672_v46 = vrot.slane %v9098_v21, 2 }
 0x1cf   :  { %v1375_v16 = vrot.slane %v1190_v34, 1  ;;  %v1114_v54 = vmax.f32 %v949_v6, 0.0  ;;  %v951_v27 = vadd.f32 %v950_v9, %v8661_v57 }
 0x1d0   :  { %v9187_v0 = vpack.c.bf16 %v1518_v12, %v1517_v49  ;;  %v952_v55 = vpop.f32.mrf.mxu0 }
 0x1d1   :  { %v9189_v8 = vmax.f32 %v1113_v11, %v1114_v54  ;;  %v953_v35 = vadd.f32 %v952_v55, %v8653_v53  ;;  %v1376_v62 = vsel %vm1269_vm2, %v1373_v59, %v1375_v16  ;;  %v1115_v38 = vmax.f32 %v951_v27, 0.0 }
 0x1d2   :  { %v956_v1 = vpop.f32.mrf.mxu0  ;;  %3032 = vmatmul.mubr.bf16.gmra.mxu0 %v2671_v4  ;;  %v1682_v37 = vrot.slane %v9187_v0, 1  ;;  %v1519_v58 = vmax.f32 %v1189_v40, %v1376_v62  ;;  %v2673_v40 = vsel %vm2630_vm3, %v2670_v39, %v2672_v46 }
 0x1d3   :  { %v1377_v19 = vrot.slane %v9189_v8, 1  ;;  %v1116_v33 = vmax.f32 %v953_v35, 0.0  ;;  %v957_v26 = vadd.f32 %v956_v1, %v8661_v57  ;;  %3041 = vmatprep.mubr.bf16.mxu0 %v12696_v5 }
 0x1d4   :  { %v958_v32 = vpop.f32.mrf.mxu0  ;;  %v1683_v10 = vsel %vm1269_vm2, %v1680_v28, %v1682_v37 }
 0x1d5   :  { %v1378_v51 = vsel %vm1269_vm2, %v1375_v16, %v1377_v19  ;;  %v1192_v52 = vmax.f32 %v1115_v38, %v1116_v33  ;;  %v959_v59 = vadd.f32 %v958_v32, %v8653_v53  ;;  %v9201_v61 = vpop.f32.mrf.mxu1  ;;  %2084 = vmatmul.mubr.bf16.gmra.mxu1 %v1683_v10  ;;  %v1117_v49 = vmax.f32 %v957_v26, 0.0 }
 0x1d6   :  { %v1520_v18 = vmax.f32 %v1190_v34, %v1378_v51  ;;  %v960_v41 = vpop.f32.mrf.mxu0  ;;  %2093 = vmatprep.mubr.bf16.mxu1 %v12696_v5 }
 0x1d7   :  { %v1379_v6 = vrot.slane %v1192_v52, 1  ;;  %v1118_v12 = vmax.f32 %v959_v59, 0.0  ;;  %v961_v28 = vadd.f32 %v960_v41, %v8661_v57  ;;  %v9206_v9 = vpop.f32.mrf.mxu1 }
 0x1d8   :  { %v9208_v16 = vpack.c.bf16 %v1520_v18, %v1519_v58  ;;  %v962_v11 = vpop.f32.mrf.mxu0  ;;  %v2674_v58 = vrot.slane %v9128_v7, 2 }
 0x1d9   :  { %v9210_v54 = vmax.f32 %v1117_v49, %v1118_v12  ;;  %v963_v27 = vadd.f32 %v962_v11, %v8653_v53  ;;  %v9213_v55 = vpop.f32.mrf.mxu1  ;;  %v1380_v34 = vsel %vm1269_vm2, %v1377_v19, %v1379_v6  ;;  %v1119_v1 = vmax.f32 %v961_v28, 0.0 }
 0x1da   :  { %v966_v35 = vpop.f32.mrf.mxu0  ;;  %3042 = vmatmul.mubr.bf16.gmra.mxu0 %v2673_v40  ;;  %v1684_v4 = vrot.slane %v9208_v16, 1  ;;  %v1521_v18 = vmax.f32 %v9189_v8, %v1380_v34  ;;  %v2675_v8 = vsel %vm2630_vm3, %v2672_v46, %v2674_v58 }
 0x1db   :  { %v1381_v62 = vrot.slane %v9210_v54, 1  ;;  %v1120_v38 = vmax.f32 %v963_v27, 0.0  ;;  %v967_v33 = vadd.f32 %v966_v35, %v8661_v57  ;;  %v9220_v26 = vpop.f32.mrf.mxu1  ;;  %3051 = vmatprep.mubr.bf16.mxu0 %v12696_v5 }
 0x1dc   :  { %v968_v32 = vpop.f32.mrf.mxu0  ;;  %v1685_v10 = vsel %vm1269_vm2, %v1682_v37, %v1684_v4 }
 0x1dd   :  { %v1382_v39 = vsel %vm1269_vm2, %v1379_v6, %v1381_v62  ;;  %v1194_v19 = vmax.f32 %v1119_v1, %v1120_v38  ;;  %v969_v51 = vadd.f32 %v968_v32, %v8653_v53  ;;  %v9226_v59 = vpop.f32.mrf.mxu1  ;;  %2094 = vmatmul.mubr.bf16.gmra.mxu1 %v1685_v10  ;;  %v1121_v28 = vmax.f32 %v967_v33, 0.0 }
 0x1de   :  { %v1522_v41 = vmax.f32 %v1192_v52, %v1382_v39  ;;  %v970_v49 = vpop.f32.mrf.mxu0  ;;  %2103 = vmatprep.mubr.bf16.mxu1 %v12696_v5 }
 0x1df   :  { %v1383_v12 = vrot.slane %v1194_v19, 1  ;;  %v1122_v11 = vmax.f32 %v969_v51, 0.0  ;;  %v971_v37 = vadd.f32 %v970_v49, %v8661_v57  ;;  %v9232_v6 = vpop.f32.mrf.mxu1 }
 0x1e0   :  { %v9234_v27 = vpack.c.bf16 %v1522_v41, %v1521_v18  ;;  %v972_v40 = vpop.f32.mrf.mxu0 }
 0x1e1   :  { %v9236_v35 = vmax.f32 %v1121_v28, %v1122_v11  ;;  %v973_v1 = vadd.f32 %v972_v40, %v8653_v53  ;;  %v9239_v38 = vpop.f32.mrf.mxu1  ;;  %v1384_v52 = vsel %vm1269_vm2, %v1381_v62, %v1383_v12  ;;  %v1123_v10 = vmax.f32 %v971_v37, 0.0 }
 0x1e2   :  { %12723 = vst [vmem:[#allocation3_spill] sm:$0xff] %v9239_v38  ;;  %v976_v34 = vpop.f32.mrf.mxu0  ;;  %3052 = vmatmul.mubr.bf16.gmra.mxu0 %v2675_v8  ;;  %v1686_v33 = vrot.slane %v9234_v27, 1  ;;  %v2676_v37 = vrot.slane %v9158_v25, 2  ;;  %v1523_v40 = vmax.f32 %v9210_v54, %v1384_v52 }
 0x1e3   :  { %v1385_v32 = vrot.slane %v9236_v35, 1  ;;  %v1124_v39 = vmax.f32 %v973_v1, 0.0  ;;  %v977_v51 = vadd.f32 %v976_v34, %v8661_v57  ;;  %v9246_v18 = vpop.f32.mrf.mxu1  ;;  %3061 = vmatprep.mubr.bf16.mxu0 %v12696_v5 }
 0x1e4   :  { %12724 = vst [vmem:[#allocation4_spill] sm:$0xff] %v9246_v18  ;;  %v978_v41 = vpop.f32.mrf.mxu0  ;;  %v1687_v49 = vsel %vm1269_vm2, %v1684_v4, %v1686_v33  ;;  %v2677_v54 = vsel %vm2630_vm3, %v2674_v58, %v2676_v37 }
 0x1e5   :  { %v1386_v46 = vsel %vm1269_vm2, %v1383_v12, %v1385_v32  ;;  %v1196_v62 = vmax.f32 %v1123_v10, %v1124_v39  ;;  %v979_v28 = vadd.f32 %v978_v41, %v8653_v53  ;;  %v9252_v11 = vpop.f32.mrf.mxu1  ;;  %2104 = vmatmul.mubr.bf16.gmra.mxu1 %v1687_v49  ;;  %v1125_v44 = vmax.f32 %v977_v51, 0.0 }
 0x1e6   :  { %12725 = vst [vmem:[#allocation5_spill] sm:$0xff] %v9252_v11  ;;  %v1524_v1 = vmax.f32 %v1194_v19, %v1386_v46  ;;  %v980_v8 = vpop.f32.mrf.mxu0  ;;  %2113 = vmatprep.mubr.bf16.mxu1 %v12696_v5 }
 0x1e7   :  { %v1387_v34 = vrot.slane %v1196_v62, 1  ;;  %v1126_v47 = vmax.f32 %v979_v28, 0.0  ;;  %v981_v4 = vadd.f32 %v980_v8, %v8661_v57  ;;  %v9258_v12 = vpop.f32.mrf.mxu1 }
 0x1e8   :  { %12726 = vst [vmem:[#allocation6_spill] sm:$0xff] %v9258_v12  ;;  %v9260_v10 = vpack.c.bf16 %v1524_v1, %v1523_v40  ;;  %v982_v39 = vpop.f32.mrf.mxu0 }
 0x1e9   :  { %v9262_v41 = vmax.f32 %v1125_v44, %v1126_v47  ;;  %v983_v49 = vadd.f32 %v982_v39, %v8653_v53  ;;  %v9265_v11 = vpop.f32.mrf.mxu1  ;;  %v1388_v19 = vsel %vm1269_vm2, %v1385_v32, %v1387_v34  ;;  %v1127_v28 = vmax.f32 %v981_v4, 0.0 }
 0x1ea   :  { %12727 = vst [vmem:[#allocation7_spill] sm:$0xff] %v9265_v11  ;;  %v986_v52 = vpop.f32.mrf.mxu0  ;;  %3062 = vmatmul.mubr.bf16.gmra.mxu0 %v2677_v54  ;;  %v1688_v51 = vrot.slane %v9260_v10, 1  ;;  %v2678_v4 = vrot.slane %v9173_v15, 2 }
 0x1eb   :  { %v1389_v46 = vrot.slane %v9262_v41, 1  ;;  %v1128_v40 = vmax.f32 %v983_v49, 0.0  ;;  %v987_v1 = vadd.f32 %v986_v52, %v8661_v57  ;;  %v9272_v44 = vpop.f32.mrf.mxu1  ;;  %3071 = vmatprep.mubr.bf16.mxu0 %v12696_v5  ;;  %v1525_v49 = vmax.f32 %v9236_v35, %v1388_v19 }
 0x1ec   :  { %12728 = vst [vmem:[#allocation8_spill] sm:$0xff] %v9272_v44  ;;  %v988_v47 = vpop.f32.mrf.mxu0  ;;  %v1689_v8 = vsel %vm1269_vm2, %v1686_v33, %v1688_v51  ;;  %v2679_v35 = vsel %vm2630_vm3, %v2676_v37, %v2678_v4 }
 0x1ed   :  { %v1390_v58 = vsel %vm1269_vm2, %v1387_v34, %v1389_v46  ;;  %v1198_v32 = vmax.f32 %v1127_v28, %v1128_v40  ;;  %v989_v39 = vadd.f32 %v988_v47, %v8653_v53  ;;  %v9278_v54 = vpop.f32.mrf.mxu1  ;;  %2114 = vmatmul.mubr.bf16.gmra.mxu1 %v1689_v8  ;;  %v1129_v12 = vmax.f32 %v987_v1, 0.0 }
 0x1ee   :  { %12729 = vst [vmem:[#allocation9_spill] sm:$0xff] %v9278_v54  ;;  %v1526_v52 = vmax.f32 %v1196_v62, %v1390_v58  ;;  %v990_v11 = vpop.f32.mrf.mxu0  ;;  %2123 = vmatprep.mubr.bf16.mxu1 %v12696_v5 }
 0x1ef   :  { %v1391_v44 = vrot.slane %v1198_v32, 1  ;;  %v1130_v18 = vmax.f32 %v989_v39, 0.0  ;;  %v991_v33 = vadd.f32 %v990_v11, %v8661_v57  ;;  %v9284_v34 = vpop.f32.mrf.mxu1 }
 0x1f0   :  { %12730 = vst [vmem:[#allocation10_spill] sm:$0xff] %v9284_v34  ;;  %v9286_v28 = vpack.c.bf16 %v1526_v52, %v1525_v49  ;;  %v992_v40 = vpop.f32.mrf.mxu0 }
 0x1f1   :  { %v1199_v47 = vmax.f32 %v1129_v12, %v1130_v18  ;;  %v993_v8 = vadd.f32 %v992_v40, %v8653_v53  ;;  %v9289_v54 = vpop.f32.mrf.mxu1  ;;  %v1392_v62 = vsel %vm1269_vm2, %v1389_v46, %v1391_v44  ;;  %v1131_v11 = vmax.f32 %v991_v33, 0.0 }
 0x1f2   :  { %12731 = vst [vmem:[#allocation11_spill] sm:$0xff] %v9289_v54  ;;  %v996_v19 = vpop.f32.mrf.mxu0  ;;  %3072 = vmatmul.mubr.bf16.gmra.mxu0 %v2679_v35  ;;  %v1690_v1 = vrot.slane %v9286_v28, 1  ;;  %v2680_v33 = vrot.slane %v9187_v0, 2 }
 0x1f3   :  { %v1393_v58 = vrot.slane %v1199_v47, 1  ;;  %v1132_v39 = vmax.f32 %v993_v8, 0.0  ;;  %v997_v49 = vadd.f32 %v996_v19, %v8661_v57  ;;  %v9295_v52 = vpop.f32.mrf.mxu1  ;;  %3081 = vmatprep.mubr.bf16.mxu0 %v12696_v5  ;;  %v1527_v8 = vmax.f32 %v9262_v41, %v1392_v62 }
 0x1f4   :  { %12732 = vst [vmem:[#allocation12_spill] sm:$0xff] %v9295_v52  ;;  %v998_v18 = vpop.f32.mrf.mxu0  ;;  %v1691_v12 = vsel %vm1269_vm2, %v1688_v51, %v1690_v1  ;;  %v2681_v41 = vsel %vm2630_vm3, %v2678_v4, %v2680_v33 }
 0x1f5   :  { %v1394_v37 = vsel %vm1269_vm2, %v1391_v44, %v1393_v58  ;;  %v1200_v40 = vmax.f32 %v1131_v11, %v1132_v39  ;;  %v999_v46 = vadd.f32 %v998_v18, %v8653_v53  ;;  %v9301_v35 = vpop.f32.mrf.mxu1  ;;  %2124 = vmatmul.mubr.bf16.gmra.mxu1 %v1691_v12  ;;  %v1133_v34 = vmax.f32 %v997_v49, 0.0 }
 0x1f6   :  { %12733 = vst [vmem:[#allocation13_spill] sm:$0xff] %v9301_v35  ;;  %v1528_v19 = vmax.f32 %v1198_v32, %v1394_v37  ;;  %v1000_v54 = vpop.f32.mrf.mxu0  ;;  %2133 = vmatprep.mubr.bf16.mxu1 %v12696_v5 }
 0x1f7   :  { %v1395_v52 = vrot.slane %v1200_v40, 1  ;;  %v1134_v38 = vmax.f32 %v999_v46, 0.0  ;;  %v1001_v51 = vadd.f32 %v1000_v54, %v8661_v57  ;;  %v9307_v44 = vpop.f32.mrf.mxu1 }
 0x1f8   :  { %12734 = vst [vmem:[#allocation14_spill] sm:$0xff] %v9307_v44  ;;  %v9309_v11 = vpack.c.bf16 %v1528_v19, %v1527_v8  ;;  %v1002_v39 = vpop.f32.mrf.mxu0  ;;  %v2682_v19 = vrot.slane %v9208_v16, 2 }
 0x1f9   :  { %v1201_v18 = vmax.f32 %v1133_v34, %v1134_v38  ;;  %v1003_v12 = vadd.f32 %v1002_v39, %v8653_v53  ;;  %v9312_v35 = vpop.f32.mrf.mxu1  ;;  %v1396_v49 = vsel %vm1269_vm2, %v1393_v58, %v1395_v52  ;;  %v1135_v54 = vmax.f32 %v1001_v51, 0.0 }
 0x1fa   :  { %12735 = vst [vmem:[#allocation15_spill] sm:$0xff] %v9312_v35  ;;  %v9315_v32 = vpop.f32.mrf.mxu0  ;;  %3082 = vmatmul.mubr.bf16.gmra.mxu0 %v2681_v41  ;;  %v1692_v62 = vrot.slane %v9309_v11, 1  ;;  %v1529_v58 = vmax.f32 %v1199_v47, %v1396_v49 }
 0x1fb   :  { %v1397_v57 = vrot.slane %v1201_v18, 1  ;;  %v1136_v37 = vmax.f32 %v1003_v12, 0.0  ;;  %v9319_v46 = vpop.f32.mrf.mxu1  ;;  %3091 = vmatprep.mubr.bf16.mxu0 %v12696_v5 }
 0x1fc   :  { %12736 = vst [vmem:[#allocation16_spill] sm:$0xff] %v9319_v46  ;;  %v9322_v38 = vpop.f32.mrf.mxu0  ;;  %v1693_v53 = vsel %vm1269_vm2, %v1690_v1, %v1692_v62 }
 0x1fd   :  { %v1398_v4 = vsel %vm1269_vm2, %v1395_v52, %v1397_v57  ;;  %v1202_v34 = vmax.f32 %v1135_v54, %v1136_v37  ;;  %v9326_v8 = vpop.f32.mrf.mxu1  ;;  %2134 = vmatmul.mubr.bf16.gmra.mxu1 %v1693_v53  ;;  %v2683_v53 = vsel %vm2630_vm3, %v2680_v33, %v2682_v19  ;;  %v2684_v33 = vrot.slane %v9234_v27, 2 }
 0x1fe   :  { %12737 = vst [vmem:[#allocation17_spill] sm:$0xff] %v9326_v8  ;;  %v1530_v39 = vmax.f32 %v1200_v40, %v1398_v4  ;;  %v9329_v51 = vpop.f32.mrf.mxu0  ;;  %2143 = vmatprep.mubr.bf16.mxu1 %v12696_v5 }
 0x1ff   :  { %12738 = vst [vmem:[#allocation18_spill] sm:$0xff] %v9329_v51  ;;  %v1399_v12 = vrot.slane %v1202_v34, 1  ;;  %v9332_v41 = vpop.f32.mrf.mxu1 }
 0x200   :  { %12739 = vst [vmem:[#allocation19_spill] sm:$0xff] %v9332_v41  ;;  %v9334_v46 = vpack.c.bf16 %v1530_v39, %v1529_v58  ;;  %v9336_v1 = vpop.f32.mrf.mxu0 }
 0x201   :  { %12740 = vst [vmem:[#allocation20_spill] sm:$0xff] %v9336_v1  ;;  %v1400_v52 = vsel %vm1269_vm2, %v1397_v57, %v1399_v12  ;;  %v1532_v54 = vmax.f32 %v1202_v34, %v1399_v12  ;;  %v9339_v37 = vpop.f32.mrf.mxu1 }
 0x202   :  { %12741 = vst [vmem:[#allocation21_spill] sm:$0xff] %v9339_v37  ;;  %v1531_v47 = vmax.f32 %v1201_v18, %v1400_v52  ;;  %v9342_v40 = vpop.f32.mrf.mxu0  ;;  %3092 = vmatmul.mubr.bf16.gmra.mxu0 %v2683_v53  ;;  %v1694_v49 = vrot.slane %v9334_v46, 1  ;;  %v2686_v37 = vrot.slane %v9260_v10, 2 }
 0x203   :  { %12742 = vst [vmem:[#allocation22_spill] sm:$0xff] %v9342_v40  ;;  %v9345_v4 = vpop.f32.mrf.mxu1  ;;  %3101 = vmatprep.mubr.bf16.mxu0 %v12696_v5  ;;  %v4052_v40 = vrot.slane %v9173_v15, 4 }
 0x204   :  { %12743 = vst [vmem:[#allocation23_spill] sm:$0xff] %v9345_v4  ;;  %v9348_v58 = vpack.c.bf16 %v1532_v54, %v1531_v47  ;;  %v9350_v39 = vpop.f32.mrf.mxu0  ;;  %v1695_v57 = vsel %vm1269_vm2, %v1692_v62, %v1694_v49  ;;  %v2685_v47 = vsel %vm2630_vm3, %v2682_v19, %v2684_v33 }
 0x205   :  { %12745 = vst [vmem:[#allocation25_spill] sm:$0xff] %v9350_v39  ;;  %v9353_v34 = vpop.f32.mrf.mxu1  ;;  %2144 = vmatmul.mubr.bf16.gmra.mxu1 %v1695_v57 }
 0x206   :  { %12744 = vst [vmem:[#allocation24_spill] sm:$0xff] %v9348_v58  ;;  %12746 = vst [vmem:[#allocation26_spill] sm:$0xff] %v9353_v34  ;;  %v9356_v18 = vpop.f32.mrf.mxu0  ;;  %2153 = vmatprep.mubr.bf16.mxu1 %v12696_v5  ;;  %v1696_v54 = vrot.slane %v9348_v58, 1 }
 0x207   :  { %12747 = vst [vmem:[#allocation27_spill] sm:$0xff] %v9356_v18  ;;  %v9359_v12 = vpop.f32.mrf.mxu1 }
 0x208   :  { %12748 = vst [vmem:[#allocation28_spill] sm:$0xff] %v9359_v12  ;;  %v9361_v52 = vpop.f32.mrf.mxu0  ;;  %v1697_v4 = vsel %vm1269_vm2, %v1694_v49, %v1696_v54 }
 0x209   :  { %12749 = vst [vmem:[#allocation29_spill] sm:$0xff] %v9361_v52  ;;  %v9364_v53 = vpop.f32.mrf.mxu1 }
 0x20a   :  { %12750 = vst [vmem:[#allocation30_spill] sm:$0xff] %v9364_v53  ;;  %v9367_v62 = vpop.f32.mrf.mxu0  ;;  %3102 = vmatmul.mubr.bf16.gmra.mxu0 %v2685_v47  ;;  %v2687_v53 = vsel %vm2630_vm3, %v2684_v33, %v2686_v37 }
 0x20b   :  { %12751 = vst [vmem:[#allocation31_spill] sm:$0xff] %v9367_v62  ;;  %v9369_v57 = vpop.f32.mrf.mxu1  ;;  %3111 = vmatprep.mubr.bf16.mxu0 %v12696_v5  ;;  %v4050_v62 = vrot.slane %v9158_v25, 4 }
 0x20c   :  { %12752 = vst [vmem:[#allocation32_spill] sm:$0xff] %v9369_v57  ;;  %v9372_v34 = vpop.f32.mrf.mxu0 }
 0x20d   :  { %12753 = vst [vmem:[#allocation33_spill] sm:$0xff] %v9372_v34  ;;  %v9375_v12 = vpop.f32.mrf.mxu1  ;;  %2154 = vmatmul.mubr.bf16.gmra.mxu1 %v1697_v4  ;;  %v4053_v1 = vsel %vm4004_vm4, %v4050_v62, %v4052_v40 }
 0x20e   :  { %12754 = vst [vmem:[#allocation34_spill] sm:$0xff] %v9375_v12  ;;  %v9378_v41 = vpop.f32.mrf.mxu0  ;;  %2163 = vmatprep.mubr.bf16.mxu1 %v12696_v5 }
 0x20f   :  { %12755 = vst [vmem:[#allocation35_spill] sm:$0xff] %v9378_v41  ;;  %v9381_v19 = vpop.f32.mrf.mxu1 }
 0x210   :  { %12756 = vst [vmem:[#allocation36_spill] sm:$0xff] %v9381_v19  ;;  %v9383_v47 = vpop.f32.mrf.mxu0  ;;  %v2688_v19 = vrot.slane %v9286_v28, 2 }
 0x211   :  { %12757 = vst [vmem:[#allocation37_spill] sm:$0xff] %v9383_v47  ;;  %v9385_v57 = vpop.f32.mrf.mxu1  ;;  %v4048_v47 = vrot.slane %v9128_v7, 4 }
 0x212   :  { %12758 = vst [vmem:[#allocation38_spill] sm:$0xff] %v9385_v57  ;;  %v9388_v8 = vpop.f32.mrf.mxu0  ;;  %3112 = vmatmul.mubr.bf16.gmra.mxu0 %v2687_v53 }
 0x213   :  { %12759 = vst [vmem:[#allocation39_spill] sm:$0xff] %v9388_v8  ;;  %v9390_v49 = vpop.f32.mrf.mxu1  ;;  %3121 = vmatprep.mubr.bf16.mxu0 %v12696_v5  ;;  %v4051_v52 = vsel %vm4004_vm4, %v4048_v47, %v4050_v62 }
 0x214   :  { %12760 = vst [vmem:[#allocation40_spill] sm:$0xff] %v9390_v49  ;;  %v9393_v4 = vpop.f32.mrf.mxu0  ;;  %v2689_v49 = vsel %vm2630_vm3, %v2686_v37, %v2688_v19 }
 0x215   :  { %12761 = vst [vmem:[#allocation41_spill] sm:$0xff] %v9393_v4  ;;  %v9395_v12 = vpop.f32.mrf.mxu1  ;;  %2164 = vmatmul.mubr.bf16.gmra.mxu1 %v1696_v54 }
 0x216   :  { %12762 = vst [vmem:[#allocation42_spill] sm:$0xff] %v9395_v12  ;;  %v9398_v35 = vpop.f32.mrf.mxu0  ;;  %2284 = vmatprep.mubr.bf16.mxu1 %v12696_v5 }
 0x217   :  { %12763 = vst [vmem:[#allocation43_spill] sm:$0xff] %v9398_v35  ;;  %v9401_v57 = vpop.f32.mrf.mxu1  ;;  %v4032_v35 = vrot.slane %v8901_v24, 4 }
 0x218   :  { %12764 = vst [vmem:[#allocation44_spill] sm:$0xff] %v9401_v57  ;;  %v9403_v33 = vpop.f32.mrf.mxu0  ;;  %v2690_v57 = vrot.slane %v9309_v11, 2 }
 0x219   :  { %12765 = vst [vmem:[#allocation45_spill] sm:$0xff] %v9403_v33  ;;  %v9405_v53 = vpop.f32.mrf.mxu1 }
 0x21a   :  { %12766 = vst [vmem:[#allocation46_spill] sm:$0xff] %v9405_v53  ;;  %v9408_v8 = vpop.f32.mrf.mxu0  ;;  %3122 = vmatmul.mubr.bf16.gmra.mxu0 %v2689_v49 }
 0x21b   :  { %12767 = vst [vmem:[#allocation47_spill] sm:$0xff] %v9408_v8  ;;  %v9410_v4 = vpop.f32.mrf.mxu1  ;;  %3131 = vmatprep.mubr.bf16.mxu0 %v12696_v5 }
 0x21c   :  { %12768 = vst [vmem:[#allocation48_spill] sm:$0xff] %v9410_v4  ;;  %v9413_v54 = vpop.f32.mrf.mxu0  ;;  %v2691_v4 = vsel %vm2630_vm3, %v2688_v19, %v2690_v57 }
 0x21d   :  { %12769 = vst [vmem:[#allocation49_spill] sm:$0xff] %v9413_v54  ;;  %v9415_v12 = vpop.f32.mrf.mxu1  ;;  %2285 = vmatmul.mubr.bf16.vlgmr.msra.gmra.mxu1 %v8696_v56 }
 0x21e   :  { %12770 = vst [vmem:[#allocation50_spill] sm:$0xff] %v9415_v12  ;;  %v9419_v33 = vpop.f32.mrf.mxu0  ;;  %2294 = vmatprep.mubr.bf16.mxu1 %v12696_v5 }
 0x21f   :  { %12771 = vst [vmem:[#allocation51_spill] sm:$0xff] %v9419_v33  ;;  %v9422_v37 = vpop.f32.mrf.mxu1 }
 0x220   :  { %12772 = vst [vmem:[#allocation52_spill] sm:$0xff] %v9422_v37  ;;  %v9424_v53 = vpop.f32.mrf.mxu0  ;;  %v2692_v37 = vrot.slane %v9334_v46, 2 }
 0x221   :  { %12773 = vst [vmem:[#allocation53_spill] sm:$0xff] %v9424_v53  ;;  %v9426_v49 = vpop.f32.mrf.mxu1 }
 0x222   :  { %12774 = vst [vmem:[#allocation54_spill] sm:$0xff] %v9426_v49  ;;  %v9429_v8 = vpop.f32.mrf.mxu0  ;;  %3132 = vmatmul.mubr.bf16.gmra.mxu0 %v2691_v4 }
 0x223   :  { %12775 = vst [vmem:[#allocation55_spill] sm:$0xff] %v9429_v8  ;;  %v9431_v12 = vpop.f32.mrf.mxu1  ;;  %3141 = vmatprep.mubr.bf16.mxu0 %v12696_v5 }
 0x224   :  { %12776 = vst [vmem:[#allocation56_spill] sm:$0xff] %v9431_v12  ;;  %v9434_v54 = vpop.f32.mrf.mxu0  ;;  %v2693_v12 = vsel %vm2630_vm3, %v2690_v57, %v2692_v37 }
 0x225   :  { %12777 = vst [vmem:[#allocation57_spill] sm:$0xff] %v9434_v54  ;;  %v9436_v33 = vpop.f32.mrf.mxu1  ;;  %2295 = vmatmul.mubr.bf16.gmra.mxu1 %v8705_v3 }
 0x226   :  { %12778 = vst [vmem:[#allocation58_spill] sm:$0xff] %v9436_v33  ;;  %v9440_v53 = vpop.f32.mrf.mxu0  ;;  %2304 = vmatprep.mubr.bf16.mxu1 %v12696_v5 }
 0x227   :  { %12779 = vst [vmem:[#allocation59_spill] sm:$0xff] %v9440_v53  ;;  %v9443_v19 = vpop.f32.mrf.mxu1 }
 0x228   :  { %12780 = vst [vmem:[#allocation60_spill] sm:$0xff] %v9443_v19  ;;  %v9445_v49 = vpop.f32.mrf.mxu0  ;;  %v2694_v19 = vrot.slane %v9348_v58, 2 }
 0x229   :  { %12781 = vst [vmem:[#allocation61_spill] sm:$0xff] %v9445_v49  ;;  %v9447_v4 = vpop.f32.mrf.mxu1 }
 0x22a   :  { %12782 = vst [vmem:[#allocation62_spill] sm:$0xff] %v9447_v4  ;;  %v9450_v8 = vpop.f32.mrf.mxu0  ;;  %3142 = vmatmul.mubr.bf16.gmra.mxu0 %v2693_v12 }
 0x22b   :  { %12783 = vst [vmem:[#allocation63_spill] sm:$0xff] %v9450_v8  ;;  %v9452_v33 = vpop.f32.mrf.mxu1  ;;  %3151 = vmatprep.mubr.bf16.mxu0 %v12696_v5 }
 0x22c   :  { %12784 = vst [vmem:[#allocation64_spill] sm:$0xff] %v9452_v33  ;;  %v9455_v54 = vpop.f32.mrf.mxu0  ;;  %v2695_v33 = vsel %vm2630_vm3, %v2692_v37, %v2694_v19 }
 0x22d   :  { %12785 = vst [vmem:[#allocation65_spill] sm:$0xff] %v9455_v54  ;;  %v9457_v53 = vpop.f32.mrf.mxu1  ;;  %2305 = vmatmul.mubr.bf16.gmra.mxu1 %v8724_v30 }
 0x22e   :  { %12786 = vst [vmem:[#allocation66_spill] sm:$0xff] %v9457_v53  ;;  %v9461_v49 = vpop.f32.mrf.mxu0  ;;  %2314 = vmatprep.mubr.bf16.mxu1 %v12696_v5 }
 0x22f   :  { %12787 = vst [vmem:[#allocation67_spill] sm:$0xff] %v9461_v49  ;;  %v9464_v57 = vpop.f32.mrf.mxu1 }
 0x230   :  { %12788 = vst [vmem:[#allocation68_spill] sm:$0xff] %v9464_v57  ;;  %v9466_v4 = vpop.f32.mrf.mxu0 }
 0x231   :  { %12789 = vst [vmem:[#allocation69_spill] sm:$0xff] %v9466_v4  ;;  %v9468_v12 = vpop.f32.mrf.mxu1 }
 0x232   :  { %12790 = vst [vmem:[#allocation70_spill] sm:$0xff] %v9468_v12  ;;  %v9471_v8 = vpop.f32.mrf.mxu0  ;;  %3152 = vmatmul.mubr.bf16.gmra.mxu0 %v2695_v33 }
 0x233   :  { %12791 = vst [vmem:[#allocation71_spill] sm:$0xff] %v9471_v8  ;;  %v9473_v53 = vpop.f32.mrf.mxu1  ;;  %3161 = vmatprep.mubr.bf16.mxu0 %v12696_v5 }
 0x234   :  { %12792 = vst [vmem:[#allocation72_spill] sm:$0xff] %v9473_v53  ;;  %v9476_v54 = vpop.f32.mrf.mxu0 }
 0x235   :  { %12793 = vst [vmem:[#allocation73_spill] sm:$0xff] %v9476_v54  ;;  %v9478_v49 = vpop.f32.mrf.mxu1  ;;  %2315 = vmatmul.mubr.bf16.gmra.mxu1 %v8742_v60 }
 0x236   :  { %12794 = vst [vmem:[#allocation74_spill] sm:$0xff] %v9478_v49  ;;  %v9481_v57 = vpop.f32.mrf.mxu0  ;;  %2324 = vmatprep.mubr.bf16.mxu1 %v12696_v5 }
 0x237   :  { %12795 = vst [vmem:[#allocation75_spill] sm:$0xff] %v9481_v57  ;;  %v9484_v12 = vpop.f32.mrf.mxu1  ;;  %v4006_v57 = vrot.slane %v8705_v3, 4 }
 0x238   :  { %12796 = vst [vmem:[#allocation76_spill] sm:$0xff] %v9484_v12  ;;  %v9486_v37 = vpop.f32.mrf.mxu0 }
 0x239   :  { %12797 = vst [vmem:[#allocation77_spill] sm:$0xff] %v9486_v37  ;;  %v9488_v8 = vpop.f32.mrf.mxu1 }
 0x23a   :  { %12798 = vst [vmem:[#allocation78_spill] sm:$0xff] %v9488_v8  ;;  %v9490_v33 = vpop.f32.mrf.mxu0  ;;  %3162 = vmatmul.mubr.bf16.gmra.mxu0 %v2694_v19  ;;  %v4005_v19 = vrot.slane %v8696_v56, 4 }
 0x23b   :  { %12799 = vst [vmem:[#allocation79_spill] sm:$0xff] %v9490_v33  ;;  %v9492_v53 = vpop.f32.mrf.mxu1  ;;  %4215 = vmatprep.mubr.bf16.mxu0 %v12696_v5 }
 0x23c   :  { %12800 = vst [vmem:[#allocation80_spill] sm:$0xff] %v9492_v53  ;;  %v9495_v49 = vpop.f32.mrf.mxu0 }
 0x23d   :  { %12801 = vst [vmem:[#allocation81_spill] sm:$0xff] %v9495_v49  ;;  %v9497_v54 = vpop.f32.mrf.mxu1  ;;  %2325 = vmatmul.mubr.bf16.gmra.mxu1 %v8760_v23  ;;  %v4007_v49 = vsel %vm4004_vm4, %v4005_v19, %v4006_v57 }
 0x23e   :  { %12802 = vst [vmem:[#allocation82_spill] sm:$0xff] %v9497_v54  ;;  %v9501_v12 = vpop.f32.mrf.mxu0  ;;  %2334 = vmatprep.mubr.bf16.mxu1 %v12696_v5 }
 0x23f   :  { %12803 = vst [vmem:[#allocation83_spill] sm:$0xff] %v9501_v12  ;;  %v9504_v8 = vpop.f32.mrf.mxu1 }
 0x240   :  { %12804 = vst [vmem:[#allocation84_spill] sm:$0xff] %v9504_v8  ;;  %v9507_v53 = vpop.f32.mrf.mxu0  ;;  %v4008_v8 = vrot.slane %v8724_v30, 4 }
 0x241   :  { %12805 = vst [vmem:[#allocation85_spill] sm:$0xff] %v9507_v53  ;;  %v9509_v33 = vpop.f32.mrf.mxu1 }
 0x242   :  { %12806 = vst [vmem:[#allocation86_spill] sm:$0xff] %v9509_v33  ;;  %v9512_v54 = vpop.f32.mrf.mxu0  ;;  %4216 = vmatmul.mubr.bf16.vlgmr.msra.gmra.mxu0 %v4007_v49 }
 0x243   :  { %12807 = vst [vmem:[#allocation87_spill] sm:$0xff] %v9512_v54  ;;  %v9514_v37 = vpop.f32.mrf.mxu1  ;;  %4225 = vmatprep.mubr.bf16.mxu0 %v12696_v5 }
 0x244   :  { %12808 = vst [vmem:[#allocation88_spill] sm:$0xff] %v9514_v37  ;;  %v9517_v12 = vpop.f32.mrf.mxu0  ;;  %v4009_v37 = vsel %vm4004_vm4, %v4006_v57, %v4008_v8 }
 0x245   :  { %12809 = vst [vmem:[#allocation89_spill] sm:$0xff] %v9517_v12  ;;  %v9519_v4 = vpop.f32.mrf.mxu1  ;;  %2335 = vmatmul.mubr.bf16.gmra.mxu1 %v8775_v50 }
 0x246   :  { %12810 = vst [vmem:[#allocation90_spill] sm:$0xff] %v9519_v4  ;;  %v9523_v53 = vpop.f32.mrf.mxu0  ;;  %2344 = vmatprep.mubr.bf16.mxu1 %v12696_v5 }
 0x247   :  { %12811 = vst [vmem:[#allocation91_spill] sm:$0xff] %v9523_v53  ;;  %v9526_v19 = vpop.f32.mrf.mxu1 }
 0x248   :  { %12812 = vst [vmem:[#allocation92_spill] sm:$0xff] %v9526_v19  ;;  %v9528_v33 = vpop.f32.mrf.mxu0  ;;  %v4010_v19 = vrot.slane %v8742_v60, 4 }
 0x249   :  { %12813 = vst [vmem:[#allocation93_spill] sm:$0xff] %v9528_v33  ;;  %v9530_v49 = vpop.f32.mrf.mxu1 }
 0x24a   :  { %12814 = vst [vmem:[#allocation94_spill] sm:$0xff] %v9530_v49  ;;  %v9533_v54 = vpop.f32.mrf.mxu0  ;;  %4226 = vmatmul.mubr.bf16.gmra.mxu0 %v4009_v37 }
 0x24b   :  { %12815 = vst [vmem:[#allocation95_spill] sm:$0xff] %v9533_v54  ;;  %v9535_v4 = vpop.f32.mrf.mxu1  ;;  %4235 = vmatprep.mubr.bf16.mxu0 %v12696_v5 }
 0x24c   :  { %12816 = vst [vmem:[#allocation96_spill] sm:$0xff] %v9535_v4  ;;  %v9538_v12 = vpop.f32.mrf.mxu0  ;;  %v4011_v4 = vsel %vm4004_vm4, %v4008_v8, %v4010_v19 }
 0x24d   :  { %12817 = vst [vmem:[#allocation97_spill] sm:$0xff] %v9538_v12  ;;  %v9540_v53 = vpop.f32.mrf.mxu1  ;;  %2345 = vmatmul.mubr.bf16.gmra.mxu1 %v8789_v17 }
 0x24e   :  { %12818 = vst [vmem:[#allocation98_spill] sm:$0xff] %v9540_v53  ;;  %v9544_v33 = vpop.f32.mrf.mxu0  ;;  %2354 = vmatprep.mubr.bf16.mxu1 %v12696_v5 }
 0x24f   :  { %12819 = vst [vmem:[#allocation99_spill] sm:$0xff] %v9544_v33  ;;  %v9547_v57 = vpop.f32.mrf.mxu1 }
 0x250   :  { %12820 = vst [vmem:[#allocation100_spill] sm:$0xff] %v9547_v57  ;;  %v9549_v49 = vpop.f32.mrf.mxu0  ;;  %v4012_v57 = vrot.slane %v8760_v23, 4 }
 0x251   :  { %12821 = vst [vmem:[#allocation101_spill] sm:$0xff] %v9549_v49  ;;  %v9551_v37 = vpop.f32.mrf.mxu1 }
 0x252   :  { %12822 = vst [vmem:[#allocation102_spill] sm:$0xff] %v9551_v37  ;;  %v9554_v54 = vpop.f32.mrf.mxu0  ;;  %4236 = vmatmul.mubr.bf16.gmra.mxu0 %v4011_v4 }
 0x253   :  { %12823 = vst [vmem:[#allocation103_spill] sm:$0xff] %v9554_v54  ;;  %v9556_v53 = vpop.f32.mrf.mxu1  ;;  %4245 = vmatprep.mubr.bf16.mxu0 %v12696_v5 }
 0x254   :  { %12824 = vst [vmem:[#allocation104_spill] sm:$0xff] %v9556_v53  ;;  %v9559_v12 = vpop.f32.mrf.mxu0  ;;  %v4013_v53 = vsel %vm4004_vm4, %v4010_v19, %v4012_v57 }
 0x255   :  { %12825 = vst [vmem:[#allocation105_spill] sm:$0xff] %v9559_v12  ;;  %v9561_v33 = vpop.f32.mrf.mxu1  ;;  %2355 = vmatmul.mubr.bf16.gmra.mxu1 %v8803_v45 }
 0x256   :  { %12826 = vst [vmem:[#allocation106_spill] sm:$0xff] %v9561_v33  ;;  %v9565_v49 = vpop.f32.mrf.mxu0  ;;  %2364 = vmatprep.mubr.bf16.mxu1 %v12696_v5 }
 0x257   :  { %12827 = vst [vmem:[#allocation107_spill] sm:$0xff] %v9565_v49  ;;  %v9568_v8 = vpop.f32.mrf.mxu1 }
 0x258   :  { %12828 = vst [vmem:[#allocation108_spill] sm:$0xff] %v9568_v8  ;;  %v9570_v37 = vpop.f32.mrf.mxu0  ;;  %v4014_v8 = vrot.slane %v8775_v50, 4 }
 0x259   :  { %12829 = vst [vmem:[#allocation109_spill] sm:$0xff] %v9570_v37  ;;  %v9572_v4 = vpop.f32.mrf.mxu1 }
 0x25a   :  { %12830 = vst [vmem:[#allocation110_spill] sm:$0xff] %v9572_v4  ;;  %v9575_v54 = vpop.f32.mrf.mxu0  ;;  %4246 = vmatmul.mubr.bf16.gmra.mxu0 %v4013_v53 }
 0x25b   :  { %12831 = vst [vmem:[#allocation111_spill] sm:$0xff] %v9575_v54  ;;  %v9577_v33 = vpop.f32.mrf.mxu1  ;;  %4255 = vmatprep.mubr.bf16.mxu0 %v12696_v5 }
 0x25c   :  { %12832 = vst [vmem:[#allocation112_spill] sm:$0xff] %v9577_v33  ;;  %v9580_v12 = vpop.f32.mrf.mxu0  ;;  %v4015_v33 = vsel %vm4004_vm4, %v4012_v57, %v4014_v8 }
 0x25d   :  { %12833 = vst [vmem:[#allocation113_spill] sm:$0xff] %v9580_v12  ;;  %v9582_v49 = vpop.f32.mrf.mxu1  ;;  %2365 = vmatmul.mubr.bf16.gmra.mxu1 %v8817_v14 }
 0x25e   :  { %12834 = vst [vmem:[#allocation114_spill] sm:$0xff] %v9582_v49  ;;  %v9586_v37 = vpop.f32.mrf.mxu0  ;;  %2374 = vmatprep.mubr.bf16.mxu1 %v12696_v5 }
 0x25f   :  { %12835 = vst [vmem:[#allocation115_spill] sm:$0xff] %v9586_v37  ;;  %v9589_v19 = vpop.f32.mrf.mxu1 }
 0x260   :  { %12836 = vst [vmem:[#allocation116_spill] sm:$0xff] %v9589_v19  ;;  %v9591_v4 = vpop.f32.mrf.mxu0  ;;  %v4016_v19 = vrot.slane %v8789_v17, 4 }
 0x261   :  { %12837 = vst [vmem:[#allocation117_spill] sm:$0xff] %v9591_v4  ;;  %v9593_v53 = vpop.f32.mrf.mxu1 }
 0x262   :  { %12838 = vst [vmem:[#allocation118_spill] sm:$0xff] %v9593_v53  ;;  %v9596_v54 = vpop.f32.mrf.mxu0  ;;  %4256 = vmatmul.mubr.bf16.gmra.mxu0 %v4015_v33 }
 0x263   :  { %12839 = vst [vmem:[#allocation119_spill] sm:$0xff] %v9596_v54  ;;  %v9598_v49 = vpop.f32.mrf.mxu1  ;;  %4265 = vmatprep.mubr.bf16.mxu0 %v12696_v5 }
 0x264   :  { %12840 = vst [vmem:[#allocation120_spill] sm:$0xff] %v9598_v49  ;;  %v9601_v12 = vpop.f32.mrf.mxu0  ;;  %v4017_v49 = vsel %vm4004_vm4, %v4014_v8, %v4016_v19 }
 0x265   :  { %12841 = vst [vmem:[#allocation121_spill] sm:$0xff] %v9601_v12  ;;  %v9603_v37 = vpop.f32.mrf.mxu1  ;;  %2375 = vmatmul.mubr.bf16.gmra.mxu1 %v8831_v42 }
 0x266   :  { %12842 = vst [vmem:[#allocation122_spill] sm:$0xff] %v9603_v37  ;;  %v9607_v4 = vpop.f32.mrf.mxu0  ;;  %2384 = vmatprep.mubr.bf16.mxu1 %v12696_v5 }
 0x267   :  { %12843 = vst [vmem:[#allocation123_spill] sm:$0xff] %v9607_v4  ;;  %v9610_v57 = vpop.f32.mrf.mxu1 }
 0x268   :  { %12844 = vst [vmem:[#allocation124_spill] sm:$0xff] %v9610_v57  ;;  %v9612_v53 = vpop.f32.mrf.mxu0  ;;  %v4018_v57 = vrot.slane %v8803_v45, 4 }
 0x269   :  { %12845 = vst [vmem:[#allocation125_spill] sm:$0xff] %v9612_v53  ;;  %v9614_v33 = vpop.f32.mrf.mxu1 }
 0x26a   :  { %12846 = vst [vmem:[#allocation126_spill] sm:$0xff] %v9614_v33  ;;  %v9617_v54 = vpop.f32.mrf.mxu0  ;;  %4266 = vmatmul.mubr.bf16.gmra.mxu0 %v4017_v49 }
 0x26b   :  { %12847 = vst [vmem:[#allocation127_spill] sm:$0xff] %v9617_v54  ;;  %v9619_v37 = vpop.f32.mrf.mxu1  ;;  %4275 = vmatprep.mubr.bf16.mxu0 %v12696_v5 }
 0x26c   :  { %12848 = vst [vmem:[#allocation128_spill] sm:$0xff] %v9619_v37  ;;  %v9622_v12 = vpop.f32.mrf.mxu0  ;;  %v4019_v37 = vsel %vm4004_vm4, %v4016_v19, %v4018_v57 }
 0x26d   :  { %12849 = vst [vmem:[#allocation129_spill] sm:$0xff] %v9622_v12  ;;  %v9624_v4 = vpop.f32.mrf.mxu1  ;;  %2385 = vmatmul.mubr.bf16.gmra.mxu1 %v8845_v13 }
 0x26e   :  { %12850 = vst [vmem:[#allocation130_spill] sm:$0xff] %v9624_v4  ;;  %v9628_v53 = vpop.f32.mrf.mxu0  ;;  %2394 = vmatprep.mubr.bf16.mxu1 %v12696_v5 }
 0x26f   :  { %12851 = vst [vmem:[#allocation131_spill] sm:$0xff] %v9628_v53  ;;  %v9631_v8 = vpop.f32.mrf.mxu1 }
 0x270   :  { %12852 = vst [vmem:[#allocation132_spill] sm:$0xff] %v9631_v8  ;;  %v9633_v33 = vpop.f32.mrf.mxu0  ;;  %v4020_v8 = vrot.slane %v8817_v14, 4 }
 0x271   :  { %12853 = vst [vmem:[#allocation133_spill] sm:$0xff] %v9633_v33  ;;  %v9635_v49 = vpop.f32.mrf.mxu1 }
 0x272   :  { %12854 = vst [vmem:[#allocation134_spill] sm:$0xff] %v9635_v49  ;;  %v9638_v54 = vpop.f32.mrf.mxu0  ;;  %4276 = vmatmul.mubr.bf16.gmra.mxu0 %v4019_v37 }
 0x273   :  { %12855 = vst [vmem:[#allocation135_spill] sm:$0xff] %v9638_v54  ;;  %v9640_v4 = vpop.f32.mrf.mxu1  ;;  %4285 = vmatprep.mubr.bf16.mxu0 %v12696_v5 }
 0x274   :  { %12856 = vst [vmem:[#allocation136_spill] sm:$0xff] %v9640_v4  ;;  %v9643_v12 = vpop.f32.mrf.mxu0  ;;  %v4021_v4 = vsel %vm4004_vm4, %v4018_v57, %v4020_v8 }
 0x275   :  { %12857 = vst [vmem:[#allocation137_spill] sm:$0xff] %v9643_v12  ;;  %v9645_v53 = vpop.f32.mrf.mxu1  ;;  %2395 = vmatmul.mubr.bf16.gmra.mxu1 %v8859_v43 }
 0x276   :  { %12858 = vst [vmem:[#allocation138_spill] sm:$0xff] %v9645_v53  ;;  %v9649_v33 = vpop.f32.mrf.mxu0  ;;  %2404 = vmatprep.mubr.bf16.mxu1 %v12696_v5 }
 0x277   :  { %12859 = vst [vmem:[#allocation139_spill] sm:$0xff] %v9649_v33  ;;  %v9652_v19 = vpop.f32.mrf.mxu1 }
 0x278   :  { %12860 = vst [vmem:[#allocation140_spill] sm:$0xff] %v9652_v19  ;;  %v9654_v49 = vpop.f32.mrf.mxu0  ;;  %v4022_v19 = vrot.slane %v8831_v42, 4 }
 0x279   :  { %12861 = vst [vmem:[#allocation141_spill] sm:$0xff] %v9654_v49  ;;  %v9656_v37 = vpop.f32.mrf.mxu1 }
 0x27a   :  { %12862 = vst [vmem:[#allocation142_spill] sm:$0xff] %v9656_v37  ;;  %v9659_v54 = vpop.f32.mrf.mxu0  ;;  %4286 = vmatmul.mubr.bf16.gmra.mxu0 %v4021_v4 }
 0x27b   :  { %12863 = vst [vmem:[#allocation143_spill] sm:$0xff] %v9659_v54  ;;  %v9661_v53 = vpop.f32.mrf.mxu1  ;;  %4295 = vmatprep.mubr.bf16.mxu0 %v12696_v5 }
 0x27c   :  { %12864 = vst [vmem:[#allocation144_spill] sm:$0xff] %v9661_v53  ;;  %v9664_v12 = vpop.f32.mrf.mxu0  ;;  %v4023_v53 = vsel %vm4004_vm4, %v4020_v8, %v4022_v19 }
 0x27d   :  { %12865 = vst [vmem:[#allocation145_spill] sm:$0xff] %v9664_v12  ;;  %v9666_v33 = vpop.f32.mrf.mxu1  ;;  %2405 = vmatmul.mubr.bf16.gmra.mxu1 %v8873_v20 }
 0x27e   :  { %12866 = vst [vmem:[#allocation146_spill] sm:$0xff] %v9666_v33  ;;  %v9670_v49 = vpop.f32.mrf.mxu0  ;;  %2414 = vmatprep.mubr.bf16.mxu1 %v12696_v5 }
 0x27f   :  { %12867 = vst [vmem:[#allocation147_spill] sm:$0xff] %v9670_v49  ;;  %v9673_v57 = vpop.f32.mrf.mxu1  ;;  %v8186_v49 = vld [vmem:[%s12688_s2 + $0x1f4] ss:$8 sps:$4 sm:$0xff]  }
 0x280   :  { %12868 = vst [vmem:[#allocation148_spill] sm:$0xff] %v9673_v57  ;;  %v9675_v37 = vpop.f32.mrf.mxu0  ;;  %v8184_v57 = vld [vmem:[%s12688_s2 + $0x1f0] ss:$8 sps:$4 sm:$0xff]   ;;  %3496 = vmatprep.subr.bf16.mxu1 %v8186_v49 }
 0x281   :  { %12869 = vst [vmem:[#allocation149_spill] sm:$0xff] %v9675_v37  ;;  %v9677_v4 = vpop.f32.mrf.mxu1  ;;  %3497 = vmatpush1.bf16.msra.mxu1 %v8184_v57 }
 0x282   :  { %12870 = vst [vmem:[#allocation150_spill] sm:$0xff] %v9677_v4  ;;  %v9680_v54 = vpop.f32.mrf.mxu0  ;;  %4296 = vmatmul.mubr.bf16.gmra.mxu0 %v4023_v53  ;;  %v4024_v53 = vrot.slane %v8845_v13, 4 }
 0x283   :  { %12871 = vst [vmem:[#allocation151_spill] sm:$0xff] %v9680_v54  ;;  %v9682_v33 = vpop.f32.mrf.mxu1  ;;  %4305 = vmatprep.mubr.bf16.mxu0 %v12696_v5 }
 0x284   :  { %12872 = vst [vmem:[#allocation152_spill] sm:$0xff] %v9682_v33  ;;  %v9688_v12 = vpop.f32.mrf.mxu0  ;;  %v4025_v49 = vsel %vm4004_vm4, %v4022_v19, %v4024_v53 }
 0x285   :  { %12873 = vst [vmem:[#allocation153_spill] sm:$0xff] %v9688_v12  ;;  %v9693_v4 = vpop.f32.mrf.mxu1  ;;  %2415 = vmatmul.mubr.bf16.gmra.mxu1 %v8887_v48  ;;  %v8189_v12 = vld [vmem:[%s12688_s2 + $0x1e4] ss:$8 sps:$4 sm:$0xff]  }
 0x286   :  { %12874 = vst [vmem:[#allocation154_spill] sm:$0xff] %v9693_v4  ;;  %v9697_v8 = vpop.f32.mrf.mxu0  ;;  %2424 = vmatprep.mubr.bf16.mxu1 %v12696_v5  ;;  %v8187_v4 = vld [vmem:[%s12688_s2 + $0x1e0] ss:$8 sps:$4 sm:$0xff]   ;;  %3498 = vmatprep.subr.bf16.mxu1 %v8189_v12  ;;  %v4026_v12 = vrot.slane %v8859_v43, 4 }
 0x287   :  { %12875 = vst [vmem:[#allocation155_spill] sm:$0xff] %v9697_v8  ;;  %v9700_v33 = vpop.f32.mrf.mxu1  ;;  %3499 = vmatpush1.bf16.msra.mxu1 %v8187_v4 }
 0x288   :  { %12876 = vst [vmem:[#allocation156_spill] sm:$0xff] %v9700_v33  ;;  %v9705_v54 = vpop.f32.mrf.mxu0  ;;  %v8192_v33 = vld [vmem:[%s12688_s2 + $0x1d4] ss:$8 sps:$4 sm:$0xff]  }
 0x289   :  { %12877 = vst [vmem:[#allocation157_spill] sm:$0xff] %v9705_v54  ;;  %v9710_v37 = vpop.f32.mrf.mxu1  ;;  %3500 = vmatprep.subr.bf16.mxu1 %v8192_v33  ;;  %v4027_v33 = vsel %vm4004_vm4, %v4024_v53, %v4026_v12 }
 0x28a   :  { %12878 = vst [vmem:[#allocation158_spill] sm:$0xff] %v9710_v37  ;;  %v9713_v8 = vpop.f32.mrf.mxu0  ;;  %4306 = vmatmul.mubr.bf16.gmra.mxu0 %v4025_v49  ;;  %v8190_v37 = vld [vmem:[%s12688_s2 + $0x1d0] ss:$8 sps:$4 sm:$0xff]  }
 0x28b   :  { %12879 = vst [vmem:[#allocation159_spill] sm:$0xff] %v9713_v8  ;;  %v9715_v57 = vpop.f32.mrf.mxu1  ;;  %4315 = vmatprep.mubr.bf16.mxu0 %v12696_v5  ;;  %3501 = vmatpush1.bf16.msra.mxu1 %v8190_v37 }
 0x28c   :  { %12880 = vst [vmem:[#allocation160_spill] sm:$0xff] %v9715_v57  ;;  %v9721_v54 = vpop.f32.mrf.mxu0  ;;  %v8195_v57 = vld [vmem:[%s12688_s2 + $0x1c4] ss:$8 sps:$4 sm:$0xff]  }
 0x28d   :  { %12881 = vst [vmem:[#allocation161_spill] sm:$0xff] %v9721_v54  ;;  %v9726_v19 = vpop.f32.mrf.mxu1  ;;  %2425 = vmatmul.mubr.bf16.gmra.mxu1 %v8901_v24  ;;  %3502 = vmatprep.subr.bf16.mxu1 %v8195_v57  ;;  %v4028_v57 = vrot.slane %v8873_v20, 4 }
 0x28e   :  { %12882 = vst [vmem:[#allocation162_spill] sm:$0xff] %v9726_v19  ;;  %v9730_v4 = vpop.f32.mrf.mxu0  ;;  %2434 = vmatprep.mubr.bf16.mxu1 %v12696_v5  ;;  %v8193_v19 = vld [vmem:[%s12688_s2 + $0x1c0] ss:$8 sps:$4 sm:$0xff]  }
 0x28f   :  { %12883 = vst [vmem:[#allocation163_spill] sm:$0xff] %v9730_v4  ;;  %v9733_v49 = vpop.f32.mrf.mxu1  ;;  %3503 = vmatpush1.bf16.msra.mxu1 %v8193_v19 }
 0x290   :  { %12884 = vst [vmem:[#allocation164_spill] sm:$0xff] %v9733_v49  ;;  %v9738_v54 = vpop.f32.mrf.mxu0  ;;  %v8198_v49 = vld [vmem:[%s12688_s2 + $0x1b4] ss:$8 sps:$4 sm:$0xff]  }
 0x291   :  { %12885 = vst [vmem:[#allocation165_spill] sm:$0xff] %v9738_v54  ;;  %v9743_v8 = vpop.f32.mrf.mxu1  ;;  %3504 = vmatprep.subr.bf16.mxu1 %v8198_v49  ;;  %v4029_v49 = vsel %vm4004_vm4, %v4026_v12, %v4028_v57 }
 0x292   :  { %12886 = vst [vmem:[#allocation166_spill] sm:$0xff] %v9743_v8  ;;  %v9746_v4 = vpop.f32.mrf.mxu0  ;;  %4316 = vmatmul.mubr.bf16.gmra.mxu0 %v4027_v33  ;;  %v8196_v8 = vld [vmem:[%s12688_s2 + $0x1b0] ss:$8 sps:$4 sm:$0xff]  }
 0x293   :  { %12887 = vst [vmem:[#allocation167_spill] sm:$0xff] %v9746_v4  ;;  %v9748_v37 = vpop.f32.mrf.mxu1  ;;  %4325 = vmatprep.mubr.bf16.mxu0 %v12696_v5  ;;  %3505 = vmatpush1.bf16.msra.mxu1 %v8196_v8 }
 0x294   :  { %12888 = vst [vmem:[#allocation168_spill] sm:$0xff] %v9748_v37  ;;  %v9754_v54 = vpop.f32.mrf.mxu0  ;;  %v8201_v37 = vld [vmem:[%s12688_s2 + $0x1a4] ss:$8 sps:$4 sm:$0xff]  }
 0x295   :  { %12889 = vst [vmem:[#allocation169_spill] sm:$0xff] %v9754_v54  ;;  %v9759_v53 = vpop.f32.mrf.mxu1  ;;  %2435 = vmatmul.mubr.bf16.gmra.mxu1 %v8927_v63  ;;  %3506 = vmatprep.subr.bf16.mxu1 %v8201_v37  ;;  %v4030_v37 = vrot.slane %v8887_v48, 4 }
 0x296   :  { %12890 = vst [vmem:[#allocation170_spill] sm:$0xff] %v9759_v53  ;;  %v9763_v19 = vpop.f32.mrf.mxu0  ;;  %2444 = vmatprep.mubr.bf16.mxu1 %v12696_v5  ;;  %v8199_v53 = vld [vmem:[%s12688_s2 + $0x1a0] ss:$8 sps:$4 sm:$0xff]  }
 0x297   :  { %12891 = vst [vmem:[#allocation171_spill] sm:$0xff] %v9763_v19  ;;  %v9766_v33 = vpop.f32.mrf.mxu1  ;;  %3507 = vmatpush1.bf16.msra.mxu1 %v8199_v53 }
 0x298   :  { %12892 = vst [vmem:[#allocation172_spill] sm:$0xff] %v9766_v33  ;;  %v9771_v54 = vpop.f32.mrf.mxu0  ;;  %v8204_v33 = vld [vmem:[%s12688_s2 + $0x194] ss:$8 sps:$4 sm:$0xff]  }
 0x299   :  { %12893 = vst [vmem:[#allocation173_spill] sm:$0xff] %v9771_v54  ;;  %v9776_v4 = vpop.f32.mrf.mxu1  ;;  %3508 = vmatprep.subr.bf16.mxu1 %v8204_v33  ;;  %v4031_v33 = vsel %vm4004_vm4, %v4028_v57, %v4030_v37 }
 0x29a   :  { %12894 = vst [vmem:[#allocation174_spill] sm:$0xff] %v9776_v4  ;;  %v9779_v19 = vpop.f32.mrf.mxu0  ;;  %4326 = vmatmul.mubr.bf16.gmra.mxu0 %v4029_v49  ;;  %v8202_v4 = vld [vmem:[%s12688_s2 + $0x190] ss:$8 sps:$4 sm:$0xff]  }
 0x29b   :  { %12895 = vst [vmem:[#allocation175_spill] sm:$0xff] %v9779_v19  ;;  %v9781_v8 = vpop.f32.mrf.mxu1  ;;  %4335 = vmatprep.mubr.bf16.mxu0 %v12696_v5  ;;  %3509 = vmatpush1.bf16.msra.mxu1 %v8202_v4 }
 0x29c   :  { %12896 = vst [vmem:[#allocation176_spill] sm:$0xff] %v9781_v8  ;;  %v9787_v54 = vpop.f32.mrf.mxu0  ;;  %v8207_v8 = vld [vmem:[%s12688_s2 + $0x184] ss:$8 sps:$4 sm:$0xff]  }
 0x29d   :  { %12897 = vst [vmem:[#allocation177_spill] sm:$0xff] %v9787_v54  ;;  %v9792_v12 = vpop.f32.mrf.mxu1  ;;  %2445 = vmatmul.mubr.bf16.gmra.mxu1 %v8957_v36  ;;  %3510 = vmatprep.subr.bf16.mxu1 %v8207_v8 }
 0x29e   :  { %12898 = vst [vmem:[#allocation178_spill] sm:$0xff] %v9792_v12  ;;  %v9796_v53 = vpop.f32.mrf.mxu0  ;;  %2454 = vmatprep.mubr.bf16.mxu1 %v12696_v5  ;;  %v8205_v12 = vld [vmem:[%s12688_s2 + $0x180] ss:$8 sps:$4 sm:$0xff]  }
 0x29f   :  { %12899 = vst [vmem:[#allocation179_spill] sm:$0xff] %v9796_v53  ;;  %v9799_v49 = vpop.f32.mrf.mxu1  ;;  %3511 = vmatpush1.bf16.msra.mxu1 %v8205_v12 }
 0x2a0   :  { %12900 = vst [vmem:[#allocation180_spill] sm:$0xff] %v9799_v49  ;;  %v9804_v54 = vpop.f32.mrf.mxu0 }
 0x2a1   :  { %12901 = vst [vmem:[#allocation181_spill] sm:$0xff] %v9804_v54  ;;  %v9809_v19 = vpop.f32.mrf.mxu1 }
 0x2a2   :  { %12902 = vst [vmem:[#allocation182_spill] sm:$0xff] %v9809_v19  ;;  %v9812_v53 = vpop.f32.mrf.mxu0  ;;  %4336 = vmatmul.mubr.bf16.gmra.mxu0 %v4031_v33  ;;  %v4033_v33 = vsel %vm4004_vm4, %v4030_v37, %v4032_v35 }
 0x2a3   :  { %12903 = vst [vmem:[#allocation183_spill] sm:$0xff] %v9812_v53  ;;  %v9814_v4 = vpop.f32.mrf.mxu1  ;;  %4345 = vmatprep.mubr.bf16.mxu0 %v12696_v5 }
 0x2a4   :  { %12904 = vst [vmem:[#allocation184_spill] sm:$0xff] %v9814_v4  ;;  %v9817_v49 = vpop.f32.mrf.mxu0 }
 0x2a5   :  { %12905 = vst [vmem:[#allocation185_spill] sm:$0xff] %v9817_v49  ;;  %v9819_v54 = vpop.f32.mrf.mxu1  ;;  %2455 = vmatmul.mubr.bf16.gmra.mxu1 %v8987_v22 }
 0x2a6   :  { %12906 = vst [vmem:[#allocation186_spill] sm:$0xff] %v9819_v54  ;;  %v9823_v19 = vpop.f32.mrf.mxu0  ;;  %2464 = vmatprep.mubr.bf16.mxu1 %v12696_v5 }
 0x2a7   :  { %12907 = vst [vmem:[#allocation187_spill] sm:$0xff] %v9823_v19  ;;  %v9826_v57 = vpop.f32.mrf.mxu1 }
 0x2a8   :  { %12908 = vst [vmem:[#allocation188_spill] sm:$0xff] %v9826_v57  ;;  %v9828_v8 = vpop.f32.mrf.mxu0  ;;  %v4034_v57 = vrot.slane %v8927_v63, 4 }
 0x2a9   :  { %12909 = vst [vmem:[#allocation189_spill] sm:$0xff] %v9828_v8  ;;  %v9830_v12 = vpop.f32.mrf.mxu1 }
 0x2aa   :  { %12910 = vst [vmem:[#allocation190_spill] sm:$0xff] %v9830_v12  ;;  %v9833_v4 = vpop.f32.mrf.mxu0  ;;  %4346 = vmatmul.mubr.bf16.gmra.mxu0 %v4033_v33 }
 0x2ab   :  { %12911 = vst [vmem:[#allocation191_spill] sm:$0xff] %v9833_v4  ;;  %v9835_v54 = vpop.f32.mrf.mxu1  ;;  %4355 = vmatprep.mubr.bf16.mxu0 %v12696_v5 }
 0x2ac   :  { %12912 = vst [vmem:[#allocation192_spill] sm:$0xff] %v9835_v54  ;;  %v9838_v49 = vpop.f32.mrf.mxu0  ;;  %v4035_v54 = vsel %vm4004_vm4, %v4032_v35, %v4034_v57 }
 0x2ad   :  { %12913 = vst [vmem:[#allocation193_spill] sm:$0xff] %v9838_v49  ;;  %v9840_v19 = vpop.f32.mrf.mxu1  ;;  %2465 = vmatmul.mubr.bf16.gmra.mxu1 %v9017_v2 }
 0x2ae   :  { %12914 = vst [vmem:[#allocation194_spill] sm:$0xff] %v9840_v19  ;;  %v9844_v8 = vpop.f32.mrf.mxu0  ;;  %2474 = vmatprep.mubr.bf16.mxu1 %v12696_v5 }
 0x2af   :  { %12915 = vst [vmem:[#allocation195_spill] sm:$0xff] %v9844_v8  ;;  %v9847_v37 = vpop.f32.mrf.mxu1 }
 0x2b0   :  { %12916 = vst [vmem:[#allocation196_spill] sm:$0xff] %v9847_v37  ;;  %v9849_v12 = vpop.f32.mrf.mxu0  ;;  %v4036_v37 = vrot.slane %v8957_v36, 4 }
 0x2b1   :  { %12917 = vst [vmem:[#allocation197_spill] sm:$0xff] %v9849_v12  ;;  %v9851_v33 = vpop.f32.mrf.mxu1 }
 0x2b2   :  { %12918 = vst [vmem:[#allocation198_spill] sm:$0xff] %v9851_v33  ;;  %v9854_v4 = vpop.f32.mrf.mxu0  ;;  %4356 = vmatmul.mubr.bf16.gmra.mxu0 %v4035_v54 }
 0x2b3   :  { %12919 = vst [vmem:[#allocation199_spill] sm:$0xff] %v9854_v4  ;;  %v9856_v19 = vpop.f32.mrf.mxu1  ;;  %4365 = vmatprep.mubr.bf16.mxu0 %v12696_v5 }
 0x2b4   :  { %12920 = vst [vmem:[#allocation200_spill] sm:$0xff] %v9856_v19  ;;  %v9859_v49 = vpop.f32.mrf.mxu0  ;;  %v4037_v19 = vsel %vm4004_vm4, %v4034_v57, %v4036_v37 }
 0x2b5   :  { %12921 = vst [vmem:[#allocation201_spill] sm:$0xff] %v9859_v49  ;;  %v9861_v8 = vpop.f32.mrf.mxu1  ;;  %2475 = vmatmul.mubr.bf16.gmra.mxu1 %v9038_v29 }
 0x2b6   :  { %12922 = vst [vmem:[#allocation202_spill] sm:$0xff] %v9861_v8  ;;  %v9865_v12 = vpop.f32.mrf.mxu0  ;;  %2484 = vmatprep.mubr.bf16.mxu1 %v12696_v5 }
 0x2b7   :  { %12923 = vst [vmem:[#allocation203_spill] sm:$0xff] %v9865_v12  ;;  %v9868_v35 = vpop.f32.mrf.mxu1 }
 0x2b8   :  { %12924 = vst [vmem:[#allocation204_spill] sm:$0xff] %v9868_v35  ;;  %v9870_v33 = vpop.f32.mrf.mxu0  ;;  %v4038_v35 = vrot.slane %v8987_v22, 4 }
 0x2b9   :  { %12925 = vst [vmem:[#allocation205_spill] sm:$0xff] %v9870_v33  ;;  %v9872_v54 = vpop.f32.mrf.mxu1 }
 0x2ba   :  { %12926 = vst [vmem:[#allocation206_spill] sm:$0xff] %v9872_v54  ;;  %v9875_v4 = vpop.f32.mrf.mxu0  ;;  %4366 = vmatmul.mubr.bf16.gmra.mxu0 %v4037_v19 }
 0x2bb   :  { %12927 = vst [vmem:[#allocation207_spill] sm:$0xff] %v9875_v4  ;;  %v9877_v8 = vpop.f32.mrf.mxu1  ;;  %4375 = vmatprep.mubr.bf16.mxu0 %v12696_v5 }
 0x2bc   :  { %12928 = vst [vmem:[#allocation208_spill] sm:$0xff] %v9877_v8  ;;  %v9880_v49 = vpop.f32.mrf.mxu0  ;;  %v4039_v8 = vsel %vm4004_vm4, %v4036_v37, %v4038_v35 }
 0x2bd   :  { %12929 = vst [vmem:[#allocation209_spill] sm:$0xff] %v9880_v49  ;;  %v9882_v12 = vpop.f32.mrf.mxu1  ;;  %2485 = vmatmul.mubr.bf16.gmra.mxu1 %v9068_v31 }
 0x2be   :  { %12930 = vst [vmem:[#allocation210_spill] sm:$0xff] %v9882_v12  ;;  %v9886_v33 = vpop.f32.mrf.mxu0  ;;  %2494 = vmatprep.mubr.bf16.mxu1 %v12696_v5 }
 0x2bf   :  { %12931 = vst [vmem:[#allocation211_spill] sm:$0xff] %v9886_v33  ;;  %v9889_v57 = vpop.f32.mrf.mxu1 }
 0x2c0   :  { %12932 = vst [vmem:[#allocation212_spill] sm:$0xff] %v9889_v57  ;;  %v9891_v54 = vpop.f32.mrf.mxu0  ;;  %v4040_v57 = vrot.slane %v9017_v2, 4 }
 0x2c1   :  { %12933 = vst [vmem:[#allocation213_spill] sm:$0xff] %v9891_v54  ;;  %v9893_v19 = vpop.f32.mrf.mxu1 }
 0x2c2   :  { %12934 = vst [vmem:[#allocation214_spill] sm:$0xff] %v9893_v19  ;;  %v9896_v4 = vpop.f32.mrf.mxu0  ;;  %4376 = vmatmul.mubr.bf16.gmra.mxu0 %v4039_v8 }
 0x2c3   :  { %12935 = vst [vmem:[#allocation215_spill] sm:$0xff] %v9896_v4  ;;  %v9898_v12 = vpop.f32.mrf.mxu1  ;;  %4385 = vmatprep.mubr.bf16.mxu0 %v12696_v5 }
 0x2c4   :  { %12936 = vst [vmem:[#allocation216_spill] sm:$0xff] %v9898_v12  ;;  %v9901_v49 = vpop.f32.mrf.mxu0  ;;  %v4041_v12 = vsel %vm4004_vm4, %v4038_v35, %v4040_v57 }
 0x2c5   :  { %12937 = vst [vmem:[#allocation217_spill] sm:$0xff] %v9901_v49  ;;  %v9903_v33 = vpop.f32.mrf.mxu1  ;;  %2495 = vmatmul.mubr.bf16.gmra.mxu1 %v9098_v21 }
 0x2c6   :  { %12938 = vst [vmem:[#allocation218_spill] sm:$0xff] %v9903_v33  ;;  %v9907_v54 = vpop.f32.mrf.mxu0  ;;  %2504 = vmatprep.mubr.bf16.mxu1 %v12696_v5 }
 0x2c7   :  { %12939 = vst [vmem:[#allocation219_spill] sm:$0xff] %v9907_v54  ;;  %v9910_v37 = vpop.f32.mrf.mxu1 }
 0x2c8   :  { %12940 = vst [vmem:[#allocation220_spill] sm:$0xff] %v9910_v37  ;;  %v9912_v19 = vpop.f32.mrf.mxu0  ;;  %v4042_v37 = vrot.slane %v9038_v29, 4 }
 0x2c9   :  { %12941 = vst [vmem:[#allocation221_spill] sm:$0xff] %v9912_v19  ;;  %v9914_v8 = vpop.f32.mrf.mxu1 }
 0x2ca   :  { %12942 = vst [vmem:[#allocation222_spill] sm:$0xff] %v9914_v8  ;;  %v9917_v4 = vpop.f32.mrf.mxu0  ;;  %4386 = vmatmul.mubr.bf16.gmra.mxu0 %v4041_v12 }
 0x2cb   :  { %12943 = vst [vmem:[#allocation223_spill] sm:$0xff] %v9917_v4  ;;  %v9919_v33 = vpop.f32.mrf.mxu1  ;;  %4395 = vmatprep.mubr.bf16.mxu0 %v12696_v5 }
 0x2cc   :  { %12944 = vst [vmem:[#allocation224_spill] sm:$0xff] %v9919_v33  ;;  %v9922_v49 = vpop.f32.mrf.mxu0  ;;  %v4043_v33 = vsel %vm4004_vm4, %v4040_v57, %v4042_v37 }
 0x2cd   :  { %12945 = vst [vmem:[#allocation225_spill] sm:$0xff] %v9922_v49  ;;  %v9924_v54 = vpop.f32.mrf.mxu1  ;;  %2505 = vmatmul.mubr.bf16.gmra.mxu1 %v9128_v7 }
 0x2ce   :  { %12946 = vst [vmem:[#allocation226_spill] sm:$0xff] %v9924_v54  ;;  %v9928_v19 = vpop.f32.mrf.mxu0  ;;  %2514 = vmatprep.mubr.bf16.mxu1 %v12696_v5 }
 0x2cf   :  { %12947 = vst [vmem:[#allocation227_spill] sm:$0xff] %v9928_v19  ;;  %v9931_v35 = vpop.f32.mrf.mxu1 }
 0x2d0   :  { %12948 = vst [vmem:[#allocation228_spill] sm:$0xff] %v9931_v35  ;;  %v9933_v8 = vpop.f32.mrf.mxu0  ;;  %v4044_v35 = vrot.slane %v9068_v31, 4 }
 0x2d1   :  { %12949 = vst [vmem:[#allocation229_spill] sm:$0xff] %v9933_v8  ;;  %v9935_v12 = vpop.f32.mrf.mxu1 }
 0x2d2   :  { %12950 = vst [vmem:[#allocation230_spill] sm:$0xff] %v9935_v12  ;;  %v9938_v4 = vpop.f32.mrf.mxu0  ;;  %4396 = vmatmul.mubr.bf16.gmra.mxu0 %v4043_v33 }
 0x2d3   :  { %12951 = vst [vmem:[#allocation231_spill] sm:$0xff] %v9938_v4  ;;  %v9940_v54 = vpop.f32.mrf.mxu1  ;;  %4405 = vmatprep.mubr.bf16.mxu0 %v12696_v5 }
 0x2d4   :  { %12952 = vst [vmem:[#allocation232_spill] sm:$0xff] %v9940_v54  ;;  %v9943_v49 = vpop.f32.mrf.mxu0  ;;  %v4045_v54 = vsel %vm4004_vm4, %v4042_v37, %v4044_v35 }
 0x2d5   :  { %12953 = vst [vmem:[#allocation233_spill] sm:$0xff] %v9943_v49  ;;  %v9945_v19 = vpop.f32.mrf.mxu1  ;;  %2515 = vmatmul.mubr.bf16.gmra.mxu1 %v9158_v25 }
 0x2d6   :  { %12954 = vst [vmem:[#allocation234_spill] sm:$0xff] %v9945_v19  ;;  %v9949_v8 = vpop.f32.mrf.mxu0  ;;  %2524 = vmatprep.mubr.bf16.mxu1 %v12696_v5 }
 0x2d7   :  { %12955 = vst [vmem:[#allocation235_spill] sm:$0xff] %v9949_v8  ;;  %v9952_v57 = vpop.f32.mrf.mxu1  ;;  %v4046_v8 = vrot.slane %v9098_v21, 4 }
 0x2d8   :  { %12956 = vst [vmem:[#allocation236_spill] sm:$0xff] %v9952_v57  ;;  %v9954_v12 = vpop.f32.mrf.mxu0 }
 0x2d9   :  { %12957 = vst [vmem:[#allocation237_spill] sm:$0xff] %v9954_v12  ;;  %v2169_v33 = vpop.f32.mrf.mxu1  ;;  %v4049_v41 = vsel %vm4004_vm4, %v4046_v8, %v4048_v47 }
 0x2da   :  { %v9957_v4 = vpop.f32.mrf.mxu0  ;;  %4406 = vmatmul.mubr.bf16.gmra.mxu0 %v4045_v54 }
 0x2db   :  { %12958 = vst [vmem:[#allocation238_spill] sm:$0xff] %v9957_v4  ;;  %v2170_v49 = vpop.f32.mrf.mxu1  ;;  %4415 = vmatprep.mubr.bf16.mxu0 %v12696_v5 }
 0x2dc   :  { %v9960_v19 = vpop.f32.mrf.mxu0  ;;  %v4047_v49 = vsel %vm4004_vm4, %v4044_v35, %v4046_v8 }
 0x2dd   :  { %12959 = vst [vmem:[#allocation239_spill] sm:$0xff] %v9960_v19  ;;  %v9962_v53 = vpop.f32.mrf.mxu1  ;;  %2525 = vmatmul.mubr.bf16.gmra.mxu1 %v9173_v15 }
 0x2de   :  { %v9966_v57 = vpop.f32.mrf.mxu0  ;;  %2534 = vmatprep.mubr.bf16.mxu1 %v12696_v5 }
 0x2df   :  { %12960 = vst [vmem:[#allocation240_spill] sm:$0xff] %v9966_v57  ;;  %v9969_v33 = vpop.f32.mrf.mxu1 }
 0x2e0   :  { %v9971_v37 = vpop.f32.mrf.mxu0 }
 0x2e1   :  { %12961 = vst [vmem:[#allocation241_spill] sm:$0xff] %v9971_v37  ;;  %v9973_v54 = vpop.f32.mrf.mxu1 }
 0x2e2   :  { %v9976_v4 = vpop.f32.mrf.mxu0  ;;  %4416 = vmatmul.mubr.bf16.gmra.mxu0 %v4047_v49 }
 0x2e3   :  { %12962 = vst [vmem:[#allocation242_spill] sm:$0xff] %v9976_v4  ;;  %v9978_v19 = vpop.f32.mrf.mxu1  ;;  %4425 = vmatprep.mubr.bf16.mxu0 %v12696_v5 }
 0x2e4   :  { %v9981_v12 = vpop.f32.mrf.mxu0 }
 0x2e5   :  { %12963 = vst [vmem:[#allocation243_spill] sm:$0xff] %v9981_v12  ;;  %v9983_v57 = vpop.f32.mrf.mxu1  ;;  %2535 = vmatmul.mubr.bf16.gmra.mxu1 %v9187_v0 }
 0x2e6   :  { %v9987_v37 = vpop.f32.mrf.mxu0  ;;  %2544 = vmatprep.mubr.bf16.mxu1 %v12696_v5 }
 0x2e7   :  { %12964 = vst [vmem:[#allocation244_spill] sm:$0xff] %v9987_v37  ;;  %v9990_v35 = vpop.f32.mrf.mxu1 }
 0x2e8   :  { %v9992_v4 = vpop.f32.mrf.mxu0 }
 0x2e9   :  { %12965 = vst [vmem:[#allocation245_spill] sm:$0xff] %v9992_v4  ;;  %v9994_v49 = vpop.f32.mrf.mxu1 }
 0x2ea   :  { %v9997_v44 = vpop.f32.mrf.mxu0  ;;  %4426 = vmatmul.mubr.bf16.gmra.mxu0 %v4049_v41 }
 0x2eb   :  { %12966 = vst [vmem:[#allocation246_spill] sm:$0xff] %v9997_v44  ;;  %v9999_v12 = vpop.f32.mrf.mxu1  ;;  %4435 = vmatprep.mubr.bf16.mxu0 %v12696_v5 }
 0x2ec   :  { %v10002_v34 = vpop.f32.mrf.mxu0 }
 0x2ed   :  { %12967 = vst [vmem:[#allocation247_spill] sm:$0xff] %v10002_v34  ;;  %v10004_v37 = vpop.f32.mrf.mxu1  ;;  %2545 = vmatmul.mubr.bf16.gmra.mxu1 %v9208_v16 }
 0x2ee   :  { %v10008_v4 = vpop.f32.mrf.mxu0  ;;  %2554 = vmatprep.mubr.bf16.mxu1 %v12696_v5 }
 0x2ef   :  { %12968 = vst [vmem:[#allocation248_spill] sm:$0xff] %v10008_v4  ;;  %v10011_v8 = vpop.f32.mrf.mxu1 }
 0x2f0   :  { %v10013_v44 = vpop.f32.mrf.mxu0 }
 0x2f1   :  { %12969 = vst [vmem:[#allocation249_spill] sm:$0xff] %v10013_v44  ;;  %v10015_v41 = vpop.f32.mrf.mxu1 }
 0x2f2   :  { %v10018_v18 = vpop.f32.mrf.mxu0  ;;  %4436 = vmatmul.mubr.bf16.gmra.mxu0 %v4051_v52 }
 0x2f3   :  { %12970 = vst [vmem:[#allocation250_spill] sm:$0xff] %v10018_v18  ;;  %v10020_v34 = vpop.f32.mrf.mxu1  ;;  %4445 = vmatprep.mubr.bf16.mxu0 %v12696_v5 }
 0x2f4   :  { %12971 = vst [vmem:[#allocation251_spill] sm:$0xff] %v10020_v34  ;;  %v10023_v39 = vpop.f32.mrf.mxu0 }
 0x2f5   :  { %12972 = vst [vmem:[#allocation252_spill] sm:$0xff] %v10023_v39  ;;  %v10025_v4 = vpop.f32.mrf.mxu1  ;;  %2555 = vmatmul.mubr.bf16.gmra.mxu1 %v9234_v27 }
 0x2f6   :  { %12973 = vst [vmem:[#allocation253_spill] sm:$0xff] %v10025_v4  ;;  %v10029_v44 = vpop.f32.mrf.mxu0  ;;  %2564 = vmatprep.mubr.bf16.mxu1 %v12696_v5 }
 0x2f7   :  { %12974 = vst [vmem:[#allocation254_spill] sm:$0xff] %v10029_v44  ;;  %v10032_v47 = vpop.f32.mrf.mxu1 }
 0x2f8   :  { %12975 = vst [vmem:[#allocation255_spill] sm:$0xff] %v10032_v47  ;;  %v10034_v18 = vpop.f32.mrf.mxu0  ;;  %v4054_v47 = vrot.slane %v9187_v0, 4 }
 0x2f9   :  { %12976 = vst [vmem:[#allocation256_spill] sm:$0xff] %v10034_v18  ;;  %v10036_v52 = vpop.f32.mrf.mxu1 }
 0x2fa   :  { %12977 = vst [vmem:[#allocation257_spill] sm:$0xff] %v10036_v52  ;;  %v10039_v51 = vpop.f32.mrf.mxu0  ;;  %4446 = vmatmul.mubr.bf16.gmra.mxu0 %v4053_v1  ;;  %v4055_v1 = vsel %vm4004_vm4, %v4052_v40, %v4054_v47 }
 0x2fb   :  { %12978 = vst [vmem:[#allocation258_spill] sm:$0xff] %v10039_v51  ;;  %v10041_v39 = vpop.f32.mrf.mxu1  ;;  %4455 = vmatprep.mubr.bf16.mxu0 %v12696_v5 }
 0x2fc   :  { %12979 = vst [vmem:[#allocation259_spill] sm:$0xff] %v10041_v39  ;;  %v10044_v4 = vpop.f32.mrf.mxu0 }
 0x2fd   :  { %12980 = vst [vmem:[#allocation260_spill] sm:$0xff] %v10044_v4  ;;  %v10046_v44 = vpop.f32.mrf.mxu1  ;;  %2565 = vmatmul.mubr.bf16.gmra.mxu1 %v9260_v10 }
 0x2fe   :  { %12981 = vst [vmem:[#allocation261_spill] sm:$0xff] %v10046_v44  ;;  %v3167_v18 = vpop.f32.mrf.mxu0  ;;  %2574 = vmatprep.mubr.bf16.mxu1 %v12696_v5 }
 0x2ff   :  { %v10051_v52 = vpop.f32.mrf.mxu1  ;;  %v4056_v18 = vrot.slane %v9208_v16, 4 }
 0x300   :  { %12982 = vst [vmem:[#allocation262_spill] sm:$0xff] %v10051_v52  ;;  %v3168_v62 = vpop.f32.mrf.mxu0 }
 0x301   :  { %v10053_v51 = vpop.f32.mrf.mxu1 }
 0x302   :  { %12983 = vst [vmem:[#allocation263_spill] sm:$0xff] %v10053_v51  ;;  %v10056_v39 = vpop.f32.mrf.mxu0  ;;  %4456 = vmatmul.mubr.bf16.gmra.mxu0 %v4055_v1 }
 0x303   :  { %12984 = vst [vmem:[#allocation264_spill] sm:$0xff] %v10056_v39  ;;  %v10058_v4 = vpop.f32.mrf.mxu1  ;;  %4465 = vmatprep.mubr.bf16.mxu0 %v12696_v5 }
 0x304   :  { %12985 = vst [vmem:[#allocation265_spill] sm:$0xff] %v10058_v4  ;;  %v10061_v44 = vpop.f32.mrf.mxu0  ;;  %v4057_v4 = vsel %vm4004_vm4, %v4054_v47, %v4056_v18 }
 0x305   :  { %12986 = vst [vmem:[#allocation266_spill] sm:$0xff] %v10061_v44  ;;  %v10063_v34 = vpop.f32.mrf.mxu1  ;;  %2575 = vmatmul.mubr.bf16.gmra.mxu1 %v9286_v28 }
 0x306   :  { %12987 = vst [vmem:[#allocation267_spill] sm:$0xff] %v10063_v34  ;;  %v10067_v62 = vpop.f32.mrf.mxu0  ;;  %2584 = vmatprep.mubr.bf16.mxu1 %v12696_v5 }
 0x307   :  { %12988 = vst [vmem:[#allocation268_spill] sm:$0xff] %v10067_v62  ;;  %v10070_v40 = vpop.f32.mrf.mxu1 }
 0x308   :  { %12989 = vst [vmem:[#allocation269_spill] sm:$0xff] %v10070_v40  ;;  %v10072_v39 = vpop.f32.mrf.mxu0  ;;  %v4058_v40 = vrot.slane %v9234_v27, 4 }
 0x309   :  { %12990 = vst [vmem:[#allocation270_spill] sm:$0xff] %v10072_v39  ;;  %v10074_v1 = vpop.f32.mrf.mxu1 }
 0x30a   :  { %12991 = vst [vmem:[#allocation271_spill] sm:$0xff] %v10074_v1  ;;  %v10077_v51 = vpop.f32.mrf.mxu0  ;;  %4466 = vmatmul.mubr.bf16.gmra.mxu0 %v4057_v4 }
 0x30b   :  { %12992 = vst [vmem:[#allocation272_spill] sm:$0xff] %v10077_v51  ;;  %v10079_v44 = vpop.f32.mrf.mxu1  ;;  %4475 = vmatprep.mubr.bf16.mxu0 %v12696_v5 }
 0x30c   :  { %12993 = vst [vmem:[#allocation273_spill] sm:$0xff] %v10079_v44  ;;  %v10082_v34 = vpop.f32.mrf.mxu0  ;;  %v4059_v44 = vsel %vm4004_vm4, %v4056_v18, %v4058_v40 }
 0x30d   :  { %12994 = vst [vmem:[#allocation274_spill] sm:$0xff] %v10082_v34  ;;  %v10084_v62 = vpop.f32.mrf.mxu1  ;;  %2585 = vmatmul.mubr.bf16.gmra.mxu1 %v9309_v11 }
 0x30e   :  { %12995 = vst [vmem:[#allocation275_spill] sm:$0xff] %v10084_v62  ;;  %v10088_v39 = vpop.f32.mrf.mxu0  ;;  %2594 = vmatprep.mubr.bf16.mxu1 %v12696_v5 }
 0x30f   :  { %12996 = vst [vmem:[#allocation276_spill] sm:$0xff] %v10088_v39  ;;  %v10091_v47 = vpop.f32.mrf.mxu1 }
 0x310   :  { %12997 = vst [vmem:[#allocation277_spill] sm:$0xff] %v10091_v47  ;;  %v10093_v51 = vpop.f32.mrf.mxu0  ;;  %v4060_v47 = vrot.slane %v9260_v10, 4 }
 0x311   :  { %12998 = vst [vmem:[#allocation278_spill] sm:$0xff] %v10093_v51  ;;  %v10095_v4 = vpop.f32.mrf.mxu1 }
 0x312   :  { %12999 = vst [vmem:[#allocation279_spill] sm:$0xff] %v10095_v4  ;;  %v10098_v1 = vpop.f32.mrf.mxu0  ;;  %4476 = vmatmul.mubr.bf16.gmra.mxu0 %v4059_v44 }
 0x313   :  { %13000 = vst [vmem:[#allocation280_spill] sm:$0xff] %v10098_v1  ;;  %v10100_v34 = vpop.f32.mrf.mxu1  ;;  %4485 = vmatprep.mubr.bf16.mxu0 %v12696_v5 }
 0x314   :  { %13001 = vst [vmem:[#allocation281_spill] sm:$0xff] %v10100_v34  ;;  %v10103_v62 = vpop.f32.mrf.mxu0  ;;  %v4061_v34 = vsel %vm4004_vm4, %v4058_v40, %v4060_v47 }
 0x315   :  { %13002 = vst [vmem:[#allocation282_spill] sm:$0xff] %v10103_v62  ;;  %v10105_v39 = vpop.f32.mrf.mxu1  ;;  %2595 = vmatmul.mubr.bf16.gmra.mxu1 %v9334_v46 }
 0x316   :  { %13003 = vst [vmem:[#allocation283_spill] sm:$0xff] %v10105_v39  ;;  %v10109_v51 = vpop.f32.mrf.mxu0  ;;  %2604 = vmatprep.mubr.bf16.mxu1 %v12696_v5 }
 0x317   :  { %13004 = vst [vmem:[#allocation284_spill] sm:$0xff] %v10109_v51  ;;  %v10112_v18 = vpop.f32.mrf.mxu1 }
 0x318   :  { %13005 = vst [vmem:[#allocation285_spill] sm:$0xff] %v10112_v18  ;;  %v10114_v1 = vpop.f32.mrf.mxu0  ;;  %v4062_v18 = vrot.slane %v9286_v28, 4 }
 0x319   :  { %13006 = vst [vmem:[#allocation286_spill] sm:$0xff] %v10114_v1  ;;  %v10116_v44 = vpop.f32.mrf.mxu1 }
 0x31a   :  { %13007 = vst [vmem:[#allocation287_spill] sm:$0xff] %v10116_v44  ;;  %v10119_v4 = vpop.f32.mrf.mxu0  ;;  %4486 = vmatmul.mubr.bf16.gmra.mxu0 %v4061_v34  ;;  %v3319_v34 = vrot.slane %v8705_v3, 3  ;;  %v3318_v44 = vrot.slane %v8696_v56, 3  ;;  %v4064_v3 = vrot.slane %v9309_v11, 4 }
 0x31b   :  { %13008 = vst [vmem:[#allocation288_spill] sm:$0xff] %v10119_v4  ;;  %v10121_v62 = vpop.f32.mrf.mxu1  ;;  %4495 = vmatprep.mubr.bf16.mxu0 %v12696_v5 }
 0x31c   :  { %13009 = vst [vmem:[#allocation289_spill] sm:$0xff] %v10121_v62  ;;  %v10124_v39 = vpop.f32.mrf.mxu0 }
 0x31d   :  { %13010 = vst [vmem:[#allocation290_spill] sm:$0xff] %v10124_v39  ;;  %v10126_v51 = vpop.f32.mrf.mxu1  ;;  %2605 = vmatmul.mubr.bf16.gmra.mxu1 %v9348_v58  ;;  %v4063_v39 = vsel %vm4004_vm4, %v4060_v47, %v4062_v18 }
 0x31e   :  { %13011 = vst [vmem:[#allocation291_spill] sm:$0xff] %v10126_v51  ;;  %v10130_v1 = vpop.f32.mrf.mxu0  ;;  %3528 = vmatprep.mubr.bf16.mxu1 %v12696_v5 }
 0x31f   :  { %13012 = vst [vmem:[#allocation292_spill] sm:$0xff] %v10130_v1  ;;  %v10133_v40 = vpop.f32.mrf.mxu1 }
 0x320   :  { %13013 = vst [vmem:[#allocation293_spill] sm:$0xff] %v10133_v40  ;;  %v10135_v4 = vpop.f32.mrf.mxu0 }
 0x321   :  { %13014 = vst [vmem:[#allocation294_spill] sm:$0xff] %v10135_v4  ;;  %v10138_v62 = vpop.f32.mrf.mxu1  ;;  %v3320_v4 = vsel %vm3317_vm5, %v3318_v44, %v3319_v34 }
 0x322   :  { %v10141_v51 = vpop.f32.mrf.mxu0  ;;  %4496 = vmatmul.mubr.bf16.gmra.mxu0 %v4063_v39 }
 0x323   :  { %13015 = vst [vmem:[#allocation295_spill] sm:$0xff] %v10141_v51  ;;  %v10144_v52 = vpop.f32.mrf.mxu1  ;;  %4505 = vmatprep.mubr.bf16.mxu0 %v12696_v5  ;;  %v3321_v51 = vrot.slane %v8724_v30, 3  ;;  %v4066_v30 = vrot.slane %v9334_v46, 4 }
 0x324   :  { %13016 = vst [vmem:[#allocation296_spill] sm:$0xff] %v10144_v52  ;;  %v10147_v1 = vpop.f32.mrf.mxu0 }
 0x325   :  { %13017 = vst [vmem:[#allocation297_spill] sm:$0xff] %v10147_v1  ;;  %v10150_v40 = vpop.f32.mrf.mxu1  ;;  %3529 = vmatmul.mubr.bf16.vlgmr.msra.gmra.mxu1 %v3320_v4  ;;  %v4065_v1 = vsel %vm4004_vm4, %v4062_v18, %v4064_v3 }
 0x326   :  { %13018 = vst [vmem:[#allocation298_spill] sm:$0xff] %v10150_v40  ;;  %v10153_v47 = vpop.f32.mrf.mxu0  ;;  %3538 = vmatprep.mubr.bf16.mxu1 %v12696_v5  ;;  %v3322_v40 = vsel %vm3317_vm5, %v3319_v34, %v3321_v51 }
 0x327   :  { %13019 = vst [vmem:[#allocation299_spill] sm:$0xff] %v10153_v47  ;;  %v10156_v39 = vpop.f32.mrf.mxu1 }
 0x328   :  { %13020 = vst [vmem:[#allocation300_spill] sm:$0xff] %v10156_v39  ;;  %v10158_v56 = vpop.f32.mrf.mxu0 }
 0x329   :  { %13021 = vst [vmem:[#allocation301_spill] sm:$0xff] %v10158_v56  ;;  %v10161_v52 = vpop.f32.mrf.mxu1 }
 0x32a   :  { %v10164_v44 = vpop.f32.mrf.mxu0  ;;  %4506 = vmatmul.mubr.bf16.gmra.mxu0 %v4065_v1 }
 0x32b   :  { %13022 = vst [vmem:[#allocation302_spill] sm:$0xff] %v10164_v44  ;;  %v10166_v4 = vpop.f32.mrf.mxu1  ;;  %4515 = vmatprep.mubr.bf16.mxu0 %v12696_v5  ;;  %v3323_v44 = vrot.slane %v8742_v60, 3  ;;  %v4068_v60 = vrot.slane %v9348_v58, 4 }
 0x32c   :  { %13023 = vst [vmem:[#allocation303_spill] sm:$0xff] %v10166_v4  ;;  %v10169_v47 = vpop.f32.mrf.mxu0 }
 0x32d   :  { %13024 = vst [vmem:[#allocation304_spill] sm:$0xff] %v10169_v47  ;;  %v10172_v39 = vpop.f32.mrf.mxu1  ;;  %3539 = vmatmul.mubr.bf16.gmra.mxu1 %v3322_v40  ;;  %v4067_v47 = vsel %vm4004_vm4, %v4064_v3, %v4066_v30 }
 0x32e   :  { %13025 = vst [vmem:[#allocation305_spill] sm:$0xff] %v10172_v39  ;;  %v10175_v56 = vpop.f32.mrf.mxu0  ;;  %3548 = vmatprep.mubr.bf16.mxu1 %v12696_v5  ;;  %v3324_v39 = vsel %vm3317_vm5, %v3321_v51, %v3323_v44 }
 0x32f   :  { %13026 = vst [vmem:[#allocation306_spill] sm:$0xff] %v10175_v56  ;;  %v10178_v18 = vpop.f32.mrf.mxu1 }
 0x330   :  { %13027 = vst [vmem:[#allocation307_spill] sm:$0xff] %v10178_v18  ;;  %v10180_v1 = vpop.f32.mrf.mxu0 }
 0x331   :  { %13028 = vst [vmem:[#allocation308_spill] sm:$0xff] %v10180_v1  ;;  %v10183_v4 = vpop.f32.mrf.mxu1 }
 0x332   :  { %v10186_v34 = vpop.f32.mrf.mxu0  ;;  %4516 = vmatmul.mubr.bf16.gmra.mxu0 %v4067_v47 }
 0x333   :  { %13029 = vst [vmem:[#allocation309_spill] sm:$0xff] %v10186_v34  ;;  %v10188_v40 = vpop.f32.mrf.mxu1  ;;  %4525 = vmatprep.mubr.bf16.mxu0 %v12696_v5  ;;  %v3325_v34 = vrot.slane %v8760_v23, 3 }
 0x334   :  { %13030 = vst [vmem:[#allocation310_spill] sm:$0xff] %v10188_v40  ;;  %v10191_v56 = vpop.f32.mrf.mxu0 }
 0x335   :  { %13031 = vst [vmem:[#allocation311_spill] sm:$0xff] %v10191_v56  ;;  %v10194_v18 = vpop.f32.mrf.mxu1  ;;  %3549 = vmatmul.mubr.bf16.gmra.mxu1 %v3324_v39  ;;  %v4069_v56 = vsel %vm4004_vm4, %v4066_v30, %v4068_v60 }
 0x336   :  { %13032 = vst [vmem:[#allocation312_spill] sm:$0xff] %v10194_v18  ;;  %v10197_v1 = vpop.f32.mrf.mxu0  ;;  %3558 = vmatprep.mubr.bf16.mxu1 %v12696_v5  ;;  %v3326_v18 = vsel %vm3317_vm5, %v3323_v44, %v3325_v34 }
 0x337   :  { %13033 = vst [vmem:[#allocation313_spill] sm:$0xff] %v10197_v1  ;;  %v10200_v3 = vpop.f32.mrf.mxu1 }
 0x338   :  { %13034 = vst [vmem:[#allocation314_spill] sm:$0xff] %v10200_v3  ;;  %v10202_v47 = vpop.f32.mrf.mxu0 }
 0x339   :  { %13035 = vst [vmem:[#allocation315_spill] sm:$0xff] %v10202_v47  ;;  %v10205_v40 = vpop.f32.mrf.mxu1 }
 0x33a   :  { %v10208_v51 = vpop.f32.mrf.mxu0  ;;  %4526 = vmatmul.mubr.bf16.gmra.mxu0 %v4069_v56  ;;  %v3327_v56 = vrot.slane %v8775_v50, 3 }
 0x33b   :  { %13036 = vst [vmem:[#allocation316_spill] sm:$0xff] %v10208_v51  ;;  %v10210_v39 = vpop.f32.mrf.mxu1  ;;  %4535 = vmatprep.mubr.bf16.mxu0 %v12696_v5 }
 0x33c   :  { %13037 = vst [vmem:[#allocation317_spill] sm:$0xff] %v10210_v39  ;;  %v10213_v1 = vpop.f32.mrf.mxu0 }
 0x33d   :  { %13038 = vst [vmem:[#allocation318_spill] sm:$0xff] %v10213_v1  ;;  %v10216_v3 = vpop.f32.mrf.mxu1  ;;  %3559 = vmatmul.mubr.bf16.gmra.mxu1 %v3326_v18  ;;  %v3328_v18 = vsel %vm3317_vm5, %v3325_v34, %v3327_v56 }
 0x33e   :  { %v10218_v47 = vpop.f32.mrf.mxu0  ;;  %3568 = vmatprep.mubr.bf16.mxu1 %v12696_v5 }
 0x33f   :  { %13039 = vst [vmem:[#allocation319_spill] sm:$0xff] %v10218_v47  ;;  %v10221_v23 = vpop.f32.mrf.mxu1 }
 0x340   :  { %13040 = vst [vmem:[#allocation320_spill] sm:$0xff] %v10221_v23  ;;  %v10223_v30 = vpop.f32.mrf.mxu0  ;;  %v13047_v23 = vmov 0  }
 0x341   :  { %13041 = vst [vmem:[#allocation321_spill] sm:$0xff] %v10223_v30  ;;  %v10226_v51 = vpop.f32.mrf.mxu1 }
 0x342   :  { %v10228_v39 = vpop.f32.mrf.mxu0  ;;  %4536 = vmatmul.mubr.bf16.gmra.mxu0 %v4068_v60 }
 0x343   :  { %13042 = vst [vmem:[#allocation322_spill] sm:$0xff] %v10228_v39  ;;  %v10230_v1 = vpop.f32.mrf.mxu1  ;;  %v3329_v39 = vrot.slane %v8789_v17, 3 }
 0x344   :  { %13043 = vst [vmem:[#allocation323_spill] sm:$0xff] %v10230_v1  ;;  %v10232_v44 = vpop.f32.mrf.mxu0 }
 0x345   :  { %13044 = vst [vmem:[#allocation324_spill] sm:$0xff] %v10232_v44  ;;  %v10235_v47 = vpop.f32.mrf.mxu1  ;;  %3569 = vmatmul.mubr.bf16.gmra.mxu1 %v3328_v18  ;;  %v3330_v18 = vsel %vm3317_vm5, %v3327_v56, %v3329_v39 }
 0x346   :  { %13045 = vst [vmem:[#allocation325_spill] sm:$0xff] %v10235_v47  ;;  %v10237_v5 = vpop.f32.mrf.mxu0  ;;  %3578 = vmatprep.mubr.bf16.mxu1 %v13047_v23 }
 0x347   :  { %13046 = vst [vmem:[#allocation326_spill] sm:$0xff] %v10237_v5  ;;  %v10240_v30 = vpop.f32.mrf.mxu1 }
 0x348   :  { %13048 = vst [vmem:[#allocation327_spill] sm:$0xff] %v10240_v30  ;;  %v10242_v50 = vpop.f32.mrf.mxu0  ;;  %v13279_v30 = vld [vmem:[#allocation287_spill] sm:$0xff] }
 0x349   :  { %13049 = vst [vmem:[#allocation328_spill] sm:$0xff] %v10242_v50  ;;  %v10245_v60 = vpop.f32.mrf.mxu1 }
 0x34a   :  { %13050 = vst [vmem:[#allocation329_spill] sm:$0xff] %v10245_v60  ;;  %v10247_v1 = vpop.f32.mrf.mxu0  ;;  %v3331_v60 = vrot.slane %v8803_v45, 3 }
 0x34b   :  { %13051 = vst [vmem:[#allocation330_spill] sm:$0xff] %v10247_v1  ;;  %v10249_v44 = vpop.f32.mrf.mxu1 }
 0x34c   :  { %13052 = vst [vmem:[#allocation331_spill] sm:$0xff] %v10249_v44  ;;  %v10251_v34 = vpop.f32.mrf.mxu0 }
 0x34d   :  { %13053 = vst [vmem:[#allocation332_spill] sm:$0xff] %v10251_v34  ;;  %v10254_v47 = vpop.f32.mrf.mxu1  ;;  %3579 = vmatmul.mubr.bf16.gmra.mxu1 %v3330_v18  ;;  %v3332_v18 = vsel %vm3317_vm5, %v3329_v39, %v3331_v60 }
 0x34e   :  { %13054 = vst [vmem:[#allocation333_spill] sm:$0xff] %v10254_v47  ;;  %v10256_v5 = vpop.f32.mrf.mxu0  ;;  %3588 = vmatprep.mubr.bf16.mxu1 %v13047_v23 }
 0x34f   :  { %13055 = vst [vmem:[#allocation334_spill] sm:$0xff] %v10256_v5  ;;  %v10259_v50 = vpop.f32.mrf.mxu1 }
 0x350   :  { %13056 = vst [vmem:[#allocation335_spill] sm:$0xff] %v10259_v50  ;;  %v10261_v17 = vpop.f32.mrf.mxu0  ;;  %v13277_v50 = vld [vmem:[#allocation285_spill] sm:$0xff] }
 0x351   :  { %13057 = vst [vmem:[#allocation336_spill] sm:$0xff] %v10261_v17  ;;  %v10264_v1 = vpop.f32.mrf.mxu1 }
 0x352   :  { %13058 = vst [vmem:[#allocation337_spill] sm:$0xff] %v10264_v1  ;;  %v10266_v44 = vpop.f32.mrf.mxu0  ;;  %v3333_v1 = vrot.slane %v8817_v14, 3 }
 0x353   :  { %13059 = vst [vmem:[#allocation338_spill] sm:$0xff] %v10266_v44  ;;  %v10268_v34 = vpop.f32.mrf.mxu1 }
 0x354   :  { %13060 = vst [vmem:[#allocation339_spill] sm:$0xff] %v10268_v34  ;;  %v10270_v56 = vpop.f32.mrf.mxu0 }
 0x355   :  { %13061 = vst [vmem:[#allocation340_spill] sm:$0xff] %v10270_v56  ;;  %v10273_v47 = vpop.f32.mrf.mxu1  ;;  %3589 = vmatmul.mubr.bf16.gmra.mxu1 %v3332_v18  ;;  %v3334_v18 = vsel %vm3317_vm5, %v3331_v60, %v3333_v1 }
 0x356   :  { %13062 = vst [vmem:[#allocation341_spill] sm:$0xff] %v10273_v47  ;;  %v10275_v5 = vpop.f32.mrf.mxu0  ;;  %3598 = vmatprep.mubr.bf16.mxu1 %v13047_v23 }
 0x357   :  { %13063 = vst [vmem:[#allocation342_spill] sm:$0xff] %v10275_v5  ;;  %v10278_v17 = vpop.f32.mrf.mxu1 }
 0x358   :  { %13064 = vst [vmem:[#allocation343_spill] sm:$0xff] %v10278_v17  ;;  %v10280_v45 = vpop.f32.mrf.mxu0 }
 0x359   :  { %13065 = vst [vmem:[#allocation344_spill] sm:$0xff] %v10280_v45  ;;  %v10283_v44 = vpop.f32.mrf.mxu1 }
 0x35a   :  { %13066 = vst [vmem:[#allocation345_spill] sm:$0xff] %v10283_v44  ;;  %v10285_v34 = vpop.f32.mrf.mxu0  ;;  %v3335_v44 = vrot.slane %v8831_v42, 3 }
 0x35b   :  { %13067 = vst [vmem:[#allocation346_spill] sm:$0xff] %v10285_v34  ;;  %v10287_v56 = vpop.f32.mrf.mxu1 }
 0x35c   :  { %13068 = vst [vmem:[#allocation347_spill] sm:$0xff] %v10287_v56  ;;  %v10289_v39 = vpop.f32.mrf.mxu0 }
 0x35d   :  { %13069 = vst [vmem:[#allocation348_spill] sm:$0xff] %v10289_v39  ;;  %v10292_v47 = vpop.f32.mrf.mxu1  ;;  %3599 = vmatmul.mubr.bf16.gmra.mxu1 %v3334_v18  ;;  %v3336_v18 = vsel %vm3317_vm5, %v3333_v1, %v3335_v44 }
 0x35e   :  { %13070 = vst [vmem:[#allocation349_spill] sm:$0xff] %v10292_v47  ;;  %v10294_v5 = vpop.f32.mrf.mxu0  ;;  %3608 = vmatprep.mubr.bf16.mxu1 %v13047_v23 }
 0x35f   :  { %13071 = vst [vmem:[#allocation350_spill] sm:$0xff] %v10294_v5  ;;  %v10297_v45 = vpop.f32.mrf.mxu1 }
 0x360   :  { %13072 = vst [vmem:[#allocation351_spill] sm:$0xff] %v10297_v45  ;;  %v10299_v14 = vpop.f32.mrf.mxu0  ;;  %v13269_v45 = vld [vmem:[#allocation61_spill] sm:$0xff] }
 0x361   :  { %13073 = vst [vmem:[#allocation352_spill] sm:$0xff] %v10299_v14  ;;  %v10302_v34 = vpop.f32.mrf.mxu1 }
 0x362   :  { %13074 = vst [vmem:[#allocation353_spill] sm:$0xff] %v10302_v34  ;;  %v10304_v56 = vpop.f32.mrf.mxu0  ;;  %v3337_v34 = vrot.slane %v8845_v13, 3 }
 0x363   :  { %13075 = vst [vmem:[#allocation354_spill] sm:$0xff] %v10304_v56  ;;  %v10306_v39 = vpop.f32.mrf.mxu1 }
 0x364   :  { %13076 = vst [vmem:[#allocation355_spill] sm:$0xff] %v10306_v39  ;;  %v10308_v60 = vpop.f32.mrf.mxu0 }
 0x365   :  { %13077 = vst [vmem:[#allocation356_spill] sm:$0xff] %v10308_v60  ;;  %v10311_v47 = vpop.f32.mrf.mxu1  ;;  %3609 = vmatmul.mubr.bf16.gmra.mxu1 %v3336_v18  ;;  %v3338_v18 = vsel %vm3317_vm5, %v3335_v44, %v3337_v34 }
 0x366   :  { %13078 = vst [vmem:[#allocation357_spill] sm:$0xff] %v10311_v47  ;;  %v10313_v5 = vpop.f32.mrf.mxu0  ;;  %3618 = vmatprep.mubr.bf16.mxu1 %v13047_v23 }
 0x367   :  { %13079 = vst [vmem:[#allocation358_spill] sm:$0xff] %v10313_v5  ;;  %v10316_v14 = vpop.f32.mrf.mxu1 }
 0x368   :  { %13080 = vst [vmem:[#allocation359_spill] sm:$0xff] %v10316_v14  ;;  %v10318_v42 = vpop.f32.mrf.mxu0  ;;  %v13268_v14 = vld [vmem:[#allocation279_spill] sm:$0xff] }
 0x369   :  { %13081 = vst [vmem:[#allocation360_spill] sm:$0xff] %v10318_v42  ;;  %v10321_v56 = vpop.f32.mrf.mxu1 }
 0x36a   :  { %13082 = vst [vmem:[#allocation361_spill] sm:$0xff] %v10321_v56  ;;  %v10323_v39 = vpop.f32.mrf.mxu0  ;;  %v3339_v56 = vrot.slane %v8859_v43, 3 }
 0x36b   :  { %13083 = vst [vmem:[#allocation362_spill] sm:$0xff] %v10323_v39  ;;  %v10325_v60 = vpop.f32.mrf.mxu1 }
 0x36c   :  { %13084 = vst [vmem:[#allocation363_spill] sm:$0xff] %v10325_v60  ;;  %v10327_v1 = vpop.f32.mrf.mxu0 }
 0x36d   :  { %13085 = vst [vmem:[#allocation364_spill] sm:$0xff] %v10327_v1  ;;  %v10330_v47 = vpop.f32.mrf.mxu1  ;;  %3619 = vmatmul.mubr.bf16.gmra.mxu1 %v3338_v18  ;;  %v3340_v18 = vsel %vm3317_vm5, %v3337_v34, %v3339_v56 }
 0x36e   :  { %13086 = vst [vmem:[#allocation365_spill] sm:$0xff] %v10330_v47  ;;  %v10332_v5 = vpop.f32.mrf.mxu0  ;;  %3628 = vmatprep.mubr.bf16.mxu1 %v13047_v23 }
 0x36f   :  { %13087 = vst [vmem:[#allocation366_spill] sm:$0xff] %v10332_v5  ;;  %v10335_v42 = vpop.f32.mrf.mxu1 }
 0x370   :  { %13088 = vst [vmem:[#allocation367_spill] sm:$0xff] %v10335_v42  ;;  %v10337_v13 = vpop.f32.mrf.mxu0  ;;  %v13266_v42 = vld [vmem:[#allocation277_spill] sm:$0xff] }
 0x371   :  { %13089 = vst [vmem:[#allocation368_spill] sm:$0xff] %v10337_v13  ;;  %v10340_v39 = vpop.f32.mrf.mxu1 }
 0x372   :  { %13090 = vst [vmem:[#allocation369_spill] sm:$0xff] %v10340_v39  ;;  %v10342_v60 = vpop.f32.mrf.mxu0  ;;  %v3341_v39 = vrot.slane %v8873_v20, 3 }
 0x373   :  { %13091 = vst [vmem:[#allocation370_spill] sm:$0xff] %v10342_v60  ;;  %v10344_v1 = vpop.f32.mrf.mxu1 }
 0x374   :  { %13092 = vst [vmem:[#allocation371_spill] sm:$0xff] %v10344_v1  ;;  %v10346_v44 = vpop.f32.mrf.mxu0 }
 0x375   :  { %13093 = vst [vmem:[#allocation372_spill] sm:$0xff] %v10346_v44  ;;  %v10349_v47 = vpop.f32.mrf.mxu1  ;;  %3629 = vmatmul.mubr.bf16.gmra.mxu1 %v3340_v18  ;;  %v3342_v18 = vsel %vm3317_vm5, %v3339_v56, %v3341_v39 }
 0x376   :  { %13094 = vst [vmem:[#allocation373_spill] sm:$0xff] %v10349_v47  ;;  %v10351_v5 = vpop.f32.mrf.mxu0  ;;  %3638 = vmatprep.mubr.bf16.mxu1 %v13047_v23 }
 0x377   :  { %13095 = vst [vmem:[#allocation374_spill] sm:$0xff] %v10351_v5  ;;  %v10354_v13 = vpop.f32.mrf.mxu1 }
 0x378   :  { %13096 = vst [vmem:[#allocation375_spill] sm:$0xff] %v10354_v13  ;;  %v10356_v43 = vpop.f32.mrf.mxu0 }
 0x379   :  { %13097 = vst [vmem:[#allocation376_spill] sm:$0xff] %v10356_v43  ;;  %v10359_v60 = vpop.f32.mrf.mxu1 }
 0x37a   :  { %13098 = vst [vmem:[#allocation377_spill] sm:$0xff] %v10359_v60  ;;  %v10361_v1 = vpop.f32.mrf.mxu0  ;;  %v3343_v60 = vrot.slane %v8887_v48, 3 }
 0x37b   :  { %13099 = vst [vmem:[#allocation378_spill] sm:$0xff] %v10361_v1  ;;  %v10363_v44 = vpop.f32.mrf.mxu1 }
 0x37c   :  { %13100 = vst [vmem:[#allocation379_spill] sm:$0xff] %v10363_v44  ;;  %v10365_v34 = vpop.f32.mrf.mxu0 }
 0x37d   :  { %13101 = vst [vmem:[#allocation380_spill] sm:$0xff] %v10365_v34  ;;  %v10368_v47 = vpop.f32.mrf.mxu1  ;;  %3639 = vmatmul.mubr.bf16.gmra.mxu1 %v3342_v18  ;;  %v3344_v18 = vsel %vm3317_vm5, %v3341_v39, %v3343_v60 }
 0x37e   :  { %13102 = vst [vmem:[#allocation381_spill] sm:$0xff] %v10368_v47  ;;  %v10370_v5 = vpop.f32.mrf.mxu0  ;;  %3648 = vmatprep.mubr.bf16.mxu1 %v13047_v23 }
 0x37f   :  { %13103 = vst [vmem:[#allocation382_spill] sm:$0xff] %v10370_v5  ;;  %v10373_v43 = vpop.f32.mrf.mxu1 }
 0x380   :  { %13104 = vst [vmem:[#allocation383_spill] sm:$0xff] %v10373_v43  ;;  %v10375_v20 = vpop.f32.mrf.mxu0 }
 0x381   :  { %13105 = vst [vmem:[#allocation384_spill] sm:$0xff] %v10375_v20  ;;  %v10378_v1 = vpop.f32.mrf.mxu1 }
 0x382   :  { %13106 = vst [vmem:[#allocation385_spill] sm:$0xff] %v10378_v1  ;;  %v10380_v44 = vpop.f32.mrf.mxu0  ;;  %v3345_v1 = vrot.slane %v8901_v24, 3 }
 0x383   :  { %13107 = vst [vmem:[#allocation386_spill] sm:$0xff] %v10380_v44  ;;  %v10382_v34 = vpop.f32.mrf.mxu1 }
 0x384   :  { %13108 = vst [vmem:[#allocation387_spill] sm:$0xff] %v10382_v34  ;;  %v10384_v56 = vpop.f32.mrf.mxu0 }
 0x385   :  { %13109 = vst [vmem:[#allocation388_spill] sm:$0xff] %v10384_v56  ;;  %v10387_v47 = vpop.f32.mrf.mxu1  ;;  %3649 = vmatmul.mubr.bf16.gmra.mxu1 %v3344_v18  ;;  %v3346_v18 = vsel %vm3317_vm5, %v3343_v60, %v3345_v1 }
 0x386   :  { %13110 = vst [vmem:[#allocation389_spill] sm:$0xff] %v10387_v47  ;;  %v10389_v5 = vpop.f32.mrf.mxu0  ;;  %3658 = vmatprep.mubr.bf16.mxu1 %v13047_v23 }
 0x387   :  { %13111 = vst [vmem:[#allocation390_spill] sm:$0xff] %v10389_v5  ;;  %v10392_v43 = vpop.f32.mrf.mxu1 }
 0x388   :  { %13112 = vst [vmem:[#allocation391_spill] sm:$0xff] %v10392_v43  ;;  %v10394_v48 = vpop.f32.mrf.mxu0 }
 0x389   :  { %13113 = vst [vmem:[#allocation392_spill] sm:$0xff] %v10394_v48  ;;  %v10397_v44 = vpop.f32.mrf.mxu1 }
 0x38a   :  { %13114 = vst [vmem:[#allocation393_spill] sm:$0xff] %v10397_v44  ;;  %v10399_v34 = vpop.f32.mrf.mxu0  ;;  %v3347_v44 = vrot.slane %v8927_v63, 3 }
 0x38b   :  { %13115 = vst [vmem:[#allocation394_spill] sm:$0xff] %v10399_v34  ;;  %v10401_v56 = vpop.f32.mrf.mxu1 }
 0x38c   :  { %13116 = vst [vmem:[#allocation395_spill] sm:$0xff] %v10401_v56  ;;  %v10403_v39 = vpop.f32.mrf.mxu0 }
 0x38d   :  { %13117 = vst [vmem:[#allocation396_spill] sm:$0xff] %v10403_v39  ;;  %v10406_v47 = vpop.f32.mrf.mxu1  ;;  %3659 = vmatmul.mubr.bf16.gmra.mxu1 %v3346_v18  ;;  %v3348_v18 = vsel %vm3317_vm5, %v3345_v1, %v3347_v44 }
 0x38e   :  { %13118 = vst [vmem:[#allocation397_spill] sm:$0xff] %v10406_v47  ;;  %v10408_v5 = vpop.f32.mrf.mxu0  ;;  %3668 = vmatprep.mubr.bf16.mxu1 %v13047_v23 }
 0x38f   :  { %13119 = vst [vmem:[#allocation398_spill] sm:$0xff] %v10408_v5  ;;  %v10411_v43 = vpop.f32.mrf.mxu1 }
 0x390   :  { %13120 = vst [vmem:[#allocation399_spill] sm:$0xff] %v10411_v43  ;;  %v10413_v24 = vpop.f32.mrf.mxu0 }
 0x391   :  { %13121 = vst [vmem:[#allocation400_spill] sm:$0xff] %v10413_v24  ;;  %v10416_v34 = vpop.f32.mrf.mxu1 }
 0x392   :  { %13122 = vst [vmem:[#allocation401_spill] sm:$0xff] %v10416_v34  ;;  %v10418_v56 = vpop.f32.mrf.mxu0  ;;  %v3349_v34 = vrot.slane %v8957_v36, 3 }
 0x393   :  { %13123 = vst [vmem:[#allocation402_spill] sm:$0xff] %v10418_v56  ;;  %v10420_v39 = vpop.f32.mrf.mxu1 }
 0x394   :  { %13124 = vst [vmem:[#allocation403_spill] sm:$0xff] %v10420_v39  ;;  %v10422_v60 = vpop.f32.mrf.mxu0 }
 0x395   :  { %13125 = vst [vmem:[#allocation404_spill] sm:$0xff] %v10422_v60  ;;  %v10425_v47 = vpop.f32.mrf.mxu1  ;;  %3669 = vmatmul.mubr.bf16.gmra.mxu1 %v3348_v18  ;;  %v3350_v18 = vsel %vm3317_vm5, %v3347_v44, %v3349_v34 }
 0x396   :  { %13126 = vst [vmem:[#allocation405_spill] sm:$0xff] %v10425_v47  ;;  %v10427_v5 = vpop.f32.mrf.mxu0  ;;  %3678 = vmatprep.mubr.bf16.mxu1 %v13047_v23 }
 0x397   :  { %13127 = vst [vmem:[#allocation406_spill] sm:$0xff] %v10427_v5  ;;  %v10430_v43 = vpop.f32.mrf.mxu1 }
 0x398   :  { %13128 = vst [vmem:[#allocation407_spill] sm:$0xff] %v10430_v43  ;;  %v10432_v63 = vpop.f32.mrf.mxu0 }
 0x399   :  { %13129 = vst [vmem:[#allocation408_spill] sm:$0xff] %v10432_v63  ;;  %v10435_v56 = vpop.f32.mrf.mxu1 }
 0x39a   :  { %13130 = vst [vmem:[#allocation409_spill] sm:$0xff] %v10435_v56  ;;  %v10437_v39 = vpop.f32.mrf.mxu0  ;;  %v3351_v56 = vrot.slane %v8987_v22, 3 }
 0x39b   :  { %13131 = vst [vmem:[#allocation410_spill] sm:$0xff] %v10437_v39  ;;  %v10439_v60 = vpop.f32.mrf.mxu1 }
 0x39c   :  { %13132 = vst [vmem:[#allocation411_spill] sm:$0xff] %v10439_v60  ;;  %v10441_v1 = vpop.f32.mrf.mxu0 }
 0x39d   :  { %13133 = vst [vmem:[#allocation412_spill] sm:$0xff] %v10441_v1  ;;  %v10444_v47 = vpop.f32.mrf.mxu1  ;;  %3679 = vmatmul.mubr.bf16.gmra.mxu1 %v3350_v18  ;;  %v3352_v18 = vsel %vm3317_vm5, %v3349_v34, %v3351_v56 }
 0x39e   :  { %13134 = vst [vmem:[#allocation413_spill] sm:$0xff] %v10444_v47  ;;  %v10446_v5 = vpop.f32.mrf.mxu0  ;;  %3688 = vmatprep.mubr.bf16.mxu1 %v13047_v23 }
 0x39f   :  { %13135 = vst [vmem:[#allocation414_spill] sm:$0xff] %v10446_v5  ;;  %v10449_v43 = vpop.f32.mrf.mxu1 }
 0x3a0   :  { %13136 = vst [vmem:[#allocation415_spill] sm:$0xff] %v10449_v43  ;;  %v10451_v36 = vpop.f32.mrf.mxu0 }
 0x3a1   :  { %13137 = vst [vmem:[#allocation416_spill] sm:$0xff] %v10451_v36  ;;  %v10454_v39 = vpop.f32.mrf.mxu1  ;;  %v13241_v36 = vld [vmem:[#allocation267_spill] sm:$0xff] }
 0x3a2   :  { %13138 = vst [vmem:[#allocation417_spill] sm:$0xff] %v10454_v39  ;;  %v10456_v60 = vpop.f32.mrf.mxu0  ;;  %v3353_v39 = vrot.slane %v9017_v2, 3 }
 0x3a3   :  { %13139 = vst [vmem:[#allocation418_spill] sm:$0xff] %v10456_v60  ;;  %v10458_v1 = vpop.f32.mrf.mxu1 }
 0x3a4   :  { %13140 = vst [vmem:[#allocation419_spill] sm:$0xff] %v10458_v1  ;;  %v10460_v44 = vpop.f32.mrf.mxu0 }
 0x3a5   :  { %13141 = vst [vmem:[#allocation420_spill] sm:$0xff] %v10460_v44  ;;  %v10463_v47 = vpop.f32.mrf.mxu1  ;;  %3689 = vmatmul.mubr.bf16.gmra.mxu1 %v3352_v18  ;;  %v3354_v18 = vsel %vm3317_vm5, %v3351_v56, %v3353_v39 }
 0x3a6   :  { %13142 = vst [vmem:[#allocation421_spill] sm:$0xff] %v10463_v47  ;;  %v10465_v5 = vpop.f32.mrf.mxu0  ;;  %3698 = vmatprep.mubr.bf16.mxu1 %v13047_v23 }
 0x3a7   :  { %13143 = vst [vmem:[#allocation422_spill] sm:$0xff] %v10465_v5  ;;  %v10468_v43 = vpop.f32.mrf.mxu1 }
 0x3a8   :  { %13144 = vst [vmem:[#allocation423_spill] sm:$0xff] %v10468_v43  ;;  %v10470_v22 = vpop.f32.mrf.mxu0 }
 0x3a9   :  { %13145 = vst [vmem:[#allocation424_spill] sm:$0xff] %v10470_v22  ;;  %v10473_v60 = vpop.f32.mrf.mxu1  ;;  %v13240_v22 = vld [vmem:[#allocation17_spill] sm:$0xff] }
 0x3aa   :  { %13146 = vst [vmem:[#allocation425_spill] sm:$0xff] %v10473_v60  ;;  %v10475_v1 = vpop.f32.mrf.mxu0  ;;  %v3355_v60 = vrot.slane %v9038_v29, 3 }
 0x3ab   :  { %13147 = vst [vmem:[#allocation426_spill] sm:$0xff] %v10475_v1  ;;  %v10477_v44 = vpop.f32.mrf.mxu1 }
 0x3ac   :  { %13148 = vst [vmem:[#allocation427_spill] sm:$0xff] %v10477_v44  ;;  %v10479_v34 = vpop.f32.mrf.mxu0 }
 0x3ad   :  { %13149 = vst [vmem:[#allocation428_spill] sm:$0xff] %v10479_v34  ;;  %v10482_v47 = vpop.f32.mrf.mxu1  ;;  %3699 = vmatmul.mubr.bf16.gmra.mxu1 %v3354_v18  ;;  %v3356_v18 = vsel %vm3317_vm5, %v3353_v39, %v3355_v60 }
 0x3ae   :  { %13150 = vst [vmem:[#allocation429_spill] sm:$0xff] %v10482_v47  ;;  %v10484_v5 = vpop.f32.mrf.mxu0  ;;  %3708 = vmatprep.mubr.bf16.mxu1 %v13047_v23 }
 0x3af   :  { %13151 = vst [vmem:[#allocation430_spill] sm:$0xff] %v10484_v5  ;;  %v10487_v43 = vpop.f32.mrf.mxu1 }
 0x3b0   :  { %13152 = vst [vmem:[#allocation431_spill] sm:$0xff] %v10487_v43  ;;  %v10489_v2 = vpop.f32.mrf.mxu0 }
 0x3b1   :  { %13153 = vst [vmem:[#allocation432_spill] sm:$0xff] %v10489_v2  ;;  %v10492_v1 = vpop.f32.mrf.mxu1  ;;  %v13234_v2 = vld [vmem:[#allocation37_spill] sm:$0xff] }
 0x3b2   :  { %13154 = vst [vmem:[#allocation433_spill] sm:$0xff] %v10492_v1  ;;  %v10494_v44 = vpop.f32.mrf.mxu0  ;;  %v3357_v1 = vrot.slane %v9068_v31, 3 }
 0x3b3   :  { %13155 = vst [vmem:[#allocation434_spill] sm:$0xff] %v10494_v44  ;;  %v10496_v34 = vpop.f32.mrf.mxu1 }
 0x3b4   :  { %13156 = vst [vmem:[#allocation435_spill] sm:$0xff] %v10496_v34  ;;  %v10498_v56 = vpop.f32.mrf.mxu0 }
 0x3b5   :  { %13157 = vst [vmem:[#allocation436_spill] sm:$0xff] %v10498_v56  ;;  %v10501_v47 = vpop.f32.mrf.mxu1  ;;  %3709 = vmatmul.mubr.bf16.gmra.mxu1 %v3356_v18  ;;  %v3358_v18 = vsel %vm3317_vm5, %v3355_v60, %v3357_v1 }
 0x3b6   :  { %13158 = vst [vmem:[#allocation437_spill] sm:$0xff] %v10501_v47  ;;  %v10503_v5 = vpop.f32.mrf.mxu0  ;;  %3718 = vmatprep.mubr.bf16.mxu1 %v13047_v23 }
 0x3b7   :  { %13159 = vst [vmem:[#allocation438_spill] sm:$0xff] %v10503_v5  ;;  %v10506_v43 = vpop.f32.mrf.mxu1 }
 0x3b8   :  { %13160 = vst [vmem:[#allocation439_spill] sm:$0xff] %v10506_v43  ;;  %v10508_v29 = vpop.f32.mrf.mxu0 }
 0x3b9   :  { %13161 = vst [vmem:[#allocation440_spill] sm:$0xff] %v10508_v29  ;;  %v10511_v44 = vpop.f32.mrf.mxu1  ;;  %v13231_v29 = vld [vmem:[#allocation262_spill] sm:$0xff] }
 0x3ba   :  { %13162 = vst [vmem:[#allocation441_spill] sm:$0xff] %v10511_v44  ;;  %v10513_v34 = vpop.f32.mrf.mxu0  ;;  %v3359_v44 = vrot.slane %v9098_v21, 3 }
 0x3bb   :  { %13163 = vst [vmem:[#allocation442_spill] sm:$0xff] %v10513_v34  ;;  %v10515_v56 = vpop.f32.mrf.mxu1 }
 0x3bc   :  { %13164 = vst [vmem:[#allocation443_spill] sm:$0xff] %v10515_v56  ;;  %v10517_v39 = vpop.f32.mrf.mxu0 }
 0x3bd   :  { %13165 = vst [vmem:[#allocation444_spill] sm:$0xff] %v10517_v39  ;;  %v10520_v47 = vpop.f32.mrf.mxu1  ;;  %3719 = vmatmul.mubr.bf16.gmra.mxu1 %v3358_v18  ;;  %v3360_v18 = vsel %vm3317_vm5, %v3357_v1, %v3359_v44 }
 0x3be   :  { %13166 = vst [vmem:[#allocation445_spill] sm:$0xff] %v10520_v47  ;;  %v10522_v5 = vpop.f32.mrf.mxu0  ;;  %3728 = vmatprep.mubr.bf16.mxu1 %v13047_v23 }
 0x3bf   :  { %13167 = vst [vmem:[#allocation446_spill] sm:$0xff] %v10522_v5  ;;  %v10525_v43 = vpop.f32.mrf.mxu1 }
 0x3c0   :  { %13168 = vst [vmem:[#allocation447_spill] sm:$0xff] %v10525_v43  ;;  %v10527_v31 = vpop.f32.mrf.mxu0 }
 0x3c1   :  { %13169 = vst [vmem:[#allocation448_spill] sm:$0xff] %v10527_v31  ;;  %v10530_v34 = vpop.f32.mrf.mxu1  ;;  %v13230_v31 = vld [vmem:[#allocation14_spill] sm:$0xff] }
 0x3c2   :  { %13170 = vst [vmem:[#allocation449_spill] sm:$0xff] %v10530_v34  ;;  %v10532_v56 = vpop.f32.mrf.mxu0  ;;  %v3361_v34 = vrot.slane %v9128_v7, 3 }
 0x3c3   :  { %13171 = vst [vmem:[#allocation450_spill] sm:$0xff] %v10532_v56  ;;  %v10534_v39 = vpop.f32.mrf.mxu1 }
 0x3c4   :  { %13172 = vst [vmem:[#allocation451_spill] sm:$0xff] %v10534_v39  ;;  %v10536_v60 = vpop.f32.mrf.mxu0 }
 0x3c5   :  { %13173 = vst [vmem:[#allocation452_spill] sm:$0xff] %v10536_v60  ;;  %v10539_v47 = vpop.f32.mrf.mxu1  ;;  %3729 = vmatmul.mubr.bf16.gmra.mxu1 %v3360_v18  ;;  %v3362_v18 = vsel %vm3317_vm5, %v3359_v44, %v3361_v34 }
 0x3c6   :  { %13174 = vst [vmem:[#allocation453_spill] sm:$0xff] %v10539_v47  ;;  %v10541_v5 = vpop.f32.mrf.mxu0  ;;  %3738 = vmatprep.mubr.bf16.mxu1 %v13047_v23 }
 0x3c7   :  { %13175 = vst [vmem:[#allocation454_spill] sm:$0xff] %v10541_v5  ;;  %v10544_v43 = vpop.f32.mrf.mxu1 }
 0x3c8   :  { %13176 = vst [vmem:[#allocation455_spill] sm:$0xff] %v10544_v43  ;;  %v10546_v21 = vpop.f32.mrf.mxu0 }
 0x3c9   :  { %13177 = vst [vmem:[#allocation456_spill] sm:$0xff] %v10546_v21  ;;  %v10549_v56 = vpop.f32.mrf.mxu1 }
 0x3ca   :  { %13178 = vst [vmem:[#allocation457_spill] sm:$0xff] %v10549_v56  ;;  %v10551_v39 = vpop.f32.mrf.mxu0  ;;  %v3363_v56 = vrot.slane %v9158_v25, 3  ;;  %v3367_v25 = vrot.slane %v9187_v0, 3 }
 0x3cb   :  { %13179 = vst [vmem:[#allocation458_spill] sm:$0xff] %v10551_v39  ;;  %v10553_v60 = vpop.f32.mrf.mxu1 }
 0x3cc   :  { %13180 = vst [vmem:[#allocation459_spill] sm:$0xff] %v10553_v60  ;;  %v10555_v1 = vpop.f32.mrf.mxu0 }
 0x3cd   :  { %13181 = vst [vmem:[#allocation460_spill] sm:$0xff] %v10555_v1  ;;  %v10558_v47 = vpop.f32.mrf.mxu1  ;;  %3739 = vmatmul.mubr.bf16.gmra.mxu1 %v3362_v18  ;;  %v3364_v18 = vsel %vm3317_vm5, %v3361_v34, %v3363_v56  ;;  %v3373_v34 = vrot.slane %v9260_v10, 3 }
 0x3ce   :  { %13182 = vst [vmem:[#allocation461_spill] sm:$0xff] %v10558_v47  ;;  %v10560_v5 = vpop.f32.mrf.mxu0  ;;  %3748 = vmatprep.mubr.bf16.mxu1 %v13047_v23 }
 0x3cf   :  { %13183 = vst [vmem:[#allocation462_spill] sm:$0xff] %v10560_v5  ;;  %v10563_v43 = vpop.f32.mrf.mxu1 }
 0x3d0   :  { %13184 = vst [vmem:[#allocation463_spill] sm:$0xff] %v10563_v43  ;;  %v10565_v7 = vpop.f32.mrf.mxu0  ;;  %v3365_v43 = vrot.slane %v9173_v15, 3 }
 0x3d1   :  { %13185 = vst [vmem:[#allocation464_spill] sm:$0xff] %v10565_v7  ;;  %v10568_v39 = vpop.f32.mrf.mxu1  ;;  %v13228_v7 = vld [vmem:[#allocation261_spill] sm:$0xff] }
 0x3d2   :  { %13186 = vst [vmem:[#allocation465_spill] sm:$0xff] %v10568_v39  ;;  %v10570_v60 = vpop.f32.mrf.mxu0  ;;  %v3366_v15 = vsel %vm3317_vm5, %v3363_v56, %v3365_v43  ;;  %v3368_v0 = vsel %vm3317_vm5, %v3365_v43, %v3367_v25  ;;  %v2291_v43 = vadd.f32 %v9973_v54, %v9213_v55  ;;  %v2299_v55 = vadd.f32 %v9990_v35, %v9232_v6  ;;  %v13203_v6 = vld [vmem:[#allocation6_spill] sm:$0xff] }
 0x3d3   :  { %13187 = vst [vmem:[#allocation466_spill] sm:$0xff] %v10570_v60  ;;  %v10572_v1 = vpop.f32.mrf.mxu1  ;;  %v3369_v60 = vrot.slane %v9208_v16, 3  ;;  %v3379_v16 = vrot.slane %v9334_v46, 3  ;;  %v2293_v46 = vadd.f32 %v9978_v19, %v9220_v26  ;;  %v2309_v19 = vadd.f32 %v10011_v8, %v13203_v6 }
 0x3d4   :  { %13188 = vst [vmem:[#allocation467_spill] sm:$0xff] %v10572_v1  ;;  %v10574_v44 = vpop.f32.mrf.mxu0 }
 0x3d5   :  { %13189 = vst [vmem:[#allocation468_spill] sm:$0xff] %v10574_v44  ;;  %v10577_v47 = vpop.f32.mrf.mxu1  ;;  %3749 = vmatmul.mubr.bf16.gmra.mxu1 %v3364_v18  ;;  %v3371_v44 = vrot.slane %v9234_v27, 3  ;;  %v3375_v18 = vrot.slane %v9286_v28, 3  ;;  %v2289_v27 = vadd.f32 %v9969_v33, %v9206_v9  ;;  %v10607_v28 = vsel %vm3317_vm5, %v3367_v25, %v3369_v60  ;;  %v13198_v33 = vld [vmem:[#allocation3_spill] sm:$0xff] }
 0x3d6   :  { %13190 = vst [vmem:[#allocation469_spill] sm:$0xff] %v10577_v47  ;;  %v10579_v5 = vpop.f32.mrf.mxu0  ;;  %3758 = vmatprep.mubr.bf16.mxu1 %v13047_v23  ;;  %v2301_v54 = vadd.f32 %v9994_v49, %v13198_v33  ;;  %v13207_v33 = vld [vmem:[#allocation8_spill] sm:$0xff] }
 0x3d7   :  { %13191 = vst [vmem:[#allocation470_spill] sm:$0xff] %v10579_v5  ;;  %v10584_v39 = vpop.f32.mrf.mxu1  ;;  %v10621_v9 = vsel %vm3317_vm5, %v3373_v34, %v3375_v18  ;;  %v3171_v35 = vadd.f32 %v9322_v38, %v2289_v27  ;;  %v13213_v38 = vld [vmem:[#allocation20_spill] sm:$0xff] }
 0x3d8   :  { %13192 = vst [vmem:[#allocation471_spill] sm:$0xff] %v10584_v39  ;;  %v10587_v1 = vpop.f32.mrf.mxu0  ;;  %v3377_v39 = vrot.slane %v9309_v11, 3  ;;  %v10615_v11 = vsel %vm3317_vm5, %v3369_v60, %v3371_v44  ;;  %v3173_v27 = vadd.f32 %v13213_v38, %v2293_v46  ;;  %v13222_v46 = vld [vmem:[#allocation31_spill] sm:$0xff]  ;;  %v13225_v38 = vld [vmem:[#allocation12_spill] sm:$0xff] }
 0x3d9   :  { %13193 = vst [vmem:[#allocation472_spill] sm:$0xff] %v10587_v1  ;;  %v10592_v47 = vpop.f32.mrf.mxu1  ;;  %v2287_v1 = vadd.f32 %v9962_v53, %v9201_v61  ;;  %v10618_v61 = vsel %vm3317_vm5, %v3371_v44, %v3373_v34  ;;  %v2297_v53 = vadd.f32 %v9983_v57, %v9226_v59  ;;  %v13200_v44 = vld [vmem:[#allocation4_spill] sm:$0xff]  ;;  %v13201_v34 = vld [vmem:[#allocation5_spill] sm:$0xff] }
 0x3da   :  { %13194 = vst [vmem:[#allocation473_spill] sm:$0xff] %v10592_v47  ;;  %v10594_v5 = vpop.f32.mrf.mxu0  ;;  %v2303_v25 = vadd.f32 %v9999_v12, %v13200_v44  ;;  %v2307_v47 = vadd.f32 %v10004_v37, %v13201_v34  ;;  %v10641_v26 = vsel %vm3317_vm5, %v3375_v18, %v3377_v39  ;;  %v10644_v59 = vsel %vm3317_vm5, %v3377_v39, %v3379_v16  ;;  %v13208_v39 = vld [vmem:[#allocation251_spill] sm:$0xff]  ;;  %v13209_v34 = vld [vmem:[#allocation9_spill] sm:$0xff] }
 0x3db   :  { %13195 = vst [vmem:[#allocation474_spill] sm:$0xff] %v10594_v5  ;;  %v10604_v10 = vpop.f32.mrf.mxu1  ;;  %v3170_v12 = vadd.f32 %v9315_v32, %v2287_v1  ;;  %v13205_v37 = vrot.slane %v9348_v58, 3  ;;  %v2313_v44 = vadd.f32 %v13208_v39, %v13207_v33  ;;  %v13217_v33 = vld [vmem:[#allocation10_spill] sm:$0xff]  ;;  %v13218_v39 = vld [vmem:[#allocation255_spill] sm:$0xff] }
 0x3dc   :  { %13196 = vst [vmem:[#allocation475_spill] sm:$0xff] %v10604_v10  ;;  %v10612_v56 = vpop.f32.mrf.mxu0  ;;  %v2319_v5 = vadd.f32 %v13218_v39, %v13217_v33  ;;  %v13229_v39 = vld [vmem:[#allocation33_spill] sm:$0xff] }
 0x3dd   :  { %13197 = vst [vmem:[#allocation476_spill] sm:$0xff] %v10612_v56  ;;  %v10631_v60 = vpop.f32.mrf.mxu1  ;;  %3759 = vmatmul.mubr.bf16.gmra.mxu1 %v3366_v15  ;;  %v10655_v49 = vsel %vm3317_vm5, %v3379_v16, %v13205_v37  ;;  %v13206_v15 = vld [vmem:[#allocation7_spill] sm:$0xff]  ;;  %v13215_v16 = vld [vmem:[#allocation25_spill] sm:$0xff] }
 0x3de   :  { %13199 = vst [vmem:[#allocation3_spill] sm:$0xff] %v10631_v60  ;;  %v10637_v10 = vpop.f32.mrf.mxu0  ;;  %3768 = vmatprep.mubr.bf16.mxu1 %v13047_v23  ;;  %v2311_v18 = vadd.f32 %v10015_v41, %v13206_v15  ;;  %v13210_v60 = vld [vmem:[#allocation253_spill] sm:$0xff]  ;;  %v10671_v37 = vadd.f32 %v13215_v16, %v2299_v55  ;;  %v13216_v41 = vld [vmem:[#allocation27_spill] sm:$0xff] }
 0x3df   :  { %13202 = vst [vmem:[#allocation4_spill] sm:$0xff] %v10637_v10  ;;  %v10648_v57 = vpop.f32.mrf.mxu1  ;;  %v2317_v8 = vadd.f32 %v13210_v60, %v13209_v34  ;;  %v13214_v10 = vld [vmem:[#allocation22_spill] sm:$0xff]  ;;  %v10674_v15 = vadd.f32 %v13216_v41, %v2301_v54  ;;  %v13226_v16 = vld [vmem:[#allocation259_spill] sm:$0xff]  ;;  %v13227_v41 = vld [vmem:[#allocation13_spill] sm:$0xff] }
 0x3e0   :  { %13204 = vst [vmem:[#allocation5_spill] sm:$0xff] %v10648_v57  ;;  %v10663_v6 = vpop.f32.mrf.mxu0  ;;  %v13212_v57 = vld [vmem:[#allocation18_spill] sm:$0xff]  ;;  %v10668_v56 = vadd.f32 %v13214_v10, %v2297_v53  ;;  %v13223_v10 = vld [vmem:[#allocation11_spill] sm:$0xff]  ;;  %v13224_v53 = vld [vmem:[#allocation257_spill] sm:$0xff]  ;;  %v2323_v54 = vadd.f32 %v13226_v16, %v13225_v38  ;;  %v2327_v21 = vadd.f32 %v13228_v7, %v13227_v41 }
 0x3e1   :  { %13211 = vst [vmem:[#allocation6_spill] sm:$0xff] %v10663_v6  ;;  %v3172_v32 = vadd.f32 %v13212_v57, %v2291_v43  ;;  %v2610_v1 = vpop.f32.mrf.mxu1  ;;  %v13220_v34 = vld [vmem:[#allocation2_spill] sm:$0xff]  ;;  %v13221_v43 = vld [vmem:[#allocation29_spill] sm:$0xff]  ;;  %v2321_v55 = vadd.f32 %v13224_v53, %v13223_v10  ;;  %v10704_v10 = vadd.f32 %v13234_v2, %v2313_v44  ;;  %v13235_v53 = vld [vmem:[#allocation39_spill] sm:$0xff] }
 0x3e2   :  { %v10678_v60 = vpop.f32.mrf.mxu0  ;;  %v4676_v6 = vsub.s32 1, %v13220_v34  ;;  %v10682_v57 = vadd.f32 %v13221_v43, %v2303_v25  ;;  %v10685_v1 = vadd.f32 %v13222_v46, %v2307_v47  ;;  %v2329_v25 = vadd.f32 %v13231_v29, %v13230_v31  ;;  %v13233_v47 = vld [vmem:[#allocation35_spill] sm:$0xff] }
 0x3e3   :  { %13219 = vst [vmem:[#allocation7_spill] sm:$0xff] %v10678_v60  ;;  %v2611_v33 = vpop.f32.mrf.mxu1  ;;  %v10694_v60 = vadd.f32 %v13229_v39, %v2309_v19  ;;  %v10701_v46 = vadd.f32 %v13233_v47, %v2311_v18  ;;  %v10707_v38 = vadd.f32 %v13235_v53, %v2317_v8  ;;  %v13236_v16 = vld [vmem:[#allocation15_spill] sm:$0xff]  ;;  %v13239_v19 = vld [vmem:[#allocation265_spill] sm:$0xff]  ;;  %v2337_v29 = vadd.f32 %v13241_v36, %v13240_v22  ;;  %v8256_v8 = vld [vmem:[%s12689_s5] sm:$0xff] }
 0x3e4   :  { %v10698_v43 = vpop.f32.mrf.mxu0  ;;  %v13237_v7 = vld [vmem:[#allocation263_spill] sm:$0xff]  ;;  %v13238_v33 = vld [vmem:[#allocation16_spill] sm:$0xff]  ;;  %v13244_v47 = vld [vmem:[#allocation21_spill] sm:$0xff]  ;;  %v10722_v53 = vrot.slane %v8256_v8, %v4676_v6 }
 0x3e5   :  { %13232 = vst [vmem:[#allocation8_spill] sm:$0xff] %v10698_v43  ;;  %v2331_v41 = vadd.f32 %v13237_v7, %v13236_v16  ;;  %v2333_v39 = vadd.f32 %v13239_v19, %v13238_v33  ;;  %v13242_v31 = vld [vmem:[#allocation19_spill] sm:$0xff]  ;;  %v13243_v43 = vld [vmem:[#allocation269_spill] sm:$0xff]  ;;  %v3530_v18 = vpop.f32.mrf.mxu1  ;;  %3769 = vmatmul.mubr.bf16.gmra.mxu1 %v3368_v0  ;;  %v13253_v8 = vld [vmem:[#allocation264_spill] sm:$0xff] }
 0x3e6   :  { %v2339_v63 = vadd.f32 %v13243_v43, %v13242_v31  ;;  %v13245_v2 = vld [vmem:[#allocation271_spill] sm:$0xff]  ;;  %v3857_v24 = vadd.f32 %v3530_v18, %v3170_v12  ;;  %v10724_v16 = vpop.f32.mrf.mxu0  ;;  %3778 = vmatprep.mubr.bf16.mxu1 %v13047_v23  ;;  %v13247_v36 = vld [vmem:[#allocation41_spill] sm:$0xff] }
 0x3e7   :  { %v2341_v44 = vadd.f32 %v13245_v2, %v13244_v47  ;;  %13246 = vst [vmem:[#allocation251_spill] sm:$0xff] %v10724_v16  ;;  %v10728_v22 = vadd.f32 %v13247_v36, %v2319_v5  ;;  %v13248_v43 = vld [vmem:[#allocation23_spill] sm:$0xff]  ;;  %v13249_v7 = vld [vmem:[#allocation273_spill] sm:$0xff]  ;;  %v3532_v33 = vpop.f32.mrf.mxu1 }
 0x3e8   :  { %v2343_v0 = vadd.f32 %v13249_v7, %v13248_v43  ;;  %v13250_v19 = vld [vmem:[#allocation43_spill] sm:$0xff]  ;;  %v13251_v12 = vld [vmem:[#allocation45_spill] sm:$0xff]  ;;  %v4544_v16 = vadd.f32 %v13253_v8, %v3857_v24  ;;  %v3858_v48 = vadd.f32 %v3532_v33, %v3171_v35  ;;  %v10747_v43 = vpop.f32.mrf.mxu0 }
 0x3e9   :  { %v10733_v31 = vadd.f32 %v13250_v19, %v2321_v55  ;;  %v10736_v18 = vadd.f32 %v13251_v12, %v2323_v54  ;;  %v13252_v47 = vld [vmem:[#allocation47_spill] sm:$0xff]  ;;  %13254 = vst [vmem:[#allocation9_spill] sm:$0xff] %v10747_v43  ;;  %v13255_v7 = vld [vmem:[#allocation49_spill] sm:$0xff]  ;;  %v3534_v19 = vpop.f32.mrf.mxu1 }
 0x3ea   :  { %v10739_v2 = vadd.f32 %v13252_v47, %v2327_v21  ;;  %v8257_v5 = vld [vmem:[%s12689_s5 + $0x8] sm:$0xff]  ;;  %v10750_v55 = vadd.f32 %v13255_v7, %v2329_v25  ;;  %v13257_v21 = vld [vmem:[#allocation53_spill] sm:$0xff]  ;;  %v3859_v20 = vadd.f32 %v3534_v19, %v3172_v32  ;;  %v10766_v25 = vpop.f32.mrf.mxu0 }
 0x3eb   :  { %v10745_v36 = vrot.slane %v8257_v5, %v4676_v6  ;;  %v13256_v54 = vld [vmem:[#allocation51_spill] sm:$0xff]  ;;  %v10756_v47 = vadd.f32 %v13257_v21, %v2333_v39  ;;  %v13259_v33 = vld [vmem:[#allocation57_spill] sm:$0xff]  ;;  %v4682_v6 = vadd.f32 %v10722_v53, %v4544_v16  ;;  %v13260_v5 = vld [vmem:[#allocation266_spill] sm:$0xff]  ;;  %13261 = vst [vmem:[#allocation253_spill] sm:$0xff] %v10766_v25  ;;  %v10778_v16 = vadd.f32 %v13269_v45, %v2343_v0 }
 0x3ec   :  { %v10753_v12 = vadd.f32 %v13256_v54, %v2331_v41  ;;  %v13258_v24 = vld [vmem:[#allocation55_spill] sm:$0xff]  ;;  %v10762_v8 = vadd.f32 %v13259_v33, %v2339_v63  ;;  %v4545_v43 = vadd.f32 %v13260_v5, %v3858_v48  ;;  %v13263_v41 = vld [vmem:[#allocation26_spill] sm:$0xff]  ;;  %v13265_v21 = vld [vmem:[#allocation28_spill] sm:$0xff]  ;;  %v3536_v33 = vpop.f32.mrf.mxu1  ;;  %v10784_v17 = vpop.f32.mrf.mxu0 }
 0x3ed   :  { %v10759_v35 = vadd.f32 %v13258_v24, %v2337_v29  ;;  %v13262_v7 = vld [vmem:[#allocation59_spill] sm:$0xff]  ;;  %v2349_v29 = vadd.f32 %v13266_v42, %v13265_v21  ;;  %v13267_v24 = vld [vmem:[#allocation30_spill] sm:$0xff]  ;;  %v13270_v48 = vld [vmem:[#allocation32_spill] sm:$0xff]  ;;  %v3860_v25 = vadd.f32 %v3536_v33, %v3173_v27  ;;  %13273 = vst [vmem:[#allocation18_spill] sm:$0xff] %v10784_v17  ;;  %v4812_v0 = vmax.f32 %v4682_v6, 0.0  ;;  %3779 = vmatmul.mubr.bf16.gmra.mxu1 %v10607_v28 }
 0x3ee   :  { %v10769_v13 = vadd.f32 %v13262_v7, %v2341_v44  ;;  %v13264_v54 = vld [vmem:[#allocation275_spill] sm:$0xff]  ;;  %v2351_v63 = vadd.f32 %v13268_v14, %v13267_v24  ;;  %v13271_v32 = vld [vmem:[#allocation281_spill] sm:$0xff]  ;;  %v4683_v5 = vadd.f32 %v10745_v36, %v4545_v43  ;;  %v13272_v44 = vld [vmem:[#allocation268_spill] sm:$0xff]  ;;  %v3540_v58 = vpop.f32.mrf.mxu1  ;;  %3788 = vmatprep.mubr.bf16.mxu1 %v13047_v23 }
 0x3ef   :  { %v2347_v39 = vadd.f32 %v13264_v54, %v13263_v41  ;;  %v2353_v19 = vadd.f32 %v13271_v32, %v13270_v48  ;;  %v4546_v7 = vadd.f32 %v13272_v44, %v3859_v20  ;;  %v13274_v41 = vld [vmem:[#allocation34_spill] sm:$0xff]  ;;  %v13275_v54 = vld [vmem:[#allocation283_spill] sm:$0xff]  ;;  %v13276_v21 = vld [vmem:[#allocation36_spill] sm:$0xff]  ;;  %v3861_v33 = vadd.f32 %v3540_v58, %v10668_v56  ;;  %v10796_v32 = vpop.f32.mrf.mxu0 }
 0x3f0   :  { %v2357_v42 = vadd.f32 %v13275_v54, %v13274_v41  ;;  %v2359_v14 = vadd.f32 %v13277_v50, %v13276_v21  ;;  %v13278_v24 = vld [vmem:[#allocation38_spill] sm:$0xff]  ;;  %v4813_v48 = vmax.f32 %v4683_v5, 0.0  ;;  %13281 = vst [vmem:[#allocation20_spill] sm:$0xff] %v10796_v32  ;;  %v13282_v44 = vld [vmem:[#allocation40_spill] sm:$0xff]  ;;  %v13283_v50 = vld [vmem:[#allocation289_spill] sm:$0xff]  ;;  %v3542_v54 = vpop.f32.mrf.mxu1 }
 0x3f1   :  { %v2361_v45 = vadd.f32 %v13279_v30, %v13278_v24  ;;  %v4684_v43 = vadd.f32 %v10722_v53, %v4546_v7  ;;  %v13280_v20 = vld [vmem:[#allocation270_spill] sm:$0xff]  ;;  %v2363_v41 = vadd.f32 %v13283_v50, %v13282_v44  ;;  %v13284_v30 = vld [vmem:[#allocation63_spill] sm:$0xff]  ;;  %v13285_v21 = vld [vmem:[#allocation65_spill] sm:$0xff] }
 0x3f2   :  { %v4547_v27 = vadd.f32 %v13280_v20, %v3860_v25  ;;  %v10802_v6 = vadd.f32 %v13284_v30, %v2347_v39  ;;  %v10805_v28 = vadd.f32 %v13285_v21, %v2349_v29  ;;  %v13286_v5 = vld [vmem:[#allocation67_spill] sm:$0xff]  ;;  %v10810_v25 = vmax.f32 %v4812_v0, %v4813_v48  ;;  %v13287_v56 = vld [vmem:[#allocation272_spill] sm:$0xff]  ;;  %v10814_v20 = vpop.f32.mrf.mxu0  ;;  %v13289_v32 = vld [vmem:[#allocation69_spill] sm:$0xff]  ;;  %v3544_v21 = vpop.f32.mrf.mxu1 }
 0x3f3   :  { %v10808_v7 = vadd.f32 %v13286_v5, %v2351_v63  ;;  %v4548_v24 = vadd.f32 %v13287_v56, %v3861_v33  ;;  %13288 = vst [vmem:[#allocation22_spill] sm:$0xff] %v10814_v20  ;;  %v10817_v44 = vadd.f32 %v13289_v32, %v2353_v19  ;;  %v13290_v50 = vld [vmem:[#allocation42_spill] sm:$0xff]  ;;  %v13291_v39 = vld [vmem:[#allocation291_spill] sm:$0xff]  ;;  %v3862_v29 = vadd.f32 %v3542_v54, %v10671_v37  ;;  %v13294_v0 = vld [vmem:[#allocation73_spill] sm:$0xff] }
 0x3f4   :  { %v4685_v58 = vadd.f32 %v10745_v36, %v4547_v27  ;;  %v2367_v30 = vadd.f32 %v13291_v39, %v13290_v50  ;;  %v13292_v17 = vld [vmem:[#allocation71_spill] sm:$0xff]  ;;  %v10826_v48 = vadd.f32 %v13294_v0, %v2359_v14  ;;  %v4814_v27 = vmax.f32 %v4684_v43, 0.0  ;;  %v10829_v56 = vpop.f32.mrf.mxu0  ;;  %v13297_v20 = vld [vmem:[#allocation44_spill] sm:$0xff]  ;;  %v13298_v50 = vld [vmem:[#allocation293_spill] sm:$0xff] }
 0x3f5   :  { %v10823_v63 = vadd.f32 %v13292_v17, %v2357_v42  ;;  %v3863_v33 = vadd.f32 %v3544_v21, %v10674_v15  ;;  %13295 = vst [vmem:[#allocation27_spill] sm:$0xff] %v10829_v56  ;;  %v13296_v19 = vld [vmem:[#allocation75_spill] sm:$0xff]  ;;  %v2369_v39 = vadd.f32 %v13298_v50, %v13297_v20  ;;  %v4686_v37 = vadd.f32 %v10722_v53, %v4548_v24  ;;  %v13299_v54 = vld [vmem:[#allocation274_spill] sm:$0xff]  ;;  %v3546_v42 = vpop.f32.mrf.mxu1  ;;  %v13303_v21 = vld [vmem:[#allocation276_spill] sm:$0xff] }
 0x3f6   :  { %v4815_v5 = vmax.f32 %v4685_v58, 0.0  ;;  %v10832_v32 = vadd.f32 %v13296_v19, %v2361_v45  ;;  %v4549_v17 = vadd.f32 %v13299_v54, %v3862_v29  ;;  %v13302_v43 = vld [vmem:[#allocation46_spill] sm:$0xff]  ;;  %v3864_v45 = vadd.f32 %v3546_v42, %v10682_v57  ;;  %v10847_v19 = vpop.f32.mrf.mxu0  ;;  %v13305_v20 = vld [vmem:[#allocation48_spill] sm:$0xff]  ;;  %3789 = vmatmul.mubr.bf16.gmra.mxu1 %v10615_v11 }
 0x3f7   :  { %13293 = vst [vmem:[#allocation25_spill] sm:$0xff] %v10823_v63  ;;  %v13300_v63 = vld [vmem:[#allocation77_spill] sm:$0xff]  ;;  %v2371_v58 = vadd.f32 %v10138_v62, %v13302_v43  ;;  %v4550_v0 = vadd.f32 %v13303_v21, %v3863_v33  ;;  %13304 = vst [vmem:[#allocation255_spill] sm:$0xff] %v10847_v19  ;;  %v13306_v50 = vld [vmem:[#allocation296_spill] sm:$0xff]  ;;  %v5073_v29 = vrot.slane %v10810_v25, 2  ;;  %3798 = vmatprep.mubr.bf16.mxu1 %v13047_v23 }
 0x3f8   :  { %v10839_v14 = vadd.f32 %v13300_v63, %v2363_v41  ;;  %v10843_v15 = vmax.f32 %v4814_v27, %v4815_v5  ;;  %v2373_v24 = vadd.f32 %v13306_v50, %v13305_v20  ;;  %v4687_v54 = vadd.f32 %v10745_v36, %v4549_v17  ;;  %v3550_v41 = vpop.f32.mrf.mxu1  ;;  %v13307_v63 = vld [vmem:[#allocation79_spill] sm:$0xff]  ;;  %v13309_v57 = vld [vmem:[#allocation278_spill] sm:$0xff]  ;;  %v10861_v43 = vpop.f32.mrf.mxu0 }
 0x3f9   :  { %v10855_v62 = vadd.f32 %v13307_v63, %v2367_v30  ;;  %v4688_v5 = vadd.f32 %v10722_v53, %v4550_v0  ;;  %v4551_v33 = vadd.f32 %v13309_v57, %v3864_v45  ;;  %v3865_v42 = vadd.f32 %v3550_v41, %v10685_v1  ;;  %13310 = vst [vmem:[#allocation31_spill] sm:$0xff] %v10861_v43  ;;  %v13311_v21 = vld [vmem:[#allocation50_spill] sm:$0xff]  ;;  %v13313_v30 = vld [vmem:[#allocation81_spill] sm:$0xff]  ;;  %v13314_v45 = vld [vmem:[#allocation280_spill] sm:$0xff] }
 0x3fa   :  { %13301 = vst [vmem:[#allocation10_spill] sm:$0xff] %v10839_v14  ;;  %v5074_v27 = vrot.slane %v10843_v15, 2  ;;  %v13312_v17 = vld [vmem:[#allocation298_spill] sm:$0xff]  ;;  %v4816_v50 = vmax.f32 %v4686_v37, 0.0  ;;  %v4817_v11 = vmax.f32 %v4687_v54, 0.0  ;;  %v3552_v19 = vpop.f32.mrf.mxu1  ;;  %v10867_v63 = vadd.f32 %v13313_v30, %v2369_v39  ;;  %v10872_v1 = vpop.f32.mrf.mxu0  ;;  %v13316_v41 = vld [vmem:[#allocation83_spill] sm:$0xff] }
 0x3fb   :  { %13308 = vst [vmem:[#allocation29_spill] sm:$0xff] %v10855_v62  ;;  %v2377_v20 = vadd.f32 %v13312_v17, %v13311_v21  ;;  %v4689_v0 = vadd.f32 %v10745_v36, %v4551_v33  ;;  %v4552_v57 = vadd.f32 %v13314_v45, %v3865_v42  ;;  %13315 = vst [vmem:[#allocation11_spill] sm:$0xff] %v10872_v1  ;;  %v13317_v62 = vld [vmem:[#allocation52_spill] sm:$0xff]  ;;  %v13320_v45 = vld [vmem:[#allocation85_spill] sm:$0xff] }
 0x3fc   :  { %v5075_v56 = vsel %vm2630_vm3, %v5073_v29, %v5074_v27  ;;  %v10875_v43 = vadd.f32 %v13316_v41, %v2371_v58  ;;  %v13318_v14 = vld [vmem:[#allocation300_spill] sm:$0xff]  ;;  %v10880_v54 = vmax.f32 %v4816_v50, %v4817_v11  ;;  %v3866_v39 = vadd.f32 %v3552_v19, %v10694_v60  ;;  %v3554_v17 = vpop.f32.mrf.mxu1  ;;  %v10884_v42 = vpop.f32.mrf.mxu0  ;;  %v13322_v50 = vld [vmem:[#allocation87_spill] sm:$0xff]  ;;  %v13323_v60 = vld [vmem:[#allocation54_spill] sm:$0xff] }
 0x3fd   :  { %v2379_v21 = vadd.f32 %v13318_v14, %v13317_v62  ;;  %v5266_v37 = vmax.f32 %v10810_v25, %v5075_v56  ;;  %v4818_v29 = vmax.f32 %v4688_v5, 0.0  ;;  %v4819_v30 = vmax.f32 %v4689_v0, 0.0  ;;  %13319 = vst [vmem:[#allocation257_spill] sm:$0xff] %v10884_v42  ;;  %v13321_v62 = vld [vmem:[#allocation282_spill] sm:$0xff] }
 0x3fe   :  { %v3867_v33 = vadd.f32 %v3554_v17, %v10701_v46  ;;  %v10887_v1 = vadd.f32 %v13320_v45, %v2373_v24  ;;  %v5076_v58 = vrot.slane %v10880_v54, 2  ;;  %v4690_v14 = vadd.f32 %v10722_v53, %v4552_v57  ;;  %v3556_v56 = vpop.f32.mrf.mxu1  ;;  %v13324_v46 = vld [vmem:[#allocation284_spill] sm:$0xff]  ;;  %v10901_v41 = vpop.f32.mrf.mxu0  ;;  %v13327_v45 = vld [vmem:[#allocation303_spill] sm:$0xff]  ;;  %3799 = vmatmul.mubr.bf16.gmra.mxu1 %v10618_v61 }
 0x3ff   :  { %v4553_v25 = vadd.f32 %v13321_v62, %v3866_v39  ;;  %v10893_v11 = vadd.f32 %v13322_v50, %v2377_v20  ;;  %v2381_v19 = vadd.f32 %v10161_v52, %v13323_v60  ;;  %v10897_v5 = vmax.f32 %v4818_v29, %v4819_v30  ;;  %13325 = vst [vmem:[#allocation12_spill] sm:$0xff] %v10901_v41  ;;  %v13326_v17 = vld [vmem:[#allocation56_spill] sm:$0xff]  ;;  %v13328_v50 = vld [vmem:[#allocation89_spill] sm:$0xff] }
 0x400   :  { %v4554_v0 = vadd.f32 %v13324_v46, %v3867_v33  ;;  %v3868_v24 = vadd.f32 %v3556_v56, %v10704_v10  ;;  %v2383_v57 = vadd.f32 %v13327_v45, %v13326_v17  ;;  %v5077_v39 = vsel %vm2630_vm3, %v5074_v27, %v5076_v58  ;;  %v3560_v20 = vpop.f32.mrf.mxu1  ;;  %v13329_v33 = vld [vmem:[#allocation286_spill] sm:$0xff]  ;;  %v10915_v60 = vpop.f32.mrf.mxu0  ;;  %3808 = vmatprep.mubr.bf16.mxu1 %v13047_v23 }
 0x401   :  { %v4691_v62 = vadd.f32 %v10745_v36, %v4553_v25  ;;  %v10909_v52 = vadd.f32 %v13328_v50, %v2379_v21  ;;  %v5267_v29 = vmax.f32 %v10843_v15, %v5077_v39  ;;  %v5078_v30 = vrot.slane %v10897_v5, 2  ;;  %13330 = vst [vmem:[#allocation259_spill] sm:$0xff] %v10915_v60  ;;  %v13331_v27 = vld [vmem:[#allocation58_spill] sm:$0xff]  ;;  %v13332_v25 = vld [vmem:[#allocation305_spill] sm:$0xff]  ;;  %v13333_v50 = vld [vmem:[#allocation60_spill] sm:$0xff] }
 0x402   :  { %v4692_v10 = vadd.f32 %v10722_v53, %v4554_v0  ;;  %v4555_v56 = vadd.f32 %v13329_v33, %v3868_v24  ;;  %v2387_v46 = vadd.f32 %v13332_v25, %v13331_v27  ;;  %v4820_v17 = vmax.f32 %v4690_v14, 0.0  ;;  %v3562_v45 = vpop.f32.mrf.mxu1  ;;  %v13334_v15 = vld [vmem:[#allocation307_spill] sm:$0xff]  ;;  %v10927_v33 = vpop.f32.mrf.mxu0  ;;  %v13337_v14 = vld [vmem:[#allocation288_spill] sm:$0xff] }
 0x403   :  { %v4821_v61 = vmax.f32 %v4691_v62, 0.0  ;;  %v3869_v21 = vadd.f32 %v3560_v20, %v10707_v38  ;;  %v2389_v39 = vadd.f32 %v13334_v15, %v13333_v50  ;;  %v10923_v41 = vpack.c.bf16 %v5267_v29, %v5266_v37  ;;  %13336 = vst [vmem:[#allocation261_spill] sm:$0xff] %v10927_v33 }
 0x404   :  { %v5079_v0 = vsel %vm2630_vm3, %v5076_v58, %v5078_v30  ;;  %v4693_v24 = vadd.f32 %v10745_v36, %v4555_v56  ;;  %v3870_v38 = vadd.f32 %v3562_v45, %v10728_v22  ;;  %v3564_v20 = vpop.f32.mrf.mxu1  ;;  %v4822_v27 = vmax.f32 %v4692_v10, 0.0  ;;  %v10935_v29 = vpop.f32.mrf.mxu0  ;;  %v13339_v58 = vld [vmem:[#allocation91_spill] sm:$0xff]  ;;  %v13342_v10 = vld [vmem:[#allocation292_spill] sm:$0xff] }
 0x405   :  { %13335 = vst [vmem:[#allocation13_spill] sm:$0xff] %v10923_v41  ;;  %v5268_v60 = vmax.f32 %v10880_v54, %v5079_v0  ;;  %v10930_v42 = vmax.f32 %v4820_v17, %v4821_v61  ;;  %v4556_v62 = vadd.f32 %v13337_v14, %v3869_v21  ;;  %v3871_v37 = vadd.f32 %v3564_v20, %v10733_v31  ;;  %v13340_v17 = vld [vmem:[#allocation290_spill] sm:$0xff]  ;;  %v13341_v21 = vld [vmem:[#allocation93_spill] sm:$0xff] }
 0x406   :  { %v4823_v25 = vmax.f32 %v4693_v24, 0.0  ;;  %13338 = vst [vmem:[#allocation33_spill] sm:$0xff] %v10935_v29  ;;  %v10938_v50 = vadd.f32 %v13339_v58, %v2381_v19  ;;  %v4557_v61 = vadd.f32 %v13340_v17, %v3870_v38  ;;  %v3566_v15 = vpop.f32.mrf.mxu1  ;;  %v10944_v0 = vadd.f32 %v13341_v21, %v2383_v57  ;;  %v10950_v24 = vpop.f32.mrf.mxu0  ;;  %v13344_v19 = vld [vmem:[#allocation95_spill] sm:$0xff]  ;;  %v13345_v20 = vld [vmem:[#allocation62_spill] sm:$0xff]  ;;  %3809 = vmatmul.mubr.bf16.gmra.mxu1 %v10621_v9 }
 0x407   :  { %v5080_v56 = vrot.slane %v10930_v42, 2  ;;  %v4694_v54 = vadd.f32 %v10722_v53, %v4556_v62  ;;  %v4558_v45 = vadd.f32 %v13342_v10, %v3871_v37  ;;  %v3872_v31 = vadd.f32 %v3566_v15, %v10736_v18  ;;  %13343 = vst [vmem:[#allocation14_spill] sm:$0xff] %v10950_v24  ;;  %v13347_v17 = vld [vmem:[#allocation294_spill] sm:$0xff]  ;;  %3818 = vmatprep.mubr.bf16.mxu1 %v13047_v23 }
 0x408   :  { %v10946_v22 = vmax.f32 %v4822_v27, %v4823_v25  ;;  %v10953_v14 = vadd.f32 %v13344_v19, %v2387_v46  ;;  %v2391_v62 = vadd.f32 %v10183_v4, %v13345_v20  ;;  %v4695_v58 = vadd.f32 %v10745_v36, %v4557_v61  ;;  %v3570_v57 = vpop.f32.mrf.mxu1  ;;  %v13346_v27 = vld [vmem:[#allocation97_spill] sm:$0xff]  ;;  %v4541_v21 = vpop.f32.mrf.mxu0  ;;  %v13348_v4 = vld [vmem:[#allocation64_spill] sm:$0xff]  ;;  %v13350_v20 = vld [vmem:[#allocation66_spill] sm:$0xff] }
 0x409   :  { %v5081_v38 = vsel %vm2630_vm3, %v5078_v30, %v5080_v56  ;;  %v10961_v25 = vadd.f32 %v13346_v27, %v2389_v39  ;;  %v4696_v46 = vadd.f32 %v10722_v53, %v4558_v45  ;;  %v4559_v15 = vadd.f32 %v13347_v17, %v3872_v31  ;;  %v13349_v30 = vld [vmem:[#allocation310_spill] sm:$0xff]  ;;  %v13351_v27 = vld [vmem:[#allocation312_spill] sm:$0xff] }
 0x40a   :  { %v5269_v18 = vmax.f32 %v10897_v5, %v5081_v38  ;;  %v5082_v37 = vrot.slane %v10946_v22, 2  ;;  %v2393_v61 = vadd.f32 %v13349_v30, %v13348_v4  ;;  %v4824_v10 = vmax.f32 %v4694_v54, 0.0  ;;  %v3572_v39 = vpop.f32.mrf.mxu1  ;;  %v4542_v17 = vpop.f32.mrf.mxu0  ;;  %v13353_v4 = vld [vmem:[#allocation295_spill] sm:$0xff] }
 0x40b   :  { %v4825_v19 = vmax.f32 %v4695_v58, 0.0  ;;  %v3873_v9 = vadd.f32 %v3570_v57, %v10739_v2  ;;  %v2397_v5 = vadd.f32 %v13351_v27, %v13350_v20  ;;  %v4697_v31 = vadd.f32 %v10745_v36, %v4559_v15  ;;  %v13356_v27 = vld [vmem:[#allocation314_spill] sm:$0xff] }
 0x40c   :  { %v10973_v38 = vpack.c.bf16 %v5269_v18, %v5268_v60  ;;  %v5083_v45 = vsel %vm2630_vm3, %v5080_v56, %v5082_v37  ;;  %v3874_v58 = vadd.f32 %v3572_v39, %v10750_v55  ;;  %v3574_v2 = vpop.f32.mrf.mxu1  ;;  %v4826_v57 = vmax.f32 %v4696_v46, 0.0  ;;  %v13354_v60 = vld [vmem:[#allocation99_spill] sm:$0xff]  ;;  %v13355_v56 = vld [vmem:[#allocation68_spill] sm:$0xff] }
 0x40d   :  { %v5270_v21 = vmax.f32 %v10930_v42, %v5083_v45  ;;  %v10978_v24 = vmax.f32 %v4824_v10, %v4825_v19  ;;  %v4560_v54 = vadd.f32 %v13353_v4, %v3873_v9  ;;  %v4827_v30 = vmax.f32 %v4697_v31, 0.0  ;;  %v13357_v10 = vld [vmem:[#allocation297_spill] sm:$0xff]  ;;  %v13358_v55 = vld [vmem:[#allocation299_spill] sm:$0xff] }
 0x40e   :  { %13352 = vst [vmem:[#allocation262_spill] sm:$0xff] %v10973_v38  ;;  %v3875_v20 = vadd.f32 %v3574_v2, %v10753_v12  ;;  %v10984_v18 = vadd.f32 %v13354_v60, %v2391_v62  ;;  %v2399_v15 = vadd.f32 %v13356_v27, %v13355_v56  ;;  %v4561_v19 = vadd.f32 %v13357_v10, %v3874_v58  ;;  %v3576_v9 = vpop.f32.mrf.mxu1  ;;  %v13359_v31 = vld [vmem:[#allocation101_spill] sm:$0xff]  ;;  %v13360_v62 = vld [vmem:[#allocation70_spill] sm:$0xff] }
 0x40f   :  { %v5084_v17 = vrot.slane %v10978_v24, 2  ;;  %v4698_v42 = vadd.f32 %v10722_v53, %v4560_v54  ;;  %v4949_v45 = vmax.f32 %v4826_v57, %v4827_v30  ;;  %v3876_v46 = vadd.f32 %v3576_v9, %v10756_v47  ;;  %3819 = vmatmul.mubr.bf16.gmra.mxu1 %v10641_v26  ;;  %v13361_v54 = vld [vmem:[#allocation103_spill] sm:$0xff]  ;;  %v13364_v26 = vld [vmem:[#allocation72_spill] sm:$0xff] }
 0x410   :  { %v4562_v39 = vadd.f32 %v13358_v55, %v3875_v20  ;;  %v10994_v12 = vadd.f32 %v13359_v31, %v2393_v61  ;;  %v2401_v4 = vadd.f32 %v10205_v40, %v13360_v62  ;;  %v4699_v60 = vadd.f32 %v10745_v36, %v4561_v19  ;;  %v3580_v56 = vpop.f32.mrf.mxu1  ;;  %v13362_v61 = vld [vmem:[#allocation301_spill] sm:$0xff]  ;;  %3828 = vmatprep.mubr.bf16.mxu1 %v13047_v23 }
 0x411   :  { %v5085_v2 = vsel %vm2630_vm3, %v5082_v37, %v5084_v17  ;;  %v11002_v58 = vadd.f32 %v13361_v54, %v2397_v5  ;;  %v5086_v30 = vrot.slane %v4949_v45, 2  ;;  %v4563_v20 = vadd.f32 %v13362_v61, %v3876_v46  ;;  %v13363_v19 = vld [vmem:[#allocation105_spill] sm:$0xff]  ;;  %v13368_v61 = vld [vmem:[#allocation107_spill] sm:$0xff] }
 0x412   :  { %v5271_v57 = vmax.f32 %v10946_v22, %v5085_v2  ;;  %v4700_v47 = vadd.f32 %v10722_v53, %v4562_v39  ;;  %v4828_v40 = vmax.f32 %v4698_v42, 0.0  ;;  %v4829_v27 = vmax.f32 %v4699_v60, 0.0  ;;  %v3582_v10 = vpop.f32.mrf.mxu1  ;;  %v13365_v5 = vld [vmem:[#allocation317_spill] sm:$0xff]  ;;  %v13367_v42 = vld [vmem:[#allocation302_spill] sm:$0xff] }
 0x413   :  { %v3877_v37 = vadd.f32 %v3580_v56, %v10759_v35  ;;  %v11010_v9 = vadd.f32 %v13363_v19, %v2399_v15  ;;  %v2403_v55 = vadd.f32 %v13365_v5, %v13364_v26  ;;  %v5087_v22 = vsel %vm2630_vm3, %v5084_v17, %v5086_v30  ;;  %v13372_v26 = vld [vmem:[#allocation109_spill] sm:$0xff]  ;;  %v13374_v5 = vld [vmem:[#allocation320_spill] sm:$0xff] }
 0x414   :  { %v11014_v31 = vpack.c.bf16 %v5271_v57, %v5270_v21  ;;  %v4701_v39 = vadd.f32 %v10745_v36, %v4563_v20  ;;  %v5272_v46 = vmax.f32 %v10978_v24, %v5087_v22  ;;  %v11019_v62 = vmax.f32 %v4828_v40, %v4829_v27  ;;  %v3584_v60 = vpop.f32.mrf.mxu1  ;;  %v13369_v57 = vld [vmem:[#allocation74_spill] sm:$0xff]  ;;  %v13370_v40 = vld [vmem:[#allocation304_spill] sm:$0xff] }
 0x415   :  { %v4564_v2 = vadd.f32 %v13367_v42, %v3877_v37  ;;  %v3878_v35 = vadd.f32 %v3582_v10, %v10762_v8  ;;  %v4830_v15 = vmax.f32 %v4700_v47, 0.0  ;;  %v3879_v54 = vadd.f32 %v3584_v60, %v10769_v13  ;;  %v13371_v8 = vld [vmem:[#allocation306_spill] sm:$0xff] }
 0x416   :  { %13366 = vst [vmem:[#allocation35_spill] sm:$0xff] %v11014_v31  ;;  %v4831_v56 = vmax.f32 %v4701_v39, 0.0  ;;  %v11025_v21 = vadd.f32 %v13368_v61, %v2401_v4  ;;  %v2407_v17 = vadd.f32 %v10216_v3, %v13369_v57  ;;  %v5088_v20 = vrot.slane %v11019_v62, 2  ;;  %v3586_v37 = vpop.f32.mrf.mxu1  ;;  %v13373_v4 = vld [vmem:[#allocation76_spill] sm:$0xff] }
 0x417   :  { %v4702_v24 = vadd.f32 %v10722_v53, %v4564_v2  ;;  %v4565_v27 = vadd.f32 %v13370_v40, %v3878_v35  ;;  %v4566_v10 = vadd.f32 %v13371_v8, %v3879_v54  ;;  %v3880_v47 = vadd.f32 %v3586_v37, %v10778_v16  ;;  %3829 = vmatmul.mubr.bf16.gmra.mxu1 %v10644_v59  ;;  %v13377_v40 = vld [vmem:[#allocation111_spill] sm:$0xff] }
 0x418   :  { %v4951_v19 = vmax.f32 %v4830_v15, %v4831_v56  ;;  %v11035_v13 = vadd.f32 %v13372_v26, %v2403_v55  ;;  %v11039_v22 = vadd.f32 %v13374_v5, %v13373_v4  ;;  %v5089_v3 = vsel %vm2630_vm3, %v5086_v30, %v5088_v20  ;;  %v3590_v42 = vpop.f32.mrf.mxu1  ;;  %v13376_v55 = vld [vmem:[#allocation308_spill] sm:$0xff]  ;;  %3838 = vmatprep.mubr.bf16.mxu1 %v13047_v23 }
 0x419   :  { %v4703_v39 = vadd.f32 %v10745_v36, %v4565_v27  ;;  %v13375_v2 = vlaneseq  ;;  %v5273_v60 = vmax.f32 %v4949_v45, %v5089_v3  ;;  %v4704_v16 = vadd.f32 %v10722_v53, %v4566_v10 }
 0x41a   :  { %v5090_v15 = vrot.slane %v4951_v19, 2  ;;  %v4567_v56 = vadd.f32 %v13376_v55, %v3880_v47  ;;  %v4832_v54 = vmax.f32 %v4702_v24, 0.0  ;;  %v3881_v30 = vadd.f32 %v3590_v42, %v10802_v6  ;;  %v3592_v57 = vpop.f32.mrf.mxu1  ;;  %v13378_v24 = vld [vmem:[#allocation309_spill] sm:$0xff]  ;;  %v13379_v42 = vld [vmem:[#allocation311_spill] sm:$0xff] }
 0x41b   :  { %v11045_v35 = vand.u32 127, %v13375_v2  ;;  %v4833_v61 = vmax.f32 %v4703_v39, 0.0  ;;  %v11052_v27 = vadd.f32 %v13377_v40, %v2407_v17  ;;  %v11054_v59 = vpack.c.bf16 %v5273_v60, %v5272_v46 }
 0x41c   :  { %v5091_v37 = vsel %vm2630_vm3, %v5088_v20, %v5090_v15  ;;  %v4705_v45 = vadd.f32 %v10745_v36, %v4567_v56  ;;  %v5369_v8 = vadd.s32 8, %v13220_v34  ;;  %v4568_v26 = vadd.f32 %v13378_v24, %v3881_v30  ;;  %v3594_v4 = vpop.f32.mrf.mxu1  ;;  %v13382_v30 = vld [vmem:[#allocation80_spill] sm:$0xff] }
 0x41d   :  { %v5274_v10 = vmax.f32 %v11019_v62, %v5091_v37  ;;  %v11060_v47 = vmax.f32 %v4832_v54, %v4833_v61  ;;  %v3882_v6 = vadd.f32 %v3592_v57, %v10805_v28  ;;  %v4834_v5 = vmax.f32 %v4704_v16, 0.0  ;;  %v13380_v28 = vld [vmem:[#allocation313_spill] sm:$0xff]  ;;  %v13383_v57 = vld [vmem:[#allocation323_spill] sm:$0xff] }
 0x41e   :  { %v4835_v17 = vmax.f32 %v4705_v45, 0.0  ;;  %v3883_v46 = vadd.f32 %v3594_v4, %v10808_v7  ;;  %v11066_v3 = vadd.s32 128, %v11045_v35  ;;  %v4706_v39 = vadd.f32 %v10722_v53, %v4568_v26  ;;  %v3596_v2 = vpop.f32.mrf.mxu1  ;;  %v13381_v7 = vld [vmem:[#allocation78_spill] sm:$0xff] }
 0x41f   :  { %v5092_v20 = vrot.slane %v11060_v47, 2  ;;  %v4569_v62 = vadd.f32 %v13379_v42, %v3882_v6  ;;  %v11072_v60 = vmul.u32 32, %v13220_v34  ;;  %v3884_v16 = vadd.f32 %v3596_v2, %v10817_v44  ;;  %3839 = vmatmul.mubr.bf16.gmra.mxu1 %v10655_v49  ;;  %v13384_v44 = vld [vmem:[#allocation315_spill] sm:$0xff] }
 0x420   :  { %v4953_v55 = vmax.f32 %v4834_v5, %v4835_v17  ;;  %v4570_v56 = vadd.f32 %v13380_v28, %v3883_v46  ;;  %v11076_v54 = vmul.u32 32, %v5369_v8  ;;  %v2411_v61 = vadd.f32 %v10226_v51, %v13381_v7  ;;  %v3600_v24 = vpop.f32.mrf.mxu1  ;;  %3848 = vmatprep.mubr.bf16.mxu1 %v13047_v23  ;;  %v13385_v17 = vld [vmem:[#allocation25_spill] sm:$0xff] }
 0x421   :  { %v2413_v40 = vadd.f32 %v13383_v57, %v13382_v30  ;;  %v5093_v37 = vsel %vm2630_vm3, %v5090_v15, %v5092_v20  ;;  %v4707_v45 = vadd.f32 %v10745_v36, %v4569_v62  ;;  %v4571_v8 = vadd.f32 %v13384_v44, %v3884_v16  ;;  %v13392_v44 = vld [vmem:[#allocation10_spill] sm:$0xff] }
 0x422   :  { %v5275_v26 = vmax.f32 %v4951_v19, %v5093_v37  ;;  %v5094_v6 = vrot.slane %v4953_v55, 2  ;;  %v4708_v4 = vadd.f32 %v10722_v53, %v4570_v56  ;;  %v4836_v5 = vmax.f32 %v4706_v39, 0.0  ;;  %v3602_v42 = vpop.f32.mrf.mxu1  ;;  %v13386_v39 = vld [vmem:[#allocation316_spill] sm:$0xff] }
 0x423   :  { %v4837_v51 = vmax.f32 %v4707_v45, 0.0  ;;  %v3885_v46 = vadd.f32 %v3600_v24, %v13385_v17  ;;  %vm5373_vm6 = vcmp.eq.s32.totalorder %v11066_v3, %v11072_v60  ;;  %v4709_v19 = vadd.f32 %v10745_v36, %v4571_v8  ;;  %v13393_v8 = vld [vmem:[#allocation115_spill] sm:$0xff]  ;;  %v13395_v17 = vld [vmem:[#allocation325_spill] sm:$0xff] }
 0x424   :  { %v11091_v15 = vpack.c.bf16 %v5275_v26, %v5274_v10  ;;  %v5095_v49 = vsel %vm2630_vm3, %v5092_v20, %v5094_v6  ;;  %vm5377_vm7 = vcmp.eq.s32.totalorder %v11066_v3, %v11076_v54  ;;  %v3886_v28 = vadd.f32 %v3602_v42, %v10826_v48  ;;  %v3604_v56 = vpop.f32.mrf.mxu1  ;;  %v13387_v20 = vld [vmem:[#allocation113_spill] sm:$0xff] }
 0x425   :  { %v5276_v62 = vmax.f32 %v11060_v47, %v5095_v49  ;;  %v11098_v23 = vmax.f32 %v4836_v5, %v4837_v51  ;;  %v4572_v2 = vadd.f32 %v13386_v39, %v3885_v46  ;;  %v4838_v16 = vmax.f32 %v4708_v4, 0.0  ;;  %v13388_v47 = vld [vmem:[#allocation318_spill] sm:$0xff]  ;;  %vm11113_vm8 = vmpackc.low %vm5377_vm7, %vm5373_vm6  ;;  %v13396_v39 = vld [vmem:[#allocation24_spill] sm:$0xff] }
 0x426   :  { %v4839_v7 = vmax.f32 %v4709_v19, 0.0  ;;  %v3887_v10 = vadd.f32 %v3604_v56, %v10832_v32  ;;  %v11105_v30 = vadd.f32 %v13387_v20, %v11039_v22  ;;  %v4573_v45 = vadd.f32 %v13388_v47, %v3886_v28  ;;  %v3606_v24 = vpop.f32.mrf.mxu1  ;;  %v13391_v32 = vld [vmem:[#allocation319_spill] sm:$0xff]  ;;  %v13394_v51 = vld [vmem:[#allocation82_spill] sm:$0xff]  ;;  %v13398_v28 = vld [vmem:[#allocation117_spill] sm:$0xff] }
 0x427   :  { %v5096_v57 = vrot.slane %v11098_v23, 2  ;;  %v4710_v37 = vadd.f32 %v10722_v53, %v4572_v2  ;;  %v3888_v22 = vadd.f32 %v3606_v24, %v13392_v44  ;;  %v11120_v5 = vadd.f32 %v13393_v8, %v2411_v61  ;;  %v13399_v61 = vld [vmem:[#allocation321_spill] sm:$0xff] }
 0x428   :  { %v4955_v26 = vmax.f32 %v4838_v16, %v4839_v7  ;;  %v4574_v4 = vadd.f32 %v13391_v32, %v3887_v10  ;;  %v2417_v46 = vadd.f32 %v13395_v17, %v13394_v51  ;;  %v4711_v49 = vadd.f32 %v10745_v36, %v4573_v45  ;;  %v3610_v19 = vpop.f32.mrf.mxu1  ;;  %v13401_v45 = vld [vmem:[#allocation327_spill] sm:$0xff]  ;;  %v13402_v8 = vld [vmem:[#allocation29_spill] sm:$0xff]  ;;  %v13403_v17 = vld [vmem:[#allocation86_spill] sm:$0xff] }
 0x429   :  { %v5097_v42 = vsel %vm2630_vm3, %v5094_v6, %v5096_v57  ;;  %v13397_v2 = vrot.slane %v13396_v39, 3  ;;  %v11129_v56 = vadd.f32 %v13398_v28, %v2413_v40  ;;  %v4575_v20 = vadd.f32 %v13399_v61, %v3888_v22  ;;  %v13400_v6 = vld [vmem:[#allocation84_spill] sm:$0xff]  ;;  %v13405_v28 = vld [vmem:[#allocation322_spill] sm:$0xff] }
 0x42a   :  { %v5277_v16 = vmax.f32 %v4953_v55, %v5097_v42  ;;  %v5098_v7 = vrot.slane %v4955_v26, 2  ;;  %v4712_v10 = vadd.f32 %v10722_v53, %v4574_v4  ;;  %v12699_v47 = vmov 1.0|1.0   ;;  %v3612_v40 = vpop.f32.mrf.mxu1  ;;  %v13404_v55 = vld [vmem:[#allocation329_spill] sm:$0xff] }
 0x42b   :  { %3849 = vmatmul.mubr.bf16.gmra.mxu1 %v13397_v2  ;;  %v2419_v24 = vadd.f32 %v13401_v45, %v13400_v6  ;;  %v4840_v32 = vmax.f32 %v4710_v37, 0.0  ;;  %v4841_v44 = vmax.f32 %v4711_v49, 0.0  ;;  %v3889_v51 = vadd.f32 %v3610_v19, %v13402_v8  ;;  %v13406_v8 = vld [vmem:[#allocation119_spill] sm:$0xff] }
 0x42c   :  { %7175 = vmatprep.mubr.msk.bf16.mxu1 %vm11113_vm8, %v12699_v47  ;;  %v2421_v42 = vadd.f32 %v13404_v55, %v13403_v17  ;;  %v11141_v39 = vpack.c.bf16 %v5277_v16, %v5276_v62  ;;  %v5099_v4 = vsel %vm2630_vm3, %v5096_v57, %v5098_v7  ;;  %v4713_v22 = vadd.f32 %v10745_v36, %v4575_v20  ;;  %v3614_v49 = vpop.f32.mrf.mxu1  ;;  %v13407_v20 = vld [vmem:[#allocation324_spill] sm:$0xff]  ;;  %v13411_v55 = vld [vmem:[#allocation326_spill] sm:$0xff] }
 0x42d   :  { %v5278_v48 = vmax.f32 %v11098_v23, %v5099_v4  ;;  %v11146_v2 = vmax.f32 %v4840_v32, %v4841_v44  ;;  %v4576_v61 = vadd.f32 %v13405_v28, %v3889_v51  ;;  %v3890_v37 = vadd.f32 %v3612_v40, %v10867_v63  ;;  %v13408_v44 = vld [vmem:[#allocation121_spill] sm:$0xff]  ;;  %v13409_v51 = vld [vmem:[#allocation88_spill] sm:$0xff]  ;;  %v13410_v63 = vld [vmem:[#allocation331_spill] sm:$0xff] }
 0x42e   :  { %v4842_v19 = vmax.f32 %v4712_v10, 0.0  ;;  %v4843_v6 = vmax.f32 %v4713_v22, 0.0  ;;  %v3891_v45 = vadd.f32 %v3614_v49, %v10875_v43  ;;  %v11152_v62 = vadd.f32 %v13406_v8, %v2417_v46  ;;  %v3616_v32 = vpop.f32.mrf.mxu1  ;;  %v13412_v46 = vld [vmem:[#allocation90_spill] sm:$0xff]  ;;  %v13413_v22 = vld [vmem:[#allocation333_spill] sm:$0xff]  ;;  %v13414_v8 = vld [vmem:[#allocation123_spill] sm:$0xff] }
 0x42f   :  { %v5100_v57 = vrot.slane %v11146_v2, 2  ;;  %v4714_v16 = vadd.f32 %v10722_v53, %v4576_v61  ;;  %v4577_v23 = vadd.f32 %v13407_v20, %v3890_v37  ;;  %v11158_v17 = vadd.f32 %v13408_v44, %v2419_v24 }
 0x430   :  { %v2423_v40 = vadd.f32 %v13410_v63, %v13409_v51  ;;  %v4957_v10 = vmax.f32 %v4842_v19, %v4843_v6  ;;  %v4578_v4 = vadd.f32 %v13411_v55, %v3891_v45  ;;  %v3892_v43 = vadd.f32 %v3616_v32, %v10887_v1  ;;  %v3620_v37 = vpop.f32.mrf.mxu1  ;;  %v13415_v19 = vld [vmem:[#allocation328_spill] sm:$0xff]  ;;  %v13417_v63 = vld [vmem:[#allocation335_spill] sm:$0xff] }
 0x431   :  { %v2427_v28 = vadd.f32 %v13413_v22, %v13412_v46  ;;  %v5101_v49 = vsel %vm2630_vm3, %v5098_v7, %v5100_v57  ;;  %v4715_v61 = vadd.f32 %v10745_v36, %v4577_v23  ;;  %v11169_v20 = vadd.f32 %v13414_v8, %v2421_v42  ;;  %v13416_v45 = vld [vmem:[#allocation92_spill] sm:$0xff]  ;;  %v13418_v22 = vld [vmem:[#allocation94_spill] sm:$0xff]  ;;  %v13419_v23 = vld [vmem:[#allocation337_spill] sm:$0xff] }
 0x432   :  { %v5279_v24 = vmax.f32 %v4955_v26, %v5101_v49  ;;  %v5102_v44 = vrot.slane %v4957_v10, 2  ;;  %v4716_v51 = vadd.f32 %v10722_v53, %v4578_v4  ;;  %v4579_v6 = vadd.f32 %v13415_v19, %v3892_v43  ;;  %v3622_v7 = vpop.f32.mrf.mxu1  ;;  %v13421_v49 = vld [vmem:[#allocation330_spill] sm:$0xff] }
 0x433   :  { %v2429_v1 = vadd.f32 %v13417_v63, %v13416_v45  ;;  %v4844_v32 = vmax.f32 %v4714_v16, 0.0  ;;  %v4845_v55 = vmax.f32 %v4715_v61, 0.0  ;;  %v3893_v46 = vadd.f32 %v3620_v37, %v10893_v11  ;;  %v13422_v45 = vld [vmem:[#allocation125_spill] sm:$0xff] }
 0x434   :  { %v2431_v47 = vadd.f32 %v13419_v23, %v13418_v22  ;;  %v11178_v34 = vpack.c.bf16 %v5279_v24, %v5278_v48  ;;  %v5103_v26 = vsel %vm2630_vm3, %v5100_v57, %v5102_v44  ;;  %v4717_v42 = vadd.f32 %v10745_v36, %v4579_v6  ;;  %v3624_v61 = vpop.f32.mrf.mxu1  ;;  %v13423_v6 = vld [vmem:[#allocation332_spill] sm:$0xff]  ;;  %v13428_v23 = vld [vmem:[#allocation339_spill] sm:$0xff] }
 0x435   :  { %v5280_v4 = vmax.f32 %v11146_v2, %v5103_v26  ;;  %v11183_v43 = vmax.f32 %v4844_v32, %v4845_v55  ;;  %v4580_v8 = vadd.f32 %v13421_v49, %v3893_v46  ;;  %v3894_v16 = vadd.f32 %v3622_v7, %v10909_v52  ;;  %v13424_v32 = vld [vmem:[#allocation127_spill] sm:$0xff]  ;;  %v13425_v46 = vld [vmem:[#allocation129_spill] sm:$0xff]  ;;  %v13426_v7 = vld [vmem:[#allocation334_spill] sm:$0xff] }
 0x436   :  { %13420 = vst [vmem:[#allocation37_spill] sm:$0xff] %v11178_v34  ;;  %v4846_v11 = vmax.f32 %v4716_v51, 0.0  ;;  %v4847_v37 = vmax.f32 %v4717_v42, 0.0  ;;  %v3895_v19 = vadd.f32 %v3624_v61, %v10938_v50  ;;  %v11189_v48 = vadd.f32 %v13422_v45, %v2423_v40  ;;  %v3626_v63 = vpop.f32.mrf.mxu1  ;;  %v13427_v40 = vld [vmem:[#allocation96_spill] sm:$0xff] }
 0x437   :  { %v5104_v57 = vrot.slane %v11183_v43, 2  ;;  %v4718_v24 = vadd.f32 %v10722_v53, %v4580_v8  ;;  %v4581_v2 = vadd.f32 %v13423_v6, %v3894_v16  ;;  %v11195_v55 = vadd.f32 %v13424_v32, %v2427_v28  ;;  %v13429_v16 = vld [vmem:[#allocation131_spill] sm:$0xff]  ;;  %v13432_v6 = vld [vmem:[#allocation341_spill] sm:$0xff] }
 0x438   :  { %v11198_v52 = vadd.f32 %v13425_v46, %v2429_v1  ;;  %v4959_v51 = vmax.f32 %v4846_v11, %v4847_v37  ;;  %v4582_v22 = vadd.f32 %v13426_v7, %v3895_v19  ;;  %v3896_v50 = vadd.f32 %v3626_v63, %v10944_v0  ;;  %v3630_v8 = vpop.f32.mrf.mxu1  ;;  %v13430_v11 = vld [vmem:[#allocation336_spill] sm:$0xff]  ;;  %v13431_v19 = vld [vmem:[#allocation98_spill] sm:$0xff] }
 0x439   :  { %v2433_v26 = vadd.f32 %v13428_v23, %v13427_v40  ;;  %v5105_v42 = vsel %vm2630_vm3, %v5102_v44, %v5104_v57  ;;  %v4719_v49 = vadd.f32 %v10745_v36, %v4581_v2  ;;  %v11207_v61 = vadd.f32 %v13429_v16, %v2431_v47  ;;  %v13433_v7 = vld [vmem:[#allocation100_spill] sm:$0xff]  ;;  %v13434_v2 = vld [vmem:[#allocation343_spill] sm:$0xff] }
 0x43a   :  { %v5281_v28 = vmax.f32 %v4957_v10, %v5105_v42  ;;  %v5106_v45 = vrot.slane %v4959_v51, 2  ;;  %v4720_v1 = vadd.f32 %v10722_v53, %v4582_v22  ;;  %v4583_v37 = vadd.f32 %v13430_v11, %v3896_v50  ;;  %v3632_v44 = vpop.f32.mrf.mxu1  ;;  %v13435_v42 = vld [vmem:[#allocation338_spill] sm:$0xff] }
 0x43b   :  { %v2437_v0 = vadd.f32 %v13432_v6, %v13431_v19  ;;  %v4848_v63 = vmax.f32 %v4718_v24, 0.0  ;;  %v4849_v32 = vmax.f32 %v4719_v49, 0.0  ;;  %v3897_v46 = vadd.f32 %v3630_v8, %v10953_v14  ;;  %v13436_v19 = vld [vmem:[#allocation133_spill] sm:$0xff] }
 0x43c   :  { %v2439_v40 = vadd.f32 %v13434_v2, %v13433_v7  ;;  %v11216_v23 = vpack.c.bf16 %v5281_v28, %v5280_v4  ;;  %v5107_v47 = vsel %vm2630_vm3, %v5104_v57, %v5106_v45  ;;  %v4721_v10 = vadd.f32 %v10745_v36, %v4583_v37  ;;  %v3634_v49 = vpop.f32.mrf.mxu1  ;;  %v13437_v37 = vld [vmem:[#allocation340_spill] sm:$0xff]  ;;  %v13441_v7 = vld [vmem:[#allocation342_spill] sm:$0xff] }
 0x43d   :  { %v5282_v22 = vmax.f32 %v11183_v43, %v5107_v47  ;;  %v11221_v50 = vmax.f32 %v4848_v63, %v4849_v32  ;;  %v4584_v16 = vadd.f32 %v13435_v42, %v3897_v46  ;;  %v3898_v24 = vadd.f32 %v3632_v44, %v10961_v25  ;;  %v13438_v63 = vld [vmem:[#allocation135_spill] sm:$0xff]  ;;  %v13439_v46 = vld [vmem:[#allocation102_spill] sm:$0xff]  ;;  %v13440_v25 = vld [vmem:[#allocation345_spill] sm:$0xff] }
 0x43e   :  { %v4850_v14 = vmax.f32 %v4720_v1, 0.0  ;;  %v4851_v8 = vmax.f32 %v4721_v10, 0.0  ;;  %v3899_v11 = vadd.f32 %v3634_v49, %v10984_v18  ;;  %v11227_v4 = vadd.f32 %v13436_v19, %v2433_v26  ;;  %v3636_v6 = vpop.f32.mrf.mxu1  ;;  %v13442_v26 = vld [vmem:[#allocation104_spill] sm:$0xff]  ;;  %v13443_v47 = vld [vmem:[#allocation347_spill] sm:$0xff]  ;;  %v13444_v49 = vld [vmem:[#allocation137_spill] sm:$0xff] }
 0x43f   :  { %v5108_v57 = vrot.slane %v11221_v50, 2  ;;  %v4722_v28 = vadd.f32 %v10722_v53, %v4584_v16  ;;  %v4585_v43 = vadd.f32 %v13437_v37, %v3898_v24  ;;  %v11233_v32 = vadd.f32 %v13438_v63, %v2437_v0 }
 0x440   :  { %v2441_v44 = vadd.f32 %v13440_v25, %v13439_v46  ;;  %v4961_v1 = vmax.f32 %v4850_v14, %v4851_v8  ;;  %v4586_v2 = vadd.f32 %v13441_v7, %v3899_v11  ;;  %v3900_v18 = vadd.f32 %v3636_v6, %v10994_v12  ;;  %v3640_v24 = vpop.f32.mrf.mxu1  ;;  %v13445_v14 = vld [vmem:[#allocation344_spill] sm:$0xff]  ;;  %v13446_v11 = vld [vmem:[#allocation106_spill] sm:$0xff]  ;;  %v13447_v46 = vld [vmem:[#allocation349_spill] sm:$0xff] }
 0x441   :  { %v2443_v10 = vadd.f32 %v13443_v47, %v13442_v26  ;;  %v5109_v42 = vsel %vm2630_vm3, %v5106_v45, %v5108_v57  ;;  %v4723_v16 = vadd.f32 %v10745_v36, %v4585_v43  ;;  %v11244_v19 = vadd.f32 %v13444_v49, %v2439_v40  ;;  %v13448_v26 = vld [vmem:[#allocation108_spill] sm:$0xff]  ;;  %v13449_v43 = vld [vmem:[#allocation351_spill] sm:$0xff] }
 0x442   :  { %v5283_v0 = vmax.f32 %v4959_v51, %v5109_v42  ;;  %v5110_v37 = vrot.slane %v4961_v1, 2  ;;  %v4724_v63 = vadd.f32 %v10722_v53, %v4586_v2  ;;  %v4587_v8 = vadd.f32 %v13445_v14, %v3900_v18  ;;  %v3642_v45 = vpop.f32.mrf.mxu1  ;;  %v13451_v42 = vld [vmem:[#allocation346_spill] sm:$0xff] }
 0x443   :  { %v2447_v12 = vadd.f32 %v13447_v46, %v13446_v11  ;;  %v4852_v6 = vmax.f32 %v4722_v28, 0.0  ;;  %v4853_v25 = vmax.f32 %v4723_v16, 0.0  ;;  %v3901_v7 = vadd.f32 %v3640_v24, %v11002_v58  ;;  %v13452_v11 = vld [vmem:[#allocation139_spill] sm:$0xff] }
 0x444   :  { %v2449_v47 = vadd.f32 %v13449_v43, %v13448_v26  ;;  %v11253_v29 = vpack.c.bf16 %v5283_v0, %v5282_v22  ;;  %v5111_v51 = vsel %vm2630_vm3, %v5108_v57, %v5110_v37  ;;  %v4725_v40 = vadd.f32 %v10745_v36, %v4587_v8  ;;  %v3644_v16 = vpop.f32.mrf.mxu1  ;;  %v13453_v8 = vld [vmem:[#allocation348_spill] sm:$0xff]  ;;  %v13456_v26 = vld [vmem:[#allocation143_spill] sm:$0xff]  ;;  %v13458_v43 = vld [vmem:[#allocation353_spill] sm:$0xff] }
 0x445   :  { %v5284_v2 = vmax.f32 %v11221_v50, %v5111_v51  ;;  %v11258_v18 = vmax.f32 %v4852_v6, %v4853_v25  ;;  %v4588_v49 = vadd.f32 %v13451_v42, %v3901_v7  ;;  %v3902_v28 = vadd.f32 %v3642_v45, %v11010_v9  ;;  %v13454_v6 = vld [vmem:[#allocation141_spill] sm:$0xff]  ;;  %v13455_v9 = vld [vmem:[#allocation350_spill] sm:$0xff] }
 0x446   :  { %13450 = vst [vmem:[#allocation39_spill] sm:$0xff] %v11253_v29  ;;  %v4854_v58 = vmax.f32 %v4724_v63, 0.0  ;;  %v4855_v24 = vmax.f32 %v4725_v40, 0.0  ;;  %v3903_v14 = vadd.f32 %v3644_v16, %v11025_v21  ;;  %v11264_v22 = vadd.f32 %v13452_v11, %v2441_v44  ;;  %v3646_v46 = vpop.f32.mrf.mxu1  ;;  %v13457_v44 = vld [vmem:[#allocation110_spill] sm:$0xff]  ;;  %v13461_v11 = vld [vmem:[#allocation112_spill] sm:$0xff] }
 0x447   :  { %v5112_v57 = vrot.slane %v11258_v18, 2  ;;  %v4726_v0 = vadd.f32 %v10722_v53, %v4588_v49  ;;  %v4589_v50 = vadd.f32 %v13453_v8, %v3902_v28  ;;  %v11270_v25 = vadd.f32 %v13454_v6, %v2443_v10  ;;  %v13459_v28 = vld [vmem:[#allocation145_spill] sm:$0xff] }
 0x448   :  { %v4963_v7 = vmax.f32 %v4854_v58, %v4855_v24  ;;  %v4590_v45 = vadd.f32 %v13455_v9, %v3903_v14  ;;  %v3904_v63 = vadd.f32 %v3646_v46, %v11035_v13  ;;  %v11275_v21 = vadd.f32 %v13456_v26, %v2447_v12  ;;  %v3650_v49 = vpop.f32.mrf.mxu1  ;;  %v13460_v14 = vld [vmem:[#allocation352_spill] sm:$0xff]  ;;  %v13462_v12 = vld [vmem:[#allocation355_spill] sm:$0xff]  ;;  %v13463_v26 = vld [vmem:[#allocation114_spill] sm:$0xff] }
 0x449   :  { %v2451_v51 = vadd.f32 %v13458_v43, %v13457_v44  ;;  %v5113_v40 = vsel %vm2630_vm3, %v5110_v37, %v5112_v57  ;;  %v4727_v42 = vadd.f32 %v10745_v36, %v4589_v50  ;;  %v11282_v16 = vadd.f32 %v13459_v28, %v2449_v47  ;;  %v13464_v50 = vld [vmem:[#allocation357_spill] sm:$0xff] }
 0x44a   :  { %v5285_v10 = vmax.f32 %v4961_v1, %v5113_v40  ;;  %v5114_v58 = vrot.slane %v4963_v7, 2  ;;  %v4728_v24 = vadd.f32 %v10722_v53, %v4590_v45  ;;  %v4591_v13 = vadd.f32 %v13460_v14, %v3904_v63  ;;  %v3652_v37 = vpop.f32.mrf.mxu1  ;;  %v13466_v40 = vld [vmem:[#allocation354_spill] sm:$0xff] }
 0x44b   :  { %v2453_v8 = vadd.f32 %v13462_v12, %v13461_v11  ;;  %v4856_v46 = vmax.f32 %v4726_v0, 0.0  ;;  %v4857_v6 = vmax.f32 %v4727_v42, 0.0  ;;  %v3905_v9 = vadd.f32 %v3650_v49, %v11052_v27  ;;  %v13467_v11 = vld [vmem:[#allocation147_spill] sm:$0xff] }
 0x44c   :  { %v2457_v44 = vadd.f32 %v13464_v50, %v13463_v26  ;;  %v11291_v43 = vpack.c.bf16 %v5285_v10, %v5284_v2  ;;  %v5115_v1 = vsel %vm2630_vm3, %v5112_v57, %v5114_v58  ;;  %v4729_v47 = vadd.f32 %v10745_v36, %v4591_v13  ;;  %v3654_v42 = vpop.f32.mrf.mxu1  ;;  %v13468_v13 = vld [vmem:[#allocation356_spill] sm:$0xff]  ;;  %v13472_v26 = vld [vmem:[#allocation358_spill] sm:$0xff] }
 0x44d   :  { %v5286_v45 = vmax.f32 %v11258_v18, %v5115_v1  ;;  %v11296_v63 = vmax.f32 %v4856_v46, %v4857_v6  ;;  %v4592_v28 = vadd.f32 %v13466_v40, %v3905_v9  ;;  %v3906_v0 = vadd.f32 %v3652_v37, %v11105_v30  ;;  %v13469_v46 = vld [vmem:[#allocation149_spill] sm:$0xff]  ;;  %v13470_v9 = vld [vmem:[#allocation116_spill] sm:$0xff]  ;;  %v13471_v30 = vld [vmem:[#allocation359_spill] sm:$0xff] }
 0x44e   :  { %13465 = vst [vmem:[#allocation15_spill] sm:$0xff] %v11291_v43  ;;  %v4858_v27 = vmax.f32 %v4728_v24, 0.0  ;;  %v4859_v49 = vmax.f32 %v4729_v47, 0.0  ;;  %v3907_v14 = vadd.f32 %v3654_v42, %v11120_v5  ;;  %v11302_v2 = vadd.f32 %v13467_v11, %v2451_v51  ;;  %v3656_v12 = vpop.f32.mrf.mxu1  ;;  %v13473_v51 = vld [vmem:[#allocation118_spill] sm:$0xff]  ;;  %v13474_v1 = vld [vmem:[#allocation361_spill] sm:$0xff]  ;;  %v13475_v42 = vld [vmem:[#allocation151_spill] sm:$0xff] }
 0x44f   :  { %v5116_v57 = vrot.slane %v11296_v63, 2  ;;  %v4730_v10 = vadd.f32 %v10722_v53, %v4592_v28  ;;  %v4593_v18 = vadd.f32 %v13468_v13, %v3906_v0  ;;  %v11308_v6 = vadd.f32 %v13469_v46, %v2453_v8 }
 0x450   :  { %v2459_v37 = vadd.f32 %v13471_v30, %v13470_v9  ;;  %v4965_v24 = vmax.f32 %v4858_v27, %v4859_v49  ;;  %v4594_v50 = vadd.f32 %v13472_v26, %v3907_v14  ;;  %v3908_v5 = vadd.f32 %v3656_v12, %v11129_v56  ;;  %v3660_v0 = vpop.f32.mrf.mxu1  ;;  %v13476_v27 = vld [vmem:[#allocation360_spill] sm:$0xff]  ;;  %v13478_v9 = vld [vmem:[#allocation363_spill] sm:$0xff] }
 0x451   :  { %v2461_v47 = vadd.f32 %v13474_v1, %v13473_v51  ;;  %v5117_v40 = vsel %vm2630_vm3, %v5114_v58, %v5116_v57  ;;  %v4731_v28 = vadd.f32 %v10745_v36, %v4593_v18  ;;  %v11319_v11 = vadd.f32 %v13475_v42, %v2457_v44  ;;  %v13477_v14 = vld [vmem:[#allocation120_spill] sm:$0xff]  ;;  %v13479_v51 = vld [vmem:[#allocation122_spill] sm:$0xff]  ;;  %v13480_v18 = vld [vmem:[#allocation365_spill] sm:$0xff] }
 0x452   :  { %v5287_v8 = vmax.f32 %v4963_v7, %v5117_v40  ;;  %v5118_v13 = vrot.slane %v4965_v24, 2  ;;  %v4732_v46 = vadd.f32 %v10722_v53, %v4594_v50  ;;  %v4595_v49 = vadd.f32 %v13476_v27, %v3908_v5  ;;  %v3662_v58 = vpop.f32.mrf.mxu1  ;;  %v13482_v40 = vld [vmem:[#allocation362_spill] sm:$0xff] }
 0x453   :  { %v2463_v56 = vadd.f32 %v13478_v9, %v13477_v14  ;;  %v4860_v12 = vmax.f32 %v4730_v10, 0.0  ;;  %v4861_v30 = vmax.f32 %v4731_v28, 0.0  ;;  %v3909_v26 = vadd.f32 %v3660_v0, %v11152_v62  ;;  %v13483_v14 = vld [vmem:[#allocation153_spill] sm:$0xff] }
 0x454   :  { %v2467_v1 = vadd.f32 %v13480_v18, %v13479_v51  ;;  %v11328_v33 = vpack.c.bf16 %v5287_v8, %v5286_v45  ;;  %v5119_v7 = vsel %vm2630_vm3, %v5116_v57, %v5118_v13  ;;  %v4733_v44 = vadd.f32 %v10745_v36, %v4595_v49  ;;  %v3664_v28 = vpop.f32.mrf.mxu1  ;;  %v13484_v49 = vld [vmem:[#allocation364_spill] sm:$0xff]  ;;  %v13487_v51 = vld [vmem:[#allocation157_spill] sm:$0xff]  ;;  %v13489_v18 = vld [vmem:[#allocation367_spill] sm:$0xff] }
 0x455   :  { %v5288_v50 = vmax.f32 %v11296_v63, %v5119_v7  ;;  %v11333_v5 = vmax.f32 %v4860_v12, %v4861_v30  ;;  %v4596_v42 = vadd.f32 %v13482_v40, %v3909_v26  ;;  %v3910_v10 = vadd.f32 %v3662_v58, %v11158_v17  ;;  %v13485_v12 = vld [vmem:[#allocation155_spill] sm:$0xff]  ;;  %v13486_v17 = vld [vmem:[#allocation366_spill] sm:$0xff] }
 0x456   :  { %13481 = vst [vmem:[#allocation263_spill] sm:$0xff] %v11328_v33  ;;  %v4862_v62 = vmax.f32 %v4732_v46, 0.0  ;;  %v4863_v0 = vmax.f32 %v4733_v44, 0.0  ;;  %v3911_v27 = vadd.f32 %v3664_v28, %v11169_v20  ;;  %v11339_v45 = vadd.f32 %v13483_v14, %v2459_v37  ;;  %v3666_v9 = vpop.f32.mrf.mxu1  ;;  %v13488_v37 = vld [vmem:[#allocation124_spill] sm:$0xff]  ;;  %v13492_v14 = vld [vmem:[#allocation126_spill] sm:$0xff] }
 0x457   :  { %v5120_v57 = vrot.slane %v11333_v5, 2  ;;  %v4734_v8 = vadd.f32 %v10722_v53, %v4596_v42  ;;  %v4597_v63 = vadd.f32 %v13484_v49, %v3910_v10  ;;  %v11345_v30 = vadd.f32 %v13485_v12, %v2461_v47  ;;  %v13490_v10 = vld [vmem:[#allocation159_spill] sm:$0xff] }
 0x458   :  { %v4967_v26 = vmax.f32 %v4862_v62, %v4863_v0  ;;  %v4598_v58 = vadd.f32 %v13486_v17, %v3911_v27  ;;  %v3912_v46 = vadd.f32 %v3666_v9, %v11189_v48  ;;  %v11350_v20 = vadd.f32 %v13487_v51, %v2463_v56  ;;  %v3670_v42 = vpop.f32.mrf.mxu1  ;;  %v13491_v27 = vld [vmem:[#allocation368_spill] sm:$0xff]  ;;  %v13493_v56 = vld [vmem:[#allocation369_spill] sm:$0xff] }
 0x459   :  { %v2469_v7 = vadd.f32 %v13489_v18, %v13488_v37  ;;  %v5121_v44 = vsel %vm2630_vm3, %v5118_v13, %v5120_v57  ;;  %v4735_v40 = vadd.f32 %v10745_v36, %v4597_v63  ;;  %v11357_v28 = vadd.f32 %v13490_v10, %v2467_v1  ;;  %v13494_v51 = vld [vmem:[#allocation128_spill] sm:$0xff]  ;;  %v13495_v63 = vld [vmem:[#allocation371_spill] sm:$0xff] }
 0x45a   :  { %v5289_v47 = vmax.f32 %v4965_v24, %v5121_v44  ;;  %v5122_v62 = vrot.slane %v4967_v26, 2  ;;  %v4736_v0 = vadd.f32 %v10722_v53, %v4598_v58  ;;  %v4599_v48 = vadd.f32 %v13491_v27, %v3912_v46  ;;  %v3672_v13 = vpop.f32.mrf.mxu1  ;;  %v13496_v44 = vld [vmem:[#allocation370_spill] sm:$0xff] }
 0x45b   :  { %v2471_v49 = vadd.f32 %v13493_v56, %v13492_v14  ;;  %v4864_v9 = vmax.f32 %v4734_v8, 0.0  ;;  %v4865_v12 = vmax.f32 %v4735_v40, 0.0  ;;  %v3913_v17 = vadd.f32 %v3670_v42, %v11195_v55  ;;  %v13497_v14 = vld [vmem:[#allocation161_spill] sm:$0xff] }
 0x45c   :  { %v2473_v37 = vadd.f32 %v13495_v63, %v13494_v51  ;;  %v11366_v18 = vpack.c.bf16 %v5289_v47, %v5288_v50  ;;  %v5123_v24 = vsel %vm2630_vm3, %v5120_v57, %v5122_v62  ;;  %v4737_v1 = vadd.f32 %v10745_v36, %v4599_v48  ;;  %v3674_v40 = vpop.f32.mrf.mxu1  ;;  %v13498_v48 = vld [vmem:[#allocation372_spill] sm:$0xff]  ;;  %v13502_v51 = vld [vmem:[#allocation374_spill] sm:$0xff] }
 0x45d   :  { %v5290_v58 = vmax.f32 %v11333_v5, %v5123_v24  ;;  %v11371_v46 = vmax.f32 %v4864_v9, %v4865_v12  ;;  %v4600_v10 = vadd.f32 %v13496_v44, %v3913_v17  ;;  %v3914_v8 = vadd.f32 %v3672_v13, %v11198_v52  ;;  %v13499_v9 = vld [vmem:[#allocation163_spill] sm:$0xff]  ;;  %v13500_v17 = vld [vmem:[#allocation130_spill] sm:$0xff]  ;;  %v13501_v52 = vld [vmem:[#allocation373_spill] sm:$0xff] }
 0x45e   :  { %v4866_v55 = vmax.f32 %v4736_v0, 0.0  ;;  %v4867_v42 = vmax.f32 %v4737_v1, 0.0  ;;  %v3915_v27 = vadd.f32 %v3674_v40, %v11207_v61  ;;  %v11377_v50 = vadd.f32 %v13497_v14, %v2469_v7  ;;  %v3676_v56 = vpop.f32.mrf.mxu1  ;;  %v13503_v7 = vld [vmem:[#allocation132_spill] sm:$0xff]  ;;  %v13504_v24 = vld [vmem:[#allocation375_spill] sm:$0xff]  ;;  %v13505_v40 = vld [vmem:[#allocation165_spill] sm:$0xff] }
 0x45f   :  { %v5124_v57 = vrot.slane %v11371_v46, 2  ;;  %v4738_v47 = vadd.f32 %v10722_v53, %v4600_v10  ;;  %v4601_v5 = vadd.f32 %v13498_v48, %v3914_v8  ;;  %v11383_v12 = vadd.f32 %v13499_v9, %v2471_v49 }
 0x460   :  { %v2477_v13 = vadd.f32 %v13501_v52, %v13500_v17  ;;  %v4969_v0 = vmax.f32 %v4866_v55, %v4867_v42  ;;  %v4602_v63 = vadd.f32 %v13502_v51, %v3915_v27  ;;  %v3916_v61 = vadd.f32 %v3676_v56, %v11227_v4  ;;  %v3680_v8 = vpop.f32.mrf.mxu1  ;;  %v13506_v55 = vld [vmem:[#allocation376_spill] sm:$0xff]  ;;  %v13507_v27 = vld [vmem:[#allocation134_spill] sm:$0xff]  ;;  %v13508_v17 = vld [vmem:[#allocation377_spill] sm:$0xff] }
 0x461   :  { %v2479_v1 = vadd.f32 %v13504_v24, %v13503_v7  ;;  %v5125_v44 = vsel %vm2630_vm3, %v5122_v62, %v5124_v57  ;;  %v4739_v10 = vadd.f32 %v10745_v36, %v4601_v5  ;;  %v11394_v14 = vadd.f32 %v13505_v40, %v2473_v37  ;;  %v13509_v7 = vld [vmem:[#allocation136_spill] sm:$0xff]  ;;  %v13510_v5 = vld [vmem:[#allocation379_spill] sm:$0xff] }
 0x462   :  { %v5291_v49 = vmax.f32 %v4967_v26, %v5125_v44  ;;  %v5126_v48 = vrot.slane %v4969_v0, 2  ;;  %v4740_v9 = vadd.f32 %v10722_v53, %v4602_v63  ;;  %v4603_v42 = vadd.f32 %v13506_v55, %v3916_v61  ;;  %v3682_v62 = vpop.f32.mrf.mxu1  ;;  %v13512_v44 = vld [vmem:[#allocation378_spill] sm:$0xff] }
 0x463   :  { %v2481_v4 = vadd.f32 %v13508_v17, %v13507_v27  ;;  %v4868_v56 = vmax.f32 %v4738_v47, 0.0  ;;  %v4869_v52 = vmax.f32 %v4739_v10, 0.0  ;;  %v3917_v51 = vadd.f32 %v3680_v8, %v11233_v32  ;;  %v13513_v27 = vld [vmem:[#allocation167_spill] sm:$0xff] }
 0x464   :  { %v2483_v24 = vadd.f32 %v13510_v5, %v13509_v7  ;;  %v11403_v41 = vpack.c.bf16 %v5291_v49, %v5290_v58  ;;  %v5127_v26 = vsel %vm2630_vm3, %v5124_v57, %v5126_v48  ;;  %v4741_v37 = vadd.f32 %v10745_v36, %v4603_v42  ;;  %v3684_v10 = vpop.f32.mrf.mxu1  ;;  %v13514_v42 = vld [vmem:[#allocation380_spill] sm:$0xff]  ;;  %v13517_v7 = vld [vmem:[#allocation171_spill] sm:$0xff]  ;;  %v13519_v5 = vld [vmem:[#allocation381_spill] sm:$0xff] }
 0x465   :  { %v5292_v63 = vmax.f32 %v11371_v46, %v5127_v26  ;;  %v11408_v61 = vmax.f32 %v4868_v56, %v4869_v52  ;;  %v4604_v40 = vadd.f32 %v13512_v44, %v3917_v51  ;;  %v3918_v47 = vadd.f32 %v3682_v62, %v11244_v19  ;;  %v13515_v56 = vld [vmem:[#allocation169_spill] sm:$0xff]  ;;  %v13516_v19 = vld [vmem:[#allocation382_spill] sm:$0xff] }
 0x466   :  { %13511 = vst [vmem:[#allocation16_spill] sm:$0xff] %v11403_v41  ;;  %v4870_v32 = vmax.f32 %v4740_v9, 0.0  ;;  %v4871_v8 = vmax.f32 %v4741_v37, 0.0  ;;  %v3919_v55 = vadd.f32 %v3684_v10, %v11264_v22  ;;  %v11414_v58 = vadd.f32 %v13513_v27, %v2477_v13  ;;  %v3686_v17 = vpop.f32.mrf.mxu1  ;;  %v13518_v13 = vld [vmem:[#allocation138_spill] sm:$0xff]  ;;  %v13522_v27 = vld [vmem:[#allocation140_spill] sm:$0xff] }
 0x467   :  { %v5128_v57 = vrot.slane %v11408_v61, 2  ;;  %v4742_v49 = vadd.f32 %v10722_v53, %v4604_v40  ;;  %v4605_v46 = vadd.f32 %v13514_v42, %v3918_v47  ;;  %v11420_v52 = vadd.f32 %v13515_v56, %v2479_v1  ;;  %v13520_v47 = vld [vmem:[#allocation173_spill] sm:$0xff] }
 0x468   :  { %v4971_v51 = vmax.f32 %v4870_v32, %v4871_v8  ;;  %v4606_v62 = vadd.f32 %v13516_v19, %v3919_v55  ;;  %v3920_v9 = vadd.f32 %v3686_v17, %v11270_v25  ;;  %v11425_v22 = vadd.f32 %v13517_v7, %v2481_v4  ;;  %v3690_v40 = vpop.f32.mrf.mxu1  ;;  %v13521_v55 = vld [vmem:[#allocation384_spill] sm:$0xff]  ;;  %v13523_v4 = vld [vmem:[#allocation383_spill] sm:$0xff]  ;;  %v13524_v7 = vld [vmem:[#allocation142_spill] sm:$0xff] }
 0x469   :  { %v2487_v26 = vadd.f32 %v13519_v5, %v13518_v13  ;;  %v5129_v37 = vsel %vm2630_vm3, %v5126_v48, %v5128_v57  ;;  %v4743_v44 = vadd.f32 %v10745_v36, %v4605_v46  ;;  %v11432_v10 = vadd.f32 %v13520_v47, %v2483_v24  ;;  %v13525_v46 = vld [vmem:[#allocation385_spill] sm:$0xff] }
 0x46a   :  { %v5293_v1 = vmax.f32 %v4969_v0, %v5129_v37  ;;  %v5130_v32 = vrot.slane %v4971_v51, 2  ;;  %v4744_v8 = vadd.f32 %v10722_v53, %v4606_v62  ;;  %v4607_v25 = vadd.f32 %v13521_v55, %v3920_v9  ;;  %v3692_v48 = vpop.f32.mrf.mxu1  ;;  %v13526_v37 = vld [vmem:[#allocation386_spill] sm:$0xff]  ;;  %v13528_v55 = vld [vmem:[#allocation388_spill] sm:$0xff] }
 0x46b   :  { %v2489_v42 = vadd.f32 %v13523_v4, %v13522_v27  ;;  %v4872_v17 = vmax.f32 %v4742_v49, 0.0  ;;  %v4873_v56 = vmax.f32 %v4743_v44, 0.0  ;;  %v3921_v19 = vadd.f32 %v3690_v40, %v11275_v21 }
 0x46c   :  { %v2491_v13 = vadd.f32 %v13525_v46, %v13524_v7  ;;  %v5131_v24 = vsel %vm2630_vm3, %v5128_v57, %v5130_v32  ;;  %v4745_v0 = vadd.f32 %v10745_v36, %v4607_v25  ;;  %v3922_v5 = vadd.f32 %v3692_v48, %v11282_v16  ;;  %v3694_v49 = vpop.f32.mrf.mxu1  ;;  %v13529_v57 = vld [vmem:[#allocation144_spill] sm:$0xff]  ;;  %v13530_v7 = vld [vmem:[#allocation387_spill] sm:$0xff] }
 0x46d   :  { %v5294_v62 = vmax.f32 %v11408_v61, %v5131_v24  ;;  %v11445_v9 = vmax.f32 %v4872_v17, %v4873_v56  ;;  %v4608_v47 = vadd.f32 %v13526_v37, %v3921_v19  ;;  %v11448_v44 = vpack.c.bf16 %v5293_v1, %v5292_v63  ;;  %v13531_v56 = vld [vmem:[#allocation175_spill] sm:$0xff]  ;;  %v13532_v1 = vld [vmem:[#allocation390_spill] sm:$0xff] }
 0x46e   :  { %v4874_v21 = vmax.f32 %v4744_v8, 0.0  ;;  %v4875_v40 = vmax.f32 %v4745_v0, 0.0  ;;  %v4609_v27 = vadd.f32 %v13528_v55, %v3922_v5  ;;  %v3923_v4 = vadd.f32 %v3694_v49, %v11302_v2  ;;  %v3696_v17 = vpop.f32.mrf.mxu1  ;;  %v13533_v24 = vld [vmem:[#allocation146_spill] sm:$0xff]  ;;  %v13534_v2 = vld [vmem:[#allocation389_spill] sm:$0xff] }
 0x46f   :  { %13527 = vst [vmem:[#allocation265_spill] sm:$0xff] %v11448_v44  ;;  %v2493_v25 = vadd.f32 %v13530_v7, %v13529_v57  ;;  %v5132_v16 = vrot.slane %v11445_v9, 2  ;;  %v4746_v61 = vadd.f32 %v10722_v53, %v4608_v47  ;;  %v11457_v48 = vadd.f32 %v13531_v56, %v2487_v26  ;;  %v13535_v49 = vld [vmem:[#allocation177_spill] sm:$0xff]  ;;  %v13536_v47 = vld [vmem:[#allocation179_spill] sm:$0xff]  ;;  %v13537_v7 = vld [vmem:[#allocation392_spill] sm:$0xff] }
 0x470   :  { %v4973_v19 = vmax.f32 %v4874_v21, %v4875_v40  ;;  %v4747_v63 = vadd.f32 %v10745_v36, %v4609_v27  ;;  %v4610_v8 = vadd.f32 %v13532_v1, %v3923_v4  ;;  %v3924_v46 = vadd.f32 %v3696_v17, %v11308_v6  ;;  %v3700_v37 = vpop.f32.mrf.mxu1  ;;  %v13538_v1 = vld [vmem:[#allocation181_spill] sm:$0xff] }
 0x471   :  { %v2497_v0 = vadd.f32 %v13534_v2, %v13533_v24  ;;  %v5133_v5 = vsel %vm2630_vm3, %v5130_v32, %v5132_v16  ;;  %v11466_v55 = vadd.f32 %v13535_v49, %v2489_v42  ;;  %v11469_v57 = vadd.f32 %v13536_v47, %v2491_v13  ;;  %v13539_v24 = vld [vmem:[#allocation148_spill] sm:$0xff]  ;;  %v13540_v42 = vld [vmem:[#allocation391_spill] sm:$0xff] }
 0x472   :  { %v5295_v26 = vmax.f32 %v4971_v51, %v5133_v5  ;;  %v5134_v21 = vrot.slane %v4973_v19, 2  ;;  %v4876_v40 = vmax.f32 %v4746_v61, 0.0  ;;  %v4877_v27 = vmax.f32 %v4747_v63, 0.0  ;;  %v3702_v56 = vpop.f32.mrf.mxu1 }
 0x473   :  { %v4748_v4 = vadd.f32 %v10722_v53, %v4610_v8  ;;  %v4611_v6 = vadd.f32 %v13537_v7, %v3924_v46  ;;  %v3925_v17 = vadd.f32 %v3700_v37, %v11319_v11  ;;  %v11475_v32 = vadd.f32 %v13538_v1, %v2493_v25  ;;  %v13541_v8 = vld [vmem:[#allocation394_spill] sm:$0xff]  ;;  %v13543_v37 = vld [vmem:[#allocation393_spill] sm:$0xff] }
 0x474   :  { %v2499_v2 = vadd.f32 %v13540_v42, %v13539_v24  ;;  %v11479_v49 = vpack.c.bf16 %v5295_v26, %v5294_v62  ;;  %v5135_v51 = vsel %vm2630_vm3, %v5132_v16, %v5134_v21  ;;  %v11482_v13 = vmax.f32 %v4876_v40, %v4877_v27  ;;  %v3704_v5 = vpop.f32.mrf.mxu1  ;;  %v13542_v25 = vld [vmem:[#allocation150_spill] sm:$0xff]  ;;  %v13544_v26 = vld [vmem:[#allocation183_spill] sm:$0xff] }
 0x475   :  { %v5296_v61 = vmax.f32 %v11445_v9, %v5135_v51  ;;  %v4749_v63 = vadd.f32 %v10745_v36, %v4611_v6  ;;  %v4612_v46 = vadd.f32 %v13541_v8, %v3925_v17  ;;  %v3926_v11 = vadd.f32 %v3702_v56, %v11339_v45  ;;  %v13545_v6 = vld [vmem:[#allocation396_spill] sm:$0xff]  ;;  %v13546_v56 = vld [vmem:[#allocation398_spill] sm:$0xff]  ;;  %v13547_v51 = vld [vmem:[#allocation185_spill] sm:$0xff] }
 0x476   :  { %v2501_v47 = vadd.f32 %v13543_v37, %v13542_v25  ;;  %v5136_v7 = vrot.slane %v11482_v13, 2  ;;  %v3927_v62 = vadd.f32 %v3704_v5, %v11345_v30  ;;  %v11493_v16 = vadd.f32 %v13544_v26, %v2497_v0  ;;  %v3706_v17 = vpop.f32.mrf.mxu1  ;;  %v13548_v30 = vld [vmem:[#allocation152_spill] sm:$0xff]  ;;  %v13549_v5 = vld [vmem:[#allocation395_spill] sm:$0xff] }
 0x477   :  { %v4878_v40 = vmax.f32 %v4748_v4, 0.0  ;;  %v4879_v27 = vmax.f32 %v4749_v63, 0.0  ;;  %v4750_v9 = vadd.f32 %v10722_v53, %v4612_v46  ;;  %v4613_v1 = vadd.f32 %v13545_v6, %v3926_v11  ;;  %v13550_v37 = vld [vmem:[#allocation400_spill] sm:$0xff] }
 0x478   :  { %v5137_v45 = vsel %vm2630_vm3, %v5134_v21, %v5136_v7  ;;  %v4614_v24 = vadd.f32 %v13546_v56, %v3927_v62  ;;  %v3928_v42 = vadd.f32 %v3706_v17, %v11350_v20  ;;  %v11501_v8 = vadd.f32 %v13547_v51, %v2499_v2  ;;  %v3710_v46 = vpop.f32.mrf.mxu1  ;;  %v13551_v62 = vld [vmem:[#allocation187_spill] sm:$0xff] }
 0x479   :  { %v2503_v0 = vadd.f32 %v13549_v5, %v13548_v30  ;;  %v5297_v25 = vmax.f32 %v4973_v19, %v5137_v45  ;;  %v4975_v4 = vmax.f32 %v4878_v40, %v4879_v27  ;;  %v4751_v63 = vadd.f32 %v10745_v36, %v4613_v1  ;;  %v13552_v19 = vld [vmem:[#allocation154_spill] sm:$0xff]  ;;  %v13553_v40 = vld [vmem:[#allocation397_spill] sm:$0xff]  ;;  %v13555_v30 = vld [vmem:[#allocation156_spill] sm:$0xff] }
 0x47a   :  { %v4752_v11 = vadd.f32 %v10722_v53, %v4614_v24  ;;  %v4615_v26 = vadd.f32 %v13550_v37, %v3928_v42  ;;  %v3929_v21 = vadd.f32 %v3710_v46, %v11357_v28  ;;  %v11510_v6 = vadd.f32 %v13551_v62, %v2501_v47  ;;  %v3712_v51 = vpop.f32.mrf.mxu1  ;;  %v13554_v45 = vld [vmem:[#allocation402_spill] sm:$0xff]  ;;  %v13556_v28 = vld [vmem:[#allocation399_spill] sm:$0xff]  ;;  %v13559_v62 = vld [vmem:[#allocation401_spill] sm:$0xff] }
 0x47b   :  { %v11512_v20 = vpack.c.bf16 %v5297_v25, %v5296_v61  ;;  %v5138_v2 = vrot.slane %v4975_v4, 2  ;;  %v4880_v17 = vmax.f32 %v4750_v9, 0.0  ;;  %v4881_v56 = vmax.f32 %v4751_v63, 0.0 }
 0x47c   :  { %v2507_v27 = vadd.f32 %v13553_v40, %v13552_v19  ;;  %v4753_v1 = vadd.f32 %v10745_v36, %v4615_v26  ;;  %v4616_v24 = vadd.f32 %v13554_v45, %v3929_v21  ;;  %v3930_v42 = vadd.f32 %v3712_v51, %v11377_v50  ;;  %v3714_v9 = vpop.f32.mrf.mxu1  ;;  %v13557_v26 = vld [vmem:[#allocation404_spill] sm:$0xff]  ;;  %v13558_v50 = vld [vmem:[#allocation158_spill] sm:$0xff]  ;;  %v13561_v45 = vld [vmem:[#allocation191_spill] sm:$0xff] }
 0x47d   :  { %v2509_v5 = vadd.f32 %v13556_v28, %v13555_v30  ;;  %v5139_v47 = vsel %vm2630_vm3, %v5136_v7, %v5138_v2  ;;  %v11522_v61 = vmax.f32 %v4880_v17, %v4881_v56  ;;  %v4882_v25 = vmax.f32 %v4752_v11, 0.0  ;;  %7406 = vmatprep.subr.bf16.mxu1 %v11512_v20  ;;  %v13560_v56 = vld [vmem:[#allocation189_spill] sm:$0xff]  ;;  %v13562_v28 = vld [vmem:[#allocation406_spill] sm:$0xff] }
 0x47e   :  { %v5298_v63 = vmax.f32 %v11482_v13, %v5139_v47  ;;  %v4883_v46 = vmax.f32 %v4753_v1, 0.0  ;;  %v4754_v37 = vadd.f32 %v10722_v53, %v4616_v24  ;;  %v4617_v21 = vadd.f32 %v13557_v26, %v3930_v42  ;;  %7407 = vmatpush3.bf16.msra.mxu1 %v11216_v23  ;;  %v3716_v11 = vpop.f32.mrf.mxu1 }
 0x47f   :  { %v2511_v51 = vadd.f32 %v13559_v62, %v13558_v50  ;;  %v5140_v7 = vrot.slane %v11522_v61, 2  ;;  %v3931_v17 = vadd.f32 %v3714_v9, %v11383_v12  ;;  %7408 = vmatprep.subr.bf16.mxu1 %v11479_v49  ;;  %v11535_v19 = vadd.f32 %v13560_v56, %v2503_v0  ;;  %v13563_v9 = vld [vmem:[#allocation193_spill] sm:$0xff] }
 0x480   :  { %v4977_v13 = vmax.f32 %v4882_v25, %v4883_v46  ;;  %v4755_v40 = vadd.f32 %v10745_v36, %v4617_v21  ;;  %v3932_v1 = vadd.f32 %v3716_v11, %v11394_v14  ;;  %v11540_v24 = vadd.f32 %v13561_v45, %v2507_v27  ;;  %v3720_v12 = vpop.f32.mrf.mxu1  ;;  %v13564_v25 = vld [vmem:[#allocation408_spill] sm:$0xff]  ;;  %v13566_v21 = vld [vmem:[#allocation403_spill] sm:$0xff]  ;;  %v13568_v45 = vld [vmem:[#allocation162_spill] sm:$0xff] }
 0x481   :  { %v5141_v42 = vsel %vm2630_vm3, %v5138_v2, %v5140_v7  ;;  %v4884_v30 = vmax.f32 %v4754_v37, 0.0  ;;  %v4618_v47 = vadd.f32 %v13562_v28, %v3931_v17  ;;  %v11545_v26 = vadd.f32 %v13563_v9, %v2509_v5  ;;  %v13565_v14 = vld [vmem:[#allocation160_spill] sm:$0xff]  ;;  %v13567_v17 = vld [vmem:[#allocation195_spill] sm:$0xff] }
 0x482   :  { %v5299_v50 = vmax.f32 %v4975_v4, %v5141_v42  ;;  %v5142_v0 = vrot.slane %v4977_v13, 2  ;;  %v4885_v62 = vmax.f32 %v4755_v40, 0.0  ;;  %v4619_v46 = vadd.f32 %v13564_v25, %v3932_v1  ;;  %7409 = vmatpush3.bf16.msra.mxu1 %v11178_v34  ;;  %v3722_v37 = vpop.f32.mrf.mxu1  ;;  %v13569_v42 = vld [vmem:[#allocation405_spill] sm:$0xff] }
 0x483   :  { %v2513_v27 = vadd.f32 %v13566_v21, %v13565_v14  ;;  %v4756_v11 = vadd.f32 %v10722_v53, %v4618_v47  ;;  %v3933_v2 = vadd.f32 %v3720_v12, %v11414_v58  ;;  %7410 = vmatprep.subr.bf16.mxu1 %v11448_v44  ;;  %v11555_v5 = vadd.f32 %v13567_v17, %v2511_v51  ;;  %v13570_v58 = vld [vmem:[#allocation410_spill] sm:$0xff]  ;;  %v13573_v21 = vld [vmem:[#allocation412_spill] sm:$0xff] }
 0x484   :  { %v11557_v4 = vpack.c.bf16 %v5299_v50, %v5298_v63  ;;  %v5143_v56 = vsel %vm2630_vm3, %v5140_v7, %v5142_v0  ;;  %v11560_v40 = vmax.f32 %v4884_v30, %v4885_v62  ;;  %v4757_v1 = vadd.f32 %v10745_v36, %v4619_v46  ;;  %v3724_v25 = vpop.f32.mrf.mxu1  ;;  %v13571_v30 = vld [vmem:[#allocation164_spill] sm:$0xff]  ;;  %v13572_v62 = vld [vmem:[#allocation407_spill] sm:$0xff] }
 0x485   :  { %v2517_v28 = vadd.f32 %v13569_v42, %v13568_v45  ;;  %v5300_v47 = vmax.f32 %v11522_v61, %v5143_v56  ;;  %v4620_v12 = vadd.f32 %v13570_v58, %v3933_v2  ;;  %v3934_v9 = vadd.f32 %v3722_v37, %v11420_v52  ;;  %v13574_v52 = vld [vmem:[#allocation197_spill] sm:$0xff]  ;;  %v13575_v56 = vld [vmem:[#allocation414_spill] sm:$0xff] }
 0x486   :  { %v5144_v51 = vrot.slane %v11560_v40, 2  ;;  %v4886_v63 = vmax.f32 %v4756_v11, 0.0  ;;  %v4887_v50 = vmax.f32 %v4757_v1, 0.0  ;;  %v3935_v7 = vadd.f32 %v3724_v25, %v11425_v22  ;;  %7411 = vmatpush3.bf16.msra.mxu1 %v11141_v39  ;;  %v3726_v17 = vpop.f32.mrf.mxu1  ;;  %v13576_v45 = vld [vmem:[#allocation166_spill] sm:$0xff]  ;;  %v13577_v42 = vld [vmem:[#allocation409_spill] sm:$0xff] }
 0x487   :  { %v2519_v46 = vadd.f32 %v13572_v62, %v13571_v30  ;;  %v4758_v14 = vadd.f32 %v10722_v53, %v4620_v12  ;;  %v4621_v61 = vadd.f32 %v13573_v21, %v3934_v9  ;;  %7412 = vmatprep.subr.bf16.mxu1 %v11403_v41  ;;  %v11577_v2 = vadd.f32 %v13574_v52, %v2513_v27  ;;  %v13578_v30 = vld [vmem:[#allocation199_spill] sm:$0xff]  ;;  %v13579_v52 = vld [vmem:[#allocation416_spill] sm:$0xff] }
 0x488   :  { %v5145_v11 = vsel %vm2630_vm3, %v5142_v0, %v5144_v51  ;;  %v4979_v37 = vmax.f32 %v4886_v63, %v4887_v50  ;;  %v4622_v22 = vadd.f32 %v13575_v56, %v3935_v7  ;;  %v3936_v1 = vadd.f32 %v3726_v17, %v11432_v10  ;;  %v3730_v9 = vpop.f32.mrf.mxu1  ;;  %v13580_v10 = vld [vmem:[#allocation168_spill] sm:$0xff]  ;;  %v13581_v50 = vld [vmem:[#allocation411_spill] sm:$0xff] }
 0x489   :  { %v2521_v58 = vadd.f32 %v13577_v42, %v13576_v45  ;;  %v5301_v25 = vmax.f32 %v4977_v13, %v5145_v11  ;;  %v4759_v12 = vadd.f32 %v10745_v36, %v4621_v61  ;;  %v11586_v62 = vadd.f32 %v13578_v30, %v2517_v28  ;;  %v13583_v45 = vld [vmem:[#allocation201_spill] sm:$0xff]  ;;  %v13584_v42 = vld [vmem:[#allocation170_spill] sm:$0xff] }
 0x48a   :  { %v5146_v21 = vrot.slane %v4979_v37, 2  ;;  %v4760_v27 = vadd.f32 %v10722_v53, %v4622_v22  ;;  %v4623_v0 = vadd.f32 %v13579_v52, %v3936_v1  ;;  %v3937_v63 = vadd.f32 %v3730_v9, %v11457_v48  ;;  %7413 = vmatpush3.bf16.msra.mxu1 %v11091_v15  ;;  %v3732_v11 = vpop.f32.mrf.mxu1  ;;  %v13582_v22 = vld [vmem:[#allocation418_spill] sm:$0xff]  ;;  %v13585_v9 = vld [vmem:[#allocation413_spill] sm:$0xff] }
 0x48b   :  { %v2523_v7 = vadd.f32 %v13581_v50, %v13580_v10  ;;  %v11594_v17 = vpack.c.bf16 %v5301_v25, %v5300_v47  ;;  %v4888_v13 = vmax.f32 %v4758_v14, 0.0  ;;  %v4889_v61 = vmax.f32 %v4759_v12, 0.0  ;;  %7414 = vmatprep.subr.bf16.mxu1 %v11366_v18 }
 0x48c   :  { %v5147_v28 = vsel %vm2630_vm3, %v5144_v51, %v5146_v21  ;;  %v4761_v56 = vadd.f32 %v10745_v36, %v4623_v0  ;;  %v4624_v1 = vadd.f32 %v13582_v22, %v3937_v63  ;;  %v11601_v48 = vadd.f32 %v13583_v45, %v2519_v46  ;;  %v3734_v12 = vpop.f32.mrf.mxu1  ;;  %v13586_v0 = vld [vmem:[#allocation203_spill] sm:$0xff]  ;;  %v13587_v22 = vld [vmem:[#allocation420_spill] sm:$0xff] }
 0x48d   :  { %v2527_v30 = vadd.f32 %v13585_v9, %v13584_v42  ;;  %v5302_v47 = vmax.f32 %v11560_v40, %v5147_v28  ;;  %v11606_v25 = vmax.f32 %v4888_v13, %v4889_v61  ;;  %v3938_v14 = vadd.f32 %v3732_v11, %v11466_v55  ;;  %v13588_v55 = vld [vmem:[#allocation205_spill] sm:$0xff]  ;;  %v13590_v11 = vld [vmem:[#allocation415_spill] sm:$0xff] }
 0x48e   :  { %v4890_v52 = vmax.f32 %v4760_v27, 0.0  ;;  %v4891_v10 = vmax.f32 %v4761_v56, 0.0  ;;  %v3939_v51 = vadd.f32 %v3734_v12, %v11469_v57  ;;  %7415 = vmatpush3.bf16.msra.mxu1 %v11054_v59  ;;  %v11612_v63 = vadd.f32 %v13586_v0, %v2521_v58  ;;  %v3736_v13 = vpop.f32.mrf.mxu1  ;;  %v13589_v27 = vld [vmem:[#allocation172_spill] sm:$0xff]  ;;  %v13591_v56 = vld [vmem:[#allocation422_spill] sm:$0xff] }
 0x48f   :  { %v5148_v46 = vrot.slane %v11606_v25, 2  ;;  %v4762_v50 = vadd.f32 %v10722_v53, %v4624_v1  ;;  %v4625_v40 = vadd.f32 %v13587_v22, %v3938_v14  ;;  %7416 = vmatprep.subr.bf16.mxu1 %v11328_v33  ;;  %v11619_v61 = vadd.f32 %v13588_v55, %v2523_v7  ;;  %v13592_v14 = vld [vmem:[#allocation207_spill] sm:$0xff] }
 0x490   :  { %v11623_v57 = vadd.f32 %v13590_v11, %v13589_v27  ;;  %v4981_v28 = vmax.f32 %v4890_v52, %v4891_v10  ;;  %v4626_v58 = vadd.f32 %v13591_v56, %v3939_v51  ;;  %v3940_v45 = vadd.f32 %v3736_v13, %v11475_v32  ;;  %v3740_v9 = vpop.f32.mrf.mxu1  ;;  %v13593_v52 = vld [vmem:[#allocation424_spill] sm:$0xff] }
 0x491   :  { %v5149_v42 = vsel %vm2630_vm3, %v5146_v21, %v5148_v46  ;;  %v4763_v1 = vadd.f32 %v10745_v36, %v4625_v40  ;;  %vm5372_vm9 = vcmp.eq.s32.totalorder %v11045_v35, %v11072_v60  ;;  %v11632_v7 = vadd.f32 %v13592_v14, %v2527_v30 }
 0x492   :  { %v5303_v12 = vmax.f32 %v4979_v37, %v5149_v42  ;;  %v5150_v0 = vrot.slane %v4981_v28, 2  ;;  %v4764_v22 = vadd.f32 %v10722_v53, %v4626_v58  ;;  %v4627_v10 = vadd.f32 %v13593_v52, %v3940_v45  ;;  %7417 = vmatpush3.bf16.msra.mxu1 %v11014_v31  ;;  %v3742_v40 = vpop.f32.mrf.mxu1 }
 0x493   :  { %v4892_v32 = vmax.f32 %v4762_v50, 0.0  ;;  %v4893_v51 = vmax.f32 %v4763_v1, 0.0  ;;  %v3941_v21 = vadd.f32 %v3740_v9, %v11493_v16  ;;  %7418 = vmatprep.subr.bf16.mxu1 %v11291_v43  ;;  %v11640_v13 = vadd.s32 4, %v11072_v60  ;;  %v13594_v16 = vld [vmem:[#allocation426_spill] sm:$0xff]  ;;  %v13595_v9 = vld [vmem:[#allocation428_spill] sm:$0xff] }
 0x494   :  { %v11642_v30 = vpack.c.bf16 %v5303_v12, %v5302_v47  ;;  %v5151_v37 = vsel %vm2630_vm3, %v5148_v46, %v5150_v0  ;;  %v4765_v55 = vadd.f32 %v10745_v36, %v4627_v10  ;;  %v11647_v27 = vadd.s32 4, %v11076_v54  ;;  %v3744_v45 = vpop.f32.mrf.mxu1  ;;  %v13597_v10 = vld [vmem:[#allocation174_spill] sm:$0xff] }
 0x495   :  { %v5304_v50 = vmax.f32 %v11606_v25, %v5151_v37  ;;  %v11650_v11 = vmax.f32 %v4892_v32, %v4893_v51  ;;  %v4628_v56 = vadd.f32 %v13594_v16, %v3941_v21  ;;  %v3942_v58 = vadd.f32 %v3742_v40, %v11501_v8  ;;  %v13598_v32 = vld [vmem:[#allocation417_spill] sm:$0xff]  ;;  %v13599_v21 = vld [vmem:[#allocation176_spill] sm:$0xff]  ;;  %v13600_v40 = vld [vmem:[#allocation419_spill] sm:$0xff] }
 0x496   :  { %v4894_v42 = vmax.f32 %v4764_v22, 0.0  ;;  %v4895_v1 = vmax.f32 %v4765_v55, 0.0  ;;  %v3943_v47 = vadd.f32 %v3744_v45, %v11510_v6  ;;  %7419 = vmatpush3.bf16.msra.mxu1 %v10973_v38  ;;  %vm5376_vm10 = vcmp.eq.s32.totalorder %v11045_v35, %v11076_v54  ;;  %v3746_v12 = vpop.f32.mrf.mxu1  ;;  %v13596_v6 = vld [vmem:[#allocation430_spill] sm:$0xff] }
 0x497   :  { %v5152_v46 = vrot.slane %v11650_v11, 2  ;;  %v4766_v25 = vadd.f32 %v10722_v53, %v4628_v56  ;;  %v4629_v14 = vadd.f32 %v13595_v9, %v3942_v58  ;;  %7420 = vmatprep.subr.bf16.mxu1 %v11253_v29  ;;  %vm5502_vm11 = vcmp.eq.s32.totalorder %v11066_v3, %v11640_v13  ;;  %vm11686_vm13 = vmpackc.low %vm5376_vm10, %vm5372_vm9 }
 0x498   :  { %v11664_v8 = vmax.f32 %v4894_v42, %v4895_v1  ;;  %v4630_v22 = vadd.f32 %v13596_v6, %v3943_v47  ;;  %v3944_v52 = vadd.f32 %v3746_v12, %v11535_v19  ;;  %vm5506_vm12 = vcmp.eq.s32.totalorder %v11066_v3, %v11647_v27  ;;  %v3750_v56 = vpop.f32.mrf.mxu1  ;;  %v13601_v19 = vld [vmem:[#allocation432_spill] sm:$0xff]  ;;  %v13602_v47 = vld [vmem:[#allocation13_spill] sm:$0xff] }
 0x499   :  { %v2531_v51 = vadd.f32 %v13598_v32, %v13597_v10  ;;  %v2533_v37 = vadd.f32 %v13600_v40, %v13599_v21  ;;  %v5153_v55 = vsel %vm2630_vm3, %v5150_v0, %v5152_v46  ;;  %v4767_v16 = vadd.f32 %v10745_v36, %v4629_v14  ;;  %vm7190_vm14 = vmpackc.low %vm5506_vm12, %vm5502_vm11  ;;  %v13605_v21 = vld [vmem:[#allocation434_spill] sm:$0xff] }
 0x49a   :  { %v5305_v58 = vmax.f32 %v4981_v28, %v5153_v55  ;;  %v5154_v45 = vrot.slane %v11664_v8, 2  ;;  %v4768_v42 = vadd.f32 %v10722_v53, %v4630_v22  ;;  %v4631_v1 = vadd.f32 %v13601_v19, %v3944_v52  ;;  %7421 = vmatpush3.bf16.msra.mxu1 %v13602_v47  ;;  %v3752_v12 = vpop.f32.mrf.mxu1 }
 0x49b   :  { %v4896_v9 = vmax.f32 %v4766_v25, 0.0  ;;  %v4897_v28 = vmax.f32 %v4767_v16, 0.0  ;;  %v3945_v14 = vadd.f32 %v3750_v56, %v11540_v24  ;;  %7450 = vmatprep.subr.bf16.mxu1 %v11512_v20  ;;  %v11699_v6 = vadd.s32 384, %v11045_v35 }
 0x49c   :  { %v11701_v22 = vpack.c.bf16 %v5305_v58, %v5304_v50  ;;  %v5155_v25 = vsel %vm2630_vm3, %v5152_v46, %v5154_v45  ;;  %v4898_v52 = vmax.f32 %v4768_v42, 0.0  ;;  %v4769_v24 = vadd.f32 %v10745_v36, %v4631_v1  ;;  %v3754_v16 = vpop.f32.mrf.mxu1  ;;  %v13607_v46 = vld [vmem:[#allocation436_spill] sm:$0xff] }
 0x49d   :  { %v5306_v10 = vmax.f32 %v11650_v11, %v5155_v25  ;;  %v11706_v32 = vmax.f32 %v4896_v9, %v4897_v28  ;;  %v4632_v40 = vadd.f32 %v13605_v21, %v3945_v14  ;;  %v3946_v55 = vadd.f32 %v3752_v12, %v11545_v26  ;;  %v13609_v9 = vld [vmem:[#allocation438_spill] sm:$0xff]  ;;  %v13610_v12 = vld [vmem:[#allocation211_spill] sm:$0xff]  ;;  %v13612_v21 = vld [vmem:[#allocation421_spill] sm:$0xff] }
 0x49e   :  { %v13606_v56 = vmov 1.0|1.0   ;;  %v4899_v50 = vmax.f32 %v4769_v24, 0.0  ;;  %v3947_v58 = vadd.f32 %v3754_v16, %v11555_v5  ;;  %vm5375_vm15 = vcmp.eq.s32.totalorder %v11699_v6, %v11072_v60  ;;  %v3756_v19 = vpop.f32.mrf.mxu1  ;;  %v13608_v5 = vld [vmem:[#allocation209_spill] sm:$0xff]  ;;  %v13611_v24 = vld [vmem:[#allocation178_spill] sm:$0xff] }
 0x49f   :  { %7177 = vmatmul.mubr.msk.bf16.vlgmr.msra.gmra.mxu1 %vm11686_vm13, %v13606_v56  ;;  %vm5379_vm0 = vcmp.eq.s32.totalorder %v11699_v6, %v11076_v54  ;;  %v5156_v26 = vrot.slane %v11706_v32, 2  ;;  %v4770_v11 = vadd.f32 %v10722_v53, %v4632_v40  ;;  %v4633_v42 = vadd.f32 %v13607_v46, %v3946_v55  ;;  %v13613_v46 = vld [vmem:[#allocation213_spill] sm:$0xff] }
 0x4a0   :  { %7451 = vmatpush3.bf16.msra.mxu1 %v11216_v23  ;;  %7191 = vmatprep.mubr.msk.bf16.mxu1 %vm7190_vm14, %v13606_v56  ;;  %v11726_v1 = vadd.f32 %v13608_v5, %v11623_v57  ;;  %vm7178_vm1 = vmpackc.low %vm5379_vm0, %vm5375_vm15  ;;  %v11728_v0 = vmax.f32 %v4898_v52, %v4899_v50  ;;  %v4634_v28 = vadd.f32 %v13609_v9, %v3947_v58  ;;  %v3760_v16 = vpop.f32.mrf.mxu1  ;;  %v13614_v58 = vld [vmem:[#allocation440_spill] sm:$0xff]  ;;  %v13616_v9 = vld [vmem:[#allocation423_spill] sm:$0xff]  ;;  %vm8262_vm14 = vmmov 0  }
 0x4a1   :  { %7452 = vmatprep.subr.bf16.mxu1 %v11479_v49  ;;  %v3948_v14 = vadd.f32 %v3756_v19, %v11577_v2  ;;  %v11733_v25 = vadd.f32 %v13610_v12, %v2531_v51  ;;  %7179 = vmatprep.mubr.msk.bf16.mxu0 %vm7178_vm1, %v13606_v56  ;;  %v2537_v40 = vadd.f32 %v13612_v21, %v13611_v24  ;;  %v13615_v5 = vld [vmem:[#allocation180_spill] sm:$0xff] }
 0x4a2   :  { %v5157_v55 = vsel %vm2630_vm3, %v5154_v45, %v5156_v26  ;;  %v4771_v57 = vadd.f32 %v10745_v36, %v4633_v42  ;;  %v11741_v52 = vadd.f32 %v13613_v46, %v2533_v37  ;;  %v5158_v2 = vrot.slane %v11728_v0, 2  ;;  %v3762_v21 = vpop.f32.mrf.mxu1  ;;  %v13617_v37 = vld [vmem:[#allocation182_spill] sm:$0xff] }
 0x4a3   :  { %v5307_v50 = vmax.f32 %v11664_v8, %v5157_v55  ;;  %v4772_v51 = vadd.f32 %v10722_v53, %v4634_v28  ;;  %v4635_v19 = vadd.f32 %v13614_v58, %v3948_v14  ;;  %v2539_v12 = vadd.f32 %v13616_v9, %v13615_v5  ;;  %v13618_v8 = vld [vmem:[#allocation425_spill] sm:$0xff] }
 0x4a4   :  { %7453 = vmatpush3.bf16.msra.mxu1 %v11178_v34  ;;  %v4900_v45 = vmax.f32 %v4770_v11, 0.0  ;;  %v4901_v24 = vmax.f32 %v4771_v57, 0.0  ;;  %v3949_v42 = vadd.f32 %v3760_v16, %v11586_v62  ;;  %v2541_v55 = vadd.f32 %v13618_v8, %v13617_v37  ;;  %v13619_v11 = vld [vmem:[#allocation442_spill] sm:$0xff]  ;;  %v3764_v16 = vpop.f32.mrf.mxu1 }
 0x4a5   :  { %7454 = vmatprep.subr.bf16.mxu1 %v11448_v44  ;;  %v11754_v46 = vpack.c.bf16 %v5307_v50, %v5306_v10  ;;  %v5159_v28 = vsel %vm2630_vm3, %v5156_v26, %v5158_v2  ;;  %v4773_v14 = vadd.f32 %v10745_v36, %v4635_v19  ;;  %v3950_v62 = vadd.f32 %v3762_v21, %v11601_v48  ;;  %v13620_v10 = vld [vmem:[#allocation215_spill] sm:$0xff]  ;;  %v13621_v19 = vld [vmem:[#allocation444_spill] sm:$0xff]  ;;  %v13622_v48 = vld [vmem:[#allocation217_spill] sm:$0xff] }
 0x4a6   :  { %v5308_v58 = vmax.f32 %v11706_v32, %v5159_v28  ;;  %v11759_v34 = vmax.f32 %v4900_v45, %v4901_v24  ;;  %v4636_v57 = vadd.f32 %v13619_v11, %v3949_v42  ;;  %v4902_v5 = vmax.f32 %v4772_v51, 0.0  ;;  %v3766_v24 = vpop.f32.mrf.mxu1  ;;  %v13623_v51 = vld [vmem:[#allocation184_spill] sm:$0xff]  ;;  %v13624_v21 = vld [vmem:[#allocation427_spill] sm:$0xff]  ;;  %v13625_v8 = vld [vmem:[#allocation446_spill] sm:$0xff] }
 0x4a7   :  { %v4903_v9 = vmax.f32 %v4773_v14, 0.0  ;;  %v3951_v44 = vadd.f32 %v3764_v16, %v11612_v63  ;;  %v11766_v50 = vadd.f32 %v13620_v10, %v2537_v40  ;;  %v4637_v45 = vadd.f32 %v13621_v19, %v3950_v62  ;;  %v13626_v14 = vld [vmem:[#allocation186_spill] sm:$0xff]  ;;  %v13627_v11 = vld [vmem:[#allocation429_spill] sm:$0xff]  ;;  %v13628_v19 = vld [vmem:[#allocation219_spill] sm:$0xff] }
 0x4a8   :  { %7455 = vmatpush3.bf16.msra.mxu1 %v11141_v39  ;;  %v5160_v26 = vrot.slane %v11759_v34, 2  ;;  %v4774_v32 = vadd.f32 %v10722_v53, %v4636_v57  ;;  %v11773_v42 = vadd.f32 %v13622_v48, %v2539_v12  ;;  %v2543_v63 = vadd.f32 %v13624_v21, %v13623_v51  ;;  %v3770_v10 = vpop.f32.mrf.mxu1 }
 0x4a9   :  { %7456 = vmatprep.subr.bf16.mxu1 %v11403_v41  ;;  %v4987_v37 = vmax.f32 %v4902_v5, %v4903_v9  ;;  %v4638_v28 = vadd.f32 %v13625_v8, %v3951_v44  ;;  %v3952_v40 = vadd.f32 %v3766_v24, %v11619_v61  ;;  %v2547_v16 = vadd.f32 %v13627_v11, %v13626_v14  ;;  %v13629_v9 = vld [vmem:[#allocation448_spill] sm:$0xff]  ;;  %v13631_v24 = vld [vmem:[#allocation431_spill] sm:$0xff]  ;;  %v13633_v14 = vld [vmem:[#allocation433_spill] sm:$0xff] }
 0x4aa   :  { %v5161_v57 = vsel %vm2630_vm3, %v5158_v2, %v5160_v26  ;;  %v4775_v62 = vadd.f32 %v10745_v36, %v4637_v45  ;;  %v11784_v41 = vadd.f32 %v13628_v19, %v2541_v55  ;;  %v13630_v61 = vld [vmem:[#allocation188_spill] sm:$0xff]  ;;  %v4904_v21 = vmax.f32 %v4774_v32, 0.0  ;;  %v3772_v8 = vpop.f32.mrf.mxu1  ;;  %v13632_v55 = vld [vmem:[#allocation190_spill] sm:$0xff] }
 0x4ab   :  { %v5309_v12 = vmax.f32 %v11728_v0, %v5161_v57  ;;  %v5162_v48 = vrot.slane %v4987_v37, 2  ;;  %v4776_v5 = vadd.f32 %v10722_v53, %v4638_v28  ;;  %v4639_v44 = vadd.f32 %v13629_v9, %v3952_v40  ;;  %v13634_v32 = vld [vmem:[#allocation450_spill] sm:$0xff] }
 0x4ac   :  { %7457 = vmatpush3.bf16.msra.mxu1 %v11091_v15  ;;  %v2549_v51 = vadd.f32 %v13631_v24, %v13630_v61  ;;  %v4905_v2 = vmax.f32 %v4775_v62, 0.0  ;;  %v3953_v45 = vadd.f32 %v3770_v10, %v11632_v7  ;;  %v2551_v0 = vadd.f32 %v13633_v14, %v13632_v55  ;;  %v3774_v10 = vpop.f32.mrf.mxu1 }
 0x4ad   :  { %7458 = vmatprep.subr.bf16.mxu1 %v11366_v18  ;;  %v11796_v11 = vpack.c.bf16 %v5309_v12, %v5308_v58  ;;  %v5163_v28 = vsel %vm2630_vm3, %v5160_v26, %v5162_v48  ;;  %v4777_v40 = vadd.f32 %v10745_v36, %v4639_v44  ;;  %v3954_v7 = vadd.f32 %v3772_v8, %v11726_v1  ;;  %v13635_v58 = vld [vmem:[#allocation221_spill] sm:$0xff]  ;;  %v13638_v8 = vld [vmem:[#allocation192_spill] sm:$0xff] }
 0x4ae   :  { %v5310_v57 = vmax.f32 %v11759_v34, %v5163_v28  ;;  %v11801_v19 = vmax.f32 %v4904_v21, %v4905_v2  ;;  %v4640_v62 = vadd.f32 %v13634_v32, %v3953_v45  ;;  %v4906_v9 = vmax.f32 %v4776_v5, 0.0  ;;  %v13636_v34 = vld [vmem:[#allocation452_spill] sm:$0xff]  ;;  %v3776_v2 = vpop.f32.mrf.mxu1  ;;  %v13637_v45 = vld [vmem:[#allocation223_spill] sm:$0xff] }
 0x4af   :  { %v4907_v61 = vmax.f32 %v4777_v40, 0.0  ;;  %v3955_v24 = vadd.f32 %v3774_v10, %v11733_v25  ;;  %v3273_v12 = vadd.f32 %v13635_v58, %v2543_v63  ;;  %v4641_v21 = vadd.f32 %v13636_v34, %v3954_v7  ;;  %v13639_v5 = vld [vmem:[#allocation435_spill] sm:$0xff]  ;;  %v13640_v25 = vld [vmem:[#allocation454_spill] sm:$0xff]  ;;  %v13641_v7 = vld [vmem:[#allocation225_spill] sm:$0xff] }
 0x4b0   :  { %7459 = vmatpush3.bf16.msra.mxu1 %v11054_v59  ;;  %v5164_v26 = vrot.slane %v11801_v19, 2  ;;  %v4778_v44 = vadd.f32 %v10722_v53, %v4640_v62  ;;  %v3274_v1 = vadd.f32 %v13637_v45, %v2547_v16  ;;  %v2553_v55 = vadd.f32 %v13639_v5, %v13638_v8  ;;  %v3780_v62 = vpop.f32.mrf.mxu1  ;;  %v13642_v58 = vld [vmem:[#allocation227_spill] sm:$0xff] }
 0x4b1   :  { %7460 = vmatprep.subr.bf16.mxu1 %v11328_v33  ;;  %v11815_v14 = vmax.f32 %v4906_v9, %v4907_v61  ;;  %v4642_v28 = vadd.f32 %v13640_v25, %v3955_v24  ;;  %v3956_v63 = vadd.f32 %v3776_v2, %v11741_v52  ;;  %v4779_v32 = vadd.f32 %v10745_v36, %v4641_v21  ;;  %v13643_v61 = vld [vmem:[#allocation456_spill] sm:$0xff]  ;;  %v13644_v52 = vld [vmem:[#allocation194_spill] sm:$0xff]  ;;  %v13645_v24 = vld [vmem:[#allocation437_spill] sm:$0xff] }
 0x4b2   :  { %v5165_v40 = vsel %vm2630_vm3, %v5162_v48, %v5164_v26  ;;  %v3275_v10 = vadd.f32 %v13641_v7, %v2549_v51  ;;  %v11823_v34 = vadd.f32 %v13642_v58, %v2551_v0  ;;  %v2557_v48 = vadd.f32 %v13645_v24, %v13644_v52  ;;  %v3782_v51 = vpop.f32.mrf.mxu1  ;;  %v13650_v24 = vld [vmem:[#allocation196_spill] sm:$0xff] }
 0x4b3   :  { %v5311_v16 = vmax.f32 %v4987_v37, %v5165_v40  ;;  %v5166_v45 = vrot.slane %v11815_v14, 2  ;;  %v4780_v9 = vadd.f32 %v10722_v53, %v4642_v28  ;;  %v4643_v8 = vadd.f32 %v13643_v61, %v3956_v63  ;;  %v13646_v28 = vld [vmem:[#allocation229_spill] sm:$0xff] }
 0x4b4   :  { %7461 = vmatpush3.bf16.msra.mxu1 %v11014_v31  ;;  %v4908_v2 = vmax.f32 %v4778_v44, 0.0  ;;  %v4909_v21 = vmax.f32 %v4779_v32, 0.0  ;;  %v3957_v5 = vadd.f32 %v3780_v62, %v11766_v50  ;;  %v11838_v63 = vadd.f32 %v13646_v28, %v2553_v55  ;;  %v13647_v44 = vld [vmem:[#allocation458_spill] sm:$0xff]  ;;  %v3784_v62 = vpop.f32.mrf.mxu1  ;;  %v13648_v55 = vld [vmem:[#allocation460_spill] sm:$0xff] }
 0x4b5   :  { %7462 = vmatprep.subr.bf16.mxu1 %v11291_v43  ;;  %v11833_v0 = vpack.c.bf16 %v5311_v16, %v5310_v57  ;;  %v5167_v37 = vsel %vm2630_vm3, %v5164_v26, %v5166_v45  ;;  %v4781_v25 = vadd.f32 %v10745_v36, %v4643_v8  ;;  %v3958_v50 = vadd.f32 %v3782_v51, %v11773_v42  ;;  %v13706_v43 = vld [vmem:[#allocation245_spill] sm:$0xff] }
 0x4b6   :  { %v5312_v40 = vmax.f32 %v11801_v19, %v5167_v37  ;;  %v11841_v7 = vmax.f32 %v4908_v2, %v4909_v21  ;;  %v4644_v32 = vadd.f32 %v13647_v44, %v3957_v5  ;;  %v4910_v58 = vmax.f32 %v4780_v9, 0.0  ;;  %v3786_v8 = vpop.f32.mrf.mxu1  ;;  %v13651_v2 = vld [vmem:[#allocation439_spill] sm:$0xff] }
 0x4b7   :  { %v4911_v61 = vmax.f32 %v4781_v25, 0.0  ;;  %v3959_v57 = vadd.f32 %v3784_v62, %v11784_v41  ;;  %vm5501_vm2 = vcmp.eq.s32.totalorder %v11045_v35, %v11640_v13  ;;  %v4645_v16 = vadd.f32 %v13648_v55, %v3958_v50  ;;  %v13649_v41 = vld [vmem:[#allocation462_spill] sm:$0xff]  ;;  %v13652_v25 = vld [vmem:[#allocation231_spill] sm:$0xff]  ;;  %v13653_v62 = vld [vmem:[#allocation464_spill] sm:$0xff] }
 0x4b8   :  { %7463 = vmatpush3.bf16.msra.mxu1 %v10973_v38  ;;  %v5168_v26 = vrot.slane %v11841_v7, 2  ;;  %v4782_v19 = vadd.f32 %v10722_v53, %v4644_v32  ;;  %vm5505_vm4 = vcmp.eq.s32.totalorder %v11045_v35, %v11647_v27  ;;  %v3960_v52 = vadd.f32 %v3786_v8, %v3273_v12  ;;  %v3790_v37 = vpop.f32.mrf.mxu1  ;;  %v13677_v38 = vld [vmem:[#allocation238_spill] sm:$0xff] }
 0x4b9   :  { %7464 = vmatprep.subr.bf16.mxu1 %v11253_v29  ;;  %v11855_v42 = vmax.f32 %v4910_v58, %v4911_v61  ;;  %v4646_v9 = vadd.f32 %v13649_v41, %v3959_v57  ;;  %v2559_v21 = vadd.f32 %v13651_v2, %v13650_v24  ;;  %v4783_v51 = vadd.f32 %v10745_v36, %v4645_v16  ;;  %vm11871_vm5 = vmpackc.low %vm5505_vm4, %vm5501_vm2 }
 0x4ba   :  { %v5169_v5 = vsel %vm2630_vm3, %v5166_v45, %v5168_v26  ;;  %v3278_v28 = vadd.f32 %v13652_v25, %v2557_v48  ;;  %v4647_v58 = vadd.f32 %v13653_v62, %v3960_v52  ;;  %v8208_v45 = vld [vmem:[%s12690_s3 + $0x78] sm:$0xff]   ;;  %v4912_v57 = vmax.f32 %v4782_v19, 0.0  ;;  %v3792_v8 = vpop.f32.mrf.mxu1  ;;  %v13659_v52 = vld [vmem:[#allocation443_spill] sm:$0xff]  ;;  %v13660_v19 = vld [vmem:[#allocation466_spill] sm:$0xff] }
 0x4bb   :  { %v5313_v44 = vmax.f32 %v11815_v14, %v5169_v5  ;;  %v5170_v32 = vrot.slane %v11855_v42, 2  ;;  %v4784_v50 = vadd.f32 %v10722_v53, %v4646_v9  ;;  %v13656_v14 = vld [vmem:[#allocation198_spill] sm:$0xff]  ;;  %v13657_v48 = vld [vmem:[#allocation441_spill] sm:$0xff]  ;;  %v4913_v55 = vmax.f32 %v4783_v51, 0.0  ;;  %v13658_v9 = vld [vmem:[#allocation200_spill] sm:$0xff] }
 0x4bc   :  { %7465 = vmatpush3.bf16.msra.mxu1 %v13602_v47  ;;  %v2561_v61 = vadd.f32 %v13657_v48, %v13656_v14  ;;  %v3961_v16 = vadd.f32 %v3790_v37, %v3274_v1  ;;  %v12710_v41 = vmov 0.0   ;;  %v2563_v24 = vadd.f32 %v13659_v52, %v13658_v9  ;;  %v3794_v37 = vpop.f32.mrf.mxu1  ;;  %v13666_v52 = vld [vmem:[#allocation470_spill] sm:$0xff] }
 0x4bd   :  { %7760 = vmatprep.subr.bf16.mxu1 %v12710_v41  ;;  %v11883_v2 = vpack.c.bf16 %v5313_v44, %v5312_v40  ;;  %v5171_v5 = vsel %vm2630_vm3, %v5168_v26, %v5170_v32  ;;  %v4785_v25 = vadd.f32 %v10745_v36, %v4647_v58  ;;  %v11888_v47 = vmax.f32 %v4912_v57, %v4913_v55  ;;  %v8209_v26 = vld [vmem:[%s12690_s3 + $0x70] sm:$0xff]  }
 0x4be   :  { %v5314_v62 = vmax.f32 %v11841_v7, %v5171_v5  ;;  %v4648_v51 = vadd.f32 %v13660_v19, %v3961_v16  ;;  %v3962_v1 = vadd.f32 %v3792_v8, %v3275_v10  ;;  %v4914_v14 = vmax.f32 %v4784_v50, 0.0  ;;  %v13661_v7 = vld [vmem:[#allocation233_spill] sm:$0xff]  ;;  %v13662_v57 = vld [vmem:[#allocation468_spill] sm:$0xff]  ;;  %v3796_v16 = vpop.f32.mrf.mxu1  ;;  %v13663_v50 = vld [vmem:[#allocation235_spill] sm:$0xff] }
 0x4bf   :  { %7193 = vmatmul.mubr.msk.bf16.vlgmr.msra.gmra.mxu1 %vm11871_vm5, %v13606_v56  ;;  %v4915_v48 = vmax.f32 %v4785_v25, 0.0  ;;  %v3963_v40 = vadd.f32 %v3794_v37, %v11823_v34  ;;  %v3279_v44 = vadd.f32 %v13661_v7, %v2559_v21  ;;  %v5172_v58 = vrot.slane %v11888_v47, 2  ;;  %v13664_v8 = vld [vmem:[#allocation202_spill] sm:$0xff]  ;;  %v13665_v34 = vld [vmem:[#allocation445_spill] sm:$0xff]  ;;  %v13667_v25 = vld [vmem:[#allocation204_spill] sm:$0xff] }
 0x4c0   :  { %7761 = vmatpush3.bf16.msra.mxu1 %v8208_v45  ;;  %v4786_v10 = vadd.f32 %v10722_v53, %v4648_v51  ;;  %v4649_v55 = vadd.f32 %v13662_v57, %v3962_v1  ;;  %v3280_v12 = vadd.f32 %v13663_v50, %v2561_v61  ;;  %v2567_v45 = vadd.f32 %v13665_v34, %v13664_v8  ;;  %v13668_v19 = vld [vmem:[#allocation447_spill] sm:$0xff]  ;;  %v3800_v7 = vpop.f32.mrf.mxu1  ;;  %v13669_v57 = vld [vmem:[#allocation237_spill] sm:$0xff] }
 0x4c1   :  { %7762 = vmatprep.subr.bf16.mxu1 %v12710_v41  ;;  %v11906_v9 = vmax.f32 %v4914_v14, %v4915_v48  ;;  %v4650_v5 = vadd.f32 %v13666_v52, %v3963_v40  ;;  %v3964_v21 = vadd.f32 %v3796_v16, %v11838_v63  ;;  %v2569_v37 = vadd.f32 %v13668_v19, %v13667_v25  ;;  %v13670_v48 = vld [vmem:[#allocation472_spill] sm:$0xff]  ;;  %v8210_v63 = vld [vmem:[%s12690_s3 + $0x68] sm:$0xff]   ;;  %v13671_v16 = vld [vmem:[#allocation206_spill] sm:$0xff] }
 0x4c2   :  { %v5173_v51 = vsel %vm2630_vm3, %v5170_v32, %v5172_v58  ;;  %v4787_v1 = vadd.f32 %v10745_v36, %v4649_v55  ;;  %v3281_v41 = vadd.f32 %v13669_v57, %v2563_v24  ;;  %v13672_v32 = vld [vmem:[#allocation449_spill] sm:$0xff]  ;;  %v4916_v55 = vmax.f32 %v4786_v10, 0.0  ;;  %v3802_v24 = vpop.f32.mrf.mxu1  ;;  %v13675_v19 = vld [vmem:[#allocation451_spill] sm:$0xff] }
 0x4c3   :  { %v5315_v61 = vmax.f32 %v11855_v42, %v5173_v51  ;;  %v5174_v50 = vrot.slane %v11906_v9, 2  ;;  %v4788_v14 = vadd.f32 %v10722_v53, %v4650_v5  ;;  %v4651_v40 = vadd.f32 %v13670_v48, %v3964_v21  ;;  %v13674_v42 = vld [vmem:[#allocation208_spill] sm:$0xff] }
 0x4c4   :  { %7763 = vmatpush3.bf16.msra.mxu1 %v8209_v26  ;;  %v2571_v8 = vadd.f32 %v13672_v32, %v13671_v16  ;;  %v4917_v34 = vmax.f32 %v4787_v1, 0.0  ;;  %v3965_v52 = vadd.f32 %v3800_v7, %v3278_v28  ;;  %v13673_v25 = vmov 0.0   ;;  %v13676_v16 = vld [vmem:[#allocation474_spill] sm:$0xff]  ;;  %v3804_v28 = vpop.f32.mrf.mxu1 }
 0x4c5   :  { %7764 = vmatprep.subr.bf16.mxu1 %v13673_v25  ;;  %v2573_v51 = vadd.f32 %v13675_v19, %v13674_v42  ;;  %v11927_v5 = vpack.c.bf16 %v5315_v61, %v5314_v62  ;;  %v5175_v26 = vsel %vm2630_vm3, %v5172_v58, %v5174_v50  ;;  %v4789_v21 = vadd.f32 %v10745_v36, %v4651_v40  ;;  %v8211_v62 = vld [vmem:[%s12690_s3 + $0x60] sm:$0xff]   ;;  %v13678_v61 = vld [vmem:[#allocation476_spill] sm:$0xff]  ;;  %v13683_v19 = vld [vmem:[#allocation453_spill] sm:$0xff] }
 0x4c6   :  { %v5316_v57 = vmax.f32 %v11888_v47, %v5175_v26  ;;  %v11932_v48 = vmax.f32 %v4916_v55, %v4917_v34  ;;  %v4652_v10 = vadd.f32 %v13676_v16, %v3965_v52  ;;  %v3966_v1 = vadd.f32 %v3802_v24, %v3279_v44  ;;  %v3806_v55 = vpop.f32.mrf.mxu1  ;;  %v13679_v44 = vld [vmem:[#allocation239_spill] sm:$0xff]  ;;  %v13682_v24 = vld [vmem:[#allocation210_spill] sm:$0xff]  ;;  %7776 = vmatprep.mubr.msk.bf16.mxu1 %vm8262_vm14, %v13673_v25 }
 0x4c7   :  { %v4918_v7 = vmax.f32 %v4788_v14, 0.0  ;;  %v4919_v32 = vmax.f32 %v4789_v21, 0.0  ;;  %v3967_v29 = vadd.f32 %v3804_v28, %v3280_v12  ;;  %v3282_v42 = vadd.f32 %v13677_v38, %v2567_v45  ;;  %v13680_v12 = vld [vmem:[#allocation4_spill] sm:$0xff] }
 0x4c8   :  { %7765 = vmatpush3.bf16.msra.mxu1 %v8210_v63  ;;  %v5176_v58 = vrot.slane %v11932_v48, 2  ;;  %v4790_v47 = vadd.f32 %v10722_v53, %v4652_v10  ;;  %v4653_v40 = vadd.f32 %v13678_v61, %v3966_v1  ;;  %v3283_v14 = vadd.f32 %v13679_v44, %v2569_v37  ;;  %v13681_v45 = vld [vmem:[#allocation240_spill] sm:$0xff]  ;;  %v3810_v10 = vpop.f32.mrf.mxu1  ;;  %v13684_v1 = vld [vmem:[#allocation241_spill] sm:$0xff] }
 0x4c9   :  { %7766 = vmatprep.subr.bf16.mxu1 %v13673_v25  ;;  %v11944_v34 = vmax.f32 %v4918_v7, %v4919_v32  ;;  %v4654_v63 = vadd.f32 %v13680_v12, %v3967_v29  ;;  %v3968_v38 = vadd.f32 %v3806_v55, %v3281_v41  ;;  %v3284_v52 = vadd.f32 %v13681_v45, %v2571_v8  ;;  %v13685_v29 = vld [vmem:[#allocation6_spill] sm:$0xff]  ;;  %v8212_v8 = vld [vmem:[%s12690_s3 + $0x58] sm:$0xff]   ;;  %v13686_v32 = vld [vmem:[#allocation212_spill] sm:$0xff] }
 0x4ca   :  { %v2577_v26 = vadd.f32 %v13683_v19, %v13682_v24  ;;  %v5177_v21 = vsel %vm2630_vm3, %v5174_v50, %v5176_v58  ;;  %v4791_v16 = vadd.f32 %v10745_v36, %v4653_v40  ;;  %v3285_v28 = vadd.f32 %v13684_v1, %v2573_v51  ;;  %v13687_v50 = vld [vmem:[#allocation455_spill] sm:$0xff]  ;;  %v3812_v51 = vpop.f32.mrf.mxu1  ;;  %v13689_v45 = vld [vmem:[#allocation457_spill] sm:$0xff] }
 0x4cb   :  { %v5317_v61 = vmax.f32 %v11906_v9, %v5177_v21  ;;  %v5178_v37 = vrot.slane %v11944_v34, 2  ;;  %v4792_v7 = vadd.f32 %v10722_v53, %v4654_v63  ;;  %v4655_v41 = vadd.f32 %v13685_v29, %v3968_v38  ;;  %v13688_v9 = vld [vmem:[#allocation214_spill] sm:$0xff]  ;;  %v13690_v1 = vld [vmem:[#allocation7_spill] sm:$0xff] }
 0x4cc   :  { %7767 = vmatpush3.bf16.msra.mxu1 %v8211_v62  ;;  %v2579_v55 = vadd.f32 %v13687_v50, %v13686_v32  ;;  %v4920_v40 = vmax.f32 %v4790_v47, 0.0  ;;  %v4921_v44 = vmax.f32 %v4791_v16, 0.0  ;;  %v3969_v12 = vadd.f32 %v3810_v10, %v3282_v42  ;;  %v3814_v42 = vpop.f32.mrf.mxu1  ;;  %v13691_v50 = vld [vmem:[#allocation242_spill] sm:$0xff] }
 0x4cd   :  { %7768 = vmatprep.subr.bf16.mxu1 %v13673_v25  ;;  %v2581_v24 = vadd.f32 %v13689_v45, %v13688_v9  ;;  %v11965_v63 = vpack.c.bf16 %v5317_v61, %v5316_v57  ;;  %v5179_v62 = vsel %vm2630_vm3, %v5176_v58, %v5178_v37  ;;  %v4793_v38 = vadd.f32 %v10745_v36, %v4655_v41  ;;  %v8213_v57 = vld [vmem:[%s12690_s3 + $0x50] sm:$0xff]  }
 0x4ce   :  { %v5318_v19 = vmax.f32 %v11932_v48, %v5179_v62  ;;  %v11970_v21 = vmax.f32 %v4920_v40, %v4921_v44  ;;  %v4656_v47 = vadd.f32 %v13690_v1, %v3969_v12  ;;  %v3970_v16 = vadd.f32 %v3812_v51, %v3283_v14  ;;  %v13692_v61 = vld [vmem:[#allocation8_spill] sm:$0xff]  ;;  %v3816_v40 = vpop.f32.mrf.mxu1  ;;  %v13693_v14 = vld [vmem:[#allocation243_spill] sm:$0xff]  ;;  %v13697_v62 = vld [vmem:[#allocation218_spill] sm:$0xff] }
 0x4cf   :  { %v4922_v10 = vmax.f32 %v4792_v7, 0.0  ;;  %v4923_v29 = vmax.f32 %v4793_v38, 0.0  ;;  %v3971_v32 = vadd.f32 %v3814_v42, %v3284_v52  ;;  %v3286_v9 = vadd.f32 %v13691_v50, %v2577_v26  ;;  %v13694_v44 = vld [vmem:[#allocation216_spill] sm:$0xff]  ;;  %v13695_v52 = vld [vmem:[#allocation459_spill] sm:$0xff]  ;;  %v13698_v38 = vld [vmem:[#allocation461_spill] sm:$0xff] }
 0x4d0   :  { %7769 = vmatpush3.bf16.msra.mxu1 %v8212_v8  ;;  %v5180_v58 = vrot.slane %v11970_v21, 2  ;;  %v4794_v48 = vadd.f32 %v10722_v53, %v4656_v47  ;;  %v4657_v41 = vadd.f32 %v13692_v61, %v3970_v16  ;;  %v3287_v7 = vadd.f32 %v13693_v14, %v2579_v55  ;;  %v13696_v26 = vld [vmem:[#allocation251_spill] sm:$0xff]  ;;  %v3820_v42 = vpop.f32.mrf.mxu1  ;;  %v13699_v50 = vld [vmem:[#allocation244_spill] sm:$0xff] }
 0x4d1   :  { %7770 = vmatprep.subr.bf16.mxu1 %v13673_v25  ;;  %v2583_v8 = vadd.f32 %v13695_v52, %v13694_v44  ;;  %v11984_v12 = vmax.f32 %v4922_v10, %v4923_v29  ;;  %v4658_v51 = vadd.f32 %v13696_v26, %v3971_v32  ;;  %v3972_v45 = vadd.f32 %v3816_v40, %v3285_v28  ;;  %v13700_v29 = vld [vmem:[#allocation9_spill] sm:$0xff]  ;;  %v8214_v28 = vld [vmem:[%s12690_s3 + $0x48] sm:$0xff]   ;;  %v13701_v32 = vld [vmem:[#allocation220_spill] sm:$0xff] }
 0x4d2   :  { %v2587_v1 = vadd.f32 %v13698_v38, %v13697_v62  ;;  %v5181_v47 = vsel %vm2630_vm3, %v5178_v37, %v5180_v58  ;;  %v4795_v16 = vadd.f32 %v10745_v36, %v4657_v41  ;;  %v3288_v61 = vadd.f32 %v13699_v50, %v2581_v24  ;;  %v13702_v37 = vld [vmem:[#allocation463_spill] sm:$0xff]  ;;  %v3822_v24 = vpop.f32.mrf.mxu1  ;;  %v13704_v62 = vld [vmem:[#allocation465_spill] sm:$0xff] }
 0x4d3   :  { %v5319_v55 = vmax.f32 %v11944_v34, %v5181_v47  ;;  %v5182_v14 = vrot.slane %v11984_v12, 2  ;;  %v4796_v10 = vadd.f32 %v10722_v53, %v4658_v51  ;;  %v4659_v44 = vadd.f32 %v13700_v29, %v3972_v45  ;;  %v13703_v34 = vld [vmem:[#allocation222_spill] sm:$0xff]  ;;  %v13705_v29 = vld [vmem:[#allocation253_spill] sm:$0xff] }
 0x4d4   :  { %7771 = vmatpush3.bf16.msra.mxu1 %v8213_v57  ;;  %v2589_v40 = vadd.f32 %v13702_v37, %v13701_v32  ;;  %v4924_v41 = vmax.f32 %v4794_v48, 0.0  ;;  %v4925_v52 = vmax.f32 %v4795_v16, 0.0  ;;  %v3973_v26 = vadd.f32 %v3820_v42, %v3286_v9  ;;  %v3824_v9 = vpop.f32.mrf.mxu1 }
 0x4d5   :  { %7772 = vmatprep.subr.bf16.mxu1 %v13673_v25  ;;  %v2591_v38 = vadd.f32 %v13704_v62, %v13703_v34  ;;  %v12004_v51 = vpack.c.bf16 %v5319_v55, %v5318_v19  ;;  %v5183_v57 = vsel %vm2630_vm3, %v5180_v58, %v5182_v14  ;;  %v4797_v45 = vadd.f32 %v10745_v36, %v4659_v44  ;;  %v8215_v19 = vld [vmem:[%s12690_s3 + $0x40] sm:$0xff]   ;;  %v13712_v62 = vld [vmem:[#allocation467_spill] sm:$0xff] }
 0x4d6   :  { %v5320_v47 = vmax.f32 %v11970_v21, %v5183_v57  ;;  %v12009_v50 = vmax.f32 %v4924_v41, %v4925_v52  ;;  %v4660_v48 = vadd.f32 %v13705_v29, %v3973_v26  ;;  %v3974_v16 = vadd.f32 %v3822_v24, %v3287_v7  ;;  %v13707_v55 = vld [vmem:[#allocation18_spill] sm:$0xff]  ;;  %v3826_v41 = vpop.f32.mrf.mxu1  ;;  %v13711_v24 = vld [vmem:[#allocation224_spill] sm:$0xff] }
 0x4d7   :  { %v4926_v42 = vmax.f32 %v4796_v10, 0.0  ;;  %v4927_v32 = vmax.f32 %v4797_v45, 0.0  ;;  %v3975_v37 = vadd.f32 %v3824_v9, %v3288_v61  ;;  %v3289_v34 = vadd.f32 %v13706_v43, %v2583_v8  ;;  %v13708_v52 = vld [vmem:[#allocation246_spill] sm:$0xff]  ;;  %v13709_v61 = vld [vmem:[#allocation20_spill] sm:$0xff]  ;;  %v13710_v43 = vld [vmem:[#allocation247_spill] sm:$0xff] }
 0x4d8   :  { %7773 = vmatpush3.bf16.msra.mxu1 %v8214_v28  ;;  %v5184_v58 = vrot.slane %v12009_v50, 2  ;;  %v4798_v21 = vadd.f32 %v10722_v53, %v4660_v48  ;;  %v4661_v44 = vadd.f32 %v13707_v55, %v3974_v16  ;;  %v3290_v7 = vadd.f32 %v13708_v52, %v2587_v1  ;;  %v3830_v48 = vpop.f32.mrf.mxu1  ;;  %v13713_v16 = vld [vmem:[#allocation248_spill] sm:$0xff] }
 0x4d9   :  { %7774 = vmatprep.subr.bf16.mxu1 %v13673_v25  ;;  %v4999_v10 = vmax.f32 %v4926_v42, %v4927_v32  ;;  %v4662_v28 = vadd.f32 %v13709_v61, %v3975_v37  ;;  %v3976_v26 = vadd.f32 %v3826_v41, %v3289_v34  ;;  %v3291_v8 = vadd.f32 %v13710_v43, %v2589_v40  ;;  %v13714_v32 = vld [vmem:[#allocation22_spill] sm:$0xff]  ;;  %v13716_v40 = vld [vmem:[#allocation469_spill] sm:$0xff] }
 0x4da   :  { %v2593_v57 = vadd.f32 %v13712_v62, %v13711_v24  ;;  %v5185_v45 = vsel %vm2630_vm3, %v5182_v14, %v5184_v58  ;;  %v4799_v29 = vadd.f32 %v10745_v36, %v4661_v44  ;;  %v3292_v9 = vadd.f32 %v13713_v16, %v2591_v38  ;;  %v13715_v34 = vld [vmem:[#allocation226_spill] sm:$0xff]  ;;  %v3832_v14 = vpop.f32.mrf.mxu1  ;;  %v13717_v44 = vld [vmem:[#allocation228_spill] sm:$0xff]  ;;  %v13718_v24 = vld [vmem:[#allocation471_spill] sm:$0xff] }
 0x4db   :  { %v5321_v1 = vmax.f32 %v11984_v12, %v5185_v45  ;;  %v5186_v55 = vrot.slane %v4999_v10, 2  ;;  %v4800_v42 = vadd.f32 %v10722_v53, %v4662_v28  ;;  %v4663_v37 = vadd.f32 %v13714_v32, %v3976_v26  ;;  %v13719_v45 = vld [vmem:[#allocation27_spill] sm:$0xff] }
 0x4dc   :  { %7775 = vmatpush3.bf16.msra.mxu1 %v8215_v19  ;;  %v2597_v41 = vadd.f32 %v13716_v40, %v13715_v34  ;;  %v4928_v52 = vmax.f32 %v4798_v21, 0.0  ;;  %v4929_v61 = vmax.f32 %v4799_v29, 0.0  ;;  %v3977_v43 = vadd.f32 %v3830_v48, %v3290_v7  ;;  %v3834_v7 = vpop.f32.mrf.mxu1  ;;  %v13720_v34 = vld [vmem:[#allocation249_spill] sm:$0xff] }
 0x4dd   :  { %7512 = vmatprep.subr.bf16.mxu1 %v11512_v20  ;;  %v2599_v38 = vadd.f32 %v13718_v24, %v13717_v44  ;;  %v12036_v62 = vpack.c.bf16 %v5321_v1, %v5320_v47  ;;  %v5187_v12 = vsel %vm2630_vm3, %v5184_v58, %v5186_v55  ;;  %v4801_v28 = vadd.f32 %v10745_v36, %v4663_v37  ;;  %v13721_v44 = vld [vmem:[#allocation230_spill] sm:$0xff]  ;;  %v13722_v47 = vld [vmem:[#allocation473_spill] sm:$0xff]  ;;  %v13723_v24 = vld [vmem:[#allocation255_spill] sm:$0xff] }
 0x4de   :  { %v5322_v19 = vmax.f32 %v12009_v50, %v5187_v12  ;;  %v12041_v26 = vmax.f32 %v4928_v52, %v4929_v61  ;;  %v4664_v21 = vadd.f32 %v13719_v45, %v3977_v43  ;;  %v3978_v29 = vadd.f32 %v3832_v14, %v3291_v8  ;;  %v3836_v52 = vpop.f32.mrf.mxu1  ;;  %v13724_v12 = vld [vmem:[#allocation31_spill] sm:$0xff]  ;;  %v13725_v14 = vld [vmem:[#allocation250_spill] sm:$0xff] }
 0x4df   :  { %v4930_v48 = vmax.f32 %v4800_v42, 0.0  ;;  %v4931_v16 = vmax.f32 %v4801_v28, 0.0  ;;  %v3979_v32 = vadd.f32 %v3834_v7, %v3292_v9  ;;  %v3293_v40 = vadd.f32 %v13720_v34, %v2593_v57  ;;  %v13726_v28 = vld [vmem:[#allocation232_spill] sm:$0xff]  ;;  %v13727_v9 = vld [vmem:[#allocation475_spill] sm:$0xff] }
 0x4e0   :  { %v2601_v1 = vadd.f32 %v13722_v47, %v13721_v44  ;;  %v5188_v58 = vrot.slane %v12041_v26, 2  ;;  %v4802_v37 = vadd.f32 %v10722_v53, %v4664_v21  ;;  %v4665_v50 = vadd.f32 %v13723_v24, %v3978_v29  ;;  %v3840_v34 = vpop.f32.mrf.mxu1  ;;  %v13728_v44 = vld [vmem:[#allocation252_spill] sm:$0xff] }
 0x4e1   :  { %v5001_v61 = vmax.f32 %v4930_v48, %v4931_v16  ;;  %v4666_v43 = vadd.f32 %v13724_v12, %v3979_v32  ;;  %v3980_v8 = vadd.f32 %v3836_v52, %v3293_v40  ;;  %v3294_v42 = vadd.f32 %v13725_v14, %v2597_v41  ;;  %v13729_v48 = vld [vmem:[#allocation11_spill] sm:$0xff]  ;;  %v13730_v52 = vld [vmem:[#allocation254_spill] sm:$0xff] }
 0x4e2   :  { %v2603_v45 = vadd.f32 %v13727_v9, %v13726_v28  ;;  %v5189_v57 = vsel %vm2630_vm3, %v5186_v55, %v5188_v58  ;;  %v4803_v7 = vadd.f32 %v10745_v36, %v4665_v50  ;;  %v3295_v47 = vadd.f32 %v13728_v44, %v2599_v38  ;;  %v3842_v41 = vpop.f32.mrf.mxu1  ;;  %v13731_v14 = vld [vmem:[#allocation234_spill] sm:$0xff]  ;;  %v13732_v28 = vld [vmem:[#allocation3_spill] sm:$0xff] }
 0x4e3   :  { %v5323_v21 = vmax.f32 %v4999_v10, %v5189_v57  ;;  %v5190_v31 = vrot.slane %v5001_v61, 2  ;;  %v4804_v29 = vadd.f32 %v10722_v53, %v4666_v43  ;;  %v4667_v16 = vadd.f32 %v13729_v48, %v3980_v8  ;;  %v13733_v57 = vld [vmem:[#allocation257_spill] sm:$0xff] }
 0x4e4   :  { %v4932_v32 = vmax.f32 %v4802_v37, 0.0  ;;  %v4933_v40 = vmax.f32 %v4803_v7, 0.0  ;;  %v3981_v24 = vadd.f32 %v3840_v34, %v3294_v42  ;;  %v3296_v12 = vadd.f32 %v13730_v52, %v2601_v1  ;;  %v3844_v7 = vpop.f32.mrf.mxu1  ;;  %v13734_v1 = vld [vmem:[#allocation256_spill] sm:$0xff] }
 0x4e5   :  { %v2607_v55 = vadd.f32 %v13732_v28, %v13731_v14  ;;  %v12062_v9 = vpack.c.bf16 %v5323_v21, %v5322_v19  ;;  %v5191_v50 = vsel %vm2630_vm3, %v5188_v58, %v5190_v31  ;;  %v4805_v10 = vadd.f32 %v10745_v36, %v4667_v16  ;;  %v13735_v52 = vld [vmem:[#allocation236_spill] sm:$0xff]  ;;  %v13736_v14 = vld [vmem:[#allocation5_spill] sm:$0xff] }
 0x4e6   :  { %v5324_v38 = vmax.f32 %v12041_v26, %v5191_v50  ;;  %v5002_v43 = vmax.f32 %v4932_v32, %v4933_v40  ;;  %v4668_v8 = vadd.f32 %v13733_v57, %v3981_v24  ;;  %v3982_v37 = vadd.f32 %v3842_v41, %v3295_v47  ;;  %v13737_v28 = vld [vmem:[#allocation12_spill] sm:$0xff]  ;;  %v3846_v33 = vpop.f32.mrf.mxu1  ;;  %v13738_v32 = vld [vmem:[#allocation259_spill] sm:$0xff]  ;;  %v13739_v41 = vld [vmem:[#allocation258_spill] sm:$0xff] }
 0x4e7   :  { %v4934_v42 = vmax.f32 %v4804_v29, 0.0  ;;  %v4935_v34 = vmax.f32 %v4805_v10, 0.0  ;;  %v3983_v44 = vadd.f32 %v3844_v7, %v3296_v12  ;;  %v3297_v48 = vadd.f32 %v13734_v1, %v2603_v45  ;;  %v13740_v7 = vld [vmem:[#allocation261_spill] sm:$0xff] }
 0x4e8   :  { %v2609_v19 = vadd.f32 %v13736_v14, %v13735_v52  ;;  %v5192_v21 = vrot.slane %v5002_v43, 2  ;;  %v4806_v58 = vadd.f32 %v10722_v53, %v4668_v8  ;;  %v4669_v16 = vadd.f32 %v13737_v28, %v3982_v37 }
 0x4e9   :  { %v5003_v26 = vmax.f32 %v4934_v42, %v4935_v34  ;;  %v4670_v40 = vadd.f32 %v13738_v32, %v3983_v44  ;;  %v3984_v24 = vadd.f32 %v3846_v33, %v3297_v48  ;;  %v3298_v12 = vadd.f32 %v13739_v41, %v2607_v55  ;;  %v13741_v42 = vld [vmem:[#allocation260_spill] sm:$0xff] }
 0x4ea   :  { %v5193_v47 = vsel %vm2630_vm3, %v5190_v31, %v5192_v21  ;;  %v4807_v29 = vadd.f32 %v10745_v36, %v4669_v16  ;;  %v4936_v1 = vmax.f32 %v4806_v58, 0.0  ;;  %v3299_v34 = vadd.f32 %v13741_v42, %v2609_v19 }
 0x4eb   :  { %v3850_v45 = vpop.f32.mrf.mxu1  ;;  %v5325_v50 = vmax.f32 %v5001_v61, %v5193_v47  ;;  %v5194_v10 = vrot.slane %v5003_v26, 2  ;;  %v4808_v57 = vadd.f32 %v10722_v53, %v4670_v40  ;;  %v4671_v8 = vadd.f32 %v13740_v7, %v3984_v24  ;;  %v13742_v61 = vld [vmem:[#allocation33_spill] sm:$0xff] }
 0x4ec   :  { %v4937_v37 = vmax.f32 %v4807_v29, 0.0  ;;  %v3985_v52 = vadd.f32 %v3850_v45, %v3298_v12  ;;  %v13743_v29 = vld [vmem:[#allocation14_spill] sm:$0xff]  ;;  %vm5504_vm7 = vcmp.eq.s32.totalorder %v11699_v6, %v11640_v13  ;;  %vm5508_vm8 = vcmp.eq.s32.totalorder %v11699_v6, %v11647_v27 }
 0x4ed   :  { %v3852_v44 = vpop.f32.mrf.mxu1  ;;  %v12080_v33 = vpack.c.bf16 %v5325_v50, %v5324_v38  ;;  %v5195_v31 = vsel %vm2630_vm3, %v5192_v21, %v5194_v10  ;;  %v4809_v48 = vadd.f32 %v10745_v36, %v4671_v8  ;;  %v4938_v40 = vmax.f32 %v4808_v57, 0.0  ;;  %vm7194_vm10 = vmpackc.low %vm5508_vm8, %vm5504_vm7 }
 0x4ee   :  { %v5326_v55 = vmax.f32 %v5002_v43, %v5195_v31  ;;  %v5004_v14 = vmax.f32 %v4936_v1, %v4937_v37  ;;  %v4672_v28 = vadd.f32 %v13742_v61, %v3985_v52  ;;  %v3986_v16 = vadd.f32 %v3852_v44, %v3299_v34  ;;  %v8220_v44 = vld [vmem:[%s12690_s3 + $0x18] sm:$0xff]   ;;  %v8221_v31 = vld [vmem:[%s12690_s3 + $0x10] sm:$0xff]  }
 0x4ef   :  { %v3854_v32 = vpop.f32.mrf.mxu1  ;;  %v4939_v24 = vmax.f32 %v4809_v48, 0.0  ;;  %v8222_v48 = vld [vmem:[%s12690_s3 + $0x8] sm:$0xff]   ;;  %v12186_v61 = vadd.s32 8, %v11076_v54 }
 0x4f0   :  { %v5196_v58 = vrot.slane %v5004_v14, 2  ;;  %v4810_v47 = vadd.f32 %v10722_v53, %v4672_v28  ;;  %v4673_v19 = vadd.f32 %v13743_v29, %v3986_v16  ;;  %v8228_v28 = vld [vmem:[%s12690_s3 + $0xa8] sm:$0xff]  }
 0x4f1   :  { %v3855_v41 = vpop.f32.mrf.mxu1  ;;  %v5005_v38 = vmax.f32 %v4938_v40, %v4939_v24  ;;  %vm5813_vm0 = vcmp.eq.s32.totalorder %v11045_v35, %v12186_v61  ;;  %vm5816_vm4 = vcmp.eq.s32.totalorder %v11699_v6, %v12186_v61  ;;  %vm5814_vm8 = vcmp.eq.s32.totalorder %v11066_v3, %v12186_v61 }
 0x4f2   :  { %v5197_v12 = vsel %vm2630_vm3, %v5194_v10, %v5196_v58  ;;  %v4811_v21 = vadd.f32 %v10745_v36, %v4673_v19  ;;  %v4940_v50 = vmax.f32 %v4810_v47, 0.0  ;;  %v12109_v36 = vadd.s32 256, %v11045_v35  ;;  %v8217_v10 = vld [vmem:[%s12690_s3 + $0x30] sm:$0xff]  }
 0x4f3   :  { %v5327_v45 = vmax.f32 %v5003_v26, %v5197_v12  ;;  %v5198_v43 = vrot.slane %v5005_v38, 2  ;;  %v8216_v26 = vld [vmem:[%s12690_s3 + $0x38] sm:$0xff]  }
 0x4f4   :  { %v4941_v7 = vmax.f32 %v4811_v21, 0.0  ;;  %vm5378_vm6 = vcmp.eq.s32.totalorder %v12109_v36, %v11076_v54  ;;  %vm5503_vm11 = vcmp.eq.s32.totalorder %v12109_v36, %v11640_v13  ;;  %vm5507_vm12 = vcmp.eq.s32.totalorder %v12109_v36, %v11647_v27  ;;  %v8218_v13 = vld [vmem:[%s12690_s3 + $0x28] sm:$0xff]   ;;  %v8219_v27 = vld [vmem:[%s12690_s3 + $0x20] sm:$0xff]  }
 0x4f5   :  { %v12089_v8 = vpack.c.bf16 %v5327_v45, %v5326_v55  ;;  %v5199_v57 = vsel %vm2630_vm3, %v5196_v58, %v5198_v43  ;;  %vm7196_vm13 = vmpackc.low %vm5507_vm12, %vm5503_vm11  ;;  %v8223_v55 = vld [vmem:[%s12690_s3] sm:$0xff]  }
 0x4f6   :  { %v5328_v1 = vmax.f32 %v5004_v14, %v5199_v57  ;;  %v5006_v37 = vmax.f32 %v4940_v50, %v4941_v7  ;;  %v12183_v14 = vadd.s32 8, %v11072_v60 }
 0x4f8   :  { %v5200_v52 = vrot.slane %v5006_v37, 2  ;;  %vm5809_vm15 = vcmp.eq.s32.totalorder %v11045_v35, %v12183_v14  ;;  %vm5812_vm2 = vcmp.eq.s32.totalorder %v11699_v6, %v12183_v14  ;;  %vm5810_vm7 = vcmp.eq.s32.totalorder %v11066_v3, %v12183_v14 }
 0x4f9   :  { %vm12192_vm1 = vmpackc.low %vm5813_vm0, %vm5809_vm15 }
 0x4fa   :  { %v5201_v53 = vsel %vm2630_vm3, %v5198_v43, %v5200_v52  ;;  %vm5374_vm3 = vcmp.eq.s32.totalorder %v12109_v36, %v11072_v60  ;;  %vm7242_vm5 = vmpackc.low %vm5816_vm4, %vm5812_vm2 }
 0x4fb   :  { %v5329_v42 = vmax.f32 %v5005_v38, %v5201_v53  ;;  %vm7180_vm9 = vmpackc.low %vm5378_vm6, %vm5374_vm3  ;;  %vm5811_vm3 = vcmp.eq.s32.totalorder %v12109_v36, %v12183_v14  ;;  %vm5815_vm6 = vcmp.eq.s32.totalorder %v12109_v36, %v12186_v61  ;;  %v13746_v14 = vld [vmem:[#allocation37_spill] sm:$0xff] }
 0x4fc   :  { %vm7238_vm12 = vmpackc.low %vm5814_vm8, %vm5810_vm7  ;;  %v13747_v61 = vld [vmem:[#allocation265_spill] sm:$0xff] }
 0x4fd   :  { %v12093_v34 = vpack.c.bf16 %v5329_v42, %v5328_v1 }
 0x4ff   :  { %7428 = vmatprep.subr.bf16.mxu0 %v12093_v34 }
 0x500   :  { %7429 = vmatpush3.bf16.msra.mxu0 %v11883_v2 }
 0x501   :  { %7430 = vmatprep.subr.bf16.mxu0 %v12089_v8 }
 0x504   :  { %7431 = vmatpush3.bf16.msra.mxu0 %v11833_v0 }
 0x505   :  { %7432 = vmatprep.subr.bf16.mxu0 %v12080_v33 }
 0x508   :  { %7433 = vmatpush3.bf16.msra.mxu0 %v11796_v11 }
 0x509   :  { %7434 = vmatprep.subr.bf16.mxu0 %v12062_v9 }
 0x50c   :  { %7435 = vmatpush3.bf16.msra.mxu0 %v11754_v46 }
 0x50d   :  { %7436 = vmatprep.subr.bf16.mxu0 %v12036_v62 }
 0x510   :  { %7437 = vmatpush3.bf16.msra.mxu0 %v11701_v22 }
 0x511   :  { %7438 = vmatprep.subr.bf16.mxu0 %v12004_v51 }
 0x514   :  { %7439 = vmatpush3.bf16.msra.mxu0 %v11642_v30 }
 0x515   :  { %7440 = vmatprep.subr.bf16.mxu0 %v11965_v63 }
 0x518   :  { %7441 = vmatpush3.bf16.msra.mxu0 %v11594_v17 }
 0x519   :  { %7442 = vmatprep.subr.bf16.mxu0 %v11927_v5 }
 0x51c   :  { %7443 = vmatpush3.bf16.msra.mxu0 %v11557_v4 }
 0x51d   :  { %7472 = vmatprep.subr.bf16.mxu0 %v12093_v34 }
 0x51f   :  { %7181 = vmatmul.mubr.msk.bf16.vlgmr.msra.gmra.mxu0 %vm7180_vm9, %v13606_v56  ;;  %vm7244_vm9 = vmpackc.low %vm5815_vm6, %vm5811_vm3 }
 0x520   :  { %7473 = vmatpush3.bf16.msra.mxu0 %v11883_v2  ;;  %7195 = vmatprep.mubr.msk.bf16.mxu0 %vm7194_vm10, %v13606_v56 }
 0x521   :  { %7474 = vmatprep.subr.bf16.mxu0 %v12089_v8 }
 0x524   :  { %7475 = vmatpush3.bf16.msra.mxu0 %v11833_v0 }
 0x525   :  { %7476 = vmatprep.subr.bf16.mxu0 %v12080_v33 }
 0x528   :  { %7477 = vmatpush3.bf16.msra.mxu0 %v11796_v11 }
 0x529   :  { %7478 = vmatprep.subr.bf16.mxu0 %v12062_v9 }
 0x52c   :  { %7479 = vmatpush3.bf16.msra.mxu0 %v11754_v46 }
 0x52d   :  { %7480 = vmatprep.subr.bf16.mxu0 %v12036_v62 }
 0x530   :  { %7481 = vmatpush3.bf16.msra.mxu0 %v11701_v22 }
 0x531   :  { %7482 = vmatprep.subr.bf16.mxu0 %v12004_v51 }
 0x534   :  { %7483 = vmatpush3.bf16.msra.mxu0 %v11642_v30 }
 0x535   :  { %7484 = vmatprep.subr.bf16.mxu0 %v11965_v63 }
 0x538   :  { %7485 = vmatpush3.bf16.msra.mxu0 %v11594_v17 }
 0x539   :  { %7486 = vmatprep.subr.bf16.mxu0 %v11927_v5 }
 0x53c   :  { %7487 = vmatpush3.bf16.msra.mxu0 %v11557_v4 }
 0x53d   :  { %7780 = vmatprep.subr.bf16.mxu0 %v13673_v25 }
 0x53f   :  { %7197 = vmatmul.mubr.msk.bf16.vlgmr.msra.gmra.mxu0 %vm7196_vm13, %v13606_v56 }
 0x540   :  { %7781 = vmatpush3.bf16.msra.mxu0 %v8216_v26  ;;  %7796 = vmatprep.mubr.msk.bf16.mxu0 %vm8262_vm14, %v13673_v25 }
 0x541   :  { %7782 = vmatprep.subr.bf16.mxu0 %v13673_v25 }
 0x544   :  { %7783 = vmatpush3.bf16.msra.mxu0 %v8217_v10 }
 0x545   :  { %7784 = vmatprep.subr.bf16.mxu0 %v13673_v25 }
 0x548   :  { %7785 = vmatpush3.bf16.msra.mxu0 %v8218_v13 }
 0x549   :  { %7786 = vmatprep.subr.bf16.mxu0 %v13673_v25 }
 0x54c   :  { %7787 = vmatpush3.bf16.msra.mxu0 %v8219_v27  ;;  %v12215_v27 = vadd.s32 12, %v11072_v60 }
 0x54d   :  { %7788 = vmatprep.subr.bf16.mxu0 %v13673_v25 }
 0x54e   :  { %vm6031_vm10 = vcmp.eq.s32.totalorder %v11066_v3, %v12215_v27  ;;  %vm6030_vm15 = vcmp.eq.s32.totalorder %v11045_v35, %v12215_v27  ;;  %vm6032_vm3 = vcmp.eq.s32.totalorder %v12109_v36, %v12215_v27 }
 0x550   :  { %7789 = vmatpush3.bf16.msra.mxu0 %v8220_v44  ;;  %v12218_v44 = vadd.s32 12, %v11076_v54 }
 0x551   :  { %7790 = vmatprep.subr.bf16.mxu0 %v13673_v25 }
 0x552   :  { %vm6035_vm11 = vcmp.eq.s32.totalorder %v11066_v3, %v12218_v44  ;;  %vm6034_vm0 = vcmp.eq.s32.totalorder %v11045_v35, %v12218_v44  ;;  %vm6037_vm4 = vcmp.eq.s32.totalorder %v11699_v6, %v12218_v44  ;;  %vm6036_vm6 = vcmp.eq.s32.totalorder %v12109_v36, %v12218_v44  ;;  %v8241_v44 = vld [vmem:[%s12690_s3 + $0x130] sm:$0xff]  }
 0x553   :  { %vm7278_vm13 = vmpackc.low %vm6035_vm11, %vm6031_vm10 }
 0x554   :  { %7791 = vmatpush3.bf16.msra.mxu0 %v8221_v31  ;;  %vm7280_vm2 = vmpackc.low %vm6034_vm0, %vm6030_vm15 }
 0x555   :  { %7792 = vmatprep.subr.bf16.mxu0 %v13673_v25 }
 0x558   :  { %7793 = vmatpush3.bf16.msra.mxu0 %v8222_v48 }
 0x559   :  { %7794 = vmatprep.subr.bf16.mxu0 %v13673_v25 }
 0x55c   :  { %7795 = vmatpush3.bf16.msra.mxu0 %v8223_v55 }
 0x55d   :  { %7534 = vmatprep.subr.bf16.mxu0 %v12093_v34 }
 0x55f   :  { %v7422_v16 = vpop.f32.mrf.mxu1 }
 0x561   :  { %v7423_v32 = vpop.f32.mrf.mxu1 }
 0x562   :  { %v7424_v19 = vadd.f32 %v7423_v32, %v7422_v16 }
 0x563   :  { %v7425_v24 = vpop.f32.mrf.mxu1 }
 0x565   :  { %v7426_v29 = vpop.f32.mrf.mxu1 }
 0x566   :  { %v7427_v12 = vadd.f32 %v7426_v29, %v7425_v24  ;;  %v13749_v24 = vld [vmem:[#allocation263_spill] sm:$0xff]  ;;  %v13752_v29 = vld [vmem:[#allocation262_spill] sm:$0xff] }
 0x57f   :  { %v7466_v7 = vpop.f32.mrf.mxu1 }
 0x581   :  { %v7467_v57 = vpop.f32.mrf.mxu1 }
 0x582   :  { %v7468_v10 = vadd.f32 %v7467_v57, %v7466_v7  ;;  %v8231_v7 = vld [vmem:[%s12690_s3 + $0xe0] sm:$0xff]   ;;  %v8232_v57 = vld [vmem:[%s12690_s3 + $0x98] sm:$0xff]  }
 0x583   :  { %v7469_v37 = vpop.f32.mrf.mxu1 }
 0x585   :  { %v7470_v42 = vpop.f32.mrf.mxu1 }
 0x586   :  { %v7471_v31 = vadd.f32 %v7470_v42, %v7469_v37  ;;  %v8234_v37 = vld [vmem:[%s12690_s3 + $0x90] sm:$0xff]   ;;  %v8237_v42 = vld [vmem:[%s12690_s3 + $0xc8] sm:$0xff]  }
 0x5df   :  { %v7444_v40 = vpop.f32.mrf.mxu0 }
 0x5e1   :  { %v7445_v58 = vpop.f32.mrf.mxu0 }
 0x5e2   :  { %v7446_v41 = vadd.f32 %v7445_v58, %v7444_v40  ;;  %v13748_v40 = vld [vmem:[#allocation16_spill] sm:$0xff]  ;;  %v13750_v58 = vld [vmem:[#allocation35_spill] sm:$0xff] }
 0x5e3   :  { %v7447_v47 = vpop.f32.mrf.mxu0 }
 0x5e4   :  { %v5476_v45 = vadd.f32 %v7446_v41, %v7424_v19  ;;  %v13753_v19 = vld [vmem:[#allocation39_spill] sm:$0xff]  ;;  %v13754_v41 = vld [vmem:[#allocation13_spill] sm:$0xff] }
 0x5e5   :  { %v7448_v38 = vpop.f32.mrf.mxu0 }
 0x5e6   :  { %v7449_v21 = vadd.f32 %v7448_v38, %v7447_v47  ;;  %v13751_v47 = vld [vmem:[#allocation15_spill] sm:$0xff]  ;;  %v8224_v38 = vld [vmem:[%s12690_s3 + $0xb8] sm:$0xff]  }
 0x5e8   :  { %v5479_v43 = vadd.f32 %v7449_v21, %v7427_v12  ;;  %v8225_v12 = vld [vmem:[%s12690_s3 + $0xf8] sm:$0xff]   ;;  %v8226_v21 = vld [vmem:[%s12690_s3 + $0xb0] sm:$0xff]  }
 0x5ea   :  { %v5482_v50 = vpack.c.bf16 %v5479_v43, %v5476_v45  ;;  %v8227_v45 = vld [vmem:[%s12690_s3 + $0xf0] sm:$0xff]   ;;  %v8229_v43 = vld [vmem:[%s12690_s3 + $0xe8] sm:$0xff]  }
 0x5ec   :  { %7797 = vmatmul.mubr.bf16.vlgmr.msra.gmra.mxu0 %v5482_v50  ;;  %v8230_v50 = vld [vmem:[%s12690_s3 + $0xa0] sm:$0xff]  }
 0x5ed   :  { %7535 = vmatpush3.bf16.msra.mxu0 %v11883_v2  ;;  %7243 = vmatprep.mubr.msk.bf16.mxu0 %vm7242_vm5, %v13606_v56 }
 0x5ee   :  { %7536 = vmatprep.subr.bf16.mxu0 %v12089_v8 }
 0x5f1   :  { %7537 = vmatpush3.bf16.msra.mxu0 %v11833_v0 }
 0x5f2   :  { %7538 = vmatprep.subr.bf16.mxu0 %v12080_v33 }
 0x5f5   :  { %7539 = vmatpush3.bf16.msra.mxu0 %v11796_v11 }
 0x5f6   :  { %7540 = vmatprep.subr.bf16.mxu0 %v12062_v9 }
 0x5f9   :  { %7541 = vmatpush3.bf16.msra.mxu0 %v11754_v46 }
 0x5fa   :  { %7542 = vmatprep.subr.bf16.mxu0 %v12036_v62 }
 0x5fd   :  { %7543 = vmatpush3.bf16.msra.mxu0 %v11701_v22 }
 0x5fe   :  { %7544 = vmatprep.subr.bf16.mxu0 %v12004_v51 }
 0x5ff   :  { %v7488_v1 = vpop.f32.mrf.mxu0 }
 0x601   :  { %7545 = vmatpush3.bf16.msra.mxu0 %v11642_v30  ;;  %v7489_v52 = vpop.f32.mrf.mxu0 }
 0x602   :  { %7546 = vmatprep.subr.bf16.mxu0 %v11965_v63  ;;  %v7490_v26 = vadd.f32 %v7489_v52, %v7488_v1  ;;  %v8233_v1 = vld [vmem:[%s12690_s3 + $0xd8] sm:$0xff]   ;;  %v8235_v52 = vld [vmem:[%s12690_s3 + $0xd0] sm:$0xff]  }
 0x603   :  { %v7491_v53 = vpop.f32.mrf.mxu0 }
 0x604   :  { %v5605_v55 = vadd.f32 %v7490_v26, %v7468_v10  ;;  %v8238_v26 = vld [vmem:[%s12690_s3 + $0x80] sm:$0xff]  }
 0x605   :  { %7547 = vmatpush3.bf16.msra.mxu0 %v11594_v17  ;;  %v7492_v13 = vpop.f32.mrf.mxu0  ;;  %v8239_v10 = vld [vmem:[%s12690_s3 + $0xc0] sm:$0xff]  }
 0x606   :  { %v7493_v48 = vadd.f32 %v7492_v13, %v7491_v53  ;;  %7548 = vmatprep.subr.bf16.mxu0 %v11927_v5  ;;  %v8236_v53 = vld [vmem:[%s12690_s3 + $0x88] sm:$0xff]  }
 0x608   :  { %v5608_v16 = vadd.f32 %v7493_v48, %v7471_v31 }
 0x609   :  { %7549 = vmatpush3.bf16.msra.mxu0 %v11557_v4 }
 0x60a   :  { %v5611_v32 = vpack.c.bf16 %v5608_v16, %v5605_v55  ;;  %7565 = vmatprep.subr.bf16.mxu0 %v11512_v20 }
 0x60c   :  { %7777 = vmatmul.mubr.bf16.vlgmr.msra.gmra.mxu1 %v5611_v32  ;;  %7245 = vmatmul.mubr.msk.bf16.vlgmr.msra.gmra.mxu0 %vm7244_vm9, %v13606_v56  ;;  %vm7284_vm9 = vmpackc.low %vm6036_vm6, %vm6032_vm3 }
 0x60d   :  { %7513 = vmatpush3.bf16.msra.mxu1 %v11216_v23  ;;  %7566 = vmatpush3.bf16.msra.mxu0 %v11216_v23 }
 0x60e   :  { %7514 = vmatprep.subr.bf16.mxu1 %v11479_v49  ;;  %7567 = vmatprep.subr.bf16.mxu0 %v11479_v49 }
 0x60f   :  { %7239 = vmatprep.mubr.msk.bf16.mxu1 %vm7238_vm12, %v13606_v56  ;;  %7279 = vmatprep.mubr.msk.bf16.mxu0 %vm7278_vm13, %v13606_v56 }
 0x611   :  { %7515 = vmatpush3.bf16.msra.mxu1 %v13746_v14  ;;  %7568 = vmatpush3.bf16.msra.mxu0 %v13746_v14 }
 0x612   :  { %7516 = vmatprep.subr.bf16.mxu1 %v13747_v61  ;;  %7569 = vmatprep.subr.bf16.mxu0 %v13747_v61 }
 0x615   :  { %7517 = vmatpush3.bf16.msra.mxu1 %v11141_v39  ;;  %7570 = vmatpush3.bf16.msra.mxu0 %v11141_v39 }
 0x616   :  { %7518 = vmatprep.subr.bf16.mxu1 %v13748_v40  ;;  %7571 = vmatprep.subr.bf16.mxu0 %v13748_v40 }
 0x619   :  { %7519 = vmatpush3.bf16.msra.mxu1 %v11091_v15  ;;  %7572 = vmatpush3.bf16.msra.mxu0 %v11091_v15 }
 0x61a   :  { %7520 = vmatprep.subr.bf16.mxu1 %v11366_v18  ;;  %7573 = vmatprep.subr.bf16.mxu0 %v11366_v18 }
 0x61d   :  { %7521 = vmatpush3.bf16.msra.mxu1 %v11054_v59  ;;  %7574 = vmatpush3.bf16.msra.mxu0 %v11054_v59 }
 0x61e   :  { %7522 = vmatprep.subr.bf16.mxu1 %v13749_v24  ;;  %7575 = vmatprep.subr.bf16.mxu0 %v13749_v24 }
 0x621   :  { %7523 = vmatpush3.bf16.msra.mxu1 %v13750_v58  ;;  %7576 = vmatpush3.bf16.msra.mxu0 %v13750_v58 }
 0x622   :  { %7524 = vmatprep.subr.bf16.mxu1 %v13751_v47  ;;  %7577 = vmatprep.subr.bf16.mxu0 %v13751_v47 }
 0x625   :  { %7525 = vmatpush3.bf16.msra.mxu1 %v13752_v29  ;;  %7578 = vmatpush3.bf16.msra.mxu0 %v13752_v29 }
 0x626   :  { %7526 = vmatprep.subr.bf16.mxu1 %v13753_v19  ;;  %7579 = vmatprep.subr.bf16.mxu0 %v13753_v19 }
 0x629   :  { %7527 = vmatpush3.bf16.msra.mxu1 %v13754_v41  ;;  %7580 = vmatpush3.bf16.msra.mxu0 %v13754_v41 }
 0x62a   :  { %7800 = vmatprep.subr.bf16.mxu1 %v13673_v25  ;;  %7820 = vmatprep.subr.bf16.mxu0 %v13673_v25 }
 0x62c   :  { %7241 = vmatmul.mubr.msk.bf16.vlgmr.msra.gmra.mxu1 %vm12192_vm1, %v13606_v56  ;;  %7281 = vmatmul.mubr.msk.bf16.vlgmr.msra.gmra.mxu0 %vm7280_vm2, %v13606_v56  ;;  %vm6033_vm1 = vcmp.eq.s32.totalorder %v11699_v6, %v12215_v27  ;;  %v8240_v27 = vld [vmem:[%s12690_s3 + $0x138] sm:$0xff]  }
 0x62d   :  { %7801 = vmatpush3.bf16.msra.mxu1 %v8224_v38  ;;  %7821 = vmatpush3.bf16.msra.mxu0 %v8225_v12  ;;  %vm7282_vm5 = vmpackc.low %vm6037_vm4, %vm6033_vm1 }
 0x62e   :  { %7802 = vmatprep.subr.bf16.mxu1 %v13673_v25  ;;  %7822 = vmatprep.subr.bf16.mxu0 %v13673_v25 }
 0x62f   :  { %7816 = vmatprep.mubr.msk.bf16.mxu1 %vm8262_vm14, %v13673_v25  ;;  %7836 = vmatprep.mubr.msk.bf16.mxu0 %vm8262_vm14, %v13673_v25 }
 0x631   :  { %7803 = vmatpush3.bf16.msra.mxu1 %v8226_v21  ;;  %7823 = vmatpush3.bf16.msra.mxu0 %v8227_v45 }
 0x632   :  { %7804 = vmatprep.subr.bf16.mxu1 %v13673_v25  ;;  %7824 = vmatprep.subr.bf16.mxu0 %v13673_v25 }
 0x635   :  { %7805 = vmatpush3.bf16.msra.mxu1 %v8228_v28  ;;  %7825 = vmatpush3.bf16.msra.mxu0 %v8229_v43 }
 0x636   :  { %7806 = vmatprep.subr.bf16.mxu1 %v13673_v25  ;;  %7826 = vmatprep.subr.bf16.mxu0 %v13673_v25 }
 0x639   :  { %7807 = vmatpush3.bf16.msra.mxu1 %v8230_v50  ;;  %7827 = vmatpush3.bf16.msra.mxu0 %v8231_v7 }
 0x63a   :  { %7808 = vmatprep.subr.bf16.mxu1 %v13673_v25  ;;  %7828 = vmatprep.subr.bf16.mxu0 %v13673_v25 }
 0x63d   :  { %7809 = vmatpush3.bf16.msra.mxu1 %v8232_v57  ;;  %7829 = vmatpush3.bf16.msra.mxu0 %v8233_v1 }
 0x63e   :  { %7810 = vmatprep.subr.bf16.mxu1 %v13673_v25  ;;  %7830 = vmatprep.subr.bf16.mxu0 %v13673_v25 }
 0x641   :  { %7811 = vmatpush3.bf16.msra.mxu1 %v8234_v37  ;;  %7831 = vmatpush3.bf16.msra.mxu0 %v8235_v52 }
 0x642   :  { %7812 = vmatprep.subr.bf16.mxu1 %v13673_v25  ;;  %7832 = vmatprep.subr.bf16.mxu0 %v13673_v25 }
 0x645   :  { %7813 = vmatpush3.bf16.msra.mxu1 %v8236_v53  ;;  %7833 = vmatpush3.bf16.msra.mxu0 %v8237_v42 }
 0x646   :  { %7814 = vmatprep.subr.bf16.mxu1 %v13673_v25  ;;  %7834 = vmatprep.subr.bf16.mxu0 %v13673_v25 }
 0x649   :  { %7815 = vmatpush3.bf16.msra.mxu1 %v8238_v26  ;;  %7835 = vmatpush3.bf16.msra.mxu0 %v8239_v10 }
 0x64a   :  { %7587 = vmatprep.subr.bf16.mxu1 %v12093_v34  ;;  %7640 = vmatprep.subr.bf16.mxu0 %v12093_v34 }
 0x6ac   :  { %v5800_v13 = vpop.f32.mrf.mxu0 }
 0x6ae   :  { %v7798_v31 = vpop.f32.mrf.mxu0 }
 0x6b0   :  { %v5803_v48 = vpop.f32.mrf.mxu0 }
 0x6b2   :  { %v7799_v55 = vpop.f32.mrf.mxu0 }
 0x6b3   :  { %v12368_v55 = vadd.s32 16, %v11072_v60 }
 0x6b5   :  { %vm6252_vm7 = vcmp.eq.s32.totalorder %v11066_v3, %v12368_v55  ;;  %vm6251_vm11 = vcmp.eq.s32.totalorder %v11045_v35, %v12368_v55  ;;  %vm6254_vm15 = vcmp.eq.s32.totalorder %v11699_v6, %v12368_v55  ;;  %vm6253_vm1 = vcmp.eq.s32.totalorder %v12109_v36, %v12368_v55 }
 0x6cc   :  { %v5711_v16 = vpop.f32.mrf.mxu1  ;;  %v7550_v28 = vpop.f32.mrf.mxu0 }
 0x6cd   :  { %v12346_v32 = vadd.f32 %v5800_v13, %v5711_v16  ;;  %v12371_v16 = vadd.s32 16, %v11076_v54 }
 0x6ce   :  { %v7778_v38 = vpop.f32.mrf.mxu1  ;;  %v7551_v43 = vpop.f32.mrf.mxu0 }
 0x6cf   :  { %v7552_v42 = vadd.f32 %v7551_v43, %v7550_v28  ;;  %vm6256_vm8 = vcmp.eq.s32.totalorder %v11066_v3, %v12371_v16  ;;  %vm6255_vm12 = vcmp.eq.s32.totalorder %v11045_v35, %v12371_v16  ;;  %v8242_v38 = vld [vmem:[%s12690_s3 + $0x128] sm:$0xff]   ;;  %v8245_v28 = vld [vmem:[%s12690_s3 + $0x110] sm:$0xff]   ;;  %vm6258_vm0 = vcmp.eq.s32.totalorder %v11699_v6, %v12371_v16 }
 0x6d0   :  { %v5714_v12 = vpop.f32.mrf.mxu1  ;;  %v7553_v7 = vpop.f32.mrf.mxu0  ;;  %vm7318_vm10 = vmpackc.low %vm6256_vm8, %vm6252_vm7  ;;  %v8246_v43 = vld [vmem:[%s12690_s3 + $0x108] sm:$0xff]   ;;  %vm6257_vm4 = vcmp.eq.s32.totalorder %v12109_v36, %v12371_v16 }
 0x6d1   :  { %v12348_v21 = vadd.f32 %v5803_v48, %v5714_v12  ;;  %vm7320_vm13 = vmpackc.low %vm6255_vm12, %vm6251_vm11  ;;  %v8243_v12 = vld [vmem:[%s12690_s3 + $0x120] sm:$0xff]  }
 0x6d2   :  { %v7779_v45 = vpop.f32.mrf.mxu1  ;;  %v7554_v37 = vpop.f32.mrf.mxu0  ;;  %vm7322_vm2 = vmpackc.low %vm6258_vm0, %vm6254_vm15 }
 0x6d3   :  { %v7555_v10 = vadd.f32 %v7554_v37, %v7553_v7  ;;  %v8244_v45 = vld [vmem:[%s12690_s3 + $0x118] sm:$0xff]  }
 0x6ec   :  { %v7528_v50 = vpop.f32.mrf.mxu1 }
 0x6ee   :  { %v7529_v57 = vpop.f32.mrf.mxu1 }
 0x6ef   :  { %v7530_v52 = vadd.f32 %v7529_v57, %v7528_v50  ;;  %v8247_v50 = vld [vmem:[%s12690_s3 + $0x100] sm:$0xff]  }
 0x6f0   :  { %v7531_v1 = vpop.f32.mrf.mxu1 }
 0x6f1   :  { %v5913_v13 = vadd.f32 %v7552_v42, %v7530_v52  ;;  %v7581_v42 = vpop.f32.mrf.mxu0 }
 0x6f2   :  { %v7532_v53 = vpop.f32.mrf.mxu1 }
 0x6f3   :  { %v7533_v26 = vadd.f32 %v7532_v53, %v7531_v1 }
 0x6f5   :  { %v5916_v31 = vadd.f32 %v7555_v10, %v7533_v26  ;;  %v7582_v26 = vpop.f32.mrf.mxu0 }
 0x6f7   :  { %v5919_v48 = vpack.c.bf16 %v5916_v31, %v5913_v13  ;;  %v7584_v13 = vpop.f32.mrf.mxu0 }
 0x6f9   :  { %7817 = vmatmul.mubr.bf16.vlgmr.msra.gmra.mxu1 %v5919_v48 }
 0x6fa   :  { %7588 = vmatpush3.bf16.msra.mxu1 %v11883_v2  ;;  %7283 = vmatprep.mubr.msk.bf16.mxu1 %vm7282_vm5, %v13606_v56  ;;  %vm7324_vm5 = vmpackc.low %vm6257_vm4, %vm6253_vm1 }
 0x6fb   :  { %7589 = vmatprep.subr.bf16.mxu1 %v12089_v8 }
 0x6fe   :  { %7590 = vmatpush3.bf16.msra.mxu1 %v11833_v0 }
 0x6ff   :  { %7591 = vmatprep.subr.bf16.mxu1 %v12080_v33 }
 0x702   :  { %7592 = vmatpush3.bf16.msra.mxu1 %v11796_v11 }
 0x703   :  { %7593 = vmatprep.subr.bf16.mxu1 %v12062_v9 }
 0x706   :  { %7594 = vmatpush3.bf16.msra.mxu1 %v11754_v46 }
 0x707   :  { %7595 = vmatprep.subr.bf16.mxu1 %v12036_v62 }
 0x70a   :  { %7596 = vmatpush3.bf16.msra.mxu1 %v11701_v22 }
 0x70b   :  { %7597 = vmatprep.subr.bf16.mxu1 %v12004_v51 }
 0x70e   :  { %7598 = vmatpush3.bf16.msra.mxu1 %v11642_v30 }
 0x70f   :  { %7599 = vmatprep.subr.bf16.mxu1 %v11965_v63 }
 0x712   :  { %7600 = vmatpush3.bf16.msra.mxu1 %v11594_v17 }
 0x713   :  { %7601 = vmatprep.subr.bf16.mxu1 %v11927_v5 }
 0x716   :  { %7602 = vmatpush3.bf16.msra.mxu1 %v11557_v4 }
 0x717   :  { %7618 = vmatprep.subr.bf16.mxu1 %v11512_v20 }
 0x719   :  { %7285 = vmatmul.mubr.msk.bf16.vlgmr.msra.gmra.mxu1 %vm7284_vm9, %v13606_v56 }
 0x71a   :  { %7619 = vmatpush3.bf16.msra.mxu1 %v11216_v23  ;;  %7319 = vmatprep.mubr.msk.bf16.mxu1 %vm7318_vm10, %v13606_v56 }
 0x71b   :  { %7620 = vmatprep.subr.bf16.mxu1 %v11479_v49 }
 0x71e   :  { %7621 = vmatpush3.bf16.msra.mxu1 %v13746_v14 }
 0x71f   :  { %7622 = vmatprep.subr.bf16.mxu1 %v13747_v61 }
 0x722   :  { %7623 = vmatpush3.bf16.msra.mxu1 %v11141_v39 }
 0x723   :  { %7624 = vmatprep.subr.bf16.mxu1 %v13748_v40 }
 0x726   :  { %7625 = vmatpush3.bf16.msra.mxu1 %v11091_v15 }
 0x727   :  { %7626 = vmatprep.subr.bf16.mxu1 %v11366_v18 }
 0x72a   :  { %7627 = vmatpush3.bf16.msra.mxu1 %v11054_v59 }
 0x72b   :  { %7628 = vmatprep.subr.bf16.mxu1 %v13749_v24 }
 0x72e   :  { %7629 = vmatpush3.bf16.msra.mxu1 %v13750_v58 }
 0x72f   :  { %7630 = vmatprep.subr.bf16.mxu1 %v13751_v47 }
 0x732   :  { %7631 = vmatpush3.bf16.msra.mxu1 %v13752_v29 }
 0x733   :  { %7632 = vmatprep.subr.bf16.mxu1 %v13753_v19 }
 0x736   :  { %7633 = vmatpush3.bf16.msra.mxu1 %v13754_v41 }
 0x737   :  { %7840 = vmatprep.subr.bf16.mxu1 %v13673_v25 }
 0x739   :  { %7321 = vmatmul.mubr.msk.bf16.vlgmr.msra.gmra.mxu1 %vm7320_vm13, %v13606_v56 }
 0x73a   :  { %7841 = vmatpush3.bf16.msra.mxu1 %v8240_v27  ;;  %7856 = vmatprep.mubr.msk.bf16.mxu1 %vm8262_vm14, %v13673_v25  ;;  %v7585_v27 = vpop.f32.mrf.mxu0 }
 0x73b   :  { %7842 = vmatprep.subr.bf16.mxu1 %v13673_v25 }
 0x73e   :  { %7843 = vmatpush3.bf16.msra.mxu1 %v8241_v44 }
 0x73f   :  { %7844 = vmatprep.subr.bf16.mxu1 %v13673_v25 }
 0x742   :  { %7845 = vmatpush3.bf16.msra.mxu1 %v8242_v38 }
 0x743   :  { %7846 = vmatprep.subr.bf16.mxu1 %v13673_v25 }
 0x746   :  { %7847 = vmatpush3.bf16.msra.mxu1 %v8243_v12  ;;  %v7586_v12 = vadd.f32 %v7585_v27, %v7584_v13 }
 0x747   :  { %7848 = vmatprep.subr.bf16.mxu1 %v13673_v25 }
 0x74a   :  { %7849 = vmatpush3.bf16.msra.mxu1 %v8244_v45 }
 0x74b   :  { %7850 = vmatprep.subr.bf16.mxu1 %v13673_v25 }
 0x74e   :  { %7851 = vmatpush3.bf16.msra.mxu1 %v8245_v28 }
 0x74f   :  { %7852 = vmatprep.subr.bf16.mxu1 %v13673_v25 }
 0x752   :  { %7853 = vmatpush3.bf16.msra.mxu1 %v8246_v43 }
 0x753   :  { %7854 = vmatprep.subr.bf16.mxu1 %v13673_v25 }
 0x756   :  { %7855 = vmatpush3.bf16.msra.mxu1 %v8247_v50  ;;  %v6705_v50 = vld [vmem:[%s12691_s4 + $0x30] sm:$0xff] }
 0x757   :  { %7693 = vmatprep.subr.bf16.mxu1 %v12093_v34  ;;  %v7583_v34 = vadd.f32 %v7582_v26, %v7581_v42 }
 0x7b9   :  { %v6019_v7 = vpop.f32.mrf.mxu1 }
 0x7ba   :  { %v12443_v57 = vadd.f32 %v6019_v7, %v12346_v32  ;;  %v6704_v7 = vld [vmem:[%s12691_s4 + $0x28] sm:$0xff] }
 0x7bb   :  { %v7818_v1 = vpop.f32.mrf.mxu1 }
 0x7bd   :  { %v6022_v37 = vpop.f32.mrf.mxu1 }
 0x7be   :  { %v12446_v52 = vadd.f32 %v6022_v37, %v12348_v21 }
 0x7bf   :  { %v7819_v53 = vpop.f32.mrf.mxu1 }
 0x7d9   :  { %v7603_v10 = vpop.f32.mrf.mxu1 }
 0x7db   :  { %v7604_v31 = vpop.f32.mrf.mxu1 }
 0x7dc   :  { %v7605_v44 = vadd.f32 %v7604_v31, %v7603_v10 }
 0x7dd   :  { %v7606_v48 = vpop.f32.mrf.mxu1 }
 0x7de   :  { %v6134_v32 = vadd.f32 %v7605_v44, %v7583_v34 }
 0x7df   :  { %v7607_v38 = vpop.f32.mrf.mxu1 }
 0x7e0   :  { %v7608_v45 = vadd.f32 %v7607_v38, %v7606_v48 }
 0x7e2   :  { %v6137_v21 = vadd.f32 %v7608_v45, %v7586_v12 }
 0x7e4   :  { %v6140_v28 = vpack.c.bf16 %v6137_v21, %v6134_v32 }
 0x7e6   :  { %7837 = vmatmul.mubr.bf16.vlgmr.msra.gmra.mxu0 %v6140_v28 }
 0x7e7   :  { %7641 = vmatpush3.bf16.msra.mxu0 %v11883_v2  ;;  %7323 = vmatprep.mubr.msk.bf16.mxu0 %vm7322_vm2, %v13606_v56 }
 0x7e8   :  { %7642 = vmatprep.subr.bf16.mxu0 %v12089_v8 }
 0x7eb   :  { %7643 = vmatpush3.bf16.msra.mxu0 %v11833_v0 }
 0x7ec   :  { %7644 = vmatprep.subr.bf16.mxu0 %v12080_v33 }
 0x7ef   :  { %7645 = vmatpush3.bf16.msra.mxu0 %v11796_v11 }
 0x7f0   :  { %7646 = vmatprep.subr.bf16.mxu0 %v12062_v9 }
 0x7f3   :  { %7647 = vmatpush3.bf16.msra.mxu0 %v11754_v46 }
 0x7f4   :  { %7648 = vmatprep.subr.bf16.mxu0 %v12036_v62 }
 0x7f7   :  { %7649 = vmatpush3.bf16.msra.mxu0 %v11701_v22 }
 0x7f8   :  { %7650 = vmatprep.subr.bf16.mxu0 %v12004_v51 }
 0x7fb   :  { %7651 = vmatpush3.bf16.msra.mxu0 %v11642_v30 }
 0x7fc   :  { %7652 = vmatprep.subr.bf16.mxu0 %v11965_v63 }
 0x7ff   :  { %7653 = vmatpush3.bf16.msra.mxu0 %v11594_v17 }
 0x800   :  { %7654 = vmatprep.subr.bf16.mxu0 %v11927_v5 }
 0x803   :  { %7655 = vmatpush3.bf16.msra.mxu0 %v11557_v4 }
 0x804   :  { %7671 = vmatprep.subr.bf16.mxu0 %v11512_v20  ;;  %v7634_v20 = vpop.f32.mrf.mxu1 }
 0x806   :  { %7325 = vmatmul.mubr.msk.bf16.vlgmr.msra.gmra.mxu0 %vm7324_vm5, %v13606_v56 }
 0x807   :  { %7672 = vmatpush3.bf16.msra.mxu0 %v11216_v23 }
 0x808   :  { %7673 = vmatprep.subr.bf16.mxu0 %v11479_v49 }
 0x80b   :  { %7674 = vmatpush3.bf16.msra.mxu0 %v13746_v14 }
 0x80c   :  { %7675 = vmatprep.subr.bf16.mxu0 %v13747_v61 }
 0x80f   :  { %7676 = vmatpush3.bf16.msra.mxu0 %v11141_v39  ;;  %v6471_v39 = vadd.s32 20, %v11076_v54 }
 0x810   :  { %7677 = vmatprep.subr.bf16.mxu0 %v13748_v40 }
 0x811   :  { %vm6477_vm6 = vcmp.eq.s32.totalorder %v11066_v3, %v6471_v39  ;;  %vm6476_vm9 = vcmp.eq.s32.totalorder %v11045_v35, %v6471_v39  ;;  %vm6479_vm12 = vcmp.eq.s32.totalorder %v11699_v6, %v6471_v39  ;;  %vm6478_vm15 = vcmp.eq.s32.totalorder %v12109_v36, %v6471_v39  ;;  %v6703_v39 = vld [vmem:[%s12691_s4 + $0x20] sm:$0xff] }
 0x813   :  { %7678 = vmatpush3.bf16.msra.mxu0 %v11091_v15  ;;  %v6470_v15 = vadd.s32 20, %v11072_v60 }
 0x814   :  { %7679 = vmatprep.subr.bf16.mxu0 %v11366_v18 }
 0x815   :  { %vm6473_vm3 = vcmp.eq.s32.totalorder %v11066_v3, %v6470_v15  ;;  %vm6472_vm8 = vcmp.eq.s32.totalorder %v11045_v35, %v6470_v15  ;;  %vm6475_vm11 = vcmp.eq.s32.totalorder %v11699_v6, %v6470_v15  ;;  %vm6474_vm13 = vcmp.eq.s32.totalorder %v12109_v36, %v6470_v15  ;;  %v7635_v6 = vpop.f32.mrf.mxu1  ;;  %v6701_v35 = vld [vmem:[%s12691_s4 + $0x10] sm:$0xff] }
 0x816   :  { %vm7358_vm7 = vmpackc.low %vm6477_vm6, %vm6473_vm3 }
 0x817   :  { %7680 = vmatpush3.bf16.msra.mxu0 %v11054_v59  ;;  %7359 = vmatprep.mubr.msk.bf16.mxu0 %vm7358_vm7, %v13606_v56  ;;  %vm7360_vm10 = vmpackc.low %vm6476_vm9, %vm6472_vm8  ;;  %v7637_v14 = vpop.f32.mrf.mxu1  ;;  %v6702_v59 = vld [vmem:[%s12691_s4 + $0x18] sm:$0xff] }
 0x818   :  { %7681 = vmatprep.subr.bf16.mxu0 %v13749_v24  ;;  %vm12504_vm0 = vmpackc.low %vm6479_vm12, %vm6475_vm11 }
 0x819   :  { %vm12508_vm2 = vmpackc.low %vm6478_vm15, %vm6474_vm13  ;;  %v7638_v24 = vpop.f32.mrf.mxu1 }
 0x81b   :  { %7682 = vmatpush3.bf16.msra.mxu0 %v13750_v58 }
 0x81c   :  { %7683 = vmatprep.subr.bf16.mxu0 %v13751_v47 }
 0x81f   :  { %7684 = vmatpush3.bf16.msra.mxu0 %v13752_v29  ;;  %v7636_v29 = vadd.f32 %v7635_v6, %v7634_v20  ;;  %v7401_v20 = vld [vmem:[%s12691_s4 + $0xd8] sm:$0xff]  ;;  %v7400_v6 = vld [vmem:[%s12691_s4 + $0xd0] sm:$0xff] }
 0x820   :  { %7685 = vmatprep.subr.bf16.mxu0 %v13753_v19  ;;  %v7639_v19 = vadd.f32 %v7638_v24, %v7637_v14  ;;  %v7398_v14 = vld [vmem:[%s12691_s4 + $0xc0] sm:$0xff]  ;;  %v7395_v24 = vld [vmem:[%s12691_s4 + $0xa8] sm:$0xff] }
 0x823   :  { %7686 = vmatpush3.bf16.msra.mxu0 %v13754_v41 }
 0x824   :  { %7860 = vmatprep.subr.bf16.mxu0 %v13673_v25 }
 0x826   :  { %7361 = vmatmul.mubr.msk.bf16.vlgmr.msra.gmra.mxu0 %vm7360_vm10, %v13606_v56 }
 0x827   :  { %7876 = vmatprep.mubr.msk.bf16.mxu0 %vm8262_vm14, %v13673_v25 }
 0x8a6   :  { %v6240_v3 = vpop.f32.mrf.mxu0 }
 0x8a7   :  { %v12513_v60 = vadd.f32 %v6240_v3, %v12443_v57  ;;  %v6700_v3 = vld [vmem:[%s12691_s4 + $0x8] sm:$0xff] }
 0x8a8   :  { %v7838_v54 = vpop.f32.mrf.mxu0 }
 0x8a9   :  { %v7405_v54 = vld [vmem:[%s12691_s4 + $0xf8] sm:$0xff] }
 0x8aa   :  { %v6243_v23 = vpop.f32.mrf.mxu0 }
 0x8ab   :  { %v12516_v18 = vadd.f32 %v6243_v23, %v12446_v52  ;;  %v7404_v23 = vld [vmem:[%s12691_s4 + $0xf0] sm:$0xff] }
 0x8ac   :  { %v7839_v49 = vpop.f32.mrf.mxu0 }
 0x8ad   :  { %v7402_v49 = vld [vmem:[%s12691_s4 + $0xe0] sm:$0xff] }
 0x8c6   :  { %v7656_v36 = vpop.f32.mrf.mxu0 }
 0x8c8   :  { %v7657_v61 = vpop.f32.mrf.mxu0 }
 0x8c9   :  { %v7658_v58 = vadd.f32 %v7657_v61, %v7656_v36  ;;  %v7399_v36 = vld [vmem:[%s12691_s4 + $0xc8] sm:$0xff]  ;;  %v7397_v61 = vld [vmem:[%s12691_s4 + $0xb8] sm:$0xff] }
 0x8ca   :  { %v7659_v40 = vpop.f32.mrf.mxu0 }
 0x8cb   :  { %v6355_v55 = vadd.f32 %v7658_v58, %v7636_v29  ;;  %v7394_v58 = vld [vmem:[%s12691_s4 + $0xa0] sm:$0xff] }
 0x8cc   :  { %v7660_v47 = vpop.f32.mrf.mxu0 }
 0x8cd   :  { %v7661_v41 = vadd.f32 %v7660_v47, %v7659_v40  ;;  %v7396_v40 = vld [vmem:[%s12691_s4 + $0xb0] sm:$0xff]  ;;  %v13759_v47 = vld [vmem:[#allocation2_spill] sm:$0xff] }
 0x8ce   :  { %v6693_v29 = vsub.s32 2, %v13759_v47 }
 0x8cf   :  { %v6358_v16 = vadd.f32 %v7661_v41, %v7639_v19  ;;  %v8258_v19 = vld [vmem:[%s12689_s5] sm:$0xff] }
 0x8d0   :  { %v6694_v41 = vrot.slane %v8258_v19, %v6693_v29 }
 0x8d1   :  { %v6361_v43 = vpack.c.bf16 %v6358_v16, %v6355_v55 }
 0x8d3   :  { %7857 = vmatmul.mubr.bf16.vlgmr.msra.gmra.mxu1 %v6361_v43 }
 0x8d4   :  { %7694 = vmatpush3.bf16.msra.mxu1 %v11883_v2  ;;  %7363 = vmatprep.mubr.msk.bf16.mxu1 %vm12504_vm0, %v13606_v56  ;;  %v6714_v2 = vld [vmem:[%s12691_s4 + $0x78] sm:$0xff] }
 0x8d5   :  { %7695 = vmatprep.subr.bf16.mxu1 %v12089_v8  ;;  %v6706_v8 = vld [vmem:[%s12691_s4 + $0x38] sm:$0xff] }
 0x8d8   :  { %7696 = vmatpush3.bf16.msra.mxu1 %v11833_v0  ;;  %v8255_v0 = vld [vmem:[%s12690_s3 + $0x140] sm:$0xff]  }
 0x8d9   :  { %7697 = vmatprep.subr.bf16.mxu1 %v12080_v33  ;;  %v6707_v33 = vld [vmem:[%s12691_s4 + $0x40] sm:$0xff] }
 0x8dc   :  { %7698 = vmatpush3.bf16.msra.mxu1 %v11796_v11  ;;  %v8254_v11 = vld [vmem:[%s12690_s3 + $0x148] sm:$0xff]  }
 0x8dd   :  { %7699 = vmatprep.subr.bf16.mxu1 %v12062_v9  ;;  %v6708_v9 = vld [vmem:[%s12691_s4 + $0x48] sm:$0xff] }
 0x8e0   :  { %7700 = vmatpush3.bf16.msra.mxu1 %v11754_v46  ;;  %v8253_v46 = vld [vmem:[%s12690_s3 + $0x150] sm:$0xff]  }
 0x8e1   :  { %7701 = vmatprep.subr.bf16.mxu1 %v12036_v62  ;;  %v6709_v62 = vld [vmem:[%s12691_s4 + $0x50] sm:$0xff] }
 0x8e4   :  { %7702 = vmatpush3.bf16.msra.mxu1 %v11701_v22  ;;  %v8248_v22 = vld [vmem:[%s12690_s3 + $0x178] sm:$0xff]  }
 0x8e5   :  { %7703 = vmatprep.subr.bf16.mxu1 %v12004_v51  ;;  %7861 = vmatpush3.bf16.msra.mxu0 %v8248_v22  ;;  %v6710_v51 = vld [vmem:[%s12691_s4 + $0x58] sm:$0xff] }
 0x8e6   :  { %7862 = vmatprep.subr.bf16.mxu0 %v13673_v25  ;;  %v7687_v26 = vpop.f32.mrf.mxu0 }
 0x8e8   :  { %7704 = vmatpush3.bf16.msra.mxu1 %v11642_v30  ;;  %v8249_v30 = vld [vmem:[%s12690_s3 + $0x170] sm:$0xff]   ;;  %v7688_v10 = vpop.f32.mrf.mxu0 }
 0x8e9   :  { %7705 = vmatprep.subr.bf16.mxu1 %v11965_v63  ;;  %7863 = vmatpush3.bf16.msra.mxu0 %v8249_v30  ;;  %v6712_v63 = vld [vmem:[%s12691_s4 + $0x68] sm:$0xff]  ;;  %v7689_v12 = vadd.f32 %v7688_v10, %v7687_v26 }
 0x8ea   :  { %7864 = vmatprep.subr.bf16.mxu0 %v13673_v25  ;;  %v7690_v31 = vpop.f32.mrf.mxu0 }
 0x8ec   :  { %7706 = vmatpush3.bf16.msra.mxu1 %v11594_v17  ;;  %v8251_v17 = vld [vmem:[%s12690_s3 + $0x160] sm:$0xff]   ;;  %v7691_v44 = vpop.f32.mrf.mxu0 }
 0x8ed   :  { %7707 = vmatprep.subr.bf16.mxu1 %v11927_v5  ;;  %v6713_v5 = vld [vmem:[%s12691_s4 + $0x70] sm:$0xff]  ;;  %v7692_v45 = vadd.f32 %v7691_v44, %v7690_v31 }
 0x8f0   :  { %7708 = vmatpush3.bf16.msra.mxu1 %v11557_v4  ;;  %v8250_v4 = vld [vmem:[%s12690_s3 + $0x168] sm:$0xff]  }
 0x8f1   :  { %7865 = vmatpush3.bf16.msra.mxu0 %v8250_v4  ;;  %7880 = vmatprep.subr.mxu1 %v6714_v2 }
 0x8f2   :  { %7866 = vmatprep.subr.bf16.mxu0 %v13673_v25 }
 0x8f3   :  { %7365 = vmatmul.mubr.msk.bf16.vlgmr.msra.gmra.mxu1 %vm12508_vm2, %v13606_v56  ;;  %v8252_v56 = vld [vmem:[%s12690_s3 + $0x158] sm:$0xff]  }
 0x8f4   :  { %7881 = vmatpush3.msra.mxu1 %v6714_v2  ;;  %v7392_v2 = vld [vmem:[%s12691_s4 + $0x90] sm:$0xff] }
 0x8f5   :  { %7867 = vmatpush3.bf16.msra.mxu0 %v8251_v17  ;;  %7882 = vmatprep.subr.mxu1 %v6713_v5 }
 0x8f6   :  { %7868 = vmatprep.subr.bf16.mxu0 %v13673_v25  ;;  %7883 = vmatpush3.msra.mxu1 %v6713_v5  ;;  %v7391_v5 = vld [vmem:[%s12691_s4 + $0x88] sm:$0xff] }
 0x8f7   :  { %7884 = vmatprep.subr.mxu1 %v6712_v63 }
 0x8f8   :  { %7885 = vmatpush3.msra.mxu1 %v6712_v63  ;;  %v7390_v63 = vld [vmem:[%s12691_s4 + $0x80] sm:$0xff] }
 0x8f9   :  { %7869 = vmatpush3.bf16.msra.mxu0 %v8252_v56 }
 0x8fa   :  { %7870 = vmatprep.subr.bf16.mxu0 %v13673_v25 }
 0x8fd   :  { %7871 = vmatpush3.bf16.msra.mxu0 %v8253_v46 }
 0x8fe   :  { %7872 = vmatprep.subr.bf16.mxu0 %v13673_v25 }
 0x901   :  { %7873 = vmatpush3.bf16.msra.mxu0 %v8254_v11 }
 0x902   :  { %7874 = vmatprep.subr.bf16.mxu0 %v13673_v25  ;;  %v6711_v25 = vld [vmem:[%s12691_s4 + $0x60] sm:$0xff] }
 0x903   :  { %7886 = vmatprep.subr.mxu1 %v6711_v25 }
 0x904   :  { %7887 = vmatpush3.msra.mxu1 %v6711_v25  ;;  %v6717_v25 = vsub.s32 3, %v13759_v47 }
 0x905   :  { %7875 = vmatpush3.bf16.msra.mxu0 %v8255_v0  ;;  %7888 = vmatprep.subr.mxu1 %v6710_v51  ;;  %v7393_v0 = vld [vmem:[%s12691_s4 + $0x98] sm:$0xff] }
 0x906   :  { %7889 = vmatpush3.msra.mxu1 %v6710_v51  ;;  %7915 = vmatprep.subr.mxu0 %v7405_v54  ;;  %v6718_v51 = vrot.slane %v8258_v19, %v6717_v25 }
 0x907   :  { %7890 = vmatprep.subr.mxu1 %v6709_v62 }
 0x908   :  { %7891 = vmatpush3.msra.mxu1 %v6709_v62 }
 0x909   :  { %7892 = vmatprep.subr.mxu1 %v6708_v9 }
 0x90a   :  { %7893 = vmatpush3.msra.mxu1 %v6708_v9 }
 0x90b   :  { %7894 = vmatprep.subr.mxu1 %v6707_v33 }
 0x90c   :  { %7895 = vmatpush3.msra.mxu1 %v6707_v33 }
 0x90d   :  { %7896 = vmatprep.subr.mxu1 %v6706_v8 }
 0x90e   :  { %7897 = vmatpush3.msra.mxu1 %v6706_v8 }
 0x90f   :  { %7898 = vmatprep.subr.mxu1 %v6705_v50 }
 0x910   :  { %7899 = vmatpush3.msra.mxu1 %v6705_v50 }
 0x911   :  { %7900 = vmatprep.subr.mxu1 %v6704_v7 }
 0x912   :  { %7901 = vmatpush3.msra.mxu1 %v6704_v7 }
 0x913   :  { %7902 = vmatprep.subr.mxu1 %v6703_v39 }
 0x914   :  { %7903 = vmatpush3.msra.mxu1 %v6703_v39 }
 0x915   :  { %7904 = vmatprep.subr.mxu1 %v6702_v59 }
 0x916   :  { %7905 = vmatpush3.msra.mxu1 %v6702_v59 }
 0x917   :  { %7906 = vmatprep.subr.mxu1 %v6701_v35 }
 0x918   :  { %7907 = vmatpush3.msra.mxu1 %v6701_v35 }
 0x919   :  { %7908 = vmatprep.subr.mxu1 %v6700_v3 }
 0x91a   :  { %7909 = vmatpush3.msra.mxu1 %v6700_v3 }
 0x993   :  { %v6461_v57 = vpop.f32.mrf.mxu1 }
 0x994   :  { %v12604_v1 = vadd.f32 %v6461_v57, %v12513_v60  ;;  %v6699_v60 = vld [vmem:[%s12691_s4] sm:$0xff]  ;;  %v6815_v57 = vsub.s32 4, %v13759_v47 }
 0x995   :  { %v7858_v37 = vpop.f32.mrf.mxu1  ;;  %7910 = vmatprep.subr.mxu1 %v6699_v60 }
 0x996   :  { %7911 = vmatpush3.msra.mxu1 %v6699_v60 }
 0x997   :  { %v6464_v52 = vpop.f32.mrf.mxu1 }
 0x998   :  { %v12607_v53 = vadd.f32 %v6464_v52, %v12516_v18  ;;  %v7403_v18 = vld [vmem:[%s12691_s4 + $0xe8] sm:$0xff] }
 0x999   :  { %v7859_v42 = vpop.f32.mrf.mxu1 }
 0x9b3   :  { %v7709_v13 = vpop.f32.mrf.mxu1 }
 0x9b5   :  { %v7710_v48 = vpop.f32.mrf.mxu1 }
 0x9b6   :  { %v7711_v38 = vadd.f32 %v7710_v48, %v7709_v13 }
 0x9b7   :  { %v7712_v27 = vpop.f32.mrf.mxu1 }
 0x9b8   :  { %v6576_v21 = vadd.f32 %v7711_v38, %v7689_v12 }
 0x9b9   :  { %v7713_v34 = vpop.f32.mrf.mxu1 }
 0x9ba   :  { %v7714_v32 = vadd.f32 %v7713_v34, %v7712_v27 }
 0x9bc   :  { %v6579_v28 = vadd.f32 %v7714_v32, %v7692_v45 }
 0x9be   :  { %v6582_v15 = vpack.c.bf16 %v6579_v28, %v6576_v21 }
 0x9c0   :  { %7877 = vmatmul.mubr.bf16.vlgmr.msra.gmra.mxu0 %v6582_v15 }
 0x9c1   :  { %7916 = vmatpush3.msra.mxu0 %v7405_v54 }
 0x9c2   :  { %7917 = vmatprep.subr.mxu0 %v7404_v23 }
 0x9c3   :  { %7918 = vmatpush3.msra.mxu0 %v7404_v23 }
 0x9c4   :  { %7919 = vmatprep.subr.mxu0 %v7403_v18 }
 0x9c5   :  { %7920 = vmatpush3.msra.mxu0 %v7403_v18 }
 0x9c6   :  { %7921 = vmatprep.subr.mxu0 %v7402_v49 }
 0x9c7   :  { %7922 = vmatpush3.msra.mxu0 %v7402_v49 }
 0x9c8   :  { %7923 = vmatprep.subr.mxu0 %v7401_v20 }
 0x9c9   :  { %7924 = vmatpush3.msra.mxu0 %v7401_v20 }
 0x9ca   :  { %7925 = vmatprep.subr.mxu0 %v7400_v6 }
 0x9cb   :  { %7926 = vmatpush3.msra.mxu0 %v7400_v6 }
 0x9cc   :  { %7927 = vmatprep.subr.mxu0 %v7399_v36 }
 0x9cd   :  { %7928 = vmatpush3.msra.mxu0 %v7399_v36 }
 0x9ce   :  { %7929 = vmatprep.subr.mxu0 %v7398_v14 }
 0x9cf   :  { %7930 = vmatpush3.msra.mxu0 %v7398_v14 }
 0x9d0   :  { %7931 = vmatprep.subr.mxu0 %v7397_v61 }
 0x9d1   :  { %7932 = vmatpush3.msra.mxu0 %v7397_v61 }
 0x9d2   :  { %7933 = vmatprep.subr.mxu0 %v7396_v40 }
 0x9d3   :  { %7934 = vmatpush3.msra.mxu0 %v7396_v40 }
 0x9d4   :  { %7935 = vmatprep.subr.mxu0 %v7395_v24 }
 0x9d5   :  { %7936 = vmatpush3.msra.mxu0 %v7395_v24 }
 0x9d6   :  { %7937 = vmatprep.subr.mxu0 %v7394_v58 }
 0x9d7   :  { %7938 = vmatpush3.msra.mxu0 %v7394_v58 }
 0x9d8   :  { %7939 = vmatprep.subr.mxu0 %v7393_v0 }
 0x9d9   :  { %7940 = vmatpush3.msra.mxu0 %v7393_v0 }
 0x9da   :  { %7941 = vmatprep.subr.mxu0 %v7392_v2 }
 0x9db   :  { %7942 = vmatpush3.msra.mxu0 %v7392_v2 }
 0x9dc   :  { %7943 = vmatprep.subr.mxu0 %v7391_v5 }
 0x9dd   :  { %7944 = vmatpush3.msra.mxu0 %v7391_v5 }
 0x9de   :  { %7945 = vmatprep.subr.mxu0 %v7390_v63 }
 0x9df   :  { %7946 = vmatpush3.msra.mxu0 %v7390_v63 }
 0xa80   :  { %v6682_v55 = vpop.f32.mrf.mxu0 }
 0xa81   :  { %v6689_v16 = vadd.f32 %v6682_v55, %v12604_v1  ;;  %v6816_v1 = vrot.slane %v8258_v19, %v6815_v57 }
 0xa82   :  { %v7878_v43 = vpop.f32.mrf.mxu0 }
 0xa83   :  { %v6695_v22 = vadd.f32 %v6694_v41, %v6689_v16 }
 0xa84   :  { %v6685_v30 = vpop.f32.mrf.mxu0 }
 0xa85   :  { %v6697_v4 = vmax.f32 %v6695_v22, 0.0  ;;  %v6690_v17 = vadd.f32 %v6685_v30, %v12607_v53 }
 0xa86   :  { %v7879_v56 = vpop.f32.mrf.mxu0 }
 0xa87   :  { %v6696_v46 = vadd.f32 %v6694_v41, %v6690_v17  ;;  %7912 = vmatprep.mubr.f32.mxu1 %v6697_v4 }
 0xa89   :  { %v6698_v11 = vmax.f32 %v6696_v46, 0.0 }
 0xa8b   :  { %7913 = vmatmul.mubr.f32.vlgmr.msra.gmra.mxu1 %v6698_v11 }
 0xb4b   :  { %v7914_v62 = vpop.f32.mrf.mxu1 }
 0xb4c   :  { %v6791_v9 = vadd.f32 %v7914_v62, %v6718_v51 }
 0xb4d   :  { %v6785_v33 = vpop.f32.mrf.mxu1 }
 0xb4e   :  { %v6786_v8 = vadd.f32 %v6785_v33, %v6718_v51  ;;  %v6795_v7 = vmax.f32 %v6791_v9, 0.0 }
 0xb50   :  { %v6794_v50 = vmax.f32 %v6786_v8, 0.0 }
 0xb52   :  { %7947 = vmatprep.mubr.f32.mxu0 %v6794_v50 }
 0xb53   :  { %7948 = vmatmul.mubr.f32.vlgmr.msra.gmra.mxu0 %v6795_v7 }
 0xc13   :  { %v7949_v37 = vpop.f32.mrf.mxu0 }
 0xc14   :  { %v6889_v52 = vadd.f32 %v7949_v37, %v6816_v1 }
 0xc15   :  { %v6883_v53 = vpop.f32.mrf.mxu0 }
 0xc16   :  { %6893 = vst [vmem:[%s12692_s6 + $0x8] sm:$0xff] %v6889_v52  ;;  %v6884_v42 = vadd.f32 %v6883_v53, %v6816_v1 }
 0xc18   :  { %6892 = vst [vmem:[%s12692_s6] sm:$0xff] %v6884_v42 }

</bundles_post_ra>
